<compile_context>
chip_gen: v7x
topology: tpu7x:2x2x1
jax: 0.10.0
libtpu: 0.0.40
codegen_flags: <defaults>
</compile_context>

<pallas_src>
import jax
import jax.numpy as jnp
from jax.experimental import pallas as pl
from jax.experimental.pallas import tpu as pltpu


# ----------------------------------------------------------------------------
# Fused Pallas kernel: conv_a + bn_a + relu + conv_b + bn_b + add + relu
# ----------------------------------------------------------------------------
def _basicblock_kernel(x_ref, wa_ref, sa_ref, ba_ref, wb_ref, sb_ref, bb_ref,
                       o_ref, pad_ref, patch_ref):
    """Per grid step: B_blk (H, W, C) images.

    x_ref:   (B, H, W, C)     f32 NHWC input block
    wa_ref:  (9*C, C)         bf16 conv_a weights, row = (ky*3 + kx)*C + cin
    sa_ref:  (1, C)           f32 folded BN_a scale
    ba_ref:  (1, C)           f32 folded BN_a bias
    wb_ref / sb_ref / bb_ref: same for stage B
    o_ref:   (B, H, W, C)     f32 output block
    pad_ref:   (B, H+2, W+2, C) bf16 VMEM scratch (zero-haloed activations)
    patch_ref: (B, H, W, 9*C)   bf16 VMEM scratch (im2col patch)
    """
    B, H, W, C = x_ref.shape
    M = B * H * W

    # Zero only the 1-pixel halo; the interior is fully rewritten each stage.
    # Done every step (not just program_id==0): under megacore 'parallel'
    # sharding the second core's first step does not have id 0.
    zrow = jnp.zeros((B, 1, W + 2, C), pad_ref.dtype)
    zcol = jnp.zeros((B, H + 2, 1, C), pad_ref.dtype)
    pad_ref[:, 0:1, :, :] = zrow
    pad_ref[:, H + 1:H + 2, :, :] = zrow
    pad_ref[:, :, 0:1, :] = zcol
    pad_ref[:, :, W + 1:W + 2, :] = zcol

    def im2col():
        # Fold the 9 taps into the contraction dim: build (B, H, W, 9*C) once
        # (bf16 copies), then a single (B*H*W, 9*C) x (9*C, C) MXU dot.
        for ky in range(3):
            for kx in range(3):
                k = ky * 3 + kx
                patch_ref[:, :, :, k * C:(k + 1) * C] = \
                    pad_ref[:, ky:ky + H, kx:kx + W, :]
        return patch_ref[...].reshape(M, 9 * C)

    # ---- stage A: conv3x3 + BN + ReLU (result stays in VMEM) ---------------
    pad_ref[:, 1:H + 1, 1:W + 1, :] = x_ref[...].astype(pad_ref.dtype)
    acc = jnp.dot(im2col(), wa_ref[...], preferred_element_type=jnp.float32)
    h = jnp.maximum(acc * sa_ref[...] + ba_ref[...], 0.0)
    pad_ref[:, 1:H + 1, 1:W + 1, :] = h.reshape(B, H, W, C).astype(pad_ref.dtype)

    # ---- stage B: conv3x3 + BN + residual add + ReLU ------------------------
    acc = jnp.dot(im2col(), wb_ref[...], preferred_element_type=jnp.float32)
    y = acc * sb_ref[...] + bb_ref[...]
    o_ref[...] = jnp.maximum(y.reshape(B, H, W, C) + x_ref[...], 0.0)


# ----------------------------------------------------------------------------
# Parameter folding helpers
# ----------------------------------------------------------------------------
def _fold_bn(gamma, beta, mean, var, eps=1e-5):
    scale = gamma / jnp.sqrt(var + eps)
    bias = beta - mean * scale
    return scale[None, :].astype(jnp.float32), bias[None, :].astype(jnp.float32)


def _conv_w_to_mat(w_oihw):
    # (Cout, Cin, 3, 3) -> (9*Cin, Cout), row index = (ky*3 + kx)*Cin + cin
    cout, cin = w_oihw.shape[0], w_oihw.shape[1]
    return jnp.transpose(w_oihw, (2, 3, 1, 0)).reshape(9 * cin, cout)


# ----------------------------------------------------------------------------
# Per-step VMEM sizing / batch-block selection
# ----------------------------------------------------------------------------
def _step_vmem_bytes(b, H, W, C):
    x_blk = b * H * W * C * 4                    # f32 input block
    o_blk = b * H * W * C * 4                    # f32 output block
    pad = b * (H + 2) * (W + 2) * C * 2          # bf16 halo scratch
    patch = b * H * W * 9 * C * 2                # bf16 im2col scratch
    wts = 2 * (9 * C * C) * 2 + 4 * C * 4        # bf16 weights + f32 BN params
    tmps = 3 * b * H * W * C * 4                 # f32 matmul / epilogue temps
    # in/out blocks and constants are double-buffered by the pipeline.
    return 2 * (x_blk + o_blk + wts) + pad + patch + tmps


def _pick_batch_block(N, H, W, C, cap_bytes=36 * 1024 * 1024, max_blk=8):
    best = 1
    for b in range(1, min(N, max_blk) + 1):
        if N % b == 0 and _step_vmem_bytes(b, H, W, C) <= cap_bytes:
            best = b
    return best


# ----------------------------------------------------------------------------
# ResNetBasicblock wrapper (stride=1, downsample=None)
# ----------------------------------------------------------------------------
@jax.jit
def resnet_basicblock_forward(x_nchw, params):
    # NCHW (PyTorch convention) -> NHWC (channels on the lane axis).
    x = jnp.transpose(x_nchw, (0, 2, 3, 1)).astype(jnp.float32)
    N, H, W, C = x.shape

    wa = _conv_w_to_mat(params["conv_a_w"]).astype(jnp.bfloat16)
    wb = _conv_w_to_mat(params["conv_b_w"]).astype(jnp.bfloat16)
    sa, ba = _fold_bn(params["bn_a_gamma"], params["bn_a_beta"],
                      params["bn_a_mean"], params["bn_a_var"])
    sb, bb = _fold_bn(params["bn_b_gamma"], params["bn_b_beta"],
                      params["bn_b_mean"], params["bn_b_var"])

    b_blk = _pick_batch_block(N, H, W, C)
    vmem_limit = int(min(48 * 1024 * 1024,
                         max(32 * 1024 * 1024,
                             1.3 * _step_vmem_bytes(b_blk, H, W, C))))

    const = lambda n: (0, 0)                      # weights/BN stay VMEM-resident
    flops = 2 * (2 * 9 * N * H * W * C * C)       # two conv stages, 2 flops/MAC
    bytes_accessed = (2 * x.size * 4              # x in + y out (f32)
                      + (wa.size + wb.size) * 2   # bf16 weights
                      + 4 * C * 4)                # folded BN params

    out = pl.pallas_call(
        _basicblock_kernel,
        out_shape=jax.ShapeDtypeStruct((N, H, W, C), jnp.float32),
        grid=(N // b_blk,),
        in_specs=[
            pl.BlockSpec((b_blk, H, W, C), lambda n: (n, 0, 0, 0)),   # x
            pl.BlockSpec((9 * C, C), const),                          # conv_a W
            pl.BlockSpec((1, C), const),                              # bn_a scale
            pl.BlockSpec((1, C), const),                              # bn_a bias
            pl.BlockSpec((9 * C, C), const),                          # conv_b W
            pl.BlockSpec((1, C), const),                              # bn_b scale
            pl.BlockSpec((1, C), const),                              # bn_b bias
        ],
        out_specs=pl.BlockSpec((b_blk, H, W, C), lambda n: (n, 0, 0, 0)),
        scratch_shapes=[
            pltpu.VMEM((b_blk, H + 2, W + 2, C), jnp.bfloat16),  # halo-padded act
            pltpu.VMEM((b_blk, H, W, 9 * C), jnp.bfloat16),      # im2col patch
        ],
        compiler_params=pltpu.CompilerParams(
            dimension_semantics=("parallel",),            # v7x: 2nd TC picks up steps
            vmem_limit_bytes=vmem_limit,
        ),
        cost_estimate=pl.CostEstimate(flops=flops, transcendentals=0,
                                      bytes_accessed=bytes_accessed),
    )(x, wa, sa, ba, wb, sb, bb)

    # Back to NCHW to match the PyTorch output convention.
    return jnp.transpose(out, (0, 3, 1, 2))


# ----------------------------------------------------------------------------
# Parameter init (deterministic given a key)
# ----------------------------------------------------------------------------
def init_params(key, inplanes, planes):
    k = jax.random.split(key, 8)
    return {
        "conv_a_w": jax.random.normal(k[0], (planes, inplanes, 3, 3), jnp.float32) * 0.1,
        "bn_a_gamma": jax.random.uniform(k[1], (planes,), jnp.float32, 0.5, 1.5),
        "bn_a_beta": jax.random.normal(k[2], (planes,), jnp.float32) * 0.1,
        "bn_a_mean": jax.random.normal(k[3], (planes,), jnp.float32) * 0.1,
        "bn_a_var": jax.random.uniform(k[4], (planes,), jnp.float32, 0.5, 1.5),
        "conv_b_w": jax.random.normal(k[5], (planes, planes, 3, 3), jnp.float32) * 0.1,
        "bn_b_gamma": jax.random.uniform(k[6], (planes,), jnp.float32, 0.5, 1.5),
        "bn_b_beta": jax.random.normal(k[7], (planes,), jnp.float32) * 0.1,
        "bn_b_mean": jnp.zeros((planes,), jnp.float32),
        "bn_b_var": jnp.ones((planes,), jnp.float32),
    }


# ----------------------------------------------------------------------------
# Pure-JAX reference (for verification)
# ----------------------------------------------------------------------------
def _ref_conv3x3(x_nhwc, w_oihw):
    w_hwio = jnp.transpose(w_oihw, (2, 3, 1, 0))
    return jax.lax.conv_general_dilated(
        x_nhwc, w_hwio, window_strides=(1, 1), padding="SAME",
        dimension_numbers=("NHWC", "HWIO", "NHWC"))


def reference_forward(x_nchw, params):
    x = jnp.transpose(x_nchw, (0, 2, 3, 1)).astype(jnp.float32)
    sa, ba = _fold_bn(params["bn_a_gamma"], params["bn_a_beta"],
                      params["bn_a_mean"], params["bn_a_var"])
    sb, bb = _fold_bn(params["bn_b_gamma"], params["bn_b_beta"],
                      params["bn_b_mean"], params["bn_b_var"])
    h = jnp.maximum(_ref_conv3x3(x, params["conv_a_w"]) * sa + ba, 0.0)
    y = _ref_conv3x3(h, params["conv_b_w"]) * sb + bb
    y = jnp.maximum(y + x, 0.0)
    return jnp.transpose(y, (0, 3, 1, 2))


if __name__ == "__main__":
    key = jax.random.PRNGKey(0)
    k_x, k_p = jax.random.split(key)

    N, C, H, W = 2, 4, 16, 16           # inplanes = planes = 4, stride = 1
    x = jax.random.normal(k_x, (N, C, H, W), jnp.float32)
    params = init_params(k_p, inplanes=C, planes=C)

    out = jax.block_until_ready(resnet_basicblock_forward(x, params))
    ref = reference_forward(x, params)

    assert out.shape == (N, C, H, W), out.shape
    # bf16 MXU operands -> compare against the f32 reference at bf16 tolerance.
    max_err = float(jnp.max(jnp.abs(out - ref)))
    assert jnp.allclose(out, ref, atol=2e-2, rtol=2e-2), (
        "mismatch vs reference, max abs err = %g" % max_err)

    print("KERNEL_OK")
</pallas_src>

<mosaic_0001>
module attributes {stable_mosaic.version = 11 : i64} {
  func.func @_basicblock_kernel(%arg0: i32, %arg1: memref<2x16x16x4xf32, #tpu.memory_space<vmem>>, %arg2: memref<36x4xbf16, #tpu.memory_space<vmem>>, %arg3: memref<1x4xf32, #tpu.memory_space<vmem>>, %arg4: memref<1x4xf32, #tpu.memory_space<vmem>>, %arg5: memref<36x4xbf16, #tpu.memory_space<vmem>>, %arg6: memref<1x4xf32, #tpu.memory_space<vmem>>, %arg7: memref<1x4xf32, #tpu.memory_space<vmem>>, %arg8: memref<2x16x16x4xf32, #tpu.memory_space<vmem>>, %arg9: memref<2x18x18x4xbf16, #tpu.memory_space<vmem>>, %arg10: memref<2x16x16x36xbf16, #tpu.memory_space<vmem>>) attributes {dimension_semantics = [#tpu.dimension_semantics<parallel>], iteration_bounds = array<i64: 1>, scalar_prefetch = 0 : i64, scratch_operands = 2 : i64, tpu.core_type = #tpu.core_type<tc>, window_params = [{transform_indices = @transform_0, window_bounds = array<i64: 2, 16, 16, 4>}, {pipeline_mode = #tpu.pipeline_mode<synchronous>, transform_indices = @transform_1, window_bounds = array<i64: 36, 4>}, {pipeline_mode = #tpu.pipeline_mode<synchronous>, transform_indices = @transform_2, window_bounds = array<i64: 1, 4>}, {pipeline_mode = #tpu.pipeline_mode<synchronous>, transform_indices = @transform_3, window_bounds = array<i64: 1, 4>}, {pipeline_mode = #tpu.pipeline_mode<synchronous>, transform_indices = @transform_4, window_bounds = array<i64: 36, 4>}, {pipeline_mode = #tpu.pipeline_mode<synchronous>, transform_indices = @transform_5, window_bounds = array<i64: 1, 4>}, {pipeline_mode = #tpu.pipeline_mode<synchronous>, transform_indices = @transform_6, window_bounds = array<i64: 1, 4>}, {transform_indices = @transform_7, window_bounds = array<i64: 2, 16, 16, 4>}]} {
    %cst = arith.constant 0.000000e+00 : bf16
    %0 = vector.broadcast %cst : bf16 to vector<2x1x18x4xbf16>
    %cst_0 = arith.constant 0.000000e+00 : bf16
    %1 = vector.broadcast %cst_0 : bf16 to vector<2x18x1x4xbf16>
    %c0 = arith.constant 0 : index
    %c0_1 = arith.constant 0 : index
    %c0_2 = arith.constant 0 : index
    %c0_3 = arith.constant 0 : index
    %2 = vector.load %arg9[%c0, %c0_1, %c0_2, %c0_3] : memref<2x18x18x4xbf16, #tpu.memory_space<vmem>>, vector<2x1x18x4xbf16>
    tpu.vector_store %arg9[%c0, %c0_1, %c0_2, %c0_3], %0 {strides = array<i32>} : memref<2x18x18x4xbf16, #tpu.memory_space<vmem>>, vector<2x1x18x4xbf16>,
    %c0_4 = arith.constant 0 : index
    %c17 = arith.constant 17 : index
    %c0_5 = arith.constant 0 : index
    %c0_6 = arith.constant 0 : index
    %3 = vector.load %arg9[%c0_4, %c17, %c0_5, %c0_6] : memref<2x18x18x4xbf16, #tpu.memory_space<vmem>>, vector<2x1x18x4xbf16>
    tpu.vector_store %arg9[%c0_4, %c17, %c0_5, %c0_6], %0 {strides = array<i32>} : memref<2x18x18x4xbf16, #tpu.memory_space<vmem>>, vector<2x1x18x4xbf16>,
    %c0_7 = arith.constant 0 : index
    %c0_8 = arith.constant 0 : index
    %c0_9 = arith.constant 0 : index
    %c0_10 = arith.constant 0 : index
    %4 = vector.load %arg9[%c0_7, %c0_8, %c0_9, %c0_10] : memref<2x18x18x4xbf16, #tpu.memory_space<vmem>>, vector<2x18x1x4xbf16>
    tpu.vector_store %arg9[%c0_7, %c0_8, %c0_9, %c0_10], %1 {strides = array<i32>} : memref<2x18x18x4xbf16, #tpu.memory_space<vmem>>, vector<2x18x1x4xbf16>,
    %c0_11 = arith.constant 0 : index
    %c0_12 = arith.constant 0 : index
    %c17_13 = arith.constant 17 : index
    %c0_14 = arith.constant 0 : index
    %5 = vector.load %arg9[%c0_11, %c0_12, %c17_13, %c0_14] : memref<2x18x18x4xbf16, #tpu.memory_space<vmem>>, vector<2x18x1x4xbf16>
    tpu.vector_store %arg9[%c0_11, %c0_12, %c17_13, %c0_14], %1 {strides = array<i32>} : memref<2x18x18x4xbf16, #tpu.memory_space<vmem>>, vector<2x18x1x4xbf16>,
    %c0_15 = arith.constant 0 : index
    %c0_16 = arith.constant 0 : index
    %c0_17 = arith.constant 0 : index
    %c0_18 = arith.constant 0 : index
    %6 = vector.load %arg1[%c0_15, %c0_16, %c0_17, %c0_18] : memref<2x16x16x4xf32, #tpu.memory_space<vmem>>, vector<2x16x16x4xf32>
    %7 = arith.truncf %6 : vector<2x16x16x4xf32> to vector<2x16x16x4xbf16>
    %c0_19 = arith.constant 0 : index
    %c1 = arith.constant 1 : index
    %c1_20 = arith.constant 1 : index
    %c0_21 = arith.constant 0 : index
    %8 = vector.load %arg9[%c0_19, %c1, %c1_20, %c0_21] : memref<2x18x18x4xbf16, #tpu.memory_space<vmem>>, vector<2x16x16x4xbf16>
    tpu.vector_store %arg9[%c0_19, %c1, %c1_20, %c0_21], %7 {strides = array<i32>} : memref<2x18x18x4xbf16, #tpu.memory_space<vmem>>, vector<2x16x16x4xbf16>,
    %c0_22 = arith.constant 0 : index
    %c0_23 = arith.constant 0 : index
    %c0_24 = arith.constant 0 : index
    %c0_25 = arith.constant 0 : index
    %9 = vector.load %arg9[%c0_22, %c0_23, %c0_24, %c0_25] : memref<2x18x18x4xbf16, #tpu.memory_space<vmem>>, vector<2x16x16x4xbf16>
    %c0_26 = arith.constant 0 : index
    %c0_27 = arith.constant 0 : index
    %c0_28 = arith.constant 0 : index
    %c0_29 = arith.constant 0 : index
    %10 = vector.load %arg10[%c0_26, %c0_27, %c0_28, %c0_29] : memref<2x16x16x36xbf16, #tpu.memory_space<vmem>>, vector<2x16x16x4xbf16>
    tpu.vector_store %arg10[%c0_26, %c0_27, %c0_28, %c0_29], %9 {strides = array<i32>} : memref<2x16x16x36xbf16, #tpu.memory_space<vmem>>, vector<2x16x16x4xbf16>,
    %c0_30 = arith.constant 0 : index
    %c0_31 = arith.constant 0 : index
    %c1_32 = arith.constant 1 : index
    %c0_33 = arith.constant 0 : index
    %11 = vector.load %arg9[%c0_30, %c0_31, %c1_32, %c0_33] : memref<2x18x18x4xbf16, #tpu.memory_space<vmem>>, vector<2x16x16x4xbf16>
    %c0_34 = arith.constant 0 : index
    %c0_35 = arith.constant 0 : index
    %c0_36 = arith.constant 0 : index
    %c4 = arith.constant 4 : index
    %12 = vector.load %arg10[%c0_34, %c0_35, %c0_36, %c4] : memref<2x16x16x36xbf16, #tpu.memory_space<vmem>>, vector<2x16x16x4xbf16>
    tpu.vector_store %arg10[%c0_34, %c0_35, %c0_36, %c4], %11 {strides = array<i32>} : memref<2x16x16x36xbf16, #tpu.memory_space<vmem>>, vector<2x16x16x4xbf16>,
    %c0_37 = arith.constant 0 : index
    %c0_38 = arith.constant 0 : index
    %c2 = arith.constant 2 : index
    %c0_39 = arith.constant 0 : index
    %13 = vector.load %arg9[%c0_37, %c0_38, %c2, %c0_39] : memref<2x18x18x4xbf16, #tpu.memory_space<vmem>>, vector<2x16x16x4xbf16>
    %c0_40 = arith.constant 0 : index
    %c0_41 = arith.constant 0 : index
    %c0_42 = arith.constant 0 : index
    %c8 = arith.constant 8 : index
    %14 = vector.load %arg10[%c0_40, %c0_41, %c0_42, %c8] : memref<2x16x16x36xbf16, #tpu.memory_space<vmem>>, vector<2x16x16x4xbf16>
    tpu.vector_store %arg10[%c0_40, %c0_41, %c0_42, %c8], %13 {strides = array<i32>} : memref<2x16x16x36xbf16, #tpu.memory_space<vmem>>, vector<2x16x16x4xbf16>,
    %c0_43 = arith.constant 0 : index
    %c1_44 = arith.constant 1 : index
    %c0_45 = arith.constant 0 : index
    %c0_46 = arith.constant 0 : index
    %15 = vector.load %arg9[%c0_43, %c1_44, %c0_45, %c0_46] : memref<2x18x18x4xbf16, #tpu.memory_space<vmem>>, vector<2x16x16x4xbf16>
    %c0_47 = arith.constant 0 : index
    %c0_48 = arith.constant 0 : index
    %c0_49 = arith.constant 0 : index
    %c12 = arith.constant 12 : index
    %16 = vector.load %arg10[%c0_47, %c0_48, %c0_49, %c12] : memref<2x16x16x36xbf16, #tpu.memory_space<vmem>>, vector<2x16x16x4xbf16>
    tpu.vector_store %arg10[%c0_47, %c0_48, %c0_49, %c12], %15 {strides = array<i32>} : memref<2x16x16x36xbf16, #tpu.memory_space<vmem>>, vector<2x16x16x4xbf16>,
    %c0_50 = arith.constant 0 : index
    %c1_51 = arith.constant 1 : index
    %c1_52 = arith.constant 1 : index
    %c0_53 = arith.constant 0 : index
    %17 = vector.load %arg9[%c0_50, %c1_51, %c1_52, %c0_53] : memref<2x18x18x4xbf16, #tpu.memory_space<vmem>>, vector<2x16x16x4xbf16>
    %c0_54 = arith.constant 0 : index
    %c0_55 = arith.constant 0 : index
    %c0_56 = arith.constant 0 : index
    %c16 = arith.constant 16 : index
    %18 = vector.load %arg10[%c0_54, %c0_55, %c0_56, %c16] : memref<2x16x16x36xbf16, #tpu.memory_space<vmem>>, vector<2x16x16x4xbf16>
    tpu.vector_store %arg10[%c0_54, %c0_55, %c0_56, %c16], %17 {strides = array<i32>} : memref<2x16x16x36xbf16, #tpu.memory_space<vmem>>, vector<2x16x16x4xbf16>,
    %c0_57 = arith.constant 0 : index
    %c1_58 = arith.constant 1 : index
    %c2_59 = arith.constant 2 : index
    %c0_60 = arith.constant 0 : index
    %19 = vector.load %arg9[%c0_57, %c1_58, %c2_59, %c0_60] : memref<2x18x18x4xbf16, #tpu.memory_space<vmem>>, vector<2x16x16x4xbf16>
    %c0_61 = arith.constant 0 : index
    %c0_62 = arith.constant 0 : index
    %c0_63 = arith.constant 0 : index
    %c20 = arith.constant 20 : index
    %20 = vector.load %arg10[%c0_61, %c0_62, %c0_63, %c20] : memref<2x16x16x36xbf16, #tpu.memory_space<vmem>>, vector<2x16x16x4xbf16>
    tpu.vector_store %arg10[%c0_61, %c0_62, %c0_63, %c20], %19 {strides = array<i32>} : memref<2x16x16x36xbf16, #tpu.memory_space<vmem>>, vector<2x16x16x4xbf16>,
    %c0_64 = arith.constant 0 : index
    %c2_65 = arith.constant 2 : index
    %c0_66 = arith.constant 0 : index
    %c0_67 = arith.constant 0 : index
    %21 = vector.load %arg9[%c0_64, %c2_65, %c0_66, %c0_67] : memref<2x18x18x4xbf16, #tpu.memory_space<vmem>>, vector<2x16x16x4xbf16>
    %c0_68 = arith.constant 0 : index
    %c0_69 = arith.constant 0 : index
    %c0_70 = arith.constant 0 : index
    %c24 = arith.constant 24 : index
    %22 = vector.load %arg10[%c0_68, %c0_69, %c0_70, %c24] : memref<2x16x16x36xbf16, #tpu.memory_space<vmem>>, vector<2x16x16x4xbf16>
    tpu.vector_store %arg10[%c0_68, %c0_69, %c0_70, %c24], %21 {strides = array<i32>} : memref<2x16x16x36xbf16, #tpu.memory_space<vmem>>, vector<2x16x16x4xbf16>,
    %c0_71 = arith.constant 0 : index
    %c2_72 = arith.constant 2 : index
    %c1_73 = arith.constant 1 : index
    %c0_74 = arith.constant 0 : index
    %23 = vector.load %arg9[%c0_71, %c2_72, %c1_73, %c0_74] : memref<2x18x18x4xbf16, #tpu.memory_space<vmem>>, vector<2x16x16x4xbf16>
    %c0_75 = arith.constant 0 : index
    %c0_76 = arith.constant 0 : index
    %c0_77 = arith.constant 0 : index
    %c28 = arith.constant 28 : index
    %24 = vector.load %arg10[%c0_75, %c0_76, %c0_77, %c28] : memref<2x16x16x36xbf16, #tpu.memory_space<vmem>>, vector<2x16x16x4xbf16>
    tpu.vector_store %arg10[%c0_75, %c0_76, %c0_77, %c28], %23 {strides = array<i32>} : memref<2x16x16x36xbf16, #tpu.memory_space<vmem>>, vector<2x16x16x4xbf16>,
    %c0_78 = arith.constant 0 : index
    %c2_79 = arith.constant 2 : index
    %c2_80 = arith.constant 2 : index
    %c0_81 = arith.constant 0 : index
    %25 = vector.load %arg9[%c0_78, %c2_79, %c2_80, %c0_81] : memref<2x18x18x4xbf16, #tpu.memory_space<vmem>>, vector<2x16x16x4xbf16>
    %c0_82 = arith.constant 0 : index
    %c0_83 = arith.constant 0 : index
    %c0_84 = arith.constant 0 : index
    %c32 = arith.constant 32 : index
    %26 = vector.load %arg10[%c0_82, %c0_83, %c0_84, %c32] : memref<2x16x16x36xbf16, #tpu.memory_space<vmem>>, vector<2x16x16x4xbf16>
    tpu.vector_store %arg10[%c0_82, %c0_83, %c0_84, %c32], %25 {strides = array<i32>} : memref<2x16x16x36xbf16, #tpu.memory_space<vmem>>, vector<2x16x16x4xbf16>,
    %c0_85 = arith.constant 0 : index
    %c0_86 = arith.constant 0 : index
    %c0_87 = arith.constant 0 : index
    %c0_88 = arith.constant 0 : index
    %27 = vector.load %arg10[%c0_85, %c0_86, %c0_87, %c0_88] : memref<2x16x16x36xbf16, #tpu.memory_space<vmem>>, vector<2x16x16x36xbf16>
    %28 = vector.shape_cast %27 : vector<2x16x16x36xbf16> to vector<512x36xbf16>
    %c0_89 = arith.constant 0 : index
    %c0_90 = arith.constant 0 : index
    %29 = vector.load %arg2[%c0_89, %c0_90] : memref<36x4xbf16, #tpu.memory_space<vmem>>, vector<36x4xbf16>
    %cst_91 = arith.constant dense<0.000000e+00> : vector<512x4xf32>
    %30 = tpu.matmul %28, %29, %cst_91 {dimension_numbers = #tpu.dot_dimension_numbers<[1], [0], [0], [1], [0, 0, 1, 1], [], []>} : vector<512x36xbf16>, vector<36x4xbf16>, vector<512x4xf32> -> vector<512x4xf32>
    %c0_92 = arith.constant 0 : index
    %c0_93 = arith.constant 0 : index
    %31 = vector.load %arg3[%c0_92, %c0_93] : memref<1x4xf32, #tpu.memory_space<vmem>>, vector<1x4xf32>
    %32 = vector.broadcast %31 : vector<1x4xf32> to vector<512x4xf32>
    %33 = arith.mulf %30, %32 : vector<512x4xf32>
    %c0_94 = arith.constant 0 : index
    %c0_95 = arith.constant 0 : index
    %34 = vector.load %arg4[%c0_94, %c0_95] : memref<1x4xf32, #tpu.memory_space<vmem>>, vector<1x4xf32>
    %35 = vector.broadcast %34 : vector<1x4xf32> to vector<512x4xf32>
    %36 = arith.addf %33, %35 : vector<512x4xf32>
    %cst_96 = arith.constant 0.000000e+00 : f32
    %37 = vector.broadcast %cst_96 : f32 to vector<512x4xf32>
    %38 = arith.maximumf %36, %37 : vector<512x4xf32>
    %39 = vector.shape_cast %38 : vector<512x4xf32> to vector<2x16x16x4xf32>
    %40 = arith.truncf %39 : vector<2x16x16x4xf32> to vector<2x16x16x4xbf16>
    %c0_97 = arith.constant 0 : index
    %c1_98 = arith.constant 1 : index
    %c1_99 = arith.constant 1 : index
    %c0_100 = arith.constant 0 : index
    %41 = vector.load %arg9[%c0_97, %c1_98, %c1_99, %c0_100] : memref<2x18x18x4xbf16, #tpu.memory_space<vmem>>, vector<2x16x16x4xbf16>
    tpu.vector_store %arg9[%c0_97, %c1_98, %c1_99, %c0_100], %40 {strides = array<i32>} : memref<2x18x18x4xbf16, #tpu.memory_space<vmem>>, vector<2x16x16x4xbf16>,
    %c0_101 = arith.constant 0 : index
    %c0_102 = arith.constant 0 : index
    %c0_103 = arith.constant 0 : index
    %c0_104 = arith.constant 0 : index
    %42 = vector.load %arg9[%c0_101, %c0_102, %c0_103, %c0_104] : memref<2x18x18x4xbf16, #tpu.memory_space<vmem>>, vector<2x16x16x4xbf16>
    %c0_105 = arith.constant 0 : index
    %c0_106 = arith.constant 0 : index
    %c0_107 = arith.constant 0 : index
    %c0_108 = arith.constant 0 : index
    %43 = vector.load %arg10[%c0_105, %c0_106, %c0_107, %c0_108] : memref<2x16x16x36xbf16, #tpu.memory_space<vmem>>, vector<2x16x16x4xbf16>
    tpu.vector_store %arg10[%c0_105, %c0_106, %c0_107, %c0_108], %42 {strides = array<i32>} : memref<2x16x16x36xbf16, #tpu.memory_space<vmem>>, vector<2x16x16x4xbf16>,
    %c0_109 = arith.constant 0 : index
    %c0_110 = arith.constant 0 : index
    %c1_111 = arith.constant 1 : index
    %c0_112 = arith.constant 0 : index
    %44 = vector.load %arg9[%c0_109, %c0_110, %c1_111, %c0_112] : memref<2x18x18x4xbf16, #tpu.memory_space<vmem>>, vector<2x16x16x4xbf16>
    %c0_113 = arith.constant 0 : index
    %c0_114 = arith.constant 0 : index
    %c0_115 = arith.constant 0 : index
    %c4_116 = arith.constant 4 : index
    %45 = vector.load %arg10[%c0_113, %c0_114, %c0_115, %c4_116] : memref<2x16x16x36xbf16, #tpu.memory_space<vmem>>, vector<2x16x16x4xbf16>
    tpu.vector_store %arg10[%c0_113, %c0_114, %c0_115, %c4_116], %44 {strides = array<i32>} : memref<2x16x16x36xbf16, #tpu.memory_space<vmem>>, vector<2x16x16x4xbf16>,
    %c0_117 = arith.constant 0 : index
    %c0_118 = arith.constant 0 : index
    %c2_119 = arith.constant 2 : index
    %c0_120 = arith.constant 0 : index
    %46 = vector.load %arg9[%c0_117, %c0_118, %c2_119, %c0_120] : memref<2x18x18x4xbf16, #tpu.memory_space<vmem>>, vector<2x16x16x4xbf16>
    %c0_121 = arith.constant 0 : index
    %c0_122 = arith.constant 0 : index
    %c0_123 = arith.constant 0 : index
    %c8_124 = arith.constant 8 : index
    %47 = vector.load %arg10[%c0_121, %c0_122, %c0_123, %c8_124] : memref<2x16x16x36xbf16, #tpu.memory_space<vmem>>, vector<2x16x16x4xbf16>
    tpu.vector_store %arg10[%c0_121, %c0_122, %c0_123, %c8_124], %46 {strides = array<i32>} : memref<2x16x16x36xbf16, #tpu.memory_space<vmem>>, vector<2x16x16x4xbf16>,
    %c0_125 = arith.constant 0 : index
    %c1_126 = arith.constant 1 : index
    %c0_127 = arith.constant 0 : index
    %c0_128 = arith.constant 0 : index
    %48 = vector.load %arg9[%c0_125, %c1_126, %c0_127, %c0_128] : memref<2x18x18x4xbf16, #tpu.memory_space<vmem>>, vector<2x16x16x4xbf16>
    %c0_129 = arith.constant 0 : index
    %c0_130 = arith.constant 0 : index
    %c0_131 = arith.constant 0 : index
    %c12_132 = arith.constant 12 : index
    %49 = vector.load %arg10[%c0_129, %c0_130, %c0_131, %c12_132] : memref<2x16x16x36xbf16, #tpu.memory_space<vmem>>, vector<2x16x16x4xbf16>
    tpu.vector_store %arg10[%c0_129, %c0_130, %c0_131, %c12_132], %48 {strides = array<i32>} : memref<2x16x16x36xbf16, #tpu.memory_space<vmem>>, vector<2x16x16x4xbf16>,
    %c0_133 = arith.constant 0 : index
    %c1_134 = arith.constant 1 : index
    %c1_135 = arith.constant 1 : index
    %c0_136 = arith.constant 0 : index
    %50 = vector.load %arg9[%c0_133, %c1_134, %c1_135, %c0_136] : memref<2x18x18x4xbf16, #tpu.memory_space<vmem>>, vector<2x16x16x4xbf16>
    %c0_137 = arith.constant 0 : index
    %c0_138 = arith.constant 0 : index
    %c0_139 = arith.constant 0 : index
    %c16_140 = arith.constant 16 : index
    %51 = vector.load %arg10[%c0_137, %c0_138, %c0_139, %c16_140] : memref<2x16x16x36xbf16, #tpu.memory_space<vmem>>, vector<2x16x16x4xbf16>
    tpu.vector_store %arg10[%c0_137, %c0_138, %c0_139, %c16_140], %50 {strides = array<i32>} : memref<2x16x16x36xbf16, #tpu.memory_space<vmem>>, vector<2x16x16x4xbf16>,
    %c0_141 = arith.constant 0 : index
    %c1_142 = arith.constant 1 : index
    %c2_143 = arith.constant 2 : index
    %c0_144 = arith.constant 0 : index
    %52 = vector.load %arg9[%c0_141, %c1_142, %c2_143, %c0_144] : memref<2x18x18x4xbf16, #tpu.memory_space<vmem>>, vector<2x16x16x4xbf16>
    %c0_145 = arith.constant 0 : index
    %c0_146 = arith.constant 0 : index
    %c0_147 = arith.constant 0 : index
    %c20_148 = arith.constant 20 : index
    %53 = vector.load %arg10[%c0_145, %c0_146, %c0_147, %c20_148] : memref<2x16x16x36xbf16, #tpu.memory_space<vmem>>, vector<2x16x16x4xbf16>
    tpu.vector_store %arg10[%c0_145, %c0_146, %c0_147, %c20_148], %52 {strides = array<i32>} : memref<2x16x16x36xbf16, #tpu.memory_space<vmem>>, vector<2x16x16x4xbf16>,
    %c0_149 = arith.constant 0 : index
    %c2_150 = arith.constant 2 : index
    %c0_151 = arith.constant 0 : index
    %c0_152 = arith.constant 0 : index
    %54 = vector.load %arg9[%c0_149, %c2_150, %c0_151, %c0_152] : memref<2x18x18x4xbf16, #tpu.memory_space<vmem>>, vector<2x16x16x4xbf16>
    %c0_153 = arith.constant 0 : index
    %c0_154 = arith.constant 0 : index
    %c0_155 = arith.constant 0 : index
    %c24_156 = arith.constant 24 : index
    %55 = vector.load %arg10[%c0_153, %c0_154, %c0_155, %c24_156] : memref<2x16x16x36xbf16, #tpu.memory_space<vmem>>, vector<2x16x16x4xbf16>
    tpu.vector_store %arg10[%c0_153, %c0_154, %c0_155, %c24_156], %54 {strides = array<i32>} : memref<2x16x16x36xbf16, #tpu.memory_space<vmem>>, vector<2x16x16x4xbf16>,
    %c0_157 = arith.constant 0 : index
    %c2_158 = arith.constant 2 : index
    %c1_159 = arith.constant 1 : index
    %c0_160 = arith.constant 0 : index
    %56 = vector.load %arg9[%c0_157, %c2_158, %c1_159, %c0_160] : memref<2x18x18x4xbf16, #tpu.memory_space<vmem>>, vector<2x16x16x4xbf16>
    %c0_161 = arith.constant 0 : index
    %c0_162 = arith.constant 0 : index
    %c0_163 = arith.constant 0 : index
    %c28_164 = arith.constant 28 : index
    %57 = vector.load %arg10[%c0_161, %c0_162, %c0_163, %c28_164] : memref<2x16x16x36xbf16, #tpu.memory_space<vmem>>, vector<2x16x16x4xbf16>
    tpu.vector_store %arg10[%c0_161, %c0_162, %c0_163, %c28_164], %56 {strides = array<i32>} : memref<2x16x16x36xbf16, #tpu.memory_space<vmem>>, vector<2x16x16x4xbf16>,
    %c0_165 = arith.constant 0 : index
    %c2_166 = arith.constant 2 : index
    %c2_167 = arith.constant 2 : index
    %c0_168 = arith.constant 0 : index
    %58 = vector.load %arg9[%c0_165, %c2_166, %c2_167, %c0_168] : memref<2x18x18x4xbf16, #tpu.memory_space<vmem>>, vector<2x16x16x4xbf16>
    %c0_169 = arith.constant 0 : index
    %c0_170 = arith.constant 0 : index
    %c0_171 = arith.constant 0 : index
    %c32_172 = arith.constant 32 : index
    %59 = vector.load %arg10[%c0_169, %c0_170, %c0_171, %c32_172] : memref<2x16x16x36xbf16, #tpu.memory_space<vmem>>, vector<2x16x16x4xbf16>
    tpu.vector_store %arg10[%c0_169, %c0_170, %c0_171, %c32_172], %58 {strides = array<i32>} : memref<2x16x16x36xbf16, #tpu.memory_space<vmem>>, vector<2x16x16x4xbf16>,
    %c0_173 = arith.constant 0 : index
    %c0_174 = arith.constant 0 : index
    %c0_175 = arith.constant 0 : index
    %c0_176 = arith.constant 0 : index
    %60 = vector.load %arg10[%c0_173, %c0_174, %c0_175, %c0_176] : memref<2x16x16x36xbf16, #tpu.memory_space<vmem>>, vector<2x16x16x36xbf16>
    %61 = vector.shape_cast %60 : vector<2x16x16x36xbf16> to vector<512x36xbf16>
    %c0_177 = arith.constant 0 : index
    %c0_178 = arith.constant 0 : index
    %62 = vector.load %arg5[%c0_177, %c0_178] : memref<36x4xbf16, #tpu.memory_space<vmem>>, vector<36x4xbf16>
    %cst_179 = arith.constant dense<0.000000e+00> : vector<512x4xf32>
    %63 = tpu.matmul %61, %62, %cst_179 {dimension_numbers = #tpu.dot_dimension_numbers<[1], [0], [0], [1], [0, 0, 1, 1], [], []>} : vector<512x36xbf16>, vector<36x4xbf16>, vector<512x4xf32> -> vector<512x4xf32>
    %c0_180 = arith.constant 0 : index
    %c0_181 = arith.constant 0 : index
    %64 = vector.load %arg6[%c0_180, %c0_181] : memref<1x4xf32, #tpu.memory_space<vmem>>, vector<1x4xf32>
    %65 = vector.broadcast %64 : vector<1x4xf32> to vector<512x4xf32>
    %66 = arith.mulf %63, %65 : vector<512x4xf32>
    %c0_182 = arith.constant 0 : index
    %c0_183 = arith.constant 0 : index
    %67 = vector.load %arg7[%c0_182, %c0_183] : memref<1x4xf32, #tpu.memory_space<vmem>>, vector<1x4xf32>
    %68 = vector.broadcast %67 : vector<1x4xf32> to vector<512x4xf32>
    %69 = arith.addf %66, %68 : vector<512x4xf32>
    %70 = vector.shape_cast %69 : vector<512x4xf32> to vector<2x16x16x4xf32>
    %c0_184 = arith.constant 0 : index
    %c0_185 = arith.constant 0 : index
    %c0_186 = arith.constant 0 : index
    %c0_187 = arith.constant 0 : index
    %71 = vector.load %arg1[%c0_184, %c0_185, %c0_186, %c0_187] : memref<2x16x16x4xf32, #tpu.memory_space<vmem>>, vector<2x16x16x4xf32>
    %72 = arith.addf %70, %71 : vector<2x16x16x4xf32>
    %cst_188 = arith.constant 0.000000e+00 : f32
    %73 = vector.broadcast %cst_188 : f32 to vector<2x16x16x4xf32>
    %74 = arith.maximumf %72, %73 : vector<2x16x16x4xf32>
    %c0_189 = arith.constant 0 : index
    %c0_190 = arith.constant 0 : index
    %c0_191 = arith.constant 0 : index
    %c0_192 = arith.constant 0 : index
    %75 = vector.load %arg8[%c0_189, %c0_190, %c0_191, %c0_192] : memref<2x16x16x4xf32, #tpu.memory_space<vmem>>, vector<2x16x16x4xf32>
    tpu.vector_store %arg8[%c0_189, %c0_190, %c0_191, %c0_192], %74 {strides = array<i32>} : memref<2x16x16x4xf32, #tpu.memory_space<vmem>>, vector<2x16x16x4xf32>,
    return
  }
  func.func @transform_0(%arg0: i32) -> (i32, i32, i32, i32) {
    %c0_i32 = arith.constant 0 : i32
    %c0_i32_0 = arith.constant 0 : i32
    %c0_i32_1 = arith.constant 0 : i32
    %c0_i32_2 = arith.constant 0 : i32
    return %arg0, %c0_i32, %c0_i32_0, %c0_i32_1 : i32, i32, i32, i32
  }
  func.func @transform_1(%arg0: i32) -> (i32, i32) {
    %c0_i32 = arith.constant 0 : i32
    %c0_i32_0 = arith.constant 0 : i32
    %c0_i32_1 = arith.constant 0 : i32
    return %c0_i32, %c0_i32_0 : i32, i32
  }
  func.func @transform_2(%arg0: i32) -> (i32, i32) {
    %c0_i32 = arith.constant 0 : i32
    %c0_i32_0 = arith.constant 0 : i32
    %c0_i32_1 = arith.constant 0 : i32
    return %c0_i32, %c0_i32_0 : i32, i32
  }
  func.func @transform_3(%arg0: i32) -> (i32, i32) {
    %c0_i32 = arith.constant 0 : i32
    %c0_i32_0 = arith.constant 0 : i32
    %c0_i32_1 = arith.constant 0 : i32
    return %c0_i32, %c0_i32_0 : i32, i32
  }
  func.func @transform_4(%arg0: i32) -> (i32, i32) {
    %c0_i32 = arith.constant 0 : i32
    %c0_i32_0 = arith.constant 0 : i32
    %c0_i32_1 = arith.constant 0 : i32
    return %c0_i32, %c0_i32_0 : i32, i32
  }
  func.func @transform_5(%arg0: i32) -> (i32, i32) {
    %c0_i32 = arith.constant 0 : i32
    %c0_i32_0 = arith.constant 0 : i32
    %c0_i32_1 = arith.constant 0 : i32
    return %c0_i32, %c0_i32_0 : i32, i32
  }
  func.func @transform_6(%arg0: i32) -> (i32, i32) {
    %c0_i32 = arith.constant 0 : i32
    %c0_i32_0 = arith.constant 0 : i32
    %c0_i32_1 = arith.constant 0 : i32
    return %c0_i32, %c0_i32_0 : i32, i32
  }
  func.func @transform_7(%arg0: i32) -> (i32, i32, i32, i32) {
    %c0_i32 = arith.constant 0 : i32
    %c0_i32_0 = arith.constant 0 : i32
    %c0_i32_1 = arith.constant 0 : i32
    %c0_i32_2 = arith.constant 0 : i32
    return %arg0, %c0_i32, %c0_i32_0, %c0_i32_1 : i32, i32, i32, i32
  }
}

</mosaic_0001>

<bundles_post_ra>
// kernel: resnet_basicblock_forward.1
= control target key start
LH: loop header
LB: loop body
LE: loop exit
PB: predicated region body
PF: predicated region fallthrough
CT: control target
= control target key end

     0   :  { %vm27_vm0 = vcmask 27648   ;;  %vm30_vm1 = vcmask 24576   ;;  %vm43_vm2 = vsmask.f32 256  ;;  %v17053_v0 = vmov 0   ;;  %s17054_s27 = smov 4   ;;  %s20673_s0 = inlined_call_operand.vmem [shape: f32[2,16,16,4], index: 0, kind: input, shape index: {}]   ;;  %s20674_s1 = inlined_call_operand.vmem [shape: bf16[36,4], index: 1, kind: input, shape index: {}]   ;;  %s20675_s2 = inlined_call_operand.vmem [shape: f32[1,4], index: 2, kind: input, shape index: {}]   ;;  %s20676_s3 = inlined_call_operand.vmem [shape: f32[1,4], index: 3, kind: input, shape index: {}]   ;;  %s20677_s4 = inlined_call_operand.vmem [shape: bf16[36,4], index: 4, kind: input, shape index: {}]   ;;  %s20678_s5 = inlined_call_operand.vmem [shape: f32[1,4], index: 5, kind: input, shape index: {}]   ;;  %s20679_s6 = inlined_call_operand.vmem [shape: f32[1,4], index: 6, kind: input, shape index: {}]   ;;  %s20680_s7 = inlined_call_operand.vmem [shape: f32[2,16,16,4], index: 7, kind: output, shape index: {}]  }
   0x1   :  { %28 = vst.msk [vmem:[#allocation2] sm:$0xf] %vm27_vm0, %v17053_v0  ;;  %29 = vst.msk [vmem:[#allocation2 + $0x4] sm:$0xf] %vm27_vm0, %v17053_v0  ;;  %vm153_vm4 = vsmask.f32 7938 }
   0x2   :  { %31 = vst.msk [vmem:[#allocation2 + $0x8] sm:$0x1] %vm30_vm1, %v17053_v0  ;;  %vm17107_vm3 = vmand %vm30_vm1, %vm43_vm2  ;;  %v51_v2 = vld [vmem:[#allocation2 + $0x18] sm:$0x1]  ;;  %v161_v5 = vld [vmem:[#allocation2 + $0x20] sm:$0x1] }
   0x3   :  { %32 = vst.msk [vmem:[#allocation2 + $0xd8] sm:$0xf] %vm27_vm0, %v17053_v0  ;;  %33 = vst.msk [vmem:[#allocation2 + $0xdc] sm:$0xf] %vm27_vm0, %v17053_v0  ;;  %v52_v4 = vsel %vm17107_vm3, 0, %v51_v2  ;;  %v265_v6 = vld [vmem:[%s20673_s0 + $0x10] sm:$0xff] }
   0x4   :  { %34 = vst.msk [vmem:[#allocation2 + $0xe0] sm:$0x1] %vm30_vm1, %v17053_v0  ;;  %38 = vst.msk [vmem:[#allocation2 + $0xd4] sm:$0x1] %vm30_vm1, %v17053_v0  ;;  %v266_v8 = vld [vmem:[%s20673_s0 + $0x18] sm:$0xff]  ;;  %v15734_v9 = vpack.c.bf16 %v265_v6, %v265_v6  ;;  %v263_v14 = vld [vmem:[%s20673_s0] sm:$0xff] }
   0x5   :  { %36 = vst.msk [vmem:[#allocation2 + $0xcc] sm:$0xf] %vm27_vm0, %v17053_v0  ;;  %37 = vst.msk [vmem:[#allocation2 + $0xd0] sm:$0xf] %vm27_vm0, %v17053_v0  ;;  %v48_v10 = vld [vmem:[#allocation2 + $0xc] sm:$0x1]  ;;  %v15735_v11 = vpack.c.bf16 %v266_v8, %v266_v8  ;;  %v15732_v19 = vpack.c.bf16 %v263_v14, %v263_v14 }
   0x6   :  { %39 = vst.msk [vmem:[#allocation2 + $0x1a4] sm:$0xf] %vm27_vm0, %v17053_v0  ;;  %40 = vst.msk [vmem:[#allocation2 + $0x1a8] sm:$0xf] %vm27_vm0, %v17053_v0  ;;  %vm519_vm6 = vsmask.f32 4368 }
   0x7   :  { %41 = vst.msk [vmem:[#allocation2 + $0x1ac] sm:$0x1] %vm30_vm1, %v17053_v0  ;;  %vm17122_vm5 = vmand %vm30_vm1, %vm153_vm4  ;;  %v49_v12 = vsel %vm17107_vm3, 0, %v48_v10  ;;  %v158_v13 = vld [vmem:[#allocation2 + $0x14] sm:$0x1]  ;;  %v539_v15 = vshrl.u32 %v15734_v9, 16 }
   0x8   :  { %53 = vst [vmem:[#allocation2 + $0x18] sm:$0x1] %v52_v4  ;;  %v162_v7 = vsel %vm17122_vm5, 0, %v161_v5  ;;  %v542_v16 = vshll.u32 %v15734_v9, 16  ;;  %50 = vst [vmem:[#allocation2 + $0xc] sm:$0x1] %v49_v12 }
   0x9   :  { %163 = vst [vmem:[#allocation2 + $0x20] sm:$0x1] %v162_v7  ;;  %v159_v17 = vsel %vm17122_vm5, 0, %v158_v13  ;;  %v264_v18 = vld [vmem:[%s20673_s0 + $0x8] sm:$0xff]  ;;  %v54_v20 = vld [vmem:[#allocation2 + $0x24] sm:$0x1]  ;;  %vm17153_vm7 = vmand %vm27_vm0, %vm153_vm4 }
   0xa   :  { %v547_v21 = vshrl.u32 %v15735_v11, 16  ;;  %v550_v22 = vshll.u32 %v15735_v11, 16  ;;  %160 = vst [vmem:[#allocation2 + $0x14] sm:$0x1] %v159_v17  ;;  %v15733_v23 = vpack.c.bf16 %v264_v18, %v264_v18  ;;  %v55_v24 = vsel %vm17107_vm3, 0, %v54_v20  ;;  %v267_v26 = vld [vmem:[%s20673_s0 + $0x20] sm:$0xff]  ;;  %vm17173_vm8 = vmor %vm43_vm2, %vm519_vm6 }
   0xb   :  { %v164_v25 = vld [vmem:[#allocation2 + $0x2c] sm:$0x1]  ;;  %v541_v28 = vrot.slane %v539_v15, 7  ;;  %v522_v29 = vshrl.u32 %v15732_v19, 16  ;;  %v525_v30 = vshll.u32 %v15732_v19, 16  ;;  %v269_v33 = vld [vmem:[%s20673_s0 + $0x30] sm:$0xff]  ;;  %v15736_v36 = vpack.c.bf16 %v267_v26, %v267_v26 }
   0xc   :  { %56 = vst [vmem:[#allocation2 + $0x24] sm:$0x1] %v55_v24  ;;  %v165_v31 = vsel %vm17122_vm5, 0, %v164_v25  ;;  %v268_v32 = vld [vmem:[%s20673_s0 + $0x28] sm:$0xff]  ;;  %v45_v34 = vld [vmem:[#allocation2] sm:$0x1]  ;;  %v17165_v38 = vpack.c.bf16 %v269_v33, %v269_v33 }
   0xd   :  { %v155_v35 = vld [vmem:[#allocation2 + $0x8] sm:$0x1]  ;;  %166 = vst [vmem:[#allocation2 + $0x2c] sm:$0x1] %v165_v31  ;;  %v15737_v37 = vpack.c.bf16 %v268_v32, %v268_v32  ;;  %v46_v39 = vsel %vm17107_vm3, 0, %v45_v34  ;;  %v544_v41 = vor.u32 %v542_v16, %v541_v28  ;;  %v545_v42 = vrot.slane %v541_v28, 4 }
   0xe   :  { %v156_v40 = vsel %vm17122_vm5, 0, %v155_v35  ;;  %v57_v43 = vld [vmem:[#allocation2 + $0x30] sm:$0x1]  ;;  %47 = vst [vmem:[#allocation2] sm:$0x1] %v46_v39  ;;  %v549_v44 = vrot.slane %v547_v21, 7 }
   0xf   :  { %157 = vst [vmem:[#allocation2 + $0x8] sm:$0x1] %v156_v40  ;;  %v1171_v45 = vld [vmem:[#allocation2 + $0x18] sm:$0xf]  ;;  %v524_v46 = vrot.slane %v522_v29, 7  ;;  %v530_v47 = vshrl.u32 %v15733_v23, 16 }
  0x10   :  { %v533_v48 = vshll.u32 %v15733_v23, 16  ;;  %v1172_v50 = vsel %vm17153_vm7, %v544_v41, %v1171_v45  ;;  %v1175_v51 = vld [vmem:[#allocation2 + $0x20] sm:$0x1]  ;;  %v556_v52 = vshrl.u32 %v15736_v36, 16  ;;  %v559_v53 = vshll.u32 %v15736_v36, 16  ;;  %v270_v60 = vld [vmem:[%s20673_s0 + $0x38] sm:$0xff] }
  0x11   :  { %v564_v54 = vshrl.u32 %v15737_v37, 16  ;;  %v552_v55 = vor.u32 %v550_v22, %v549_v44  ;;  %v554_v56 = vrot.slane %v549_v44, 4  ;;  %1173 = vst [vmem:[#allocation2 + $0x18] sm:$0xf] %v1172_v50  ;;  %v527_v57 = vor.u32 %v525_v30, %v524_v46  ;;  %v1164_v59 = vld [vmem:[#allocation2 + $0xc] sm:$0xf] }
  0x12   :  { %v528_v58 = vrot.slane %v524_v46, 4  ;;  %v532_v61 = vrot.slane %v530_v47, 7  ;;  %v558_v62 = vrot.slane %v556_v52, 7  ;;  %v567_v0 = vshll.u32 %v15737_v37, 16  ;;  %v167_v2 = vld [vmem:[#allocation2 + $0x38] sm:$0x1] }
  0x13   :  { %v566_v63 = vrot.slane %v564_v54, 7  ;;  %v553_v4 = vsel %vm17173_vm8, %v545_v42, %v552_v55  ;;  %v1176_v5 = vsel %vm17107_vm3, %v554_v56, %v1175_v51  ;;  %v1165_v6 = vsel %vm17153_vm7, %v527_v57, %v1164_v59  ;;  %v1168_v7 = vld [vmem:[#allocation2 + $0x14] sm:$0x1]  ;;  %v1178_v8 = vld [vmem:[#allocation2 + $0x24] sm:$0xf]  ;;  %v272_v44 = vld [vmem:[%s20673_s0 + $0x48] sm:$0xff] }
  0x14   :  { %v58_v9 = vsel %vm17107_vm3, 0, %v57_v43  ;;  %1174 = vst.msk [vmem:[#allocation2 + $0x1c] sm:$0xf] %vm27_vm0, %v553_v4  ;;  %1177 = vst [vmem:[#allocation2 + $0x20] sm:$0x1] %v1176_v5  ;;  %v535_v10 = vor.u32 %v533_v48, %v532_v61  ;;  %v537_v11 = vrot.slane %v532_v61, 4  ;;  %v561_v12 = vor.u32 %v559_v53, %v558_v62 }
  0x15   :  { %1166 = vst [vmem:[#allocation2 + $0xc] sm:$0xf] %v1165_v6  ;;  %v562_v13 = vrot.slane %v558_v62, 4  ;;  %v1182_v14 = vld [vmem:[#allocation2 + $0x2c] sm:$0x1]  ;;  %v569_v15 = vor.u32 %v567_v0, %v566_v63  ;;  %v571_v16 = vrot.slane %v566_v63, 4  ;;  %v15739_v18 = vpack.c.bf16 %v270_v60, %v270_v60 }
  0x16   :  { %59 = vst [vmem:[#allocation2 + $0x30] sm:$0x1] %v58_v9  ;;  %v168_v17 = vsel %vm17122_vm5, 0, %v167_v2  ;;  %v60_v19 = vld [vmem:[#allocation2 + $0x3c] sm:$0x1]  ;;  %v16081_v21 = vld [vmem:[#allocation2] sm:$0xff]   ;;  %v536_v22 = vsel %vm17173_vm8, %v528_v58, %v535_v10  ;;  %v1169_v23 = vsel %vm17107_vm3, %v537_v11, %v1168_v7  ;;  %v1179_v24 = vsel %vm17153_vm7, %v561_v12, %v1178_v8 }
  0x17   :  { %v170_v20 = vld [vmem:[#allocation2 + $0x44] sm:$0x1]  ;;  %169 = vst [vmem:[#allocation2 + $0x38] sm:$0x1] %v168_v17  ;;  %v573_v25 = vshrl.u32 %v17165_v38, 16  ;;  %v570_v28 = vsel %vm17173_vm8, %v562_v13, %v569_v15  ;;  %v1183_v29 = vsel %vm17107_vm3, %v571_v16, %v1182_v14  ;;  %v576_v30 = vshll.u32 %v17165_v38, 16 }
  0x18   :  { %v16082_v26 = vld [vmem:[#allocation2 + $0x8] ss:$0 sps:$4 sm:$0x11]   ;;  %1167 = vst.msk [vmem:[#allocation2 + $0x10] sm:$0xf] %vm27_vm0, %v536_v22  ;;  %v581_v31 = vshrl.u32 %v15739_v18, 16  ;;  %v15741_v6 = vpack.c.bf16 %v272_v44, %v272_v44 }
  0x19   :  { %1170 = vst [vmem:[#allocation2 + $0x14] sm:$0x1] %v1169_v23  ;;  %1180 = vst [vmem:[#allocation2 + $0x24] sm:$0xf] %v1179_v24  ;;  %v2031_v32 = vshrl.u32 %v16081_v21, 16  ;;  %v2033_v33 = vshll.u32 %v16081_v21, 16 }
  0x1a   :  { %1181 = vst.msk [vmem:[#allocation2 + $0x28] sm:$0xf] %vm27_vm0, %v570_v28  ;;  %1184 = vst [vmem:[#allocation2 + $0x2c] sm:$0x1] %v1183_v29  ;;  %v575_v34 = vrot.slane %v573_v25, 7  ;;  %v584_v35 = vshll.u32 %v15739_v18, 16 }
  0x1b   :  { %v2038_v36 = vshll.u32 %v16082_v26, 16  ;;  %v583_v37 = vrot.slane %v581_v31, 7  ;;  %v61_v39 = vsel %vm17107_vm3, 0, %v60_v19  ;;  %v171_v40 = vsel %vm17122_vm5, 0, %v170_v20  ;;  %v271_v43 = vld [vmem:[%s20673_s0 + $0x40] sm:$0xff]  ;;  %v16083_v46 = vld [vmem:[#allocation2 + $0x18] sm:$0xff]  }
  0x1c   :  { %vm2029_vm9 = vsmask.f32 7424  ;;  %v2035_v41 = vrot.slane %v2033_v33, 1  ;;  %v578_v42 = vor.u32 %v576_v30, %v575_v34  ;;  %v579_v38 = vrot.slane %v575_v34, 4  ;;  %62 = vst [vmem:[#allocation2 + $0x3c] sm:$0x1] %v61_v39 }
  0x1d   :  { %172 = vst [vmem:[#allocation2 + $0x44] sm:$0x1] %v171_v40  ;;  %v2040_v45 = vrot.slane %v2038_v36, 1  ;;  %v586_v47 = vor.u32 %v584_v35, %v583_v37  ;;  %v273_v48 = vld [vmem:[%s20673_s0 + $0x50] sm:$0xff]  ;;  %v588_v52 = vrot.slane %v583_v37, 4  ;;  %v274_v53 = vld [vmem:[%s20673_s0 + $0x58] sm:$0xff]  ;;  %v15740_v60 = vpack.c.bf16 %v271_v43, %v271_v43 }
  0x1e   :  { %v2036_v50 = vor.u32 %v2035_v41, %v2031_v32  ;;  %v16084_v51 = vld [vmem:[#allocation2 + $0x20] ss:$0 sps:$4 sm:$0x11]   ;;  %v2055_v55 = vshrl.u32 %v16083_v46, 16  ;;  %v2057_v56 = vshll.u32 %v16083_v46, 16  ;;  %v15742_v12 = vpack.c.bf16 %v273_v48, %v273_v48  ;;  %v276_v33 = vld [vmem:[%s20673_s0 + $0x68] sm:$0xff] }
  0x1f   :  { %v275_v54 = vld [vmem:[%s20673_s0 + $0x60] sm:$0xff]  ;;  %v587_v57 = vsel %vm17173_vm8, %v579_v38, %v586_v47  ;;  %v1185_v58 = vld [vmem:[#allocation2 + $0x30] sm:$0xf]  ;;  %v1189_v59 = vld [vmem:[#allocation2 + $0x38] sm:$0x1]  ;;  %v2062_v62 = vshll.u32 %v16084_v51, 16  ;;  %v17235_v16 = vpack.c.bf16 %v274_v53, %v274_v53  ;;  %v17250_v48 = vpack.c.bf16 %v276_v33, %v276_v33 }
  0x20   :  { %v2041_v61 = vsel %vm2029_vm9, %v2036_v50, %v2040_v45  ;;  %v16085_v63 = vld [vmem:[#allocation2 + $0xc] sm:$0xff]   ;;  %v1186_v0 = vsel %vm17153_vm7, %v578_v42, %v1185_v58  ;;  %1188 = vst.msk [vmem:[#allocation2 + $0x34] sm:$0xf] %vm27_vm0, %v587_v57  ;;  %v1190_v2 = vsel %vm17107_vm3, %v588_v52, %v1189_v59  ;;  %v2059_v4 = vrot.slane %v2057_v56, 1  ;;  %v63_v11 = vld [vmem:[#allocation2 + $0x48] sm:$0x1] }
  0x21   :  { %2414 = vrot.lane.b32.xlu0 %v2041_v61, %s17054_s27  ;;  %v16086_v5 = vld [vmem:[#allocation2 + $0x14] ss:$0 sps:$4 sm:$0x11]   ;;  %1187 = vst [vmem:[#allocation2 + $0x30] sm:$0xf] %v1186_v0  ;;  %v2064_v7 = vrot.slane %v2062_v62, 1  ;;  %v17237_v17 = vpack.c.bf16 %v275_v54, %v275_v54 }
  0x22   :  { %1191 = vst [vmem:[#allocation2 + $0x38] sm:$0x1] %v1190_v2  ;;  %v2043_v8 = vshrl.u32 %v16085_v63, 16  ;;  %v2045_v9 = vshll.u32 %v16085_v63, 16  ;;  %v16087_v10 = vld [vmem:[#allocation2 + $0x24] sm:$0xff]   ;;  %v2060_v13 = vor.u32 %v2059_v4, %v2055_v55  ;;  %v2050_v14 = vshll.u32 %v16086_v5, 16 }
  0x23   :  { %v16088_v15 = vld [vmem:[#allocation2 + $0x2c] ss:$0 sps:$4 sm:$0x11]   ;;  %v2067_v19 = vshrl.u32 %v16087_v10, 16  ;;  %v2069_v20 = vshll.u32 %v16087_v10, 16  ;;  %v590_v21 = vshrl.u32 %v15740_v60, 16 }
  0x24   :  { %v2047_v18 = vrot.slane %v2045_v9, 1  ;;  %v173_v22 = vld [vmem:[#allocation2 + $0x50] sm:$0x1]  ;;  %v2065_v23 = vsel %vm2029_vm9, %v2060_v13, %v2064_v7  ;;  %v2052_v24 = vrot.slane %v2050_v14, 1  ;;  %v2074_v25 = vshll.u32 %v16088_v15, 16  ;;  %v278_v2 = vld [vmem:[%s20673_s0 + $0x78] sm:$0xff] }
  0x25   :  { %v593_v26 = vshll.u32 %v15740_v60, 16  ;;  %2418 = vrot.lane.b32.xlu1 %v2065_v23, %s17054_s27  ;;  %v2071_v29 = vrot.slane %v2069_v20, 1  ;;  %v592_v30 = vrot.slane %v590_v21, 7  ;;  %v598_v31 = vshrl.u32 %v15741_v6, 16  ;;  %v1192_v32 = vld [vmem:[#allocation2 + $0x3c] sm:$0xf] }
  0x26   :  { %v2048_v28 = vor.u32 %v2047_v18, %v2043_v8  ;;  %v2076_v34 = vrot.slane %v2074_v25, 1  ;;  %v601_v35 = vshll.u32 %v15741_v6, 16  ;;  %v64_v36 = vsel %vm17107_vm3, 0, %v63_v11  ;;  %v66_v39 = vld [vmem:[#allocation2 + $0x54] sm:$0x1]  ;;  %s17055_s11 = smov 8  }
  0x27   :  { %v174_v37 = vsel %vm17122_vm5, 0, %v173_v22  ;;  %v2072_v41 = vor.u32 %v2071_v29, %v2067_v19  ;;  %v595_v38 = vor.u32 %v593_v26, %v592_v30  ;;  %v596_v43 = vrot.slane %v592_v30, 4  ;;  %65 = vst [vmem:[#allocation2 + $0x48] sm:$0x1] %v64_v36  ;;  %v1196_v54 = vld [vmem:[#allocation2 + $0x44] sm:$0x1] }
  0x28   :  { %v2053_v40 = vsel %vm2029_vm9, %v2048_v28, %v2052_v24  ;;  %v16089_v42 = vld [vmem:[#allocation2 + $0x30] sm:$0xff]   ;;  %175 = vst [vmem:[#allocation2 + $0x50] sm:$0x1] %v174_v37  ;;  %v600_v45 = vrot.slane %v598_v31, 7  ;;  %v607_v46 = vshrl.u32 %v15742_v12, 16  ;;  %v610_v47 = vshll.u32 %v15742_v12, 16 }
  0x29   :  { %2416 = vrot.lane.b32.xlu0 %v2053_v40, %s17054_s27  ;;  %v16090_v44 = vld [vmem:[#allocation2 + $0x38] ss:$0 sps:$4 sm:$0x11]   ;;  %v2077_v50 = vsel %vm2029_vm9, %v2072_v41, %v2076_v34  ;;  %v2079_v51 = vshrl.u32 %v16089_v42, 16  ;;  %v2081_v52 = vshll.u32 %v16089_v42, 16  ;;  %v1193_v53 = vsel %vm17153_vm7, %v595_v38, %v1192_v32  ;;  %v277_v0 = vld [vmem:[%s20673_s0 + $0x70] sm:$0xff] }
  0x2a   :  { %2420 = vrot.lane.b32.xlu1 %v2077_v50, %s17054_s27  ;;  %v2086_v55 = vshll.u32 %v16090_v44, 16  ;;  %v603_v56 = vor.u32 %v601_v35, %v600_v45  ;;  %v605_v57 = vrot.slane %v600_v45, 4  ;;  %1194 = vst [vmem:[#allocation2 + $0x3c] sm:$0xf] %v1193_v53  ;;  %v609_v58 = vrot.slane %v607_v46, 7  ;;  %v279_v34 = vld [vmem:[%s20673_s0 + $0x80] sm:$0xff] }
  0x2b   :  { %v176_v59 = vld [vmem:[#allocation2 + $0x5c] sm:$0x1]  ;;  %v2083_v60 = vrot.slane %v2081_v52, 1  ;;  %v615_v61 = vshrl.u32 %v17235_v16, 16  ;;  %v618_v62 = vshll.u32 %v17235_v16, 16  ;;  %v67_v63 = vsel %vm17107_vm3, 0, %v66_v39 }
  0x2c   :  { %v2088_v4 = vrot.slane %v2086_v55, 1  ;;  %v604_v5 = vsel %vm17173_vm8, %v596_v43, %v603_v56  ;;  %v1197_v6 = vsel %vm17107_vm3, %v605_v57, %v1196_v54  ;;  %v612_v7 = vor.u32 %v610_v47, %v609_v58  ;;  %68 = vst [vmem:[#allocation2 + $0x54] sm:$0x1] %v67_v63  ;;  %v69_v8 = vld [vmem:[#allocation2 + $0x60] sm:$0x1]  ;;  %v280_v41 = vld [vmem:[%s20673_s0 + $0x88] sm:$0xff] }
  0x2d   :  { %v2084_v9 = vor.u32 %v2083_v60, %v2079_v51  ;;  %1195 = vst.msk [vmem:[#allocation2 + $0x40] sm:$0xf] %vm27_vm0, %v604_v5  ;;  %1198 = vst [vmem:[#allocation2 + $0x44] sm:$0x1] %v1197_v6  ;;  %v613_v10 = vrot.slane %v609_v58, 4  ;;  %v617_v11 = vrot.slane %v615_v61, 7  ;;  %v15746_v19 = vpack.c.bf16 %v277_v0, %v277_v0 }
  0x2e   :  { %v177_v12 = vsel %vm17122_vm5, 0, %v176_v59  ;;  %v179_v13 = vld [vmem:[#allocation2 + $0x68] sm:$0x1]  ;;  %v624_v16 = vshrl.u32 %v17237_v17, 16  ;;  %v627_v18 = vshll.u32 %v17237_v17, 16  ;;  %v17275_v20 = vpack.c.bf16 %v278_v2, %v278_v2  ;;  %v281_v61 = vld [vmem:[%s20673_s0 + $0x90] sm:$0xff] }
  0x2f   :  { %v1199_v14 = vld [vmem:[#allocation2 + $0x48] sm:$0xf]  ;;  %v1203_v15 = vld [vmem:[#allocation2 + $0x50] sm:$0x1]  ;;  %178 = vst [vmem:[#allocation2 + $0x5c] sm:$0x1] %v177_v12  ;;  %v2089_v21 = vsel %vm2029_vm9, %v2084_v9, %v2088_v4  ;;  %v620_v22 = vor.u32 %v618_v62, %v617_v11  ;;  %v15748_v51 = vpack.c.bf16 %v279_v34, %v279_v34  ;;  %v15749_v56 = vpack.c.bf16 %v280_v41, %v280_v41 }
  0x30   :  { %v622_v23 = vrot.slane %v617_v11, 4  ;;  %v1200_v24 = vsel %vm17153_vm7, %v612_v7, %v1199_v14  ;;  %2422 = vrot.lane.b32.xlu0 %v2089_v21, %s17054_s27  ;;  %v626_v25 = vrot.slane %v624_v16, 7  ;;  %v632_v26 = vshrl.u32 %v17250_v48, 16  ;;  %v72_v29 = vld [vmem:[#allocation2 + $0x6c] sm:$0x1]  ;;  %s17056_s16 = smov 12  }
  0x31   :  { %1201 = vst [vmem:[#allocation2 + $0x48] sm:$0xf] %v1200_v24  ;;  %v635_v28 = vshll.u32 %v17250_v48, 16  ;;  %v70_v17 = vsel %vm17107_vm3, 0, %v69_v8  ;;  %v621_v30 = vsel %vm17173_vm8, %v613_v10, %v620_v22  ;;  %v180_v32 = vsel %vm17122_vm5, 0, %v179_v13  ;;  %v282_v24 = vld [vmem:[%s20673_s0 + $0x98] sm:$0xff] }
  0x32   :  { %v1204_v31 = vsel %vm17107_vm3, %v622_v23, %v1203_v15  ;;  %71 = vst [vmem:[#allocation2 + $0x60] sm:$0x1] %v70_v17  ;;  %v641_v33 = vshrl.u32 %v15746_v19, 16  ;;  %1202 = vst.msk [vmem:[#allocation2 + $0x4c] sm:$0xf] %vm27_vm0, %v621_v30  ;;  %v629_v35 = vor.u32 %v627_v18, %v626_v25  ;;  %v630_v36 = vrot.slane %v626_v25, 4 }
  0x33   :  { %1205 = vst [vmem:[#allocation2 + $0x50] sm:$0x1] %v1204_v31  ;;  %v634_v37 = vrot.slane %v632_v26, 7  ;;  %181 = vst [vmem:[#allocation2 + $0x68] sm:$0x1] %v180_v32  ;;  %v644_v39 = vshll.u32 %v15746_v19, 16  ;;  %v17316_v19 = vpack.c.bf16 %v281_v61, %v281_v61 }
  0x34   :  { %v182_v40 = vld [vmem:[#allocation2 + $0x74] sm:$0x1]  ;;  %v643_v38 = vrot.slane %v641_v33, 7  ;;  %v649_v43 = vshrl.u32 %v17275_v20, 16  ;;  %v652_v44 = vshll.u32 %v17275_v20, 16  ;;  %v73_v45 = vsel %vm17107_vm3, 0, %v72_v29 }
  0x35   :  { %v1206_v42 = vld [vmem:[#allocation2 + $0x54] sm:$0xf]  ;;  %v16091_v46 = vld [vmem:[#allocation2 + $0x3c] sm:$0xff]   ;;  %v637_v47 = vor.u32 %v635_v28, %v634_v37  ;;  %v639_v48 = vrot.slane %v634_v37, 4  ;;  %74 = vst [vmem:[#allocation2 + $0x6c] sm:$0x1] %v73_v45 }
  0x36   :  { %v1207_v50 = vsel %vm17153_vm7, %v629_v35, %v1206_v42  ;;  %v16092_v52 = vld [vmem:[#allocation2 + $0x44] ss:$0 sps:$4 sm:$0x11]   ;;  %v1210_v53 = vld [vmem:[#allocation2 + $0x5c] sm:$0x1]  ;;  %v646_v54 = vor.u32 %v644_v39, %v643_v38  ;;  %v647_v55 = vrot.slane %v643_v38, 4  ;;  %v15751_v39 = vpack.c.bf16 %v282_v24, %v282_v24 }
  0x37   :  { %1208 = vst [vmem:[#allocation2 + $0x54] sm:$0xf] %v1207_v50  ;;  %v2091_v57 = vshrl.u32 %v16091_v46, 16  ;;  %v2093_v58 = vshll.u32 %v16091_v46, 16  ;;  %v638_v59 = vsel %vm17173_vm8, %v630_v36, %v637_v47  ;;  %v1211_v60 = vsel %vm17107_vm3, %v639_v48, %v1210_v53  ;;  %v75_v9 = vld [vmem:[#allocation2 + $0x78] sm:$0x1] }
  0x38   :  { %v2098_v62 = vshll.u32 %v16092_v52, 16  ;;  %1209 = vst.msk [vmem:[#allocation2 + $0x58] sm:$0xf] %vm27_vm0, %v638_v59  ;;  %1212 = vst [vmem:[#allocation2 + $0x5c] sm:$0x1] %v1211_v60  ;;  %v651_v63 = vrot.slane %v649_v43, 7 }
  0x39   :  { %v183_v0 = vsel %vm17122_vm5, 0, %v182_v40  ;;  %v658_v2 = vshrl.u32 %v15748_v51, 16  ;;  %v2095_v4 = vrot.slane %v2093_v58, 1  ;;  %v1213_v5 = vld [vmem:[#allocation2 + $0x60] sm:$0xf]  ;;  %v661_v6 = vshll.u32 %v15748_v51, 16 }
  0x3a   :  { %184 = vst [vmem:[#allocation2 + $0x74] sm:$0x1] %v183_v0  ;;  %v666_v7 = vshrl.u32 %v15749_v56, 16  ;;  %v669_v8 = vshll.u32 %v15749_v56, 16  ;;  %v2100_v10 = vrot.slane %v2098_v62, 1  ;;  %v16093_v11 = vld [vmem:[#allocation2 + $0x48] sm:$0xff]   ;;  %v654_v12 = vor.u32 %v652_v44, %v651_v63 }
  0x3b   :  { %v1214_v13 = vsel %vm17153_vm7, %v646_v54, %v1213_v5  ;;  %v2096_v14 = vor.u32 %v2095_v4, %v2091_v57  ;;  %v16094_v15 = vld [vmem:[#allocation2 + $0x50] ss:$0 sps:$4 sm:$0x11]   ;;  %v656_v16 = vrot.slane %v651_v63, 4  ;;  %v1217_v18 = vld [vmem:[#allocation2 + $0x68] sm:$0x1] }
  0x3c   :  { %1215 = vst [vmem:[#allocation2 + $0x60] sm:$0xf] %v1214_v13  ;;  %v2103_v20 = vshrl.u32 %v16093_v11, 16  ;;  %v2105_v21 = vshll.u32 %v16093_v11, 16  ;;  %v655_v22 = vsel %vm17173_vm8, %v647_v55, %v654_v12  ;;  %v660_v23 = vrot.slane %v658_v2, 7  ;;  %v283_v50 = vld [vmem:[%s20673_s0 + $0xa0] sm:$0xff] }
  0x3d   :  { %v2101_v25 = vsel %vm2029_vm9, %v2096_v14, %v2100_v10  ;;  %v2110_v26 = vshll.u32 %v16094_v15, 16  ;;  %1216 = vst.msk [vmem:[#allocation2 + $0x64] sm:$0xf] %vm27_vm0, %v655_v22  ;;  %v1218_v28 = vsel %vm17107_vm3, %v656_v16, %v1217_v18  ;;  %v668_v17 = vrot.slane %v666_v7, 7  ;;  %v1220_v29 = vld [vmem:[#allocation2 + $0x6c] sm:$0xf] }
  0x3e   :  { %2424 = vrot.lane.b32.xlu1 %v2101_v25, %s17054_s27  ;;  %v2107_v30 = vrot.slane %v2105_v21, 1  ;;  %1219 = vst [vmem:[#allocation2 + $0x68] sm:$0x1] %v1218_v28  ;;  %v663_v31 = vor.u32 %v661_v6, %v660_v23  ;;  %v664_v32 = vrot.slane %v660_v23, 4  ;;  %v76_v33 = vsel %vm17107_vm3, 0, %v75_v9  ;;  %v284_v55 = vld [vmem:[%s20673_s0 + $0xa8] sm:$0xff] }
  0x3f   :  { %v185_v34 = vld [vmem:[#allocation2 + $0x80] sm:$0x1]  ;;  %v2112_v35 = vrot.slane %v2110_v26, 1  ;;  %v16095_v36 = vld [vmem:[#allocation2 + $0x54] sm:$0xff]   ;;  %v671_v37 = vor.u32 %v669_v8, %v668_v17  ;;  %77 = vst [vmem:[#allocation2 + $0x78] sm:$0x1] %v76_v33  ;;  %v15752_v2 = vpack.c.bf16 %v283_v50, %v283_v50  ;;  %v15753_v7 = vpack.c.bf16 %v284_v55, %v284_v55 }
  0x40   :  { %v2108_v40 = vor.u32 %v2107_v30, %v2103_v20  ;;  %v16096_v41 = vld [vmem:[#allocation2 + $0x5c] ss:$0 sps:$4 sm:$0x11]   ;;  %v673_v42 = vrot.slane %v668_v17, 4  ;;  %v1221_v38 = vsel %vm17153_vm7, %v663_v31, %v1220_v29  ;;  %v2115_v44 = vshrl.u32 %v16095_v36, 16  ;;  %v285_v13 = vld [vmem:[%s20673_s0 + $0xb0] sm:$0xff] }
  0x41   :  { %v1224_v43 = vld [vmem:[#allocation2 + $0x74] sm:$0x1]  ;;  %v2117_v45 = vshll.u32 %v16095_v36, 16  ;;  %v672_v46 = vsel %vm17173_vm8, %v664_v32, %v671_v37  ;;  %1222 = vst [vmem:[#allocation2 + $0x6c] sm:$0xf] %v1221_v38  ;;  %v186_v47 = vsel %vm17122_vm5, 0, %v185_v34  ;;  %v15754_v30 = vpack.c.bf16 %v285_v13, %v285_v13 }
  0x42   :  { %v78_v48 = vld [vmem:[#allocation2 + $0x84] sm:$0x1]  ;;  %v2113_v51 = vsel %vm2029_vm9, %v2108_v40, %v2112_v35  ;;  %v2122_v52 = vshll.u32 %v16096_v41, 16  ;;  %1223 = vst.msk [vmem:[#allocation2 + $0x70] sm:$0xf] %vm27_vm0, %v672_v46  ;;  %v1225_v53 = vsel %vm17107_vm3, %v673_v42, %v1224_v43  ;;  %v675_v54 = vshrl.u32 %v17316_v19, 16 }
  0x43   :  { %187 = vst [vmem:[#allocation2 + $0x80] sm:$0x1] %v186_v47  ;;  %2426 = vrot.lane.b32.xlu0 %v2113_v51, %s17054_s27  ;;  %v2119_v56 = vrot.slane %v2117_v45, 1  ;;  %1226 = vst [vmem:[#allocation2 + $0x74] sm:$0x1] %v1225_v53  ;;  %v678_v57 = vshll.u32 %v17316_v19, 16 }
  0x44   :  { %v683_v58 = vshrl.u32 %v15751_v39, 16  ;;  %v686_v59 = vshll.u32 %v15751_v39, 16  ;;  %v188_v60 = vld [vmem:[#allocation2 + $0x8c] sm:$0x1]  ;;  %v2124_v61 = vrot.slane %v2122_v52, 1  ;;  %v16097_v62 = vld [vmem:[#allocation2 + $0x60] sm:$0xff]  }
  0x45   :  { %v677_v63 = vrot.slane %v675_v54, 7  ;;  %v79_v0 = vsel %vm17107_vm3, 0, %v78_v48  ;;  %v2120_v4 = vor.u32 %v2119_v56, %v2115_v44  ;;  %v16098_v5 = vld [vmem:[#allocation2 + $0x68] ss:$0 sps:$4 sm:$0x11]   ;;  %v2127_v8 = vshrl.u32 %v16097_v62, 16 }
  0x46   :  { %v685_v6 = vrot.slane %v683_v58, 7  ;;  %80 = vst [vmem:[#allocation2 + $0x84] sm:$0x1] %v79_v0  ;;  %v2129_v9 = vshll.u32 %v16097_v62, 16  ;;  %v1227_v12 = vld [vmem:[#allocation2 + $0x78] sm:$0xf] }
  0x47   :  { %v680_v10 = vor.u32 %v678_v57, %v677_v63  ;;  %v681_v11 = vrot.slane %v677_v63, 4  ;;  %v2125_v14 = vsel %vm2029_vm9, %v2120_v4, %v2124_v61  ;;  %v2134_v15 = vshll.u32 %v16098_v5, 16  ;;  %v286_v19 = vld [vmem:[%s20673_s0 + $0xb8] sm:$0xff]  ;;  %v81_v24 = vld [vmem:[#allocation2 + $0x90] sm:$0x1]  ;;  %v287_v50 = vld [vmem:[%s20673_s0 + $0xc0] sm:$0xff] }
  0x48   :  { %v688_v16 = vor.u32 %v686_v59, %v685_v6  ;;  %v690_v18 = vrot.slane %v685_v6, 4  ;;  %2428 = vrot.lane.b32.xlu1 %v2125_v14, %s17054_s27  ;;  %v2131_v20 = vrot.slane %v2129_v9, 1  ;;  %v189_v22 = vsel %vm17122_vm5, 0, %v188_v60  ;;  %v191_v29 = vld [vmem:[#allocation2 + $0x98] sm:$0x1]  ;;  %v288_v51 = vld [vmem:[%s20673_s0 + $0xc8] sm:$0xff] }
  0x49   :  { %v1228_v21 = vsel %vm17153_vm7, %v680_v10, %v1227_v12  ;;  %v692_v23 = vshrl.u32 %v15752_v2, 16  ;;  %v2136_v25 = vrot.slane %v2134_v15, 1  ;;  %v16099_v26 = vld [vmem:[#allocation2 + $0x6c] sm:$0xff]   ;;  %190 = vst [vmem:[#allocation2 + $0x8c] sm:$0x1] %v189_v22  ;;  %v17368_v35 = vpack.c.bf16 %v286_v19, %v286_v19  ;;  %v290_v62 = vld [vmem:[%s20673_s0 + $0xd8] sm:$0xff] }
  0x4a   :  { %v689_v28 = vsel %vm17173_vm8, %v681_v11, %v688_v16  ;;  %1229 = vst [vmem:[#allocation2 + $0x78] sm:$0xf] %v1228_v21  ;;  %v1231_v17 = vld [vmem:[#allocation2 + $0x80] sm:$0x1]  ;;  %v2132_v31 = vor.u32 %v2131_v20, %v2127_v8  ;;  %v2139_v36 = vshrl.u32 %v16099_v26, 16  ;;  %v2141_v37 = vshll.u32 %v16099_v26, 16 }
  0x4b   :  { %v16100_v32 = vld [vmem:[#allocation2 + $0x74] ss:$0 sps:$4 sm:$0x11]   ;;  %1230 = vst.msk [vmem:[#allocation2 + $0x7c] sm:$0xf] %vm27_vm0, %v689_v28  ;;  %v1232_v33 = vsel %vm17107_vm3, %v690_v18, %v1231_v17  ;;  %v694_v34 = vrot.slane %v692_v23, 7  ;;  %v15756_v4 = vpack.c.bf16 %v287_v50, %v287_v50  ;;  %v15757_v5 = vpack.c.bf16 %v288_v51, %v288_v51 }
  0x4c   :  { %1233 = vst [vmem:[#allocation2 + $0x80] sm:$0x1] %v1232_v33  ;;  %v695_v39 = vshll.u32 %v15752_v2, 16  ;;  %v700_v40 = vshrl.u32 %v15753_v7, 16  ;;  %v2137_v41 = vsel %vm2029_vm9, %v2132_v31, %v2136_v25  ;;  %v2146_v42 = vshll.u32 %v16100_v32, 16  ;;  %v289_v61 = vld [vmem:[%s20673_s0 + $0xd0] sm:$0xff] }
  0x4d   :  { %v698_v38 = vrot.slane %v694_v34, 4  ;;  %v703_v43 = vshll.u32 %v15753_v7, 16  ;;  %v1234_v44 = vld [vmem:[#allocation2 + $0x84] sm:$0xf]  ;;  %2430 = vrot.lane.b32.xlu0 %v2137_v41, %s17054_s27  ;;  %v2143_v45 = vrot.slane %v2141_v37, 1  ;;  %v82_v48 = vsel %vm17107_vm3, 0, %v81_v24 }
  0x4e   :  { %v697_v46 = vor.u32 %v695_v39, %v694_v34  ;;  %v702_v47 = vrot.slane %v700_v40, 7  ;;  %v2148_v52 = vrot.slane %v2146_v42, 1  ;;  %83 = vst [vmem:[#allocation2 + $0x90] sm:$0x1] %v82_v48  ;;  %v192_v53 = vsel %vm17122_vm5, 0, %v191_v29  ;;  %s17057_s21 = smov 16  }
  0x4f   :  { %v709_v54 = vshrl.u32 %v15754_v30, 16  ;;  %v712_v55 = vshll.u32 %v15754_v30, 16  ;;  %v2144_v56 = vor.u32 %v2143_v45, %v2139_v36  ;;  %193 = vst [vmem:[#allocation2 + $0x98] sm:$0x1] %v192_v53  ;;  %v84_v60 = vld [vmem:[#allocation2 + $0x9c] sm:$0x1]  ;;  %v17399_v15 = vpack.c.bf16 %v289_v61, %v289_v61 }
  0x50   :  { %v705_v57 = vor.u32 %v703_v43, %v702_v47  ;;  %v707_v58 = vrot.slane %v702_v47, 4  ;;  %v1235_v59 = vsel %vm17153_vm7, %v697_v46, %v1234_v44  ;;  %v1238_v63 = vld [vmem:[#allocation2 + $0x8c] sm:$0x1]  ;;  %v717_v2 = vshrl.u32 %v17368_v35, 16  ;;  %v194_v11 = vld [vmem:[#allocation2 + $0xa4] sm:$0x1] }
  0x51   :  { %1236 = vst [vmem:[#allocation2 + $0x84] sm:$0xf] %v1235_v59  ;;  %v711_v0 = vrot.slane %v709_v54, 7  ;;  %v2149_v6 = vsel %vm2029_vm9, %v2144_v56, %v2148_v52  ;;  %v720_v10 = vshll.u32 %v17368_v35, 16  ;;  %v17401_v16 = vpack.c.bf16 %v290_v62, %v290_v62  ;;  %v87_v22 = vld [vmem:[#allocation2 + $0xa8] sm:$0x1] }
  0x52   :  { %v16101_v7 = vld [vmem:[#allocation2 + $0x78] sm:$0xff]   ;;  %v706_v8 = vsel %vm17173_vm8, %v698_v38, %v705_v57  ;;  %v1239_v9 = vsel %vm17107_vm3, %v707_v58, %v1238_v63  ;;  %2432 = vrot.lane.b32.xlu1 %v2149_v6, %s17054_s27  ;;  %v719_v20 = vrot.slane %v717_v2, 7  ;;  %v85_v21 = vsel %vm17107_vm3, 0, %v84_v60  ;;  %v197_v28 = vld [vmem:[#allocation2 + $0xb0] sm:$0x1]  ;;  %v291_v38 = vld [vmem:[%s20673_s0 + $0xe0] sm:$0xff] }
  0x53   :  { %v16102_v12 = vld [vmem:[#allocation2 + $0x80] ss:$0 sps:$4 sm:$0x11]   ;;  %1237 = vst.msk [vmem:[#allocation2 + $0x88] sm:$0xf] %vm27_vm0, %v706_v8  ;;  %v714_v13 = vor.u32 %v712_v55, %v711_v0  ;;  %v715_v14 = vrot.slane %v711_v0, 4  ;;  %v15760_v58 = vpack.c.bf16 %v291_v38, %v291_v38 }
  0x54   :  { %1240 = vst [vmem:[#allocation2 + $0x8c] sm:$0x1] %v1239_v9  ;;  %v2151_v18 = vshrl.u32 %v16101_v7, 16  ;;  %v2153_v19 = vshll.u32 %v16101_v7, 16  ;;  %v2158_v23 = vshll.u32 %v16102_v12, 16  ;;  %v195_v24 = vsel %vm17122_vm5, 0, %v194_v11 }
  0x55   :  { %86 = vst [vmem:[#allocation2 + $0x9c] sm:$0x1] %v85_v21  ;;  %v726_v25 = vshrl.u32 %v15756_v4, 16  ;;  %v729_v26 = vshll.u32 %v15756_v4, 16  ;;  %v722_v29 = vor.u32 %v720_v10, %v719_v20  ;;  %v724_v30 = vrot.slane %v719_v20, 4  ;;  %v292_v7 = vld [vmem:[%s20673_s0 + $0xe8] sm:$0xff] }
  0x56   :  { %v2155_v17 = vrot.slane %v2153_v19, 1  ;;  %v1241_v31 = vld [vmem:[#allocation2 + $0x90] sm:$0xf]  ;;  %196 = vst [vmem:[#allocation2 + $0xa4] sm:$0x1] %v195_v24  ;;  %v734_v32 = vshrl.u32 %v15757_v5, 16  ;;  %v15761_v21 = vpack.c.bf16 %v292_v7, %v292_v7 }
  0x57   :  { %v2160_v33 = vrot.slane %v2158_v23, 1  ;;  %v1242_v34 = vsel %vm17153_vm7, %v714_v13, %v1241_v31  ;;  %v1245_v35 = vld [vmem:[#allocation2 + $0x98] sm:$0x1]  ;;  %v728_v36 = vrot.slane %v726_v25, 7  ;;  %v737_v37 = vshll.u32 %v15757_v5, 16  ;;  %s17058_s22 = smov 20  }
  0x58   :  { %v2156_v39 = vor.u32 %v2155_v17, %v2151_v18  ;;  %v723_v40 = vsel %vm17173_vm8, %v715_v14, %v722_v29  ;;  %1243 = vst [vmem:[#allocation2 + $0x90] sm:$0xf] %v1242_v34  ;;  %v1246_v41 = vsel %vm17107_vm3, %v724_v30, %v1245_v35  ;;  %v736_v42 = vrot.slane %v734_v32, 7  ;;  %v90_v47 = vld [vmem:[#allocation2 + $0xb4] sm:$0x1]  ;;  %s17059_s23 = smov 24  }
  0x59   :  { %1244 = vst.msk [vmem:[#allocation2 + $0x94] sm:$0xf] %vm27_vm0, %v723_v40  ;;  %1247 = vst [vmem:[#allocation2 + $0x98] sm:$0x1] %v1246_v41  ;;  %v731_v43 = vor.u32 %v729_v26, %v728_v36  ;;  %v732_v44 = vrot.slane %v728_v36, 4  ;;  %v88_v45 = vsel %vm17107_vm3, 0, %v87_v22 }
  0x5a   :  { %v198_v46 = vsel %vm17122_vm5, 0, %v197_v28  ;;  %v200_v48 = vld [vmem:[#allocation2 + $0xbc] sm:$0x1]  ;;  %v2161_v50 = vsel %vm2029_vm9, %v2156_v39, %v2160_v33  ;;  %v16103_v51 = vld [vmem:[#allocation2 + $0x84] sm:$0xff]   ;;  %v739_v52 = vor.u32 %v737_v37, %v736_v42  ;;  %v741_v53 = vrot.slane %v736_v42, 4  ;;  %s17060_s24 = smov 28  }
  0x5b   :  { %89 = vst [vmem:[#allocation2 + $0xa8] sm:$0x1] %v88_v45  ;;  %199 = vst [vmem:[#allocation2 + $0xb0] sm:$0x1] %v198_v46  ;;  %2434 = vrot.lane.b32.xlu0 %v2161_v50, %s17054_s27  ;;  %v743_v55 = vshrl.u32 %v17399_v15, 16  ;;  %v746_v56 = vshll.u32 %v17399_v15, 16 }
  0x5c   :  { %v16104_v54 = vld [vmem:[#allocation2 + $0x8c] ss:$0 sps:$4 sm:$0x11]   ;;  %v751_v57 = vshrl.u32 %v17401_v16, 16  ;;  %v2163_v59 = vshrl.u32 %v16103_v51, 16  ;;  %v2165_v60 = vshll.u32 %v16103_v51, 16  ;;  %v740_v61 = vsel %vm17173_vm8, %v732_v44, %v739_v52 }
  0x5d   :  { %v1248_v62 = vld [vmem:[#allocation2 + $0x9c] sm:$0xf]  ;;  %v754_v63 = vshll.u32 %v17401_v16, 16  ;;  %v2170_v0 = vshll.u32 %v16104_v54, 16  ;;  %1251 = vst.msk [vmem:[#allocation2 + $0xa0] sm:$0xf] %vm27_vm0, %v740_v61 }
  0x5e   :  { %v1249_v2 = vsel %vm17153_vm7, %v731_v43, %v1248_v62  ;;  %v1252_v4 = vld [vmem:[#allocation2 + $0xa4] sm:$0x1]  ;;  %v745_v5 = vrot.slane %v743_v55, 7  ;;  %v753_v6 = vrot.slane %v751_v57, 7  ;;  %v2167_v8 = vrot.slane %v2165_v60, 1  ;;  %v296_v61 = vld [vmem:[%s20673_s0 + $0x108] sm:$0xff] }
  0x5f   :  { %1250 = vst [vmem:[#allocation2 + $0x9c] sm:$0xf] %v1249_v2  ;;  %v1253_v9 = vsel %vm17107_vm3, %v741_v53, %v1252_v4  ;;  %v91_v10 = vsel %vm17107_vm3, 0, %v90_v47  ;;  %v201_v11 = vsel %vm17122_vm5, 0, %v200_v48  ;;  %v2172_v12 = vrot.slane %v2170_v0, 1  ;;  %v295_v36 = vld [vmem:[%s20673_s0 + $0x100] sm:$0xff] }
  0x60   :  { %1254 = vst [vmem:[#allocation2 + $0xa4] sm:$0x1] %v1253_v9  ;;  %v748_v13 = vor.u32 %v746_v56, %v745_v5  ;;  %v749_v14 = vrot.slane %v745_v5, 4  ;;  %v756_v15 = vor.u32 %v754_v63, %v753_v6  ;;  %92 = vst [vmem:[#allocation2 + $0xb4] sm:$0x1] %v91_v10  ;;  %v2168_v18 = vor.u32 %v2167_v8, %v2163_v59  ;;  %v16105_v19 = vld [vmem:[#allocation2 + $0x90] sm:$0xff]  }
  0x61   :  { %202 = vst [vmem:[#allocation2 + $0xbc] sm:$0x1] %v201_v11  ;;  %v99_v16 = vld [vmem:[#allocation2 + $0xd8] sm:$0x1]  ;;  %v758_v20 = vrot.slane %v753_v6, 4  ;;  %v760_v25 = vshrl.u32 %v15760_v58, 16  ;;  %v15764_v52 = vpack.c.bf16 %v295_v36, %v295_v36 }
  0x62   :  { %v16106_v22 = vld [vmem:[#allocation2 + $0x98] ss:$0 sps:$4 sm:$0x11]   ;;  %v757_v23 = vsel %vm17173_vm8, %v749_v14, %v756_v15  ;;  %v1255_v24 = vld [vmem:[#allocation2 + $0xa8] sm:$0xf]  ;;  %v2173_v26 = vsel %vm2029_vm9, %v2168_v18, %v2172_v12  ;;  %v2175_v28 = vshrl.u32 %v16105_v19, 16 }
  0x63   :  { %v2177_v17 = vshll.u32 %v16105_v19, 16  ;;  %v1256_v29 = vsel %vm17153_vm7, %v748_v13, %v1255_v24  ;;  %1258 = vst.msk [vmem:[#allocation2 + $0xac] sm:$0xf] %vm27_vm0, %v757_v23  ;;  %v1259_v30 = vld [vmem:[#allocation2 + $0xb0] sm:$0x1]  ;;  %2436 = vrot.lane.b32.xlu1 %v2173_v26, %s17054_s27  ;;  %v2182_v32 = vshll.u32 %v16106_v22, 16  ;;  %v15765_v13 = vpack.c.bf16 %v296_v61, %v296_v61 }
  0x64   :  { %v209_v31 = vld [vmem:[#allocation2 + $0xe0] sm:$0x1]  ;;  %1257 = vst [vmem:[#allocation2 + $0xa8] sm:$0xf] %v1256_v29  ;;  %v1260_v33 = vsel %vm17107_vm3, %v758_v20, %v1259_v30  ;;  %v762_v34 = vrot.slane %v760_v25, 7  ;;  %v763_v35 = vshll.u32 %v15760_v58, 16 }
  0x65   :  { %v2179_v37 = vrot.slane %v2177_v17, 1  ;;  %1261 = vst [vmem:[#allocation2 + $0xb0] sm:$0x1] %v1260_v33  ;;  %v768_v39 = vshrl.u32 %v15761_v21, 16  ;;  %v771_v40 = vshll.u32 %v15761_v21, 16  ;;  %v100_v41 = vsel %vm17107_vm3, 0, %v99_v16 }
  0x66   :  { %v102_v42 = vld [vmem:[#allocation2 + $0xe4] sm:$0x1]  ;;  %v212_v38 = vld [vmem:[#allocation2 + $0xec] sm:$0x1]  ;;  %v2184_v43 = vrot.slane %v2182_v32, 1  ;;  %v16107_v44 = vld [vmem:[#allocation2 + $0x9c] sm:$0xff]   ;;  %v765_v45 = vor.u32 %v763_v35, %v762_v34 }
  0x67   :  { %v766_v46 = vrot.slane %v762_v34, 4  ;;  %101 = vst [vmem:[#allocation2 + $0xd8] sm:$0x1] %v100_v41  ;;  %v210_v47 = vsel %vm17122_vm5, 0, %v209_v31  ;;  %v2180_v48 = vor.u32 %v2179_v37, %v2175_v28  ;;  %v770_v51 = vrot.slane %v768_v39, 7  ;;  %v297_v4 = vld [vmem:[%s20673_s0 + $0x110] sm:$0xff] }
  0x68   :  { %v16108_v50 = vld [vmem:[#allocation2 + $0xa4] ss:$0 sps:$4 sm:$0x11]   ;;  %211 = vst [vmem:[#allocation2 + $0xe0] sm:$0x1] %v210_v47  ;;  %v2187_v53 = vshrl.u32 %v16107_v44, 16  ;;  %v17480_v24 = vpack.c.bf16 %v297_v4, %v297_v4 }
  0x69   :  { %v2189_v54 = vshll.u32 %v16107_v44, 16  ;;  %v1262_v55 = vld [vmem:[#allocation2 + $0xb4] sm:$0xf]  ;;  %v1266_v56 = vld [vmem:[#allocation2 + $0xbc] sm:$0x1]  ;;  %v2185_v57 = vsel %vm2029_vm9, %v2180_v48, %v2184_v43  ;;  %v2194_v58 = vshll.u32 %v16108_v50, 16  ;;  %v773_v59 = vor.u32 %v771_v40, %v770_v51 }
  0x6a   :  { %v775_v60 = vrot.slane %v770_v51, 4  ;;  %2438 = vrot.lane.b32.xlu0 %v2185_v57, %s17054_s27  ;;  %v1263_v63 = vsel %vm17153_vm7, %v765_v45, %v1262_v55  ;;  %v103_v0 = vsel %vm17107_vm3, 0, %v102_v42  ;;  %v213_v2 = vsel %vm17122_vm5, 0, %v212_v38  ;;  %v298_v10 = vld [vmem:[%s20673_s0 + $0x118] sm:$0xff]  ;;  %v105_v15 = vld [vmem:[#allocation2 + $0xf0] sm:$0x1] }
  0x6b   :  { %v2191_v62 = vrot.slane %v2189_v54, 1  ;;  %v2196_v5 = vrot.slane %v2194_v58, 1  ;;  %v16109_v6 = vld [vmem:[#allocation2 + $0xa8] sm:$0xff]   ;;  %v774_v7 = vsel %vm17173_vm8, %v766_v46, %v773_v59  ;;  %1264 = vst [vmem:[#allocation2 + $0xb4] sm:$0xf] %v1263_v63  ;;  %v794_v9 = vshrl.u32 %v15764_v52, 16 }
  0x6c   :  { %v1267_v8 = vsel %vm17107_vm3, %v775_v60, %v1266_v56  ;;  %104 = vst [vmem:[#allocation2 + $0xe4] sm:$0x1] %v103_v0  ;;  %214 = vst [vmem:[#allocation2 + $0xec] sm:$0x1] %v213_v2  ;;  %v797_v14 = vshll.u32 %v15764_v52, 16  ;;  %v2199_v16 = vshrl.u32 %v16109_v6, 16  ;;  %v17482_v25 = vpack.c.bf16 %v298_v10, %v298_v10 }
  0x6d   :  { %v2192_v11 = vor.u32 %v2191_v62, %v2187_v53  ;;  %v16110_v12 = vld [vmem:[#allocation2 + $0xb0] ss:$0 sps:$4 sm:$0x11]   ;;  %1265 = vst.msk [vmem:[#allocation2 + $0xb8] sm:$0xf] %vm27_vm0, %v774_v7  ;;  %v2201_v18 = vshll.u32 %v16109_v6, 16 }
  0x6e   :  { %1268 = vst [vmem:[#allocation2 + $0xbc] sm:$0x1] %v1267_v8  ;;  %v16113_v19 = vld [vmem:[#allocation2 + $0xd8] sm:$0xff]   ;;  %v796_v20 = vrot.slane %v794_v9, 7  ;;  %v2206_v22 = vshll.u32 %v16110_v12, 16  ;;  %v299_v30 = vld [vmem:[%s20673_s0 + $0x120] sm:$0xff] }
  0x6f   :  { %v2197_v21 = vsel %vm2029_vm9, %v2192_v11, %v2196_v5  ;;  %v16114_v23 = vld [vmem:[#allocation2 + $0xe0] ss:$0 sps:$4 sm:$0x11]   ;;  %v2203_v26 = vrot.slane %v2201_v18, 1  ;;  %v2223_v28 = vshrl.u32 %v16113_v19, 16  ;;  %v2225_v17 = vshll.u32 %v16113_v19, 16 }
  0x70   :  { %2440 = vrot.lane.b32.xlu1 %v2197_v21, %s17054_s27  ;;  %v799_v29 = vor.u32 %v797_v14, %v796_v20  ;;  %v300_v31 = vld [vmem:[%s20673_s0 + $0x128] sm:$0xff]  ;;  %v2208_v32 = vrot.slane %v2206_v22, 1  ;;  %v2230_v33 = vshll.u32 %v16114_v23, 16  ;;  %v800_v34 = vrot.slane %v796_v20, 4  ;;  %v215_v36 = vld [vmem:[#allocation2 + $0xf8] sm:$0x1] }
  0x71   :  { %v802_v35 = vshrl.u32 %v15765_v13, 16  ;;  %v2204_v37 = vor.u32 %v2203_v26, %v2199_v16  ;;  %v2227_v39 = vrot.slane %v2225_v17, 1  ;;  %v805_v40 = vshll.u32 %v15765_v13, 16  ;;  %v301_v42 = vld [vmem:[%s20673_s0 + $0x130] sm:$0xff]  ;;  %v302_v38 = vld [vmem:[%s20673_s0 + $0x138] sm:$0xff]  ;;  %s17061_s25 = smov 32  }
  0x72   :  { %v106_v41 = vsel %vm17107_vm3, 0, %v105_v15  ;;  %v2232_v43 = vrot.slane %v2230_v33, 1  ;;  %v15768_v46 = vpack.c.bf16 %v299_v30, %v299_v30  ;;  %v17499_v47 = vpack.c.bf16 %v300_v31, %v300_v31  ;;  %v108_v54 = vld [vmem:[#allocation2 + $0xfc] sm:$0x1]  ;;  %v218_v2 = vld [vmem:[#allocation2 + $0x104] sm:$0x1] }
  0x73   :  { %v804_v44 = vrot.slane %v802_v35, 7  ;;  %v1276_v45 = vld [vmem:[#allocation2 + $0xe4] sm:$0xf]  ;;  %107 = vst [vmem:[#allocation2 + $0xf0] sm:$0x1] %v106_v41  ;;  %v2209_v48 = vsel %vm2029_vm9, %v2204_v37, %v2208_v32  ;;  %v2228_v51 = vor.u32 %v2227_v39, %v2223_v28  ;;  %v216_v53 = vsel %vm17122_vm5, 0, %v215_v36 }
  0x74   :  { %v16111_v50 = vld [vmem:[#allocation2 + $0xb4] sm:$0xff]   ;;  %v1277_v52 = vsel %vm17153_vm7, %v799_v29, %v1276_v45  ;;  %2442 = vrot.lane.b32.xlu0 %v2209_v48, %s17054_s27  ;;  %v1280_v58 = vld [vmem:[#allocation2 + $0xec] sm:$0x1]  ;;  %217 = vst [vmem:[#allocation2 + $0xf8] sm:$0x1] %v216_v53  ;;  %v17507_v59 = vpack.c.bf16 %v301_v42, %v301_v42  ;;  %v17509_v60 = vpack.c.bf16 %v302_v38, %v302_v38  ;;  %v811_v0 = vshrl.u32 %v17480_v24, 16 }
  0x75   :  { %v16112_v55 = vld [vmem:[#allocation2 + $0xbc] ss:$0 sps:$4 sm:$0x11]   ;;  %v807_v56 = vor.u32 %v805_v40, %v804_v44  ;;  %v809_v57 = vrot.slane %v804_v44, 4  ;;  %1278 = vst [vmem:[#allocation2 + $0xe4] sm:$0xf] %v1277_v52  ;;  %v2233_v63 = vsel %vm2029_vm9, %v2228_v51, %v2232_v43 }
  0x76   :  { %v2211_v61 = vshrl.u32 %v16111_v50, 16  ;;  %v2213_v62 = vshll.u32 %v16111_v50, 16  ;;  %v2218_v4 = vshll.u32 %v16112_v55, 16  ;;  %v814_v7 = vshll.u32 %v17480_v24, 16  ;;  %v111_v22 = vld [vmem:[#allocation2 + $0x108] sm:$0x1] }
  0x77   :  { %v808_v5 = vsel %vm17173_vm8, %v800_v34, %v807_v56  ;;  %v1281_v6 = vsel %vm17107_vm3, %v809_v57, %v1280_v58  ;;  %v813_v9 = vrot.slane %v811_v0, 7  ;;  %v819_v10 = vshrl.u32 %v17482_v25, 16  ;;  %v221_v28 = vld [vmem:[#allocation2 + $0x110] sm:$0x1]  ;;  %v303_v37 = vld [vmem:[%s20673_s0 + $0x140] sm:$0xff]  ;;  %v304_v38 = vld [vmem:[%s20673_s0 + $0x148] sm:$0xff] }
  0x78   :  { %v2215_v8 = vrot.slane %v2213_v62, 1  ;;  %1279 = vst.msk [vmem:[#allocation2 + $0xe8] sm:$0xf] %vm27_vm0, %v808_v5  ;;  %1282 = vst [vmem:[#allocation2 + $0xec] sm:$0x1] %v1281_v6  ;;  %v822_v11 = vshll.u32 %v17482_v25, 16  ;;  %2446 = vrot.lane.b32.xlu0 %v2233_v63, %s17054_s27  ;;  %v15772_v53 = vpack.c.bf16 %v303_v37, %v303_v37 }
  0x79   :  { %v2220_v12 = vrot.slane %v2218_v4, 1  ;;  %v109_v13 = vsel %vm17107_vm3, 0, %v108_v54  ;;  %v219_v14 = vsel %vm17122_vm5, 0, %v218_v2  ;;  %v828_v15 = vshrl.u32 %v15768_v46, 16 }
  0x7a   :  { %v2216_v16 = vor.u32 %v2215_v8, %v2211_v61  ;;  %v816_v18 = vor.u32 %v814_v7, %v813_v9  ;;  %v817_v19 = vrot.slane %v813_v9, 4  ;;  %v821_v20 = vrot.slane %v819_v10, 7  ;;  %v1283_v21 = vld [vmem:[#allocation2 + $0xf0] sm:$0xf]  ;;  %110 = vst [vmem:[#allocation2 + $0xfc] sm:$0x1] %v109_v13 }
  0x7b   :  { %220 = vst [vmem:[#allocation2 + $0x104] sm:$0x1] %v219_v14  ;;  %v830_v23 = vrot.slane %v828_v15, 7  ;;  %v831_v24 = vshll.u32 %v15768_v46, 16  ;;  %v836_v25 = vshrl.u32 %v17499_v47, 16  ;;  %v839_v26 = vshll.u32 %v17499_v47, 16 }
  0x7c   :  { %v2221_v17 = vsel %vm2029_vm9, %v2216_v16, %v2220_v12  ;;  %v824_v29 = vor.u32 %v822_v11, %v821_v20  ;;  %v826_v30 = vrot.slane %v821_v20, 4  ;;  %v1284_v31 = vsel %vm17153_vm7, %v816_v18, %v1283_v21  ;;  %v1287_v32 = vld [vmem:[#allocation2 + $0xf8] sm:$0x1]  ;;  %v114_v46 = vld [vmem:[#allocation2 + $0x114] sm:$0x1] }
  0x7d   :  { %2444 = vrot.lane.b32.xlu1 %v2221_v17, %s17054_s27  ;;  %1285 = vst [vmem:[#allocation2 + $0xf0] sm:$0xf] %v1284_v31  ;;  %v833_v33 = vor.u32 %v831_v24, %v830_v23  ;;  %v834_v34 = vrot.slane %v830_v23, 4  ;;  %v838_v35 = vrot.slane %v836_v25, 7  ;;  %v112_v36 = vsel %vm17107_vm3, 0, %v111_v22  ;;  %v305_v16 = vld [vmem:[%s20673_s0 + $0x150] sm:$0xff] }
  0x7e   :  { %v825_v39 = vsel %vm17173_vm8, %v817_v19, %v824_v29  ;;  %v1288_v40 = vsel %vm17107_vm3, %v826_v30, %v1287_v32  ;;  %113 = vst [vmem:[#allocation2 + $0x108] sm:$0x1] %v112_v36  ;;  %v222_v41 = vsel %vm17122_vm5, 0, %v221_v28  ;;  %v845_v42 = vshrl.u32 %v17507_v59, 16  ;;  %v224_v47 = vld [vmem:[#allocation2 + $0x11c] sm:$0x1] }
  0x7f   :  { %v16115_v43 = vld [vmem:[#allocation2 + $0xe4] sm:$0xff]   ;;  %1286 = vst.msk [vmem:[#allocation2 + $0xf4] sm:$0xf] %vm27_vm0, %v825_v39  ;;  %1289 = vst [vmem:[#allocation2 + $0xf8] sm:$0x1] %v1288_v40  ;;  %v841_v44 = vor.u32 %v839_v26, %v838_v35  ;;  %v843_v45 = vrot.slane %v838_v35, 4  ;;  %v15773_v61 = vpack.c.bf16 %v304_v38, %v304_v38  ;;  %v15774_v39 = vpack.c.bf16 %v305_v16, %v305_v16 }
  0x80   :  { %223 = vst [vmem:[#allocation2 + $0x110] sm:$0x1] %v222_v41  ;;  %v16116_v48 = vld [vmem:[#allocation2 + $0xec] ss:$0 sps:$4 sm:$0x11]   ;;  %v847_v50 = vrot.slane %v845_v42, 7 }
  0x81   :  { %v848_v51 = vshll.u32 %v17507_v59, 16  ;;  %v853_v52 = vshrl.u32 %v17509_v60, 16  ;;  %v2235_v54 = vshrl.u32 %v16115_v43, 16  ;;  %v2237_v55 = vshll.u32 %v16115_v43, 16  ;;  %v1290_v57 = vld [vmem:[#allocation2 + $0xfc] sm:$0xf] }
  0x82   :  { %v842_v56 = vsel %vm17173_vm8, %v834_v34, %v841_v44  ;;  %v1294_v58 = vld [vmem:[#allocation2 + $0x104] sm:$0x1]  ;;  %v2242_v62 = vshll.u32 %v16116_v48, 16  ;;  %v1291_v63 = vsel %vm17153_vm7, %v833_v33, %v1290_v57  ;;  %v851_v4 = vrot.slane %v847_v50, 4  ;;  %v117_v30 = vld [vmem:[#allocation2 + $0x120] sm:$0x1] }
  0x83   :  { %1293 = vst.msk [vmem:[#allocation2 + $0x100] sm:$0xf] %vm27_vm0, %v842_v56  ;;  %v1295_v59 = vsel %vm17107_vm3, %v843_v45, %v1294_v58  ;;  %v850_v0 = vor.u32 %v848_v51, %v847_v50  ;;  %v2239_v2 = vrot.slane %v2237_v55, 1  ;;  %1292 = vst [vmem:[#allocation2 + $0xfc] sm:$0xf] %v1291_v63  ;;  %v855_v5 = vrot.slane %v853_v52, 7 }
  0x84   :  { %1296 = vst [vmem:[#allocation2 + $0x104] sm:$0x1] %v1295_v59  ;;  %v856_v6 = vshll.u32 %v17509_v60, 16  ;;  %v2244_v7 = vrot.slane %v2242_v62, 1  ;;  %v115_v8 = vsel %vm17107_vm3, 0, %v114_v46  ;;  %v225_v9 = vsel %vm17122_vm5, 0, %v224_v47 }
  0x85   :  { %v862_v10 = vshrl.u32 %v15772_v53, 16  ;;  %v2240_v11 = vor.u32 %v2239_v2, %v2235_v54  ;;  %v860_v13 = vrot.slane %v855_v5, 4  ;;  %v1297_v14 = vld [vmem:[#allocation2 + $0x108] sm:$0xf]  ;;  %116 = vst [vmem:[#allocation2 + $0x114] sm:$0x1] %v115_v8 }
  0x86   :  { %v858_v12 = vor.u32 %v856_v6, %v855_v5  ;;  %226 = vst [vmem:[#allocation2 + $0x11c] sm:$0x1] %v225_v9  ;;  %v865_v15 = vshll.u32 %v15772_v53, 16  ;;  %v306_v60 = vld [vmem:[%s20673_s0 + $0x158] sm:$0xff]  ;;  %v16117_v18 = vld [vmem:[#allocation2 + $0xf0] sm:$0xff]   ;;  %v1298_v19 = vsel %vm17153_vm7, %v850_v0, %v1297_v14  ;;  %v870_v25 = vshrl.u32 %v15773_v61, 16 }
  0x87   :  { %v864_v20 = vrot.slane %v862_v10, 7  ;;  %v2245_v21 = vsel %vm2029_vm9, %v2240_v11, %v2244_v7  ;;  %v16118_v22 = vld [vmem:[#allocation2 + $0xf8] ss:$0 sps:$4 sm:$0x11]   ;;  %1299 = vst [vmem:[#allocation2 + $0x108] sm:$0xf] %v1298_v19  ;;  %v15775_v40 = vpack.c.bf16 %v306_v60, %v306_v60 }
  0x88   :  { %v859_v23 = vsel %vm17173_vm8, %v851_v4, %v858_v12  ;;  %v1301_v24 = vld [vmem:[#allocation2 + $0x110] sm:$0x1]  ;;  %2448 = vrot.lane.b32.xlu1 %v2245_v21, %s17054_s27  ;;  %v2247_v26 = vshrl.u32 %v16117_v18, 16  ;;  %v2249_v28 = vshll.u32 %v16117_v18, 16  ;;  %v2254_v31 = vshll.u32 %v16118_v22, 16  ;;  %v307_v55 = vld [vmem:[%s20673_s0 + $0x160] sm:$0xff] }
  0x89   :  { %1300 = vst.msk [vmem:[#allocation2 + $0x10c] sm:$0xf] %vm27_vm0, %v859_v23  ;;  %v1302_v17 = vsel %vm17107_vm3, %v860_v13, %v1301_v24  ;;  %v867_v29 = vor.u32 %v865_v15, %v864_v20  ;;  %v868_v32 = vrot.slane %v864_v20, 4  ;;  %v872_v33 = vrot.slane %v870_v25, 7  ;;  %v227_v35 = vld [vmem:[#allocation2 + $0x128] sm:$0x1] }
  0x8a   :  { %1303 = vst [vmem:[#allocation2 + $0x110] sm:$0x1] %v1302_v17  ;;  %v873_v34 = vshll.u32 %v15773_v61, 16  ;;  %v2251_v36 = vrot.slane %v2249_v28, 1  ;;  %v16119_v37 = vld [vmem:[#allocation2 + $0xfc] sm:$0xff]   ;;  %v2256_v41 = vrot.slane %v2254_v31, 1  ;;  %v15776_v9 = vpack.c.bf16 %v307_v55, %v307_v55 }
  0x8b   :  { %v16120_v42 = vld [vmem:[#allocation2 + $0x104] ss:$0 sps:$4 sm:$0x11]   ;;  %v877_v43 = vrot.slane %v872_v33, 4  ;;  %v118_v44 = vsel %vm17107_vm3, 0, %v117_v30  ;;  %v2259_v46 = vshrl.u32 %v16119_v37, 16 }
  0x8c   :  { %v875_v38 = vor.u32 %v873_v34, %v872_v33  ;;  %v2252_v45 = vor.u32 %v2251_v36, %v2247_v26  ;;  %v2261_v47 = vshll.u32 %v16119_v37, 16  ;;  %v1304_v48 = vld [vmem:[#allocation2 + $0x114] sm:$0xf]  ;;  %119 = vst [vmem:[#allocation2 + $0x120] sm:$0x1] %v118_v44  ;;  %v2266_v51 = vshll.u32 %v16120_v42, 16 }
  0x8d   :  { %v1308_v50 = vld [vmem:[#allocation2 + $0x11c] sm:$0x1]  ;;  %v1305_v53 = vsel %vm17153_vm7, %v867_v29, %v1304_v48  ;;  %v308_v56 = vld [vmem:[%s20673_s0 + $0x168] sm:$0xff]  ;;  %v228_v61 = vsel %vm17122_vm5, 0, %v227_v35  ;;  %v879_v62 = vshrl.u32 %v15774_v39, 16  ;;  %v882_v2 = vshll.u32 %v15774_v39, 16 }
  0x8e   :  { %v876_v52 = vsel %vm17173_vm8, %v868_v32, %v875_v38  ;;  %v1309_v54 = vsel %vm17107_vm3, %v877_v43, %v1308_v50  ;;  %v2257_v57 = vsel %vm2029_vm9, %v2252_v45, %v2256_v41  ;;  %v2263_v58 = vrot.slane %v2261_v47, 1  ;;  %1306 = vst [vmem:[#allocation2 + $0x114] sm:$0xf] %v1305_v53  ;;  %v120_v63 = vld [vmem:[#allocation2 + $0x12c] sm:$0x1]  ;;  %v309_v15 = vld [vmem:[%s20673_s0 + $0x170] sm:$0xff] }
  0x8f   :  { %1307 = vst.msk [vmem:[#allocation2 + $0x118] sm:$0xf] %vm27_vm0, %v876_v52  ;;  %1310 = vst [vmem:[#allocation2 + $0x11c] sm:$0x1] %v1309_v54  ;;  %2450 = vrot.lane.b32.xlu0 %v2257_v57, %s17054_s27  ;;  %v2268_v59 = vrot.slane %v2266_v51, 1  ;;  %v887_v4 = vshrl.u32 %v15775_v40, 16  ;;  %v17596_v10 = vpack.c.bf16 %v308_v56, %v308_v56 }
  0x90   :  { %v16121_v0 = vld [vmem:[#allocation2 + $0x108] sm:$0xff]   ;;  %229 = vst [vmem:[#allocation2 + $0x128] sm:$0x1] %v228_v61  ;;  %v230_v5 = vld [vmem:[#allocation2 + $0x134] sm:$0x1]  ;;  %v2264_v6 = vor.u32 %v2263_v58, %v2259_v46  ;;  %v881_v8 = vrot.slane %v879_v62, 7 }
  0x91   :  { %v16122_v7 = vld [vmem:[#allocation2 + $0x110] ss:$0 sps:$4 sm:$0x11]   ;;  %v2271_v11 = vshrl.u32 %v16121_v0, 16  ;;  %v2273_v12 = vshll.u32 %v16121_v0, 16  ;;  %v889_v13 = vrot.slane %v887_v4, 7 }
  0x92   :  { %v890_v14 = vshll.u32 %v15775_v40, 16  ;;  %v2269_v16 = vsel %vm2029_vm9, %v2264_v6, %v2268_v59  ;;  %v2278_v60 = vshll.u32 %v16122_v7, 16  ;;  %v884_v18 = vor.u32 %v882_v2, %v881_v8  ;;  %v310_v20 = vld [vmem:[%s20673_s0 + $0x178] sm:$0xff]  ;;  %v311_v21 = vld [vmem:[%s20673_s0 + $0x180] sm:$0xff]  ;;  %v312_v28 = vld [vmem:[%s20673_s0 + $0x188] sm:$0xff] }
  0x93   :  { %v885_v19 = vrot.slane %v881_v8, 4  ;;  %2452 = vrot.lane.b32.xlu1 %v2269_v16, %s17054_s27  ;;  %v2275_v22 = vrot.slane %v2273_v12, 1  ;;  %v894_v24 = vrot.slane %v889_v13, 4  ;;  %v1311_v25 = vld [vmem:[#allocation2 + $0x120] sm:$0xf]  ;;  %v121_v26 = vsel %vm17107_vm3, 0, %v120_v63 }
  0x94   :  { %v892_v23 = vor.u32 %v890_v14, %v889_v13  ;;  %v2280_v17 = vrot.slane %v2278_v60, 1  ;;  %v1312_v29 = vsel %vm17153_vm7, %v884_v18, %v1311_v25  ;;  %122 = vst [vmem:[#allocation2 + $0x12c] sm:$0x1] %v121_v26  ;;  %v231_v30 = vsel %vm17122_vm5, 0, %v230_v5  ;;  %v123_v32 = vld [vmem:[#allocation2 + $0x138] sm:$0x1] }
  0x95   :  { %v896_v31 = vshrl.u32 %v15776_v9, 16  ;;  %v2276_v33 = vor.u32 %v2275_v22, %v2271_v11  ;;  %1313 = vst [vmem:[#allocation2 + $0x120] sm:$0xf] %v1312_v29  ;;  %232 = vst [vmem:[#allocation2 + $0x134] sm:$0x1] %v231_v30  ;;  %v15778_v40 = vpack.c.bf16 %v309_v15, %v309_v15  ;;  %v15779_v41 = vpack.c.bf16 %v310_v20, %v310_v20  ;;  %v313_v58 = vld [vmem:[%s20673_s0 + $0x190] sm:$0xff] }
  0x96   :  { %v893_v34 = vsel %vm17173_vm8, %v885_v19, %v892_v23  ;;  %v233_v35 = vld [vmem:[#allocation2 + $0x140] sm:$0x1]  ;;  %v16123_v36 = vld [vmem:[#allocation2 + $0x114] sm:$0xff]   ;;  %v16124_v37 = vld [vmem:[#allocation2 + $0x11c] ss:$0 sps:$4 sm:$0x11]   ;;  %v17621_v42 = vpack.c.bf16 %v311_v21, %v311_v21  ;;  %v17623_v38 = vpack.c.bf16 %v312_v28, %v312_v28  ;;  %v17645_v60 = vpack.c.bf16 %v313_v58, %v313_v58 }
  0x97   :  { %1314 = vst.msk [vmem:[#allocation2 + $0x124] sm:$0xf] %vm27_vm0, %v893_v34  ;;  %v1315_v39 = vld [vmem:[#allocation2 + $0x128] sm:$0x1]  ;;  %v2281_v43 = vsel %vm2029_vm9, %v2276_v33, %v2280_v17  ;;  %v898_v45 = vrot.slane %v896_v31, 7  ;;  %v899_v46 = vshll.u32 %v15776_v9, 16 }
  0x98   :  { %v1316_v44 = vsel %vm17107_vm3, %v894_v24, %v1315_v39  ;;  %2454 = vrot.lane.b32.xlu0 %v2281_v43, %s17054_s27  ;;  %v2283_v47 = vshrl.u32 %v16123_v36, 16  ;;  %v2285_v48 = vshll.u32 %v16123_v36, 16  ;;  %v2290_v50 = vshll.u32 %v16124_v37, 16  ;;  %v126_v52 = vld [vmem:[#allocation2 + $0x144] sm:$0x1]  ;;  %v314_v12 = vld [vmem:[%s20673_s0 + $0x198] sm:$0xff] }
  0x99   :  { %1317 = vst [vmem:[#allocation2 + $0x128] sm:$0x1] %v1316_v44  ;;  %v904_v51 = vshrl.u32 %v17596_v10, 16  ;;  %v901_v53 = vor.u32 %v899_v46, %v898_v45  ;;  %v902_v54 = vrot.slane %v898_v45, 4  ;;  %v907_v55 = vshll.u32 %v17596_v10, 16 }
  0x9a   :  { %v124_v56 = vsel %vm17107_vm3, 0, %v123_v32  ;;  %v236_v57 = vld [vmem:[#allocation2 + $0x14c] sm:$0x1]  ;;  %v2287_v61 = vrot.slane %v2285_v48, 1  ;;  %v2292_v62 = vrot.slane %v2290_v50, 1  ;;  %v234_v59 = vsel %vm17122_vm5, 0, %v233_v35 }
  0x9b   :  { %v906_v63 = vrot.slane %v904_v51, 7  ;;  %125 = vst [vmem:[#allocation2 + $0x138] sm:$0x1] %v124_v56  ;;  %v1318_v0 = vld [vmem:[#allocation2 + $0x12c] sm:$0xf]  ;;  %v913_v2 = vshrl.u32 %v15778_v40, 16  ;;  %v15783_v17 = vpack.c.bf16 %v314_v12, %v314_v12 }
  0x9c   :  { %235 = vst [vmem:[#allocation2 + $0x140] sm:$0x1] %v234_v59  ;;  %v916_v4 = vshll.u32 %v15778_v40, 16  ;;  %v921_v5 = vshrl.u32 %v15779_v41, 16  ;;  %v924_v6 = vshll.u32 %v15779_v41, 16  ;;  %v2288_v7 = vor.u32 %v2287_v61, %v2283_v47 }
  0x9d   :  { %v909_v8 = vor.u32 %v907_v55, %v906_v63  ;;  %v911_v9 = vrot.slane %v906_v63, 4  ;;  %v1319_v10 = vsel %vm17153_vm7, %v901_v53, %v1318_v0  ;;  %v1322_v11 = vld [vmem:[#allocation2 + $0x134] sm:$0x1]  ;;  %v915_v14 = vrot.slane %v913_v2, 7  ;;  %v129_v22 = vld [vmem:[#allocation2 + $0x150] sm:$0x1] }
  0x9e   :  { %v16125_v13 = vld [vmem:[#allocation2 + $0x120] sm:$0xff]   ;;  %1320 = vst [vmem:[#allocation2 + $0x12c] sm:$0xf] %v1319_v10  ;;  %v923_v15 = vrot.slane %v921_v5, 7  ;;  %v127_v16 = vsel %vm17107_vm3, 0, %v126_v52  ;;  %v2293_v18 = vsel %vm2029_vm9, %v2288_v7, %v2292_v62  ;;  %v237_v21 = vsel %vm17122_vm5, 0, %v236_v57 }
  0x9f   :  { %v910_v19 = vsel %vm17173_vm8, %v902_v54, %v909_v8  ;;  %v1323_v20 = vsel %vm17107_vm3, %v911_v9, %v1322_v11  ;;  %128 = vst [vmem:[#allocation2 + $0x144] sm:$0x1] %v127_v16  ;;  %2456 = vrot.lane.b32.xlu1 %v2293_v18, %s17054_s27  ;;  %v2295_v24 = vshrl.u32 %v16125_v13, 16  ;;  %v918_v25 = vor.u32 %v916_v4, %v915_v14  ;;  %v239_v28 = vld [vmem:[#allocation2 + $0x158] sm:$0x1]  ;;  %v315_v63 = vld [vmem:[%s20673_s0 + $0x1a0] sm:$0xff] }
  0xa0   :  { %v16126_v23 = vld [vmem:[#allocation2 + $0x128] ss:$0 sps:$4 sm:$0x11]   ;;  %1321 = vst.msk [vmem:[#allocation2 + $0x130] sm:$0xf] %vm27_vm0, %v910_v19  ;;  %v926_v26 = vor.u32 %v924_v6, %v923_v15  ;;  %v2297_v29 = vshll.u32 %v16125_v13, 16 }
  0xa1   :  { %1324 = vst [vmem:[#allocation2 + $0x134] sm:$0x1] %v1323_v20  ;;  %238 = vst [vmem:[#allocation2 + $0x14c] sm:$0x1] %v237_v21  ;;  %v919_v30 = vrot.slane %v915_v14, 4  ;;  %v928_v31 = vrot.slane %v923_v15, 4  ;;  %v15784_v21 = vpack.c.bf16 %v315_v63, %v315_v63 }
  0xa2   :  { %v930_v32 = vshrl.u32 %v17621_v42, 16  ;;  %v2302_v33 = vshll.u32 %v16126_v23, 16  ;;  %v1325_v34 = vld [vmem:[#allocation2 + $0x138] sm:$0xf]  ;;  %v933_v35 = vshll.u32 %v17621_v42, 16  ;;  %v938_v36 = vshrl.u32 %v17623_v38, 16 }
  0xa3   :  { %v941_v37 = vshll.u32 %v17623_v38, 16  ;;  %v2299_v39 = vrot.slane %v2297_v29, 1  ;;  %v927_v40 = vsel %vm17173_vm8, %v919_v30, %v926_v26  ;;  %v1326_v41 = vsel %vm17153_vm7, %v918_v25, %v1325_v34  ;;  %v1329_v43 = vld [vmem:[#allocation2 + $0x140] sm:$0x1]  ;;  %v132_v9 = vld [vmem:[#allocation2 + $0x15c] sm:$0x1] }
  0xa4   :  { %v932_v44 = vrot.slane %v930_v32, 7  ;;  %v2304_v45 = vrot.slane %v2302_v33, 1  ;;  %1327 = vst [vmem:[#allocation2 + $0x138] sm:$0xf] %v1326_v41  ;;  %1328 = vst.msk [vmem:[#allocation2 + $0x13c] sm:$0xf] %vm27_vm0, %v927_v40  ;;  %v1330_v42 = vsel %vm17107_vm3, %v928_v31, %v1329_v43 }
  0xa5   :  { %v940_v46 = vrot.slane %v938_v36, 7  ;;  %v130_v38 = vsel %vm17107_vm3, 0, %v129_v22  ;;  %v2300_v47 = vor.u32 %v2299_v39, %v2295_v24  ;;  %1331 = vst [vmem:[#allocation2 + $0x140] sm:$0x1] %v1330_v42  ;;  %v240_v51 = vsel %vm17122_vm5, 0, %v239_v28  ;;  %v316_v10 = vld [vmem:[%s20673_s0 + $0x1a8] sm:$0xff] }
  0xa6   :  { %v935_v48 = vor.u32 %v933_v35, %v932_v44  ;;  %v936_v50 = vrot.slane %v932_v44, 4  ;;  %131 = vst [vmem:[#allocation2 + $0x150] sm:$0x1] %v130_v38  ;;  %v1332_v54 = vld [vmem:[#allocation2 + $0x144] sm:$0xf]  ;;  %v947_v55 = vshrl.u32 %v17645_v60, 16  ;;  %v15785_v22 = vpack.c.bf16 %v316_v10, %v316_v10 }
  0xa7   :  { %v943_v52 = vor.u32 %v941_v37, %v940_v46  ;;  %v945_v53 = vrot.slane %v940_v46, 4  ;;  %241 = vst [vmem:[#allocation2 + $0x158] sm:$0x1] %v240_v51  ;;  %v950_v56 = vshll.u32 %v17645_v60, 16  ;;  %v2305_v57 = vsel %vm2029_vm9, %v2300_v47, %v2304_v45  ;;  %v16127_v58 = vld [vmem:[#allocation2 + $0x12c] sm:$0xff]  }
  0xa8   :  { %v1333_v61 = vsel %vm17153_vm7, %v935_v48, %v1332_v54  ;;  %v955_v62 = vshrl.u32 %v15783_v17, 16  ;;  %2458 = vrot.lane.b32.xlu0 %v2305_v57, %s17054_s27  ;;  %v16128_v59 = vld [vmem:[#allocation2 + $0x134] ss:$0 sps:$4 sm:$0x11]   ;;  %v1336_v2 = vld [vmem:[#allocation2 + $0x14c] sm:$0x1] }
  0xa9   :  { %v944_v0 = vsel %vm17173_vm8, %v936_v50, %v943_v52  ;;  %1334 = vst [vmem:[#allocation2 + $0x144] sm:$0xf] %v1333_v61  ;;  %v949_v4 = vrot.slane %v947_v55, 7  ;;  %v2307_v5 = vshrl.u32 %v16127_v58, 16  ;;  %v2309_v6 = vshll.u32 %v16127_v58, 16  ;;  %v317_v34 = vld [vmem:[%s20673_s0 + $0x1b0] sm:$0xff] }
  0xaa   :  { %1335 = vst.msk [vmem:[#allocation2 + $0x148] sm:$0xf] %vm27_vm0, %v944_v0  ;;  %v1337_v7 = vsel %vm17107_vm3, %v945_v53, %v1336_v2  ;;  %v957_v8 = vrot.slane %v955_v62, 7  ;;  %v2314_v11 = vshll.u32 %v16128_v59, 16  ;;  %v958_v14 = vshll.u32 %v15783_v17, 16  ;;  %v318_v57 = vld [vmem:[%s20673_s0 + $0x1b8] sm:$0xff] }
  0xab   :  { %1338 = vst [vmem:[#allocation2 + $0x14c] sm:$0x1] %v1337_v7  ;;  %v952_v12 = vor.u32 %v950_v56, %v949_v4  ;;  %v953_v13 = vrot.slane %v949_v4, 4  ;;  %v242_v15 = vld [vmem:[#allocation2 + $0x164] sm:$0x1]  ;;  %v2311_v16 = vrot.slane %v2309_v6, 1  ;;  %v15786_v47 = vpack.c.bf16 %v317_v34, %v317_v34 }
  0xac   :  { %v16129_v60 = vld [vmem:[#allocation2 + $0x138] sm:$0xff]   ;;  %v2316_v18 = vrot.slane %v2314_v11, 1  ;;  %v16130_v19 = vld [vmem:[#allocation2 + $0x140] ss:$0 sps:$4 sm:$0x11]   ;;  %v960_v20 = vor.u32 %v958_v14, %v957_v8  ;;  %v962_v26 = vrot.slane %v957_v8, 4  ;;  %v15787_v11 = vpack.c.bf16 %v318_v57, %v318_v57 }
  0xad   :  { %v2312_v23 = vor.u32 %v2311_v16, %v2307_v5  ;;  %v2319_v24 = vshrl.u32 %v16129_v60, 16  ;;  %v2321_v25 = vshll.u32 %v16129_v60, 16  ;;  %v1339_v28 = vld [vmem:[#allocation2 + $0x150] sm:$0xf]  ;;  %v2326_v29 = vshll.u32 %v16130_v19, 16  ;;  %v319_v58 = vld [vmem:[%s20673_s0 + $0x1c0] sm:$0xff] }
  0xae   :  { %v961_v30 = vsel %vm17173_vm8, %v953_v13, %v960_v20  ;;  %v1340_v17 = vsel %vm17153_vm7, %v952_v12, %v1339_v28  ;;  %v1343_v31 = vld [vmem:[#allocation2 + $0x158] sm:$0x1]  ;;  %v133_v32 = vsel %vm17107_vm3, 0, %v132_v9  ;;  %v135_v33 = vld [vmem:[#allocation2 + $0x168] sm:$0x1]  ;;  %v243_v39 = vsel %vm17122_vm5, 0, %v242_v15 }
  0xaf   :  { %v2317_v35 = vsel %vm2029_vm9, %v2312_v23, %v2316_v18  ;;  %v2323_v36 = vrot.slane %v2321_v25, 1  ;;  %1341 = vst [vmem:[#allocation2 + $0x150] sm:$0xf] %v1340_v17  ;;  %1342 = vst.msk [vmem:[#allocation2 + $0x154] sm:$0xf] %vm27_vm0, %v961_v30  ;;  %v1344_v37 = vsel %vm17107_vm3, %v962_v26, %v1343_v31  ;;  %v2328_v41 = vrot.slane %v2326_v29, 1 }
  0xb0   :  { %134 = vst [vmem:[#allocation2 + $0x15c] sm:$0x1] %v133_v32  ;;  %v245_v40 = vld [vmem:[#allocation2 + $0x170] sm:$0x1]  ;;  %2460 = vrot.lane.b32.xlu1 %v2317_v35, %s17054_s27  ;;  %1345 = vst [vmem:[#allocation2 + $0x158] sm:$0x1] %v1344_v37  ;;  %v15788_v15 = vpack.c.bf16 %v319_v58, %v319_v58  ;;  %v17740_v37 = vpop.permute.xlu0 %2414 }
  0xb1   :  { %v16131_v43 = vld [vmem:[#allocation2 + $0x144] sm:$0xff]   ;;  %244 = vst [vmem:[#allocation2 + $0x164] sm:$0x1] %v243_v39  ;;  %v964_v44 = vshrl.u32 %v15784_v21, 16  ;;  %v967_v45 = vshll.u32 %v15784_v21, 16  ;;  %v2324_v42 = vor.u32 %v2323_v36, %v2319_v24  ;;  %v972_v38 = vshrl.u32 %v15785_v22, 16 }
  0xb2   :  { %v16132_v46 = vld [vmem:[#allocation2 + $0x14c] ss:$0 sps:$4 sm:$0x11]   ;;  %v2331_v48 = vshrl.u32 %v16131_v43, 16  ;;  %v2333_v50 = vshll.u32 %v16131_v43, 16  ;;  %v975_v52 = vshll.u32 %v15785_v22, 16 }
  0xb3   :  { %v966_v51 = vrot.slane %v964_v44, 7  ;;  %v2329_v53 = vsel %vm2029_vm9, %v2324_v42, %v2328_v41  ;;  %v2338_v54 = vshll.u32 %v16132_v46, 16  ;;  %v974_v55 = vrot.slane %v972_v38, 7  ;;  %v320_v61 = vld [vmem:[%s20673_s0 + $0x1c8] sm:$0xff]  ;;  %v321_v2 = vld [vmem:[%s20673_s0 + $0x1d0] sm:$0xff]  ;;  %v322_v8 = vld [vmem:[%s20673_s0 + $0x1d8] sm:$0xff] }
  0xb4   :  { %v136_v56 = vsel %vm17107_vm3, 0, %v135_v33  ;;  %2462 = vrot.lane.b32.xlu0 %v2329_v53, %s17054_s27  ;;  %v2335_v62 = vrot.slane %v2333_v50, 1  ;;  %v246_v0 = vsel %vm17122_vm5, 0, %v245_v40  ;;  %v981_v7 = vshrl.u32 %v15786_v47, 16  ;;  %v138_v13 = vld [vmem:[#allocation2 + $0x174] sm:$0x1] }
  0xb5   :  { %v969_v63 = vor.u32 %v967_v45, %v966_v51  ;;  %v970_v59 = vrot.slane %v966_v51, 4  ;;  %137 = vst [vmem:[#allocation2 + $0x168] sm:$0x1] %v136_v56  ;;  %v2340_v4 = vrot.slane %v2338_v54, 1  ;;  %v977_v5 = vor.u32 %v975_v52, %v974_v55  ;;  %247 = vst [vmem:[#allocation2 + $0x170] sm:$0x1] %v246_v0  ;;  %v17746_v45 = vpop.permute.xlu1 %2418 }
  0xb6   :  { %v979_v6 = vrot.slane %v974_v55, 4  ;;  %v2336_v9 = vor.u32 %v2335_v62, %v2331_v48  ;;  %v16133_v10 = vld [vmem:[#allocation2 + $0x150] sm:$0xff]   ;;  %v984_v12 = vshll.u32 %v15786_v47, 16  ;;  %v248_v14 = vld [vmem:[#allocation2 + $0x17c] sm:$0x1]  ;;  %v983_v18 = vrot.slane %v981_v7, 7  ;;  %v17771_v7 = vpop.permute.xlu0 %2416 }
  0xb7   :  { %v16134_v16 = vld [vmem:[#allocation2 + $0x158] ss:$0 sps:$4 sm:$0x11]   ;;  %v978_v60 = vsel %vm17173_vm8, %v970_v59, %v977_v5  ;;  %v17727_v19 = vpack.c.bf16 %v320_v61, %v320_v61  ;;  %v17729_v20 = vpack.c.bf16 %v321_v2, %v321_v2  ;;  %v2343_v22 = vshrl.u32 %v16133_v10, 16  ;;  %v1346_v24 = vld [vmem:[#allocation2 + $0x15c] sm:$0xf] }
  0xb8   :  { %v2341_v21 = vsel %vm2029_vm9, %v2336_v9, %v2340_v4  ;;  %v2345_v23 = vshll.u32 %v16133_v10, 16  ;;  %1349 = vst.msk [vmem:[#allocation2 + $0x160] sm:$0xf] %vm27_vm0, %v978_v60  ;;  %v1350_v25 = vld [vmem:[#allocation2 + $0x164] sm:$0x1]  ;;  %v17733_v28 = vpack.c.bf16 %v322_v8, %v322_v8  ;;  %v2350_v29 = vshll.u32 %v16134_v16, 16 }
  0xb9   :  { %v141_v26 = vld [vmem:[#allocation2 + $0x180] sm:$0x1]  ;;  %2464 = vrot.lane.b32.xlu1 %v2341_v21, %s17054_s27  ;;  %v1347_v30 = vsel %vm17153_vm7, %v969_v63, %v1346_v24  ;;  %v1351_v17 = vsel %vm17107_vm3, %v979_v6, %v1350_v25  ;;  %v986_v31 = vor.u32 %v984_v12, %v983_v18  ;;  %v251_v32 = vld [vmem:[#allocation2 + $0x188] sm:$0x1]  ;;  %v987_v34 = vrot.slane %v983_v18, 4 }
  0xba   :  { %v2347_v33 = vrot.slane %v2345_v23, 1  ;;  %1348 = vst [vmem:[#allocation2 + $0x15c] sm:$0xf] %v1347_v30  ;;  %1352 = vst [vmem:[#allocation2 + $0x164] sm:$0x1] %v1351_v17  ;;  %v989_v35 = vshrl.u32 %v15787_v11, 16 }
  0xbb   :  { %v992_v36 = vshll.u32 %v15787_v11, 16  ;;  %v2352_v39 = vrot.slane %v2350_v29, 1  ;;  %v139_v41 = vsel %vm17107_vm3, 0, %v138_v13  ;;  %v249_v43 = vsel %vm17122_vm5, 0, %v248_v14  ;;  %v323_v58 = vld [vmem:[%s20673_s0 + $0x1e0] sm:$0xff]  ;;  %v324_v0 = vld [vmem:[%s20673_s0 + $0x1e8] sm:$0xff]  ;;  %v17774_v13 = vpop.permute.xlu1 %2420 }
  0xbc   :  { %v1353_v40 = vld [vmem:[#allocation2 + $0x168] sm:$0xf]  ;;  %v998_v44 = vshrl.u32 %v15788_v15, 16  ;;  %v2348_v42 = vor.u32 %v2347_v33, %v2343_v22  ;;  %v991_v46 = vrot.slane %v989_v35, 7  ;;  %140 = vst [vmem:[#allocation2 + $0x174] sm:$0x1] %v139_v41  ;;  %v15792_v18 = vpack.c.bf16 %v323_v58, %v323_v58  ;;  %v17790_v41 = vpop.permute.xlu0 %2422 }
  0xbd   :  { %v1354_v38 = vsel %vm17153_vm7, %v986_v31, %v1353_v40  ;;  %250 = vst [vmem:[#allocation2 + $0x17c] sm:$0x1] %v249_v43  ;;  %v1001_v47 = vshll.u32 %v15788_v15, 16  ;;  %v1357_v48 = vld [vmem:[#allocation2 + $0x170] sm:$0x1]  ;;  %v1006_v51 = vshrl.u32 %v17727_v19, 16  ;;  %v15793_v24 = vpack.c.bf16 %v324_v0, %v324_v0 }
  0xbe   :  { %1355 = vst [vmem:[#allocation2 + $0x168] sm:$0xf] %v1354_v38  ;;  %v1000_v50 = vrot.slane %v998_v44, 7  ;;  %v1009_v52 = vshll.u32 %v17727_v19, 16  ;;  %v142_v53 = vsel %vm17107_vm3, 0, %v141_v26  ;;  %v2353_v54 = vsel %vm2029_vm9, %v2348_v42, %v2352_v39 }
  0xbf   :  { %v994_v55 = vor.u32 %v992_v36, %v991_v46  ;;  %v996_v56 = vrot.slane %v991_v46, 4  ;;  %143 = vst [vmem:[#allocation2 + $0x180] sm:$0x1] %v142_v53  ;;  %v252_v57 = vsel %vm17122_vm5, 0, %v251_v32  ;;  %2466 = vrot.lane.b32.xlu0 %v2353_v54, %s17054_s27  ;;  %v1008_v63 = vrot.slane %v1006_v51, 7  ;;  %v17796_v38 = vpop.permute.xlu1 %2424 }
  0xc0   :  { %v1003_v61 = vor.u32 %v1001_v47, %v1000_v50  ;;  %v1004_v62 = vrot.slane %v1000_v50, 4  ;;  %253 = vst [vmem:[#allocation2 + $0x188] sm:$0x1] %v252_v57  ;;  %v1015_v59 = vshrl.u32 %v17729_v20, 16  ;;  %v1018_v5 = vshll.u32 %v17729_v20, 16  ;;  %v17801_v0 = vpop.permute.xlu0 %2426 }
  0xc1   :  { %v995_v2 = vsel %vm17173_vm8, %v987_v34, %v994_v55  ;;  %v1358_v4 = vsel %vm17107_vm3, %v996_v56, %v1357_v48  ;;  %v1023_v6 = vshrl.u32 %v17733_v28, 16  ;;  %v16135_v8 = vld [vmem:[#allocation2 + $0x15c] sm:$0xff]   ;;  %v1011_v9 = vor.u32 %v1009_v52, %v1008_v63  ;;  %v144_v11 = vld [vmem:[#allocation2 + $0x18c] sm:$0x1]  ;;  %v254_v12 = vld [vmem:[#allocation2 + $0x194] sm:$0x1] }
  0xc2   :  { %1356 = vst.msk [vmem:[#allocation2 + $0x16c] sm:$0xf] %vm27_vm0, %v995_v2  ;;  %1359 = vst [vmem:[#allocation2 + $0x170] sm:$0x1] %v1358_v4  ;;  %v1013_v10 = vrot.slane %v1008_v63, 4  ;;  %v1017_v15 = vrot.slane %v1015_v59, 7 }
  0xc3   :  { %v16136_v14 = vld [vmem:[#allocation2 + $0x164] ss:$0 sps:$4 sm:$0x11]   ;;  %v1025_v16 = vrot.slane %v1023_v6, 7  ;;  %v1026_v60 = vshll.u32 %v17733_v28, 16  ;;  %v2355_v19 = vshrl.u32 %v16135_v8, 16  ;;  %v1012_v21 = vsel %vm17173_vm8, %v1004_v62, %v1011_v9 }
  0xc4   :  { %v2357_v20 = vshll.u32 %v16135_v8, 16  ;;  %v1360_v22 = vld [vmem:[#allocation2 + $0x174] sm:$0xf]  ;;  %v1364_v23 = vld [vmem:[#allocation2 + $0x17c] sm:$0x1]  ;;  %v2362_v25 = vshll.u32 %v16136_v14, 16  ;;  %v1020_v30 = vor.u32 %v1018_v5, %v1017_v15  ;;  %v17803_v8 = vpop.permute.xlu1 %2428 }
  0xc5   :  { %v1361_v26 = vsel %vm17153_vm7, %v1003_v61, %v1360_v22  ;;  %1363 = vst.msk [vmem:[#allocation2 + $0x178] sm:$0xf] %vm27_vm0, %v1012_v21  ;;  %v1365_v29 = vsel %vm17107_vm3, %v1013_v10, %v1364_v23  ;;  %v1021_v17 = vrot.slane %v1017_v15, 4  ;;  %v1028_v31 = vor.u32 %v1026_v60, %v1025_v16 }
  0xc6   :  { %v2359_v28 = vrot.slane %v2357_v20, 1  ;;  %1362 = vst [vmem:[#allocation2 + $0x174] sm:$0xf] %v1361_v26  ;;  %1366 = vst [vmem:[#allocation2 + $0x17c] sm:$0x1] %v1365_v29  ;;  %v1030_v32 = vrot.slane %v1025_v16, 4 }
  0xc7   :  { %v1367_v33 = vld [vmem:[#allocation2 + $0x180] sm:$0xf]  ;;  %v2364_v34 = vrot.slane %v2362_v25, 1  ;;  %v1371_v36 = vld [vmem:[#allocation2 + $0x188] sm:$0x1]  ;;  %v145_v39 = vsel %vm17107_vm3, 0, %v144_v11  ;;  %v1029_v44 = vsel %vm17173_vm8, %v1021_v17, %v1028_v31  ;;  %v17814_v17 = vpop.permute.xlu0 %2430 }
  0xc8   :  { %v1368_v35 = vsel %vm17153_vm7, %v1020_v30, %v1367_v33  ;;  %v255_v40 = vsel %vm17122_vm5, 0, %v254_v12  ;;  %v2360_v43 = vor.u32 %v2359_v28, %v2355_v19  ;;  %v1372_v42 = vsel %vm17107_vm3, %v1030_v32, %v1371_v36  ;;  %146 = vst [vmem:[#allocation2 + $0x18c] sm:$0x1] %v145_v39  ;;  %1370 = vst.msk [vmem:[#allocation2 + $0x184] sm:$0xf] %vm27_vm0, %v1029_v44  ;;  %v17816_v32 = vpop.permute.xlu1 %2432  ;;  %v16195_v44 = vld [vmem:[#allocation2] sm:$0xff]  }
  0xc9   :  { %1369 = vst [vmem:[#allocation2 + $0x180] sm:$0xf] %v1368_v35  ;;  %256 = vst [vmem:[#allocation2 + $0x194] sm:$0x1] %v255_v40  ;;  %v1032_v46 = vshrl.u32 %v15792_v18, 16  ;;  %v16137_v47 = vld [vmem:[#allocation2 + $0x168] sm:$0xff]  }
  0xca   :  { %1373 = vst [vmem:[#allocation2 + $0x188] sm:$0x1] %v1372_v42  ;;  %v1035_v48 = vshll.u32 %v15792_v18, 16  ;;  %v2365_v50 = vsel %vm2029_vm9, %v2360_v43, %v2364_v34  ;;  %v16138_v51 = vld [vmem:[#allocation2 + $0x170] ss:$0 sps:$4 sm:$0x11]  }
  0xcb   :  { %v1034_v52 = vrot.slane %v1032_v46, 7  ;;  %v1040_v53 = vshrl.u32 %v15793_v24, 16  ;;  %v1043_v54 = vshll.u32 %v15793_v24, 16  ;;  %2468 = vrot.lane.b32.xlu1 %v2365_v50, %s17054_s27  ;;  %v2367_v55 = vshrl.u32 %v16137_v47, 16  ;;  %v16145_v18 = vld [vmem:[#allocation2] sm:$0xfe]  }
  0xcc   :  { %v2369_v56 = vshll.u32 %v16137_v47, 16  ;;  %v2374_v57 = vshll.u32 %v16138_v51, 16  ;;  %v16146_v19 = vld [vmem:[#allocation2 + $0x8] ss:$0 sps:$4 sm:$0x11]   ;;  %v2896_v40 = vrot.slane %v16145_v18, 1 }
  0xcd   :  { %v1037_v58 = vor.u32 %v1035_v48, %v1034_v52  ;;  %v1038_v61 = vrot.slane %v1034_v52, 4  ;;  %v1042_v62 = vrot.slane %v1040_v53, 7  ;;  %v16139_v59 = vld [vmem:[#allocation2 + $0x174] sm:$0xff]   ;;  %v16140_v4 = vld [vmem:[#allocation2 + $0x17c] ss:$0 sps:$4 sm:$0x11]  }
  0xce   :  { %v2371_v63 = vrot.slane %v2369_v56, 1  ;;  %v2376_v2 = vrot.slane %v2374_v57, 1  ;;  %v2379_v10 = vshrl.u32 %v16139_v59, 16  ;;  %v2381_v11 = vshll.u32 %v16139_v59, 16  ;;  %v17819_v35 = vld [vmem:[#allocation2 + $0x18] sm:$0xfe]  }
  0xcf   :  { %v1045_v5 = vor.u32 %v1043_v54, %v1042_v62  ;;  %v1047_v6 = vrot.slane %v1042_v62, 4  ;;  %v1374_v12 = vld [vmem:[#allocation2 + $0x18c] sm:$0xf]  ;;  %v2386_v14 = vshll.u32 %v16140_v4, 16  ;;  %v2897_v43 = vrot.slane %v16146_v19, 1  ;;  %v16198_v42 = vld [vmem:[#allocation2 + $0x18] sm:$0xff]   ;;  %v2435_v4 = vpop.permute.xlu0 %2434 }
  0xd0   :  { %v2372_v9 = vor.u32 %v2371_v63, %v2367_v55  ;;  %v16141_v15 = vld [vmem:[#allocation2 + $0x180] sm:$0xff]   ;;  %v1375_v60 = vsel %vm17153_vm7, %v1037_v58, %v1374_v12  ;;  %v2383_v21 = vrot.slane %v2381_v11, 1  ;;  %v1378_v23 = vld [vmem:[#allocation2 + $0x194] sm:$0x1]  ;;  %v16203_v46 = vld [vmem:[#allocation2 + $0xc] sm:$0xff]   ;;  %vm2895_vm10 = vcmask 1046528  }
  0xd1   :  { %v1046_v16 = vsel %vm17173_vm8, %v1038_v61, %v1045_v5  ;;  %v16142_v22 = vld [vmem:[#allocation2 + $0x188] ss:$0 sps:$4 sm:$0x11]   ;;  %1376 = vst [vmem:[#allocation2 + $0x18c] sm:$0xf] %v1375_v60  ;;  %v2388_v24 = vrot.slane %v2386_v14, 1  ;;  %v1379_v29 = vsel %vm17107_vm3, %v1047_v6, %v1378_v23  ;;  %v2898_v6 = vsel %vm2895_vm10, %v2896_v40, %v2897_v43 }
  0xd2   :  { %v2377_v20 = vsel %vm2029_vm9, %v2372_v9, %v2376_v2  ;;  %1377 = vst.msk [vmem:[#allocation2 + $0x190] sm:$0xf] %vm27_vm0, %v1046_v16  ;;  %v2391_v25 = vshrl.u32 %v16141_v15, 16  ;;  %v2393_v26 = vshll.u32 %v16141_v15, 16  ;;  %v2384_v30 = vor.u32 %v2383_v21, %v2379_v10  ;;  %1380 = vst [vmem:[#allocation2 + $0x194] sm:$0x1] %v1379_v29 }
  0xd3   :  { %2470 = vrot.lane.b32.xlu0 %v2377_v20, %s17054_s27  ;;  %v2398_v28 = vshll.u32 %v16142_v22, 16  ;;  %v17821_v36 = vld [vmem:[#allocation2 + $0x20] ss:$0 sps:$4 sm:$0x11]   ;;  %v16204_v47 = vld [vmem:[#allocation2 + $0x24] sm:$0xff]   ;;  %v16209_v48 = vld [vmem:[#allocation2 + $0x30] sm:$0xff]  }
  0xd4   :  { %v2395_v31 = vrot.slane %v2393_v26, 1  ;;  %v2389_v33 = vsel %vm2029_vm9, %v2384_v30, %v2388_v24  ;;  %v16210_v50 = vld [vmem:[#allocation2 + $0x3c] sm:$0xff]   ;;  %v16215_v51 = vld [vmem:[#allocation2 + $0x48] sm:$0xff]   ;;  %v16216_v52 = vld [vmem:[#allocation2 + $0x54] sm:$0xff]   ;;  %v2902_v59 = vrot.slane %v17819_v35, 1  ;;  %v2903_v9 = vrot.slane %v17821_v36, 1 }
  0xd5   :  { %v2400_v34 = vrot.slane %v2398_v28, 1  ;;  %2472 = vrot.lane.b32.xlu1 %v2389_v33, %s17054_s27  ;;  %v16219_v53 = vld [vmem:[#allocation2 + $0x60] sm:$0xff]   ;;  %v16220_v54 = vld [vmem:[#allocation2 + $0x6c] sm:$0xff]   ;;  %v16223_v55 = vld [vmem:[#allocation2 + $0x78] sm:$0xff]   ;;  %v2437_v11 = vpop.permute.xlu1 %2436  ;;  %vm1644_vm11 = vcmask 31744   ;;  %vm2510_vm12 = vcmask 64544  }
  0xd6   :  { %v2396_v39 = vor.u32 %v2395_v31, %v2391_v25  ;;  %v16224_v56 = vld [vmem:[#allocation2 + $0x84] sm:$0xff]   ;;  %v17825_v61 = vld [vmem:[#allocation2 + $0x30] sm:$0xfe]   ;;  %v17833_v2 = vld [vmem:[#allocation2 + $0x38] ss:$0 sps:$4 sm:$0x11]  }
  0xd7   :  { %v17828_v62 = vld [vmem:[#allocation2 + $0xc] sm:$0xfe]   ;;  %v17830_v63 = vld [vmem:[#allocation2 + $0x14] ss:$0 sps:$4 sm:$0x11]   ;;  %1645 = vst.msk [vmem:[#allocation3] sm:$0xff] %vm1644_vm11, %v16195_v44 }
  0xd8   :  { %v2401_v57 = vsel %vm2029_vm9, %v2396_v39, %v2400_v34  ;;  %v17837_v10 = vld [vmem:[#allocation2 + $0x24] sm:$0xfe]   ;;  %v17839_v15 = vld [vmem:[#allocation2 + $0x2c] ss:$0 sps:$4 sm:$0x11]   ;;  %1647 = vst.msk [vmem:[#allocation3 + $0x10] sm:$0xff] %vm1644_vm11, %v16198_v42 }
  0xd9   :  { %v16143_v58 = vld [vmem:[#allocation2 + $0x18c] sm:$0xff]   ;;  %2474 = vrot.lane.b32.xlu0 %v2401_v57, %s17054_s27  ;;  %v16144_v5 = vld [vmem:[#allocation2 + $0x194] ss:$0 sps:$4 sm:$0x11]   ;;  %v17841_v60 = vld [vmem:[#allocation2 + $0x3c] sm:$0xfe]  }
  0xda   :  { %v2403_v12 = vshrl.u32 %v16143_v58, 16  ;;  %v2405_v14 = vshll.u32 %v16143_v58, 16  ;;  %v2410_v16 = vshll.u32 %v16144_v5, 16  ;;  %v17843_v18 = vld [vmem:[#allocation2 + $0x48] sm:$0xfe]   ;;  %1646 = vst.msk [vmem:[#allocation3 + $0x8] sm:$0xff] %vm1644_vm11, %v16203_v46 }
  0xdb   :  { %1648 = vst.msk [vmem:[#allocation3 + $0x18] sm:$0xff] %vm1644_vm11, %v16204_v47  ;;  %1649 = vst.msk [vmem:[#allocation3 + $0x20] sm:$0xff] %vm1644_vm11, %v16209_v48  ;;  %v16158_v20 = vld [vmem:[#allocation2 + $0x50] ss:$0 sps:$4 sm:$0x11]   ;;  %v2905_v22 = vrot.slane %v17837_v10, 1 }
  0xdc   :  { %1650 = vst.msk [vmem:[#allocation3 + $0x28] sm:$0xff] %vm1644_vm11, %v16210_v50  ;;  %1651 = vst.msk [vmem:[#allocation3 + $0x30] sm:$0xff] %vm1644_vm11, %v16215_v51  ;;  %v2407_v19 = vrot.slane %v2405_v14, 1  ;;  %v2439_v21 = vpop.permute.xlu0 %2438  ;;  %v16161_v23 = vld [vmem:[#allocation2 + $0x60] sm:$0xfe]   ;;  %v2906_v25 = vrot.slane %v17839_v15, 1 }
  0xdd   :  { %1652 = vst.msk [vmem:[#allocation3 + $0x38] sm:$0xff] %vm1644_vm11, %v16216_v52  ;;  %1653 = vst.msk [vmem:[#allocation3 + $0x40] sm:$0xff] %vm1644_vm11, %v16219_v53  ;;  %2992 = vrot.lane.b32.xlu0 %v2898_v6, %s17055_s11  ;;  %v16156_v26 = vld [vmem:[#allocation2 + $0x44] ss:$0 sps:$4 sm:$0x11]   ;;  %v16228_v30 = vld [vmem:[#allocation2 + $0x9c] sm:$0xff]  }
  0xde   :  { %1654 = vst.msk [vmem:[#allocation3 + $0x48] sm:$0xff] %vm1644_vm11, %v16220_v54  ;;  %1655 = vst.msk [vmem:[#allocation3 + $0x50] sm:$0xff] %vm1644_vm11, %v16223_v55  ;;  %v16159_v29 = vld [vmem:[#allocation2 + $0x54] sm:$0xfe]   ;;  %v2914_v31 = vrot.slane %v17843_v18, 1  ;;  %v2920_v43 = vrot.slane %v16161_v23, 1  ;;  %v2907_v48 = vsel %vm2895_vm10, %v2905_v22, %v2906_v25 }
  0xdf   :  { %1656 = vst.msk [vmem:[#allocation3 + $0x58] sm:$0xff] %vm1644_vm11, %v16224_v56  ;;  %v16160_v33 = vld [vmem:[#allocation2 + $0x5c] ss:$0 sps:$4 sm:$0x11]   ;;  %1658 = vst.msk [vmem:[#allocation3 + $0x68] sm:$0xff] %vm1644_vm11, %v16228_v30  ;;  %v2912_v50 = vrot.slane %v16156_v26, 1 }
  0xe0   :  { %2511 = vst.msk [vmem:[#allocation3] sm:$0xff] %vm2510_vm12, %v17740_v37  ;;  %2513 = vst.msk [vmem:[#allocation3 + $0x10] sm:$0xff] %vm2510_vm12, %v17746_v45  ;;  %v2412_v37 = vrot.slane %v2410_v16, 1  ;;  %v2904_v45 = vsel %vm2895_vm10, %v2902_v59, %v2903_v9  ;;  %v16162_v34 = vld [vmem:[#allocation2 + $0x68] ss:$0 sps:$4 sm:$0x11]  }
  0xe1   :  { %2512 = vst.msk [vmem:[#allocation3 + $0x8] sm:$0xff] %vm2510_vm12, %v17771_v7  ;;  %2514 = vst.msk [vmem:[#allocation3 + $0x18] sm:$0xff] %vm2510_vm12, %v17774_v13  ;;  %v2908_v7 = vrot.slane %v17825_v61, 1  ;;  %v2909_v13 = vrot.slane %v17833_v2, 1  ;;  %2996 = vrot.lane.b32.xlu0 %v2904_v45, %s17055_s11  ;;  %v16163_v36 = vld [vmem:[#allocation2 + $0x6c] sm:$0xfe]  }
  0xe2   :  { %2515 = vst.msk [vmem:[#allocation3 + $0x20] sm:$0xff] %vm2510_vm12, %v17790_v41  ;;  %2516 = vst.msk [vmem:[#allocation3 + $0x28] sm:$0xff] %vm2510_vm12, %v17796_v38  ;;  %v2408_v41 = vor.u32 %v2407_v19, %v2403_v12  ;;  %v2899_v38 = vrot.slane %v17828_v62, 1  ;;  %v16165_v39 = vld [vmem:[#allocation2 + $0x78] sm:$0xfe]   ;;  %v2441_v40 = vpop.permute.xlu1 %2440  ;;  %v2921_v46 = vrot.slane %v16162_v34, 1 }
  0xe3   :  { %2517 = vst.msk [vmem:[#allocation3 + $0x30] sm:$0xff] %vm2510_vm12, %v17801_v0  ;;  %2518 = vst.msk [vmem:[#allocation3 + $0x38] sm:$0xff] %vm2510_vm12, %v17803_v8  ;;  %v2900_v0 = vrot.slane %v17830_v63, 1  ;;  %v16227_v8 = vld [vmem:[#allocation2 + $0x90] sm:$0xff]   ;;  %v2910_v28 = vsel %vm2895_vm10, %v2908_v7, %v2909_v13  ;;  %v2917_v51 = vrot.slane %v16159_v29, 1  ;;  %v2918_v53 = vrot.slane %v16160_v33, 1 }
  0xe4   :  { %2519 = vst.msk [vmem:[#allocation3 + $0x40] sm:$0xff] %vm2510_vm12, %v17814_v17  ;;  %2520 = vst.msk [vmem:[#allocation3 + $0x48] sm:$0xff] %vm2510_vm12, %v17816_v32  ;;  %v2413_v24 = vsel %vm2029_vm9, %v2408_v41, %v2412_v37  ;;  %v2911_v17 = vrot.slane %v17841_v60, 1  ;;  %v2915_v32 = vrot.slane %v16158_v20, 1  ;;  %v16169_v52 = vld [vmem:[#allocation2 + $0x90] sm:$0xfe]   ;;  %v2922_v62 = vsel %vm2895_vm10, %v2920_v43, %v2921_v46 }
  0xe5   :  { %2521 = vst.msk [vmem:[#allocation3 + $0x50] sm:$0xff] %vm2510_vm12, %v2435_v4  ;;  %2522 = vst.msk [vmem:[#allocation3 + $0x58] sm:$0xff] %vm2510_vm12, %v2437_v11  ;;  %2476 = vrot.lane.b32.xlu1 %v2413_v24, %s17054_s27  ;;  %v2901_v35 = vsel %vm2895_vm10, %v2899_v38, %v2900_v0  ;;  %3000 = vrot.lane.b32.xlu0 %v2910_v28, %s17055_s11  ;;  %v16166_v44 = vld [vmem:[#allocation2 + $0x80] ss:$0 sps:$4 sm:$0x11]   ;;  %v16231_v54 = vld [vmem:[#allocation2 + $0xa8] sm:$0xff]   ;;  %v2919_v15 = vsel %vm2895_vm10, %v2917_v51, %v2918_v53 }
  0xe6   :  { %1657 = vst.msk [vmem:[#allocation3 + $0x60] sm:$0xff] %vm1644_vm11, %v16227_v8  ;;  %v2916_v42 = vsel %vm2895_vm10, %v2914_v31, %v2915_v32  ;;  %v16164_v47 = vld [vmem:[#allocation2 + $0x74] ss:$0 sps:$4 sm:$0x11]   ;;  %v2923_v55 = vrot.slane %v16163_v36, 1  ;;  %v2926_v56 = vrot.slane %v16165_v39, 1  ;;  %v2443_v61 = vpop.permute.xlu0 %2442  ;;  %v2913_v63 = vsel %vm2895_vm10, %v2911_v17, %v2912_v50 }
  0xe7   :  { %2523 = vst.msk [vmem:[#allocation3 + $0x60] sm:$0xff] %vm2510_vm12, %v2439_v21  ;;  %2524 = vst.msk [vmem:[#allocation3 + $0x68] sm:$0xff] %vm2510_vm12, %v2441_v40  ;;  %v2927_v57 = vrot.slane %v16166_v44, 1  ;;  %v16170_v58 = vld [vmem:[#allocation2 + $0x98] ss:$0 sps:$4 sm:$0x11]  }
  0xe8   :  { %1659 = vst.msk [vmem:[#allocation3 + $0x70] sm:$0xff] %vm1644_vm11, %v16231_v54  ;;  %v2924_v59 = vrot.slane %v16164_v47, 1  ;;  %v16168_v2 = vld [vmem:[#allocation2 + $0x8c] ss:$0 sps:$4 sm:$0x11]   ;;  %v2932_v5 = vrot.slane %v16169_v52, 1 }
  0xe9   :  { %2994 = vrot.lane.b32.xlu1 %v2901_v35, %s17055_s11  ;;  %3004 = vrot.lane.b32.xlu0 %v2916_v42, %s17055_s11  ;;  %2525 = vst.msk [vmem:[#allocation3 + $0x70] sm:$0xff] %vm2510_vm12, %v2443_v61  ;;  %v16167_v4 = vld [vmem:[#allocation2 + $0x84] sm:$0xfe]   ;;  %v16232_v6 = vld [vmem:[#allocation2 + $0xb4] sm:$0xff]   ;;  %v16171_v9 = vld [vmem:[#allocation2 + $0x9c] sm:$0xfe]   ;;  %v2928_v11 = vsel %vm2895_vm10, %v2926_v56, %v2927_v57 }
  0xea   :  { %v16173_v10 = vld [vmem:[#allocation2 + $0xa8] sm:$0xfe]   ;;  %v2933_v12 = vrot.slane %v16170_v58, 1  ;;  %v16174_v14 = vld [vmem:[#allocation2 + $0xb0] ss:$0 sps:$4 sm:$0x11]   ;;  %v2925_v38 = vsel %vm2895_vm10, %v2923_v55, %v2924_v59  ;;  %v2447_v23 = vpop.permute.xlu0 %2446 }
  0xeb   :  { %1660 = vst.msk [vmem:[#allocation3 + $0x78] sm:$0xff] %vm1644_vm11, %v16232_v6  ;;  %v16177_v16 = vld [vmem:[#allocation2 + $0xd8] sm:$0xfe]   ;;  %v2929_v60 = vrot.slane %v16167_v4, 1  ;;  %v2930_v18 = vrot.slane %v16168_v2, 1  ;;  %v2935_v7 = vrot.slane %v16171_v9, 1 }
  0xec   :  { %v16178_v19 = vld [vmem:[#allocation2 + $0xe0] ss:$0 sps:$4 sm:$0x11]   ;;  %v16172_v20 = vld [vmem:[#allocation2 + $0xa4] ss:$0 sps:$4 sm:$0x11]   ;;  %v2934_v45 = vsel %vm2895_vm10, %v2932_v5, %v2933_v12 }
  0xed   :  { %2998 = vrot.lane.b32.xlu1 %v2907_v48, %s17055_s11  ;;  %3008 = vrot.lane.b32.xlu0 %v2922_v62, %s17055_s11  ;;  %v2938_v13 = vrot.slane %v16173_v10, 1  ;;  %v2939_v41 = vrot.slane %v16174_v14, 1  ;;  %v16175_v0 = vld [vmem:[#allocation2 + $0xb4] sm:$0xfe]   ;;  %v2944_v21 = vrot.slane %v16177_v16, 1  ;;  %v16236_v26 = vld [vmem:[#allocation2 + $0xe4] sm:$0xff]   ;;  %v2931_v31 = vsel %vm2895_vm10, %v2929_v60, %v2930_v18 }
  0xee   :  { %v16176_v8 = vld [vmem:[#allocation2 + $0xbc] ss:$0 sps:$4 sm:$0x11]   ;;  %v16179_v24 = vld [vmem:[#allocation2 + $0xe4] sm:$0xfe]   ;;  %v2945_v29 = vrot.slane %v16178_v19, 1 }
  0xef   :  { %v2445_v37 = vpop.permute.xlu1 %2444  ;;  %v16235_v22 = vld [vmem:[#allocation2 + $0xd8] sm:$0xff]   ;;  %v16180_v25 = vld [vmem:[#allocation2 + $0xec] ss:$0 sps:$4 sm:$0x11]   ;;  %v2940_v28 = vsel %vm2895_vm10, %v2938_v13, %v2939_v41  ;;  %v16181_v17 = vld [vmem:[#allocation2 + $0xf0] sm:$0xfe]  }
  0xf0   :  { %2526 = vst.msk [vmem:[#allocation3 + $0x78] sm:$0xff] %vm2510_vm12, %v2445_v37  ;;  %v16182_v30 = vld [vmem:[#allocation2 + $0xf8] ss:$0 sps:$4 sm:$0x11]   ;;  %v2936_v32 = vrot.slane %v16172_v20, 1  ;;  %v2941_v33 = vrot.slane %v16175_v0, 1  ;;  %v2946_v39 = vsel %vm2895_vm10, %v2944_v21, %v2945_v29 }
  0xf1   :  { %3002 = vrot.lane.b32.xlu1 %v2913_v63, %s17055_s11  ;;  %3012 = vrot.lane.b32.xlu0 %v2928_v11, %s17055_s11  ;;  %1661 = vst.msk [vmem:[#allocation3 + $0x80] sm:$0xff] %vm1644_vm11, %v16235_v22  ;;  %1662 = vst.msk [vmem:[#allocation3 + $0x88] sm:$0xff] %vm1644_vm11, %v16236_v26  ;;  %v16183_v34 = vld [vmem:[#allocation2 + $0xfc] sm:$0xfe]   ;;  %v16185_v35 = vld [vmem:[#allocation2 + $0x108] sm:$0xfe]  }
  0xf2   :  { %2527 = vst.msk [vmem:[#allocation3 + $0x80] sm:$0xff] %vm2510_vm12, %v2447_v23  ;;  %v2942_v36 = vrot.slane %v16176_v8, 1  ;;  %v16186_v40 = vld [vmem:[#allocation2 + $0x110] ss:$0 sps:$4 sm:$0x11]   ;;  %v2947_v43 = vrot.slane %v16179_v24, 1  ;;  %v2937_v47 = vsel %vm2895_vm10, %v2935_v7, %v2936_v32 }
  0xf3   :  { %v2948_v44 = vrot.slane %v16180_v25, 1  ;;  %v2950_v42 = vrot.slane %v16181_v17, 1  ;;  %v2951_v46 = vrot.slane %v16182_v30, 1  ;;  %v16184_v48 = vld [vmem:[#allocation2 + $0x104] ss:$0 sps:$4 sm:$0x11]  }
  0xf4   :  { %v16239_v50 = vld [vmem:[#allocation2 + $0xf0] sm:$0xff]   ;;  %v2953_v51 = vrot.slane %v16183_v34, 1  ;;  %v2956_v52 = vrot.slane %v16185_v35, 1  ;;  %v16189_v53 = vld [vmem:[#allocation2 + $0x120] sm:$0xfe]   ;;  %v2957_v55 = vrot.slane %v16186_v40, 1  ;;  %v2943_v59 = vsel %vm2895_vm10, %v2941_v33, %v2942_v36 }
  0xf5   :  { %3006 = vrot.lane.b32.xlu1 %v2919_v15, %s17055_s11  ;;  %3016 = vrot.lane.b32.xlu0 %v2934_v45, %s17055_s11  ;;  %v16187_v56 = vld [vmem:[#allocation2 + $0x114] sm:$0xfe]   ;;  %1663 = vst.msk [vmem:[#allocation3 + $0x90] sm:$0xff] %vm1644_vm11, %v16239_v50  ;;  %v16240_v57 = vld [vmem:[#allocation2 + $0xfc] sm:$0xff]   ;;  %v2952_v58 = vsel %vm2895_vm10, %v2950_v42, %v2951_v46  ;;  %v16191_v2 = vld [vmem:[#allocation2 + $0x12c] sm:$0xfe]   ;;  %v2949_v12 = vsel %vm2895_vm10, %v2947_v43, %v2948_v44 }
  0xf6   :  { %v16188_v61 = vld [vmem:[#allocation2 + $0x11c] ss:$0 sps:$4 sm:$0x11]   ;;  %v16190_v62 = vld [vmem:[#allocation2 + $0x128] ss:$0 sps:$4 sm:$0x11]   ;;  %v2958_v9 = vsel %vm2895_vm10, %v2956_v52, %v2957_v55 }
  0xf7   :  { %v17934_v63 = vld [vmem:[#allocation2 + $0x134] ss:$0 sps:$4 sm:$0x11]   ;;  %1664 = vst.msk [vmem:[#allocation3 + $0x98] sm:$0xff] %vm1644_vm11, %v16240_v57  ;;  %v16193_v4 = vld [vmem:[#allocation2 + $0x138] sm:$0xfe]  }
  0xf8   :  { %v2954_v5 = vrot.slane %v16184_v48, 1  ;;  %v16194_v6 = vld [vmem:[#allocation2 + $0x140] ss:$0 sps:$4 sm:$0x11]   ;;  %v2962_v10 = vrot.slane %v16189_v53, 1  ;;  %v2963_v11 = vrot.slane %v16190_v62, 1 }
  0xf9   :  { %3010 = vrot.lane.b32.xlu1 %v2925_v38, %s17055_s11  ;;  %3020 = vrot.lane.b32.xlu0 %v2940_v28, %s17055_s11  ;;  %v2959_v14 = vrot.slane %v16187_v56, 1  ;;  %v16196_v15 = vld [vmem:[#allocation2 + $0x144] sm:$0xfe]   ;;  %v2960_v18 = vrot.slane %v16188_v61, 1  ;;  %v2965_v19 = vrot.slane %v16191_v2, 1  ;;  %v2966_v20 = vrot.slane %v17934_v63, 1 }
  0xfa   :  { %v2449_v54 = vpop.permute.xlu1 %2448  ;;  %v16243_v60 = vld [vmem:[#allocation2 + $0x108] sm:$0xff]   ;;  %v16244_v37 = vld [vmem:[#allocation2 + $0x114] sm:$0xff]   ;;  %v2968_v45 = vrot.slane %v16193_v4, 1  ;;  %v2969_v7 = vrot.slane %v16194_v6, 1  ;;  %v2964_v41 = vsel %vm2895_vm10, %v2962_v10, %v2963_v11  ;;  %v2971_v38 = vrot.slane %v16196_v15, 1  ;;  %v16247_v6 = vld [vmem:[#allocation2 + $0x120] sm:$0xff]  }
  0xfb   :  { %2528 = vst.msk [vmem:[#allocation3 + $0x88] sm:$0xff] %vm2510_vm12, %v2449_v54  ;;  %v16197_v13 = vld [vmem:[#allocation2 + $0x14c] ss:$0 sps:$4 sm:$0x11]   ;;  %v293_v0 = vld [vmem:[%s20673_s0 + $0xf0] sm:$0xff]  ;;  %v2955_v8 = vsel %vm2895_vm10, %v2953_v51, %v2954_v5  ;;  %v294_v24 = vld [vmem:[%s20673_s0 + $0xf8] sm:$0xff]  ;;  %v2961_v32 = vsel %vm2895_vm10, %v2959_v14, %v2960_v18 }
  0xfc   :  { %1665 = vst.msk [vmem:[#allocation3 + $0xa0] sm:$0xff] %vm1644_vm11, %v16243_v60  ;;  %1666 = vst.msk [vmem:[#allocation3 + $0xa8] sm:$0xff] %vm1644_vm11, %v16244_v37  ;;  %v16199_v21 = vld [vmem:[#allocation2 + $0x150] sm:$0xfe]   ;;  %v17956_v25 = vpack.c.bf16 %v293_v0, %v293_v0  ;;  %v16201_v30 = vld [vmem:[#allocation2 + $0x15c] sm:$0xfe]   ;;  %v2970_v28 = vsel %vm2895_vm10, %v2968_v45, %v2969_v7  ;;  %v15763_v35 = vpack.c.bf16 %v294_v24, %v294_v24 }
  0xfd   :  { %3014 = vrot.lane.b32.xlu1 %v2931_v31, %s17055_s11  ;;  %3024 = vrot.lane.b32.xlu0 %v2946_v39, %s17055_s11  ;;  %v16200_v22 = vld [vmem:[#allocation2 + $0x158] ss:$0 sps:$4 sm:$0x11]   ;;  %v2974_v26 = vrot.slane %v16199_v21, 1  ;;  %v2972_v33 = vrot.slane %v16197_v13, 1  ;;  %v2977_v34 = vrot.slane %v16201_v30, 1 }
  0xfe   :  { %v2975_v29 = vrot.slane %v16200_v22, 1  ;;  %v16202_v17 = vld [vmem:[#allocation2 + $0x164] ss:$0 sps:$4 sm:$0x11]   ;;  %v777_v31 = vshrl.u32 %v17956_v25, 16  ;;  %v780_v40 = vshll.u32 %v17956_v25, 16 }
  0xff   :  { %v16205_v43 = vld [vmem:[#allocation2 + $0x168] sm:$0xfe]   ;;  %v2978_v42 = vrot.slane %v16202_v17, 1  ;;  %v16206_v46 = vld [vmem:[#allocation2 + $0x170] ss:$0 sps:$4 sm:$0x11]   ;;  %v2973_v61 = vsel %vm2895_vm10, %v2971_v38, %v2972_v33 }
 0x100   :  { %v17964_v39 = vrot.slane %v777_v31, 7  ;;  %v2976_v44 = vsel %vm2895_vm10, %v2974_v26, %v2975_v29  ;;  %v2980_v48 = vrot.slane %v16205_v43, 1  ;;  %v16207_v50 = vld [vmem:[#allocation2 + $0x174] sm:$0xfe]   ;;  %v785_v51 = vshrl.u32 %v15763_v35, 16  ;;  %v16217_v15 = vld [vmem:[#allocation2 + $0xc] sm:$0xff]  }
 0x101   :  { %3018 = vrot.lane.b32.xlu1 %v2937_v47, %s17055_s11  ;;  %3028 = vrot.lane.b32.xlu0 %v2952_v58, %s17055_s11  ;;  %v2451_v16 = vpop.permute.xlu0 %2450  ;;  %v2967_v47 = vsel %vm2895_vm10, %v2965_v19, %v2966_v20  ;;  %v2981_v52 = vrot.slane %v16206_v46, 1  ;;  %v16208_v53 = vld [vmem:[#allocation2 + $0x17c] ss:$0 sps:$4 sm:$0x11]   ;;  %v2983_v57 = vrot.slane %v16207_v50, 1  ;;  %v788_v58 = vshll.u32 %v15763_v35, 16 }
 0x102   :  { %2529 = vst.msk [vmem:[#allocation3 + $0x90] sm:$0xff] %vm2510_vm12, %v2451_v16  ;;  %v783_v54 = vrot.slane %v17964_v39, 4  ;;  %v17974_v55 = vrot.slane %v785_v51, 7  ;;  %v16211_v62 = vld [vmem:[#allocation2 + $0x180] sm:$0xfe]   ;;  %v2979_v14 = vsel %vm2895_vm10, %v2977_v34, %v2978_v42  ;;  %v16218_v13 = vld [vmem:[#allocation2 + $0x18] sm:$0xff]  }
 0x103   :  { %v2982_v56 = vsel %vm2895_vm10, %v2980_v48, %v2981_v52  ;;  %v16212_v2 = vld [vmem:[#allocation2 + $0x188] ss:$0 sps:$4 sm:$0x11]   ;;  %v2986_v5 = vrot.slane %v16211_v62, 1  ;;  %v16213_v10 = vld [vmem:[#allocation2 + $0x18c] sm:$0xfe]  }
 0x104   :  { %v790_v4 = vor.u32 %v788_v58, %v17974_v55  ;;  %v16214_v11 = vld [vmem:[#allocation2 + $0x194] ss:$0 sps:$4 sm:$0x11]   ;;  %1667 = vst.msk [vmem:[#allocation3 + $0xb0] sm:$0xff] %vm1644_vm11, %v16247_v6  ;;  %v2989_v60 = vrot.slane %v16213_v10, 1  ;;  %v16221_v20 = vld [vmem:[#allocation2 + $0x24] sm:$0xff]  }
 0x105   :  { %3022 = vrot.lane.b32.xlu1 %v2943_v59, %s17055_s11  ;;  %3032 = vrot.lane.b32.xlu0 %v2958_v9, %s17055_s11  ;;  %v2453_v23 = vpop.permute.xlu1 %2452  ;;  %v2984_v59 = vrot.slane %v16208_v53, 1  ;;  %v2987_v9 = vrot.slane %v16212_v2, 1  ;;  %v2990_v18 = vrot.slane %v16214_v11, 1  ;;  %v16225_v7 = vld [vmem:[#allocation2 + $0x3c] sm:$0xff]   ;;  %v16222_v38 = vld [vmem:[#allocation2 + $0x30] sm:$0xff]   ;;  %v16237_v21 = vld [vmem:[#allocation2 + $0x84] sm:$0xff]  }
 0x106   :  { %2530 = vst.msk [vmem:[#allocation3 + $0x98] sm:$0xff] %vm2510_vm12, %v2453_v23  ;;  %v16233_v0 = vld [vmem:[#allocation2 + $0x6c] sm:$0xff]   ;;  %v16230_v22 = vld [vmem:[#allocation2 + $0x60] sm:$0xff]   ;;  %v16251_v31 = vld [vmem:[#allocation2 + $0x138] sm:$0xff]   ;;  %vm3088_vm13 = vcmask 97344   ;;  %vm20682_vm14 = vcmask 130144  }
 0x107   :  { %v2988_v16 = vsel %vm2895_vm10, %v2986_v5, %v2987_v9  ;;  %v2985_v19 = vsel %vm2895_vm10, %v2983_v57, %v2984_v59  ;;  %v2991_v45 = vsel %vm2895_vm10, %v2989_v60, %v2990_v18  ;;  %v93_v23 = vld [vmem:[#allocation2 + $0xc0] sm:$0x1]  ;;  %v16248_v29 = vld [vmem:[#allocation2 + $0x12c] sm:$0xff]   ;;  %v16252_v33 = vld [vmem:[#allocation2 + $0x144] sm:$0xff]   ;;  %1669 = vst.msk [vmem:[#allocation3 + $0xc0] sm:$0xff] %vm1644_vm11, %v16251_v31  ;;  %vm20681_vm15 = vcmask 162944  }
 0x108   :  { %v94_v26 = vsel %vm17107_vm3, 0, %v93_v23  ;;  %1668 = vst.msk [vmem:[#allocation3 + $0xb8] sm:$0xff] %vm1644_vm11, %v16248_v29  ;;  %v16241_v17 = vld [vmem:[#allocation2 + $0x9c] sm:$0xff]   ;;  %v16238_v35 = vld [vmem:[#allocation2 + $0x90] sm:$0xff]   ;;  %1670 = vst.msk [vmem:[#allocation3 + $0xc8] sm:$0xff] %vm1644_vm11, %v16252_v33  ;;  %vm4883_vm1 = vcmask 195744  }
 0x109   :  { %3026 = vrot.lane.b32.xlu1 %v2949_v12, %s17055_s11  ;;  %3036 = vrot.lane.b32.xlu0 %v2964_v41, %s17055_s11  ;;  %v791_v12 = vsel %vm17173_vm8, %v783_v54, %v790_v4  ;;  %v16229_v41 = vld [vmem:[#allocation2 + $0x54] sm:$0xff]   ;;  %95 = vst [vmem:[#allocation2 + $0xc0] sm:$0x1] %v94_v26  ;;  %v16249_v46 = vld [vmem:[#allocation2 + $0xe4] sm:$0xff]   ;;  %v16253_v50 = vld [vmem:[#allocation2 + $0xfc] sm:$0xff]   ;;  %vm5237_vm2 = vcmask 228544  }
 0x10a   :  { %v2455_v36 = vpop.permute.xlu0 %2454  ;;  %1272 = vst.msk [vmem:[#allocation2 + $0xc4] sm:$0xf] %vm27_vm0, %v791_v12  ;;  %v16260_v48 = vld [vmem:[#allocation2 + $0x174] sm:$0xff]   ;;  %v16263_v52 = vld [vmem:[#allocation2 + $0x180] sm:$0xff]   ;;  %v16264_v54 = vld [vmem:[#allocation2 + $0x18c] sm:$0xff]   ;;  %vm6102_vm4 = vcmask 261344  }
 0x10b   :  { %2531 = vst.msk [vmem:[#allocation3 + $0xa0] sm:$0xff] %vm2510_vm12, %v2455_v36  ;;  %v16245_v36 = vld [vmem:[#allocation2 + $0xb4] sm:$0xff]   ;;  %v16261_v62 = vld [vmem:[#allocation2 + $0x12c] sm:$0xff]   ;;  %v16265_v4 = vld [vmem:[#allocation2 + $0x144] sm:$0xff]   ;;  %vm6861_vm6 = vcmask 1041408  }
 0x10c   :  { %1674 = vst.msk [vmem:[#allocation3 + $0xe8] sm:$0xff] %vm1644_vm11, %v16260_v48  ;;  %1675 = vst.msk [vmem:[#allocation3 + $0xf0] sm:$0xff] %vm1644_vm11, %v16263_v52  ;;  %v16250_v57 = vld [vmem:[#allocation2 + $0xf0] sm:$0xff]   ;;  %v147_v59 = vld [vmem:[#allocation2 + $0x198] sm:$0x1] }
 0x10d   :  { %3030 = vrot.lane.b32.xlu1 %v2955_v8, %s17055_s11  ;;  %3040 = vrot.lane.b32.xlu0 %v2970_v28, %s17055_s11  ;;  %v16226_v8 = vld [vmem:[#allocation2 + $0x48] sm:$0xff]   ;;  %v16234_v28 = vld [vmem:[#allocation2 + $0x78] sm:$0xff]   ;;  %1676 = vst.msk [vmem:[#allocation3 + $0xf8] sm:$0xff] %vm1644_vm11, %v16264_v54  ;;  %v325_v2 = vld [vmem:[%s20673_s0 + $0x1f0] sm:$0xff]  ;;  %v148_v5 = vsel %vm17107_vm3, 0, %v147_v59 }
 0x10e   :  { %v326_v6 = vld [vmem:[%s20673_s0 + $0x1f8] sm:$0xff]  ;;  %v15794_v9 = vpack.c.bf16 %v325_v2, %v325_v2  ;;  %149 = vst [vmem:[#allocation2 + $0x198] sm:$0x1] %v148_v5  ;;  %v18047_v12 = vld [vmem:[#allocation2 + $0xc] sm:$0xff]   ;;  %v16258_v60 = vld [vmem:[#allocation2 + $0x120] sm:$0xff]  }
 0x10f   :  { %v15795_v11 = vpack.c.bf16 %v326_v6, %v326_v6  ;;  %v3827_v23 = vshrl.u32 %v18047_v12, 16  ;;  %v16271_v54 = vld [vmem:[#allocation2 + $0x18c] sm:$0xff]   ;;  %v16282_v2 = vld [vmem:[#allocation2 + $0x44] ss:$0 sps:$4 sm:$0x11]  }
 0x110   :  { %v1269_v43 = vld [vmem:[#allocation2 + $0xc0] sm:$0xf] }
 0x111   :  { %3034 = vrot.lane.b32.xlu1 %v2961_v32, %s17055_s11  ;;  %3044 = vrot.lane.b32.xlu0 %v2976_v44, %s17055_s11  ;;  %v2457_v63 = vpop.permute.xlu1 %2456  ;;  %v782_v32 = vor.u32 %v780_v40, %v17964_v39  ;;  %v16255_v44 = vld [vmem:[#allocation2 + $0x150] sm:$0xff]   ;;  %v16256_v39 = vld [vmem:[#allocation2 + $0x15c] sm:$0xff]   ;;  %v16242_v40 = vld [vmem:[#allocation2 + $0xa8] sm:$0xff]   ;;  %v1057_v18 = vshrl.u32 %v15795_v11, 16 }
 0x112   :  { %2532 = vst.msk [vmem:[#allocation3 + $0xa8] sm:$0xff] %vm2510_vm12, %v2457_v63  ;;  %v16254_v63 = vld [vmem:[#allocation2 + $0x108] sm:$0xff]  }
 0x113   :  { %v1270_v25 = vsel %vm17153_vm7, %v782_v32, %v1269_v43  ;;  %1671 = vst.msk [vmem:[#allocation3 + $0xd0] sm:$0xff] %vm1644_vm11, %v16255_v44  ;;  %1672 = vst.msk [vmem:[#allocation3 + $0xd8] sm:$0xff] %vm1644_vm11, %v16256_v39  ;;  %v16269_v32 = vld [vmem:[#allocation2 + $0x174] sm:$0xff]  }
 0x114   :  { %1271 = vst [vmem:[#allocation2 + $0xc0] sm:$0xf] %v1270_v25  ;;  %v16266_v44 = vld [vmem:[#allocation2 + $0x150] sm:$0xff]  }
 0x115   :  { %3038 = vrot.lane.b32.xlu1 %v2967_v47, %s17055_s11  ;;  %3048 = vrot.lane.b32.xlu0 %v2982_v56, %s17055_s11  ;;  %v16259_v47 = vld [vmem:[#allocation2 + $0x168] sm:$0xff]   ;;  %v16257_v56 = vld [vmem:[#allocation2 + $0x114] sm:$0xff]  }
 0x116   :  { %1673 = vst.msk [vmem:[#allocation3 + $0xe0] sm:$0xff] %vm1644_vm11, %v16259_v47  ;;  %v1381_v33 = vld [vmem:[#allocation2 + $0x198] sm:$0xf] }
 0x119   :  { %3042 = vrot.lane.b32.xlu1 %v2973_v61, %s17055_s11  ;;  %3052 = vrot.lane.b32.xlu0 %v2988_v16, %s17055_s11  ;;  %v792_v61 = vrot.slane %v17974_v55, 4  ;;  %v1052_v16 = vshll.u32 %v15794_v9, 16 }
 0x11a   :  { %v2459_v37 = vpop.permute.xlu0 %2458 }
 0x11b   :  { %2533 = vst.msk [vmem:[#allocation3 + $0xb0] sm:$0xff] %vm2510_vm12, %v2459_v37  ;;  %v16246_v53 = vld [vmem:[#allocation2 + $0xc0] sm:$0xff]  }
 0x11d   :  { %3046 = vrot.lane.b32.xlu1 %v2979_v14, %s17055_s11  ;;  %3345 = vrot.lane.b32.xlu0 %v16217_v15, %s17056_s16  ;;  %v16274_v14 = vld [vmem:[#allocation2 + $0x14] ss:$0 sps:$4 sm:$0x11]   ;;  %v1049_v15 = vshrl.u32 %v15794_v9, 16 }
 0x121   :  { %3050 = vrot.lane.b32.xlu1 %v2985_v19, %s17055_s11  ;;  %3349 = vrot.lane.b32.xlu0 %v16221_v20, %s17056_s16  ;;  %v1060_v19 = vshll.u32 %v15795_v11, 16  ;;  %v3829_v20 = vshll.u32 %v18047_v12, 16  ;;  %v16284_v11 = vld [vmem:[#allocation2 + $0x50] ss:$0 sps:$4 sm:$0x11]  }
 0x122   :  { %v2461_v24 = vpop.permute.xlu1 %2460 }
 0x123   :  { %2534 = vst.msk [vmem:[#allocation3 + $0xb8] sm:$0xff] %vm2510_vm12, %v2461_v24  ;;  %v18060_v24 = vld [vmem:[#allocation2 + $0x24] sm:$0xff]   ;;  %v3831_v29 = vrot.slane %v3829_v20, 1 }
 0x124   :  { %v3853_v43 = vshll.u32 %v18060_v24, 16  ;;  %v3851_v39 = vshrl.u32 %v18060_v24, 16 }
 0x125   :  { %3054 = vrot.lane.b32.xlu1 %v2991_v45, %s17055_s11  ;;  %3353 = vrot.lane.b32.xlu0 %v16225_v7, %s17056_s16  ;;  %v1051_v45 = vrot.slane %v1049_v15, 7  ;;  %v3834_v7 = vshll.u32 %v16274_v14, 16  ;;  %v3832_v5 = vor.u32 %v3831_v29, %v3827_v23  ;;  %v16289_v29 = vld [vmem:[#allocation2 + $0x6c] sm:$0xff]  }
 0x126   :  { %v2463_v30 = vpop.permute.xlu0 %2462 }
 0x127   :  { %2535 = vst.msk [vmem:[#allocation3 + $0xc0] sm:$0xff] %vm2510_vm12, %v2463_v30 }
 0x129   :  { %3347 = vrot.lane.b32.xlu1 %v16218_v13, %s17056_s16  ;;  %3357 = vrot.lane.b32.xlu0 %v16229_v41, %s17056_s16  ;;  %v18053_v13 = vld [vmem:[#allocation2 + $0x18] sm:$0xff]   ;;  %v16276_v41 = vld [vmem:[#allocation2 + $0x20] ss:$0 sps:$4 sm:$0x11]  }
 0x12a   :  { %v3841_v30 = vshll.u32 %v18053_v13, 16 }
 0x12b   :  { %v2465_v34 = vpop.permute.xlu1 %2464 }
 0x12c   :  { %2536 = vst.msk [vmem:[#allocation3 + $0xc8] sm:$0xff] %vm2510_vm12, %v2465_v34  ;;  %v3836_v34 = vrot.slane %v3834_v7, 1  ;;  %v18101_v7 = vld [vmem:[#allocation2 + $0x60] sm:$0xff]  }
 0x12d   :  { %3351 = vrot.lane.b32.xlu1 %v16222_v38, %s17056_s16  ;;  %3361 = vrot.lane.b32.xlu0 %v16233_v0, %s17056_s16  ;;  %v16262_v38 = vld [vmem:[#allocation2 + $0x138] sm:$0xff]   ;;  %v18056_v0 = vrot.slane %v1057_v18, 7 }
 0x12f   :  { %v1062_v26 = vor.u32 %v1060_v19, %v18056_v0 }
 0x131   :  { %3355 = vrot.lane.b32.xlu1 %v16226_v8, %s17056_s16  ;;  %3365 = vrot.lane.b32.xlu0 %v16237_v21, %s17056_s16  ;;  %v2467_v42 = vpop.permute.xlu0 %2466  ;;  %v16267_v8 = vld [vmem:[#allocation2 + $0x15c] sm:$0xff]   ;;  %v1054_v21 = vor.u32 %v1052_v16, %v1051_v45 }
 0x132   :  { %2537 = vst.msk [vmem:[#allocation3 + $0xd0] sm:$0xff] %vm2510_vm12, %v2467_v42 }
 0x133   :  { %v1382_v25 = vsel %vm17153_vm7, %v1054_v21, %v1381_v33  ;;  %v16286_v21 = vld [vmem:[#allocation2 + $0x5c] ss:$0 sps:$4 sm:$0x11]  }
 0x134   :  { %1383 = vst [vmem:[#allocation2 + $0x198] sm:$0xf] %v1382_v25 }
 0x135   :  { %3359 = vrot.lane.b32.xlu1 %v16230_v22, %s17056_s16  ;;  %3369 = vrot.lane.b32.xlu0 %v16241_v17, %s17056_s16  ;;  %v1055_v22 = vrot.slane %v1051_v45, 4  ;;  %v18065_v17 = vld [vmem:[#allocation2 + $0x30] sm:$0xff]  }
 0x136   :  { %v3865_v52 = vshll.u32 %v18065_v17, 16  ;;  %v16285_v45 = vld [vmem:[#allocation2 + $0x54] sm:$0xff]  }
 0x137   :  { %v1063_v42 = vsel %vm17173_vm8, %v1055_v22, %v1062_v26  ;;  %v3899_v24 = vshrl.u32 %v16285_v45, 16  ;;  %v3901_v26 = vshll.u32 %v16285_v45, 16 }
 0x138   :  { %1384 = vst.msk [vmem:[#allocation2 + $0x19c] sm:$0xf] %vm27_vm0, %v1063_v42  ;;  %v3867_v6 = vrot.slane %v3865_v52, 1 }
 0x139   :  { %3363 = vrot.lane.b32.xlu1 %v16234_v28, %s17056_s16  ;;  %3373 = vrot.lane.b32.xlu0 %v16245_v36, %s17056_s16  ;;  %v16278_v28 = vld [vmem:[#allocation2 + $0x2c] ss:$0 sps:$4 sm:$0x11]   ;;  %v3846_v36 = vshll.u32 %v16276_v41, 16  ;;  %v3837_v41 = vsel %vm2029_vm9, %v3832_v5, %v3836_v34  ;;  %v3903_v33 = vrot.slane %v3901_v26, 1  ;;  %v3911_v34 = vshrl.u32 %v18101_v7, 16 }
 0x13a   :  { %v3858_v48 = vshll.u32 %v16278_v28, 16 }
 0x13b   :  { %v18081_v47 = vrot.slane %v3846_v36, 1  ;;  %v3913_v36 = vshll.u32 %v18101_v7, 16 }
 0x13d   :  { %3367 = vrot.lane.b32.xlu1 %v16238_v35, %s17056_s16  ;;  %3377 = vrot.lane.b32.xlu0 %v16249_v46, %s17056_s16  ;;  %v2469_v51 = vpop.permute.xlu1 %2468  ;;  %v3839_v35 = vshrl.u32 %v18053_v13, 16  ;;  %v18079_v46 = vrot.slane %v3841_v30, 1  ;;  %v18121_v52 = vrot.slane %v3913_v36, 1 }
 0x13e   :  { %2538 = vst.msk [vmem:[#allocation3 + $0xd8] sm:$0xff] %vm2510_vm12, %v2469_v51  ;;  %v16280_v51 = vld [vmem:[#allocation2 + $0x38] ss:$0 sps:$4 sm:$0x11]  }
 0x13f   :  { %v3870_v59 = vshll.u32 %v16280_v51, 16  ;;  %v16272_v28 = vld [vmem:[#allocation2 + $0x198] sm:$0xff]  }
 0x141   :  { %3371 = vrot.lane.b32.xlu1 %v16242_v40, %s17056_s16  ;;  %3381 = vrot.lane.b32.xlu0 %v16253_v50, %s17056_s16  ;;  %v18075_v40 = vld [vmem:[#allocation2 + $0x3c] sm:$0xff]   ;;  %v18083_v50 = vld [vmem:[#allocation2 + $0x48] sm:$0xff]   ;;  %v18094_v14 = vrot.slane %v3870_v59, 1 }
 0x142   :  { %v3875_v9 = vshrl.u32 %v18075_v40, 16  ;;  %v3889_v15 = vshll.u32 %v18083_v50, 16  ;;  %v3887_v19 = vshrl.u32 %v18083_v50, 16 }
 0x145   :  { %3375 = vrot.lane.b32.xlu1 %v16246_v53, %s17056_s16  ;;  %v2471_v58 = vpop.permute.xlu0 %2470  ;;  %3385 = vrot.lane.b32.xlu0 %v16257_v56, %s17056_s16  ;;  %v3855_v56 = vrot.slane %v3853_v43, 1  ;;  %v18114_v43 = vld [vmem:[#allocation2 + $0x78] sm:$0xff]  }
 0x146   :  { %2539 = vst.msk [vmem:[#allocation3 + $0xe0] sm:$0xff] %vm2510_vm12, %v2471_v58  ;;  %v3937_v5 = vshll.u32 %v18114_v43, 16 }
 0x147   :  { %v2473_v10 = vpop.permute.xlu1 %2472 }
 0x148   :  { %2540 = vst.msk [vmem:[#allocation3 + $0xe8] sm:$0xff] %vm2510_vm12, %v2473_v10  ;;  %v3882_v10 = vshll.u32 %v16282_v2, 16  ;;  %v3904_v2 = vor.u32 %v3903_v33, %v3899_v24  ;;  %v16298_v33 = vld [vmem:[#allocation2 + $0xa4] ss:$0 sps:$4 sm:$0x11]  }
 0x149   :  { %3379 = vrot.lane.b32.xlu1 %v16250_v57, %s17056_s16  ;;  %3389 = vrot.lane.b32.xlu0 %v16261_v62, %s17056_s16  ;;  %v3863_v57 = vshrl.u32 %v18065_v17, 16  ;;  %v16268_v62 = vld [vmem:[#allocation2 + $0x168] sm:$0xff]   ;;  %v3939_v17 = vrot.slane %v3937_v5, 1 }
 0x14a   :  { %v3884_v20 = vrot.slane %v3882_v10, 1 }
 0x14b   :  { %v2475_v37 = vpop.permute.xlu0 %2474  ;;  %v3868_v13 = vor.u32 %v3867_v6, %v3863_v57 }
 0x14c   :  { %2541 = vst.msk [vmem:[#allocation3 + $0xf0] sm:$0xff] %vm2510_vm12, %v2475_v37  ;;  %v3894_v37 = vshll.u32 %v16284_v11, 16 }
 0x14d   :  { %3383 = vrot.lane.b32.xlu1 %v16254_v63, %s17056_s16  ;;  %3393 = vrot.lane.b32.xlu0 %v16265_v4, %s17056_s16  ;;  %v3860_v63 = vrot.slane %v3858_v48, 1  ;;  %v3877_v4 = vshll.u32 %v18075_v40, 16  ;;  %v16293_v40 = vld [vmem:[#allocation2 + $0x84] sm:$0xff]   ;;  %v3844_v48 = vor.u32 %v18079_v46, %v3839_v35 }
 0x14e   :  { %v18107_v23 = vrot.slane %v3894_v37, 1  ;;  %v3947_v6 = vshrl.u32 %v16293_v40, 16 }
 0x14f   :  { %v2993_v31 = vpop.permute.xlu0 %2992  ;;  %v3879_v18 = vrot.slane %v3877_v4, 1  ;;  %v16292_v4 = vld [vmem:[#allocation2 + $0x80] ss:$0 sps:$4 sm:$0x11]  }
 0x150   :  { %3089 = vst.msk [vmem:[#allocation3] sm:$0xff] %vm3088_vm13, %v2993_v31  ;;  %v3906_v31 = vshll.u32 %v16286_v21, 16  ;;  %v3942_v57 = vshll.u32 %v16292_v4, 16  ;;  %v16297_v21 = vld [vmem:[#allocation2 + $0x9c] sm:$0xff]  }
 0x151   :  { %3387 = vrot.lane.b32.xlu1 %v16258_v60, %s17056_s16  ;;  %3397 = vrot.lane.b32.xlu0 %v16267_v8, %s17056_s16  ;;  %v16270_v60 = vld [vmem:[#allocation2 + $0x180] sm:$0xff]   ;;  %v18105_v8 = vrot.slane %v3889_v15, 1  ;;  %v3880_v42 = vor.u32 %v3879_v18, %v3875_v9  ;;  %v3849_v9 = vsel %vm2029_vm9, %v3844_v48, %v18081_v47 }
 0x152   :  { %v3908_v25 = vrot.slane %v3906_v31, 1  ;;  %v18145_v45 = vrot.slane %v3942_v57, 1 }
 0x153   :  { %v2997_v53 = vpop.permute.xlu0 %2996  ;;  %v3885_v59 = vsel %vm2029_vm9, %v3880_v42, %v3884_v20  ;;  %v18141_v20 = vld [vmem:[#allocation2 + $0x90] sm:$0xff]  }
 0x154   :  { %3091 = vst.msk [vmem:[#allocation3 + $0x10] sm:$0xff] %vm3088_vm13, %v2997_v53  ;;  %v16290_v53 = vld [vmem:[#allocation2 + $0x74] ss:$0 sps:$4 sm:$0x11]   ;;  %v3909_v47 = vsel %vm2029_vm9, %v3904_v2, %v3908_v25  ;;  %v3959_v26 = vshrl.u32 %v18141_v20, 16  ;;  %v18175_v2 = vld [vmem:[#allocation2 + $0xc0] sm:$0xff]  }
 0x155   :  { %3391 = vrot.lane.b32.xlu1 %v16262_v38, %s17056_s16  ;;  %3401 = vrot.lane.b32.xlu0 %v16269_v32, %s17056_s16  ;;  %v3856_v38 = vor.u32 %v3855_v56, %v3851_v39  ;;  %v16288_v32 = vld [vmem:[#allocation2 + $0x68] ss:$0 sps:$4 sm:$0x11]   ;;  %v3925_v56 = vshll.u32 %v16289_v29, 16  ;;  %v3930_v46 = vshll.u32 %v16290_v53, 16  ;;  %v3978_v53 = vshll.u32 %v16298_v33, 16 }
 0x156   :  { %v3918_v39 = vshll.u32 %v16288_v32, 16  ;;  %v3971_v32 = vshrl.u32 %v16297_v21, 16 }
 0x157   :  { %v2477_v58 = vpop.permute.xlu1 %2476  ;;  %v3001_v12 = vpop.permute.xlu0 %3000  ;;  %v3927_v35 = vrot.slane %v3925_v56, 1  ;;  %v3932_v11 = vrot.slane %v3930_v46, 1  ;;  %v16300_v56 = vld [vmem:[#allocation2 + $0xb0] ss:$0 sps:$4 sm:$0x11]  }
 0x158   :  { %2542 = vst.msk [vmem:[#allocation3 + $0xf8] sm:$0xff] %vm2510_vm12, %v2477_v58  ;;  %v203_v46 = vld [vmem:[#allocation2 + $0xc8] sm:$0x1] }
 0x159   :  { %3395 = vrot.lane.b32.xlu1 %v16266_v44, %s17056_s16  ;;  %3093 = vst.msk [vmem:[#allocation3 + $0x20] sm:$0xff] %vm3088_vm13, %v3001_v12  ;;  %3405 = vrot.lane.b32.xlu0 %v16271_v54, %s17056_s16  ;;  %v3861_v44 = vsel %vm2029_vm9, %v3856_v38, %v3860_v63  ;;  %v3923_v54 = vshrl.u32 %v16289_v29, 16  ;;  %v3935_v63 = vshrl.u32 %v18114_v43, 16  ;;  %v16294_v12 = vld [vmem:[#allocation2 + $0x8c] ss:$0 sps:$4 sm:$0x11]  }
 0x15a   :  { %v3954_v18 = vshll.u32 %v16294_v12, 16  ;;  %v16296_v38 = vld [vmem:[#allocation2 + $0x98] ss:$0 sps:$4 sm:$0x11]   ;;  %v3961_v29 = vshll.u32 %v18141_v20, 16  ;;  %v16305_v43 = vld [vmem:[#allocation2 + $0xe4] sm:$0xff]  }
 0x15b   :  { %v2995_v16 = vpop.permute.xlu1 %2994  ;;  %v3005_v22 = vpop.permute.xlu0 %3004  ;;  %v3928_v37 = vor.u32 %v3927_v35, %v3923_v54  ;;  %v3966_v31 = vshll.u32 %v16296_v38, 16  ;;  %v16301_v35 = vld [vmem:[#allocation2 + $0xb4] sm:$0xff]   ;;  %v3940_v5 = vor.u32 %v3939_v17, %v3935_v63  ;;  %v16306_v20 = vld [vmem:[#allocation2 + $0xec] ss:$0 sps:$4 sm:$0x11]  }
 0x15c   :  { %3090 = vst.msk [vmem:[#allocation3 + $0x8] sm:$0xff] %vm3088_vm13, %v2995_v16  ;;  %3095 = vst.msk [vmem:[#allocation3 + $0x30] sm:$0xff] %vm3088_vm13, %v3005_v22  ;;  %v3949_v16 = vshll.u32 %v16293_v40, 16  ;;  %v3892_v22 = vor.u32 %v18105_v8, %v3887_v19  ;;  %v3956_v24 = vrot.slane %v3954_v18, 1  ;;  %v3963_v50 = vrot.slane %v3961_v29, 1 }
 0x15d   :  { %3399 = vrot.lane.b32.xlu1 %v16268_v62, %s17056_s16  ;;  %4210 = vrot.lane.b32.xlu0 %v3837_v41, %s17057_s21  ;;  %v18124_v62 = vrot.slane %v3918_v39, 1  ;;  %v3973_v19 = vshll.u32 %v16297_v21, 16  ;;  %v3933_v36 = vsel %vm2029_vm9, %v3928_v37, %v3932_v11  ;;  %v18160_v42 = vrot.slane %v3966_v31, 1 }
 0x15e   :  { %v3951_v41 = vrot.slane %v3949_v16, 1  ;;  %v3897_v39 = vsel %vm2029_vm9, %v3892_v22, %v18107_v23  ;;  %v3916_v40 = vor.u32 %v18121_v52, %v3911_v34  ;;  %v3990_v34 = vshll.u32 %v16300_v56, 16  ;;  %v16302_v52 = vld [vmem:[#allocation2 + $0xbc] ss:$0 sps:$4 sm:$0x11]  }
 0x15f   :  { %v2999_v30 = vpop.permute.xlu1 %2998  ;;  %v3009_v51 = vpop.permute.xlu0 %3008  ;;  %v3997_v11 = vshll.u32 %v16301_v35, 16  ;;  %v4002_v57 = vshll.u32 %v16302_v52, 16  ;;  %v4009_v16 = vshll.u32 %v18175_v2, 16  ;;  %v3964_v63 = vor.u32 %v3963_v50, %v3959_v26  ;;  %v16308_v26 = vld [vmem:[#allocation2 + $0xf8] ss:$0 sps:$4 sm:$0x11]  }
 0x160   :  { %3092 = vst.msk [vmem:[#allocation3 + $0x18] sm:$0xff] %vm3088_vm13, %v2999_v30  ;;  %3097 = vst.msk [vmem:[#allocation3 + $0x40] sm:$0xff] %vm3088_vm13, %v3009_v51  ;;  %v18152_v30 = vld [vmem:[#allocation2 + $0xa8] sm:$0xff]   ;;  %v3975_v51 = vrot.slane %v3973_v19, 1  ;;  %v3921_v4 = vsel %vm2029_vm9, %v3916_v40, %v18124_v62  ;;  %v3945_v37 = vsel %vm2029_vm9, %v3940_v5, %v18145_v45  ;;  %v4019_v21 = vshrl.u32 %v16305_v43, 16 }
 0x161   :  { %3403 = vrot.lane.b32.xlu1 %v16270_v60, %s17056_s16  ;;  %4214 = vrot.lane.b32.xlu0 %v3861_v44, %s17057_s21  ;;  %v3873_v60 = vsel %vm2029_vm9, %v3868_v13, %v18094_v14  ;;  %v3983_v8 = vshrl.u32 %v18152_v30, 16  ;;  %v3952_v44 = vor.u32 %v3951_v41, %v3947_v6  ;;  %v3985_v25 = vshll.u32 %v18152_v30, 16  ;;  %v16313_v30 = vld [vmem:[#allocation2 + $0x114] sm:$0xff]  }
 0x162   :  { %v3980_v13 = vrot.slane %v3978_v53, 1  ;;  %v3976_v23 = vor.u32 %v3975_v51, %v3971_v32  ;;  %v4007_v6 = vshrl.u32 %v18175_v2, 16  ;;  %v3999_v62 = vrot.slane %v3997_v11, 1  ;;  %v16309_v32 = vld [vmem:[#allocation2 + $0xfc] sm:$0xff]  }
 0x163   :  { %v3003_v58 = vpop.permute.xlu1 %3002  ;;  %v3013_v10 = vpop.permute.xlu0 %3012  ;;  %v3957_v7 = vsel %vm2029_vm9, %v3952_v44, %v3956_v24  ;;  %v18188_v18 = vrot.slane %v4009_v16, 1  ;;  %v4021_v22 = vshll.u32 %v16305_v43, 16  ;;  %v4026_v24 = vshll.u32 %v16306_v20, 16  ;;  %v16310_v51 = vld [vmem:[#allocation2 + $0x104] ss:$0 sps:$4 sm:$0x11]  }
 0x164   :  { %3094 = vst.msk [vmem:[#allocation3 + $0x28] sm:$0xff] %vm3088_vm13, %v3003_v58  ;;  %3099 = vst.msk [vmem:[#allocation3 + $0x50] sm:$0xff] %vm3088_vm13, %v3013_v10  ;;  %v3987_v58 = vrot.slane %v3985_v25, 1  ;;  %v3995_v10 = vshrl.u32 %v16301_v35, 16  ;;  %v3981_v17 = vsel %vm2029_vm9, %v3976_v23, %v3980_v13  ;;  %v3969_v45 = vsel %vm2029_vm9, %v3964_v63, %v18160_v42  ;;  %v18212_v13 = vld [vmem:[#allocation2 + $0x108] sm:$0xff]   ;;  %v18222_v11 = vld [vmem:[#allocation2 + $0x120] sm:$0xff]  }
 0x165   :  { %3407 = vrot.lane.b32.xlu1 %v16272_v28, %s17056_s16  ;;  %4218 = vrot.lane.b32.xlu0 %v3885_v59, %s17057_s21  ;;  %v204_v59 = vsel %vm17122_vm5, 0, %v203_v46  ;;  %v4023_v29 = vrot.slane %v4021_v22, 1  ;;  %v4028_v19 = vrot.slane %v4026_v24, 1  ;;  %v4045_v56 = vshll.u32 %v16309_v32, 16 }
 0x166   :  { %205 = vst [vmem:[#allocation2 + $0xc8] sm:$0x1] %v204_v59  ;;  %v4000_v38 = vor.u32 %v3999_v62, %v3995_v10  ;;  %v3988_v44 = vor.u32 %v3987_v58, %v3983_v8  ;;  %v4050_v55 = vshll.u32 %v16310_v51, 16  ;;  %v16312_v58 = vld [vmem:[#allocation2 + $0x110] ss:$0 sps:$4 sm:$0x11]   ;;  %v4012_v22 = vor.u32 %v18188_v18, %v4007_v6 }
 0x167   :  { %v3007_v15 = vpop.permute.xlu1 %3006  ;;  %v3017_v14 = vpop.permute.xlu0 %3016  ;;  %v4024_v40 = vor.u32 %v4023_v29, %v4019_v21  ;;  %v4047_v8 = vrot.slane %v4045_v56, 1  ;;  %v4055_v35 = vshrl.u32 %v18212_v13, 16  ;;  %v4057_v46 = vshll.u32 %v18212_v13, 16  ;;  %v18233_v21 = vld [vmem:[#allocation2 + $0x138] sm:$0xff]  }
 0x168   :  { %3096 = vst.msk [vmem:[#allocation3 + $0x38] sm:$0xff] %vm3088_vm13, %v3007_v15  ;;  %3101 = vst.msk [vmem:[#allocation3 + $0x60] sm:$0xff] %vm3088_vm13, %v3017_v14  ;;  %v3992_v15 = vrot.slane %v3990_v34, 1  ;;  %v4052_v34 = vrot.slane %v4050_v55, 1  ;;  %v4067_v52 = vshrl.u32 %v16313_v30, 16  ;;  %v4069_v10 = vshll.u32 %v16313_v30, 16 }
 0x169   :  { %4212 = vrot.lane.b32.xlu1 %v3849_v9, %s17057_s21  ;;  %4222 = vrot.lane.b32.xlu0 %v3909_v47, %s17057_s21  ;;  %v18190_v47 = vld [vmem:[#allocation2 + $0xf0] sm:$0xff]   ;;  %v4059_v5 = vrot.slane %v4057_v46, 1  ;;  %v16321_v55 = vld [vmem:[#allocation2 + $0x144] sm:$0xff]  }
 0x16a   :  { %v4033_v31 = vshll.u32 %v18190_v47, 16  ;;  %v4071_v62 = vrot.slane %v4069_v10, 1 }
 0x16b   :  { %v3011_v28 = vpop.permute.xlu1 %3010  ;;  %v3021_v48 = vpop.permute.xlu0 %3020  ;;  %v4060_v51 = vor.u32 %v4059_v5, %v4055_v35  ;;  %v4117_v35 = vshll.u32 %v16321_v55, 16 }
 0x16c   :  { %3098 = vst.msk [vmem:[#allocation3 + $0x48] sm:$0xff] %vm3088_vm13, %v3011_v28  ;;  %3103 = vst.msk [vmem:[#allocation3 + $0x70] sm:$0xff] %vm3088_vm13, %v3021_v48  ;;  %v4031_v28 = vshrl.u32 %v18190_v47, 16  ;;  %v4035_v48 = vrot.slane %v4033_v31, 1  ;;  %v4072_v20 = vor.u32 %v4071_v62, %v4067_v52 }
 0x16d   :  { %4216 = vrot.lane.b32.xlu1 %v3873_v60, %s17057_s21  ;;  %4226 = vrot.lane.b32.xlu0 %v3933_v36, %s17057_s21  ;;  %v4004_v60 = vrot.slane %v4002_v57, 1  ;;  %v1273_v33 = vld [vmem:[#allocation2 + $0xc8] sm:$0x1]  ;;  %v4038_v36 = vshll.u32 %v16308_v26, 16  ;;  %v16317_v57 = vld [vmem:[#allocation2 + $0x12c] sm:$0xff]  }
 0x16e   :  { %v4036_v24 = vor.u32 %v4035_v48, %v4031_v28  ;;  %v16320_v28 = vld [vmem:[#allocation2 + $0x140] ss:$0 sps:$4 sm:$0x11]  }
 0x16f   :  { %v3015_v54 = vpop.permute.xlu1 %3014  ;;  %v3025_v9 = vpop.permute.xlu0 %3024  ;;  %v4005_v50 = vsel %vm2029_vm9, %v4000_v38, %v4004_v60  ;;  %v18210_v42 = vrot.slane %v4038_v36, 1  ;;  %v4081_v38 = vshll.u32 %v18222_v11, 16  ;;  %v16318_v36 = vld [vmem:[#allocation2 + $0x134] ss:$0 sps:$4 sm:$0x11]   ;;  %v4110_v13 = vshll.u32 %v16320_v28, 16 }
 0x170   :  { %3100 = vst.msk [vmem:[#allocation3 + $0x58] sm:$0xff] %vm3088_vm13, %v3015_v54  ;;  %3105 = vst.msk [vmem:[#allocation3 + $0x80] sm:$0xff] %vm3088_vm13, %v3025_v9  ;;  %v4043_v54 = vshrl.u32 %v16309_v32, 16  ;;  %v4062_v9 = vshll.u32 %v16312_v58, 16  ;;  %v4091_v32 = vshrl.u32 %v16317_v57, 16  ;;  %v4098_v47 = vshll.u32 %v16318_v36, 16 }
 0x171   :  { %4220 = vrot.lane.b32.xlu1 %v3897_v39, %s17057_s21  ;;  %4230 = vrot.lane.b32.xlu0 %v3957_v7, %s17057_s21  ;;  %v1274_v39 = vsel %vm17107_vm3, %v792_v61, %v1273_v33  ;;  %v4029_v61 = vsel %vm2029_vm9, %v4024_v40, %v4028_v19  ;;  %v3993_v7 = vsel %vm2029_vm9, %v3988_v44, %v3992_v15  ;;  %v4083_v29 = vrot.slane %v4081_v38, 1 }
 0x172   :  { %1275 = vst [vmem:[#allocation2 + $0xc8] sm:$0x1] %v1274_v39  ;;  %v18228_v16 = vrot.slane %v4062_v9, 1  ;;  %v4105_v39 = vshll.u32 %v18233_v21, 16  ;;  %v4041_v40 = vsel %vm2029_vm9, %v4036_v24, %v18210_v42  ;;  %v4112_v46 = vrot.slane %v4110_v13, 1  ;;  %v16325_v9 = vld [vmem:[#allocation2 + $0x15c] sm:$0xff]  }
 0x173   :  { %v3019_v12 = vpop.permute.xlu1 %3018  ;;  %v3029_v41 = vpop.permute.xlu0 %3028 }
 0x174   :  { %3102 = vst.msk [vmem:[#allocation3 + $0x68] sm:$0xff] %vm3088_vm13, %v3019_v12  ;;  %3107 = vst.msk [vmem:[#allocation3 + $0x90] sm:$0xff] %vm3088_vm13, %v3029_v41  ;;  %v16314_v12 = vld [vmem:[#allocation2 + $0x11c] ss:$0 sps:$4 sm:$0x11]   ;;  %v4079_v41 = vshrl.u32 %v18222_v11, 16 }
 0x175   :  { %4224 = vrot.lane.b32.xlu1 %v3921_v4, %s17057_s21  ;;  %4234 = vrot.lane.b32.xlu0 %v3981_v17, %s17057_s21  ;;  %v4048_v4 = vor.u32 %v4047_v8, %v4043_v54  ;;  %v4074_v17 = vshll.u32 %v16314_v12, 16  ;;  %v4100_v54 = vrot.slane %v4098_v47, 1  ;;  %v4107_v56 = vrot.slane %v4105_v39, 1  ;;  %v16323_v8 = vld [vmem:[#allocation2 + $0x150] sm:$0xff]  }
 0x176   :  { %v4084_v42 = vor.u32 %v4083_v29, %v4079_v41  ;;  %v4127_v52 = vshrl.u32 %v16323_v8, 16  ;;  %v4129_v5 = vshll.u32 %v16323_v8, 16  ;;  %v4119_v11 = vrot.slane %v4117_v35, 1  ;;  %v16333_v39 = vld [vmem:[#allocation2 + $0x18c] sm:$0xff]  }
 0x177   :  { %v3023_v14 = vpop.permute.xlu1 %3022  ;;  %v3033_v25 = vpop.permute.xlu0 %3032  ;;  %v4053_v15 = vsel %vm2029_vm9, %v4048_v4, %v4052_v34  ;;  %v4076_v26 = vrot.slane %v4074_v17, 1  ;;  %v16324_v34 = vld [vmem:[#allocation2 + $0x158] ss:$0 sps:$4 sm:$0x11]   ;;  %v16327_v17 = vld [vmem:[#allocation2 + $0x168] sm:$0xff]   ;;  %v4187_v13 = vshrl.u32 %v16333_v39, 16 }
 0x178   :  { %3104 = vst.msk [vmem:[#allocation3 + $0x78] sm:$0xff] %vm3088_vm13, %v3023_v14  ;;  %3109 = vst.msk [vmem:[#allocation3 + $0xa0] sm:$0xff] %vm3088_vm13, %v3033_v25  ;;  %v4103_v25 = vshrl.u32 %v18233_v21, 16  ;;  %v4131_v62 = vrot.slane %v4129_v5, 1  ;;  %v4153_v24 = vshll.u32 %v16327_v17, 16  ;;  %v4189_v8 = vshll.u32 %v16333_v39, 16 }
 0x179   :  { %4228 = vrot.lane.b32.xlu1 %v3945_v37, %s17057_s21  ;;  %4238 = vrot.lane.b32.xlu0 %v4005_v50, %s17057_s21  ;;  %v16304_v43 = vld [vmem:[#allocation2 + $0xc8] ss:$0 sps:$4 sm:$0x11]   ;;  %v4077_v19 = vsel %vm2029_vm9, %v4072_v20, %v4076_v26  ;;  %v16334_v35 = vld [vmem:[#allocation2 + $0x194] ss:$0 sps:$4 sm:$0x11]  }
 0x17a   :  { %v16316_v37 = vld [vmem:[#allocation2 + $0x128] ss:$0 sps:$4 sm:$0x11]   ;;  %v4014_v14 = vshll.u32 %v16304_v43, 16  ;;  %v4139_v43 = vshrl.u32 %v16325_v9, 16  ;;  %v4108_v41 = vor.u32 %v4107_v56, %v4103_v25  ;;  %v4194_v5 = vshll.u32 %v16334_v35, 16 }
 0x17b   :  { %v3027_v53 = vpop.permute.xlu1 %3026  ;;  %v3037_v23 = vpop.permute.xlu0 %3036  ;;  %v4086_v31 = vshll.u32 %v16316_v37, 16 }
 0x17c   :  { %3106 = vst.msk [vmem:[#allocation3 + $0x88] sm:$0xff] %vm3088_vm13, %v3027_v53  ;;  %3111 = vst.msk [vmem:[#allocation3 + $0xb0] sm:$0xff] %vm3088_vm13, %v3037_v23  ;;  %v4016_v50 = vrot.slane %v4014_v14, 1  ;;  %v4151_v14 = vshrl.u32 %v16327_v17, 16  ;;  %v1064_v17 = vrot.slane %v18056_v0, 4 }
 0x17d   :  { %4232 = vrot.lane.b32.xlu1 %v3969_v45, %s17057_s21  ;;  %4242 = vrot.lane.b32.xlu0 %v4029_v61, %s17057_s21  ;;  %v4093_v45 = vshll.u32 %v16317_v57, 16  ;;  %v4088_v2 = vrot.slane %v4086_v31, 1  ;;  %v16322_v61 = vld [vmem:[#allocation2 + $0x14c] ss:$0 sps:$4 sm:$0x11]   ;;  %v4134_v57 = vshll.u32 %v16324_v34, 16 }
 0x17e   :  { %v4017_v18 = vsel %vm2029_vm9, %v4012_v22, %v4016_v50  ;;  %v4122_v23 = vshll.u32 %v16322_v61, 16  ;;  %v16328_v22 = vld [vmem:[#allocation2 + $0x170] ss:$0 sps:$4 sm:$0x11]   ;;  %v4155_v50 = vrot.slane %v4153_v24, 1 }
 0x17f   :  { %v3031_v59 = vpop.permute.xlu1 %3030  ;;  %v3041_v63 = vpop.permute.xlu0 %3040  ;;  %v4095_v6 = vrot.slane %v4093_v45, 1  ;;  %v4136_v20 = vrot.slane %v4134_v57, 1  ;;  %v4196_v57 = vrot.slane %v4194_v5, 1  ;;  %v16341_v0 = vld [vmem:[#allocation2 + $0x24] sm:$0xfe]  }
 0x180   :  { %3108 = vst.msk [vmem:[#allocation3 + $0x98] sm:$0xff] %vm3088_vm13, %v3031_v59  ;;  %3113 = vst.msk [vmem:[#allocation3 + $0xc0] sm:$0xff] %vm3088_vm13, %v3041_v63  ;;  %v4065_v59 = vsel %vm2029_vm9, %v4060_v51, %v18228_v16  ;;  %v4124_v12 = vrot.slane %v4122_v23, 1  ;;  %v4141_v63 = vshll.u32 %v16325_v9, 16  ;;  %v4089_v16 = vsel %vm2029_vm9, %v4084_v42, %v4088_v2  ;;  %v16331_v2 = vld [vmem:[#allocation2 + $0x180] sm:$0xff]  }
 0x181   :  { %4236 = vrot.lane.b32.xlu1 %v3993_v7, %s17057_s21  ;;  %4246 = vrot.lane.b32.xlu0 %v4053_v15, %s17057_s21  ;;  %v4096_v48 = vor.u32 %v4095_v6, %v4091_v32  ;;  %v4115_v7 = vshrl.u32 %v16321_v55, 16  ;;  %v16326_v15 = vld [vmem:[#allocation2 + $0x164] ss:$0 sps:$4 sm:$0x11]   ;;  %v16329_v32 = vld [vmem:[#allocation2 + $0x174] sm:$0xff]   ;;  %v4113_v6 = vsel %vm2029_vm9, %v4108_v41, %v4112_v46  ;;  %v4177_v56 = vshll.u32 %v16331_v2, 16 }
 0x182   :  { %v4146_v37 = vshll.u32 %v16326_v15, 16  ;;  %v4143_v21 = vrot.slane %v4141_v63, 1  ;;  %v4163_v36 = vshrl.u32 %v16329_v32, 16  ;;  %v4156_v46 = vor.u32 %v4155_v50, %v4151_v14  ;;  %v257_v23 = vld [vmem:[#allocation2 + $0x1a0] sm:$0x1]  ;;  %v16335_v41 = vld [vmem:[#allocation2 + $0x198] sm:$0xff]  }
 0x183   :  { %v3035_v60 = vpop.permute.xlu1 %3034  ;;  %v3045_v33 = vpop.permute.xlu0 %3044  ;;  %v4101_v58 = vsel %vm2029_vm9, %v4096_v48, %v4100_v54  ;;  %v4175_v54 = vshrl.u32 %v16331_v2, 16  ;;  %v16338_v63 = vld [vmem:[#allocation2 + $0x14] ss:$0 sps:$4 sm:$0x11]   ;;  %v4199_v2 = vshrl.u32 %v16335_v41, 16 }
 0x184   :  { %3110 = vst.msk [vmem:[#allocation3 + $0xa8] sm:$0xff] %vm3088_vm13, %v3035_v60  ;;  %3115 = vst.msk [vmem:[#allocation3 + $0xd0] sm:$0xff] %vm3088_vm13, %v3045_v33  ;;  %v4120_v60 = vor.u32 %v4119_v11, %v4115_v7  ;;  %v4148_v31 = vrot.slane %v4146_v37, 1  ;;  %v4144_v45 = vor.u32 %v4143_v21, %v4139_v43  ;;  %v4158_v33 = vshll.u32 %v16328_v22, 16 }
 0x185   :  { %4250 = vrot.lane.b32.xlu0 %v4077_v19, %s17057_s21  ;;  %4240 = vrot.lane.b32.xlu1 %v4017_v18, %s17057_s21  ;;  %v16330_v19 = vld [vmem:[#allocation2 + $0x17c] ss:$0 sps:$4 sm:$0x11]   ;;  %v4132_v18 = vor.u32 %v4131_v62, %v4127_v52  ;;  %v4179_v7 = vrot.slane %v4177_v56, 1  ;;  %v16337_v62 = vld [vmem:[#allocation2 + $0xc] sm:$0xfe]  }
 0x186   :  { %v4125_v29 = vsel %vm2029_vm9, %v4120_v60, %v4124_v12  ;;  %v4149_v47 = vsel %vm2029_vm9, %v4144_v45, %v4148_v31  ;;  %v4160_v28 = vrot.slane %v4158_v33, 1  ;;  %v4170_v51 = vshll.u32 %v16330_v19, 16  ;;  %v16339_v33 = vld [vmem:[#allocation2 + $0x18] sm:$0xfe]  }
 0x187   :  { %v3039_v44 = vpop.permute.xlu1 %3038  ;;  %v3049_v53 = vpop.permute.xlu0 %3048  ;;  %v4180_v11 = vor.u32 %v4179_v7, %v4175_v54  ;;  %v4691_v60 = vrot.slane %v16337_v62, 1  ;;  %v4201_v31 = vshll.u32 %v16335_v41, 16 }
 0x188   :  { %3112 = vst.msk [vmem:[#allocation3 + $0xb8] sm:$0xff] %vm3088_vm13, %v3039_v44  ;;  %3117 = vst.msk [vmem:[#allocation3 + $0xe0] sm:$0xff] %vm3088_vm13, %v3049_v53  ;;  %v4165_v44 = vshll.u32 %v16329_v32, 16  ;;  %v16332_v53 = vld [vmem:[#allocation2 + $0x188] ss:$0 sps:$4 sm:$0x11]  }
 0x189   :  { %4244 = vrot.lane.b32.xlu1 %v4041_v40, %s17057_s21  ;;  %4254 = vrot.lane.b32.xlu0 %v4101_v58, %s17057_s21  ;;  %v4182_v61 = vshll.u32 %v16332_v53, 16  ;;  %v4137_v58 = vsel %vm2029_vm9, %v4132_v18, %v4136_v20  ;;  %v4692_v20 = vrot.slane %v16338_v63, 1  ;;  %v16344_v53 = vld [vmem:[#allocation2 + $0x38] ss:$0 sps:$4 sm:$0x11]  }
 0x18a   :  { %v4167_v48 = vrot.slane %v4165_v44, 1  ;;  %v16346_v44 = vld [vmem:[#allocation2 + $0x44] ss:$0 sps:$4 sm:$0x11]   ;;  %v4701_v5 = vrot.slane %v16344_v53, 1 }
 0x18b   :  { %v3043_v30 = vpop.permute.xlu1 %3042  ;;  %v3053_v4 = vpop.permute.xlu0 %3052  ;;  %v4184_v12 = vrot.slane %v4182_v61, 1  ;;  %v4693_v14 = vsel %vm2895_vm10, %v4691_v60, %v4692_v20  ;;  %v4704_v39 = vrot.slane %v16346_v44, 1  ;;  %v16352_v63 = vld [vmem:[#allocation2 + $0x68] ss:$0 sps:$4 sm:$0x11]   ;;  %v18328_v44 = vld [vmem:[#allocation2 + $0x18] sm:$0xff]  }
 0x18c   :  { %3114 = vst.msk [vmem:[#allocation3 + $0xc8] sm:$0xff] %vm3088_vm13, %v3043_v30  ;;  %3119 = vst.msk [vmem:[#allocation3 + $0xf0] sm:$0xff] %vm3088_vm13, %v3053_v4  ;;  %v4168_v55 = vor.u32 %v4167_v48, %v4163_v36  ;;  %v4172_v30 = vrot.slane %v4170_v51, 1  ;;  %v258_v4 = vsel %vm17122_vm5, 0, %v257_v23  ;;  %v16345_v36 = vld [vmem:[#allocation2 + $0x3c] sm:$0xfe]  }
 0x18d   :  { %4248 = vrot.lane.b32.xlu1 %v4065_v59, %s17057_s21  ;;  %4258 = vrot.lane.b32.xlu0 %v4125_v29, %s17057_s21  ;;  %v4191_v59 = vrot.slane %v4189_v8, 1  ;;  %259 = vst [vmem:[#allocation2 + $0x1a0] sm:$0x1] %v258_v4  ;;  %v4185_v37 = vsel %vm2029_vm9, %v4180_v11, %v4184_v12  ;;  %v4697_v29 = vrot.slane %v16341_v0, 1  ;;  %v4703_v18 = vrot.slane %v16345_v36, 1 }
 0x18e   :  { %v4173_v52 = vsel %vm2029_vm9, %v4168_v55, %v4172_v30  ;;  %v4694_v48 = vrot.slane %v16339_v33, 1  ;;  %v16343_v51 = vld [vmem:[#allocation2 + $0x30] sm:$0xfe]   ;;  %v16350_v30 = vld [vmem:[#allocation2 + $0x5c] ss:$0 sps:$4 sm:$0x11]  }
 0x18f   :  { %v3047_v10 = vpop.permute.xlu1 %3046  ;;  %v3346_v38 = vpop.permute.xlu0 %3345  ;;  %v4192_v9 = vor.u32 %v4191_v59, %v4187_v13  ;;  %v4705_v54 = vsel %vm2895_vm10, %v4703_v18, %v4704_v39  ;;  %v16349_v55 = vld [vmem:[#allocation2 + $0x54] sm:$0xfe]   ;;  %v4700_v35 = vrot.slane %v16343_v51, 1  ;;  %v16354_v11 = vld [vmem:[#allocation2 + $0x74] ss:$0 sps:$4 sm:$0x11]  }
 0x190   :  { %3116 = vst.msk [vmem:[#allocation3 + $0xd8] sm:$0xff] %vm3088_vm13, %v3047_v10  ;;  %v4161_v10 = vsel %vm2029_vm9, %v4156_v46, %v4160_v28  ;;  %v16340_v28 = vld [vmem:[#allocation2 + $0x20] ss:$0 sps:$4 sm:$0x11]   ;;  %v4709_v7 = vrot.slane %v16349_v55, 1 }
 0x191   :  { %3442 = vst.msk [vmem:[#allocation3] sm:$0xff] %vm20682_vm14, %v3346_v38  ;;  %4252 = vrot.lane.b32.xlu1 %v4089_v16, %s17057_s21  ;;  %4262 = vrot.lane.b32.xlu0 %v4149_v47, %s17057_s21  ;;  %v4197_v16 = vsel %vm2029_vm9, %v4192_v9, %v4196_v57  ;;  %v4695_v46 = vrot.slane %v16340_v28, 1  ;;  %v16355_v20 = vld [vmem:[#allocation2 + $0x78] sm:$0xfe]   ;;  %v4702_v41 = vsel %vm2895_vm10, %v4700_v35, %v4701_v5 }
 0x192   :  { %v16361_v33 = vld [vmem:[#allocation2 + $0x9c] sm:$0xfe]   ;;  %v16362_v36 = vld [vmem:[#allocation2 + $0xa4] ss:$0 sps:$4 sm:$0x11]  }
 0x193   :  { %v3051_v26 = vpop.permute.xlu1 %3050  ;;  %v3350_v25 = vpop.permute.xlu0 %3349  ;;  %v4696_v12 = vsel %vm2895_vm10, %v4694_v48, %v4695_v46  ;;  %v4727_v18 = vrot.slane %v16361_v33, 1  ;;  %v16360_v28 = vld [vmem:[#allocation2 + $0x98] ss:$0 sps:$4 sm:$0x11]   ;;  %v4728_v39 = vrot.slane %v16362_v36, 1 }
 0x194   :  { %3118 = vst.msk [vmem:[#allocation3 + $0xe8] sm:$0xff] %vm3088_vm13, %v3051_v26  ;;  %v1385_v22 = vld [vmem:[#allocation2 + $0x1a0] sm:$0x1]  ;;  %v16342_v26 = vld [vmem:[#allocation2 + $0x2c] ss:$0 sps:$4 sm:$0x11]  }
 0x195   :  { %3444 = vst.msk [vmem:[#allocation3 + $0x10] sm:$0xff] %vm20682_vm14, %v3350_v25  ;;  %4256 = vrot.lane.b32.xlu1 %v4113_v6, %s17057_s21  ;;  %4266 = vrot.lane.b32.xlu0 %v4173_v52, %s17057_s21  ;;  %v1386_v24 = vsel %vm17107_vm3, %v1064_v17, %v1385_v22  ;;  %v4698_v32 = vrot.slane %v16342_v26, 1  ;;  %v4203_v6 = vrot.slane %v4201_v31, 1  ;;  %v16348_v52 = vld [vmem:[#allocation2 + $0x50] ss:$0 sps:$4 sm:$0x11]   ;;  %v4729_v51 = vsel %vm2895_vm10, %v4727_v18, %v4728_v39 }
 0x196   :  { %1387 = vst [vmem:[#allocation2 + $0x1a0] sm:$0x1] %v1386_v24  ;;  %v16363_v48 = vld [vmem:[#allocation2 + $0xa8] sm:$0xfe]   ;;  %v16365_v53 = vld [vmem:[#allocation2 + $0xb4] sm:$0xfe]  }
 0x197   :  { %v3055_v40 = vpop.permute.xlu1 %3054  ;;  %v3354_v42 = vpop.permute.xlu0 %3353  ;;  %v4699_v19 = vsel %vm2895_vm10, %v4697_v29, %v4698_v32  ;;  %v4204_v56 = vor.u32 %v4203_v6, %v4199_v2  ;;  %v18322_v29 = vld [vmem:[#allocation2 + $0x24] sm:$0xff]   ;;  %v16359_v6 = vld [vmem:[#allocation2 + $0x90] sm:$0xfe]   ;;  %v16371_v18 = vld [vmem:[#allocation2 + $0x18] sm:$0xff]  }
 0x198   :  { %3120 = vst.msk [vmem:[#allocation3 + $0xf8] sm:$0xff] %vm3088_vm13, %v3055_v40  ;;  %v4724_v55 = vrot.slane %v16359_v6, 1  ;;  %v16368_v5 = vld [vmem:[#allocation2 + $0xc8] ss:$0 sps:$4 sm:$0x11]  }
 0x199   :  { %3446 = vst.msk [vmem:[#allocation3 + $0x20] sm:$0xff] %vm20682_vm14, %v3354_v42  ;;  %4260 = vrot.lane.b32.xlu1 %v4137_v58, %s17057_s21  ;;  %4270 = vrot.lane.b32.xlu0 %v4197_v16, %s17057_s21  ;;  %v4710_v42 = vrot.slane %v16350_v30, 1  ;;  %v16380_v6 = vld [vmem:[#allocation2 + $0x2c] ss:$0 sps:$4 sm:$0x11]  }
 0x19b   :  { %v3348_v34 = vpop.permute.xlu1 %3347  ;;  %v3358_v15 = vpop.permute.xlu0 %3357  ;;  %v4711_v59 = vsel %vm2895_vm10, %v4709_v7, %v4710_v42  ;;  %v4725_v7 = vrot.slane %v16360_v28, 1  ;;  %v16364_v42 = vld [vmem:[#allocation2 + $0xb0] ss:$0 sps:$4 sm:$0x11]   ;;  %v16377_v28 = vld [vmem:[#allocation2 + $0x18] sm:$0xfe]  }
 0x19c   :  { %3443 = vst.msk [vmem:[#allocation3 + $0x8] sm:$0xff] %vm20682_vm14, %v3348_v34  ;;  %3448 = vst.msk [vmem:[#allocation3 + $0x30] sm:$0xff] %vm20682_vm14, %v3358_v15  ;;  %v16347_v34 = vld [vmem:[#allocation2 + $0x48] sm:$0xfe]   ;;  %v4716_v15 = vrot.slane %v16354_v11, 1 }
 0x19d   :  { %4264 = vrot.lane.b32.xlu1 %v4161_v10, %s17057_s21  ;;  %4787 = vrot.lane.b32.xlu0 %v4693_v14, %s17058_s22  ;;  %v16336_v40 = vld [vmem:[#allocation2 + $0x1a0] ss:$0 sps:$4 sm:$0x11]   ;;  %v16353_v10 = vld [vmem:[#allocation2 + $0x6c] sm:$0xfe]   ;;  %v4706_v62 = vrot.slane %v16347_v34, 1 }
 0x19e   :  { %v4206_v13 = vshll.u32 %v16336_v40, 16  ;;  %v4715_v57 = vrot.slane %v16353_v10, 1  ;;  %v16356_v14 = vld [vmem:[#allocation2 + $0x80] ss:$0 sps:$4 sm:$0x11]   ;;  %v5635_v34 = vshrl.u32 %v18322_v29, 16 }
 0x19f   :  { %v3352_v43 = vpop.permute.xlu1 %3351  ;;  %v3362_v38 = vpop.permute.xlu0 %3361  ;;  %v4719_v2 = vrot.slane %v16356_v14, 1  ;;  %v4737_v14 = vrot.slane %v16368_v5, 1  ;;  %v16389_v5 = vld [vmem:[#allocation2 + $0x3c] sm:$0xfe]  }
 0x1a0   :  { %3445 = vst.msk [vmem:[#allocation3 + $0x18] sm:$0xff] %vm20682_vm14, %v3352_v43  ;;  %3450 = vst.msk [vmem:[#allocation3 + $0x40] sm:$0xff] %vm20682_vm14, %v3362_v38  ;;  %v4208_v58 = vrot.slane %v4206_v13, 1  ;;  %v16351_v43 = vld [vmem:[#allocation2 + $0x60] sm:$0xfe]   ;;  %v4717_v60 = vsel %vm2895_vm10, %v4715_v57, %v4716_v15  ;;  %v4707_v38 = vrot.slane %v16348_v52, 1  ;;  %v4726_v15 = vsel %vm2895_vm10, %v4724_v55, %v4725_v7 }
 0x1a1   :  { %4268 = vrot.lane.b32.xlu1 %v4185_v37, %s17057_s21  ;;  %4791 = vrot.lane.b32.xlu0 %v4699_v19, %s17058_s22  ;;  %v16357_v37 = vld [vmem:[#allocation2 + $0x84] sm:$0xfe]   ;;  %v4712_v32 = vrot.slane %v16351_v43, 1  ;;  %v4718_v19 = vrot.slane %v16355_v20, 1  ;;  %v18347_v57 = vld [vmem:[#allocation2 + $0x3c] sm:$0xff]   ;;  %v18352_v20 = vld [vmem:[#allocation2 + $0x30] sm:$0xff]  }
 0x1a2   :  { %v4209_v23 = vsel %vm2029_vm9, %v4204_v56, %v4208_v58  ;;  %v4721_v22 = vrot.slane %v16357_v37, 1  ;;  %v4708_v31 = vsel %vm2895_vm10, %v4706_v62, %v4707_v38  ;;  %v5637_v56 = vshll.u32 %v18322_v29, 16  ;;  %v16386_v55 = vld [vmem:[#allocation2 + $0x44] ss:$0 sps:$4 sm:$0x11]  }
 0x1a3   :  { %v3356_v21 = vpop.permute.xlu1 %3355  ;;  %v3366_v45 = vpop.permute.xlu0 %3365  ;;  %v5625_v58 = vshll.u32 %v18328_v44, 16  ;;  %v4720_v46 = vsel %vm2895_vm10, %v4718_v19, %v4719_v2  ;;  %v4731_v62 = vrot.slane %v16364_v42, 1  ;;  %v5661_v38 = vshll.u32 %v18347_v57, 16  ;;  %v16379_v2 = vld [vmem:[#allocation2 + $0x24] sm:$0xfe]  }
 0x1a4   :  { %3447 = vst.msk [vmem:[#allocation3 + $0x28] sm:$0xff] %vm20682_vm14, %v3356_v21  ;;  %3452 = vst.msk [vmem:[#allocation3 + $0x50] sm:$0xff] %vm20682_vm14, %v3366_v45  ;;  %v16358_v21 = vld [vmem:[#allocation2 + $0x8c] ss:$0 sps:$4 sm:$0x11]   ;;  %v4713_v45 = vrot.slane %v16352_v63, 1 }
 0x1a5   :  { %4795 = vrot.lane.b32.xlu0 %v4705_v54, %s17058_s22  ;;  %4272 = vrot.lane.b32.xlu1 %v4209_v23, %s17057_s21  ;;  %v4722_v0 = vrot.slane %v16358_v21, 1  ;;  %v16366_v54 = vld [vmem:[#allocation2 + $0xbc] ss:$0 sps:$4 sm:$0x11]   ;;  %v16369_v23 = vld [vmem:[#allocation2 + $0xe4] sm:$0xfe]  }
 0x1a6   :  { %v4714_v40 = vsel %vm2895_vm10, %v4712_v32, %v4713_v45  ;;  %v5639_v52 = vrot.slane %v5637_v56, 1  ;;  %v16372_v63 = vld [vmem:[#allocation2 + $0x24] sm:$0xff]   ;;  %v5627_v29 = vrot.slane %v5625_v58, 1  ;;  %v5649_v32 = vshll.u32 %v18352_v20, 16 }
 0x1a7   :  { %v3360_v50 = vpop.permute.xlu1 %3359  ;;  %v3370_v47 = vpop.permute.xlu0 %3369  ;;  %v5659_v45 = vshrl.u32 %v18347_v57, 16  ;;  %v5663_v19 = vrot.slane %v5661_v38, 1  ;;  %v6490_v39 = vrot.slane %v16379_v2, 1  ;;  %v5647_v58 = vshrl.u32 %v18352_v20, 16  ;;  %v16399_v2 = vld [vmem:[#allocation2 + $0x54] sm:$0xfe]  }
 0x1a8   :  { %3449 = vst.msk [vmem:[#allocation3 + $0x38] sm:$0xff] %vm20682_vm14, %v3360_v50  ;;  %3454 = vst.msk [vmem:[#allocation3 + $0x60] sm:$0xff] %vm20682_vm14, %v3370_v47  ;;  %v4723_v50 = vsel %vm2895_vm10, %v4721_v22, %v4722_v0  ;;  %v5623_v0 = vshrl.u32 %v18328_v44, 16  ;;  %v5666_v7 = vshll.u32 %v16386_v55, 16  ;;  %v16397_v55 = vld [vmem:[#allocation2 + $0x48] sm:$0xfe]  }
 0x1a9   :  { %4799 = vrot.lane.b32.xlu0 %v4711_v59, %s17058_s22  ;;  %4789 = vrot.lane.b32.xlu1 %v4696_v12, %s17058_s22  ;;  %v4730_v59 = vrot.slane %v16363_v48, 1  ;;  %v4739_v12 = vrot.slane %v16369_v23, 1 }
 0x1ab   :  { %v3364_v25 = vpop.permute.xlu1 %3363  ;;  %v3374_v61 = vpop.permute.xlu0 %3373  ;;  %v4732_v21 = vsel %vm2895_vm10, %v4730_v59, %v4731_v62  ;;  %v16395_v59 = vld [vmem:[#allocation2 + $0x54] sm:$0xff]  }
 0x1ac   :  { %3451 = vst.msk [vmem:[#allocation3 + $0x48] sm:$0xff] %vm20682_vm14, %v3364_v25  ;;  %3456 = vst.msk [vmem:[#allocation3 + $0x70] sm:$0xff] %vm20682_vm14, %v3374_v61  ;;  %v4733_v61 = vrot.slane %v16365_v53, 1  ;;  %v5628_v53 = vor.u32 %v5627_v29, %v5623_v0  ;;  %v5685_v20 = vshll.u32 %v16395_v59, 16  ;;  %v5683_v38 = vshrl.u32 %v16395_v59, 16  ;;  %v16402_v59 = vld [vmem:[#allocation2 + $0x6c] sm:$0xff]  }
 0x1ad   :  { %4803 = vrot.lane.b32.xlu0 %v4717_v60, %s17058_s22  ;;  %4793 = vrot.lane.b32.xlu1 %v4702_v41, %s17058_s22  ;;  %v16376_v41 = vld [vmem:[#allocation2 + $0x2c] ss:$0 sps:$4 sm:$0x11]   ;;  %v16394_v29 = vld [vmem:[#allocation2 + $0x50] ss:$0 sps:$4 sm:$0x11]  }
 0x1ae   :  { %v5687_v0 = vrot.slane %v5685_v20, 1 }
 0x1af   :  { %v3368_v8 = vpop.permute.xlu1 %3367  ;;  %v3378_v4 = vpop.permute.xlu0 %3377 }
 0x1b0   :  { %3453 = vst.msk [vmem:[#allocation3 + $0x58] sm:$0xff] %vm20682_vm14, %v3368_v8  ;;  %3458 = vst.msk [vmem:[#allocation3 + $0x80] sm:$0xff] %vm20682_vm14, %v3378_v4  ;;  %v4734_v8 = vrot.slane %v16366_v54, 1  ;;  %v16367_v4 = vld [vmem:[#allocation2 + $0xc0] sm:$0xfe]  }
 0x1b1   :  { %4807 = vrot.lane.b32.xlu0 %v4723_v50, %s17058_s22  ;;  %4797 = vrot.lane.b32.xlu1 %v4708_v31, %s17058_s22  ;;  %v4736_v22 = vrot.slane %v16367_v4, 1 }
 0x1b2   :  { %v4735_v35 = vsel %vm2895_vm10, %v4733_v61, %v4734_v8  ;;  %v16382_v8 = vld [vmem:[#allocation2 + $0x3c] sm:$0xff]  }
 0x1b3   :  { %v3372_v9 = vpop.permute.xlu1 %3371  ;;  %v3382_v17 = vpop.permute.xlu0 %3381  ;;  %v4738_v36 = vsel %vm2895_vm10, %v4736_v22, %v4737_v14 }
 0x1b4   :  { %3455 = vst.msk [vmem:[#allocation3 + $0x68] sm:$0xff] %vm20682_vm14, %v3372_v9  ;;  %3460 = vst.msk [vmem:[#allocation3 + $0x90] sm:$0xff] %vm20682_vm14, %v3382_v17  ;;  %v16370_v9 = vld [vmem:[#allocation2 + $0xec] ss:$0 sps:$4 sm:$0x11]  }
 0x1b5   :  { %4811 = vrot.lane.b32.xlu0 %v4729_v51, %s17058_s22  ;;  %4801 = vrot.lane.b32.xlu1 %v4714_v40, %s17058_s22  ;;  %v4740_v43 = vrot.slane %v16370_v9, 1  ;;  %v6491_v40 = vrot.slane %v16380_v6, 1  ;;  %v16390_v9 = vld [vmem:[#allocation2 + $0x44] ss:$0 sps:$4 sm:$0x11]  }
 0x1b6   :  { %v6497_v62 = vrot.slane %v16390_v9, 1  ;;  %v16400_v6 = vld [vmem:[#allocation2 + $0x5c] ss:$0 sps:$4 sm:$0x11]  }
 0x1b7   :  { %v3376_v16 = vpop.permute.xlu1 %3375  ;;  %v3386_v24 = vpop.permute.xlu0 %3385  ;;  %v4741_v17 = vsel %vm2895_vm10, %v4739_v12, %v4740_v43  ;;  %v6492_v56 = vsel %vm2895_vm10, %v6490_v39, %v6491_v40  ;;  %v16393_v43 = vld [vmem:[#allocation2 + $0x48] sm:$0xff]  }
 0x1b8   :  { %3457 = vst.msk [vmem:[#allocation3 + $0x78] sm:$0xff] %vm20682_vm14, %v3376_v16  ;;  %3462 = vst.msk [vmem:[#allocation3 + $0xa0] sm:$0xff] %vm20682_vm14, %v3386_v24  ;;  %v16374_v16 = vld [vmem:[#allocation2 + $0x20] ss:$0 sps:$4 sm:$0x11]   ;;  %v5640_v24 = vor.u32 %v5639_v52, %v5635_v34  ;;  %v5664_v34 = vor.u32 %v5663_v19, %v5659_v45  ;;  %v5668_v52 = vrot.slane %v5666_v7, 1 }
 0x1b9   :  { %4815 = vrot.lane.b32.xlu0 %v4735_v35, %s17058_s22  ;;  %4805 = vrot.lane.b32.xlu1 %v4720_v46, %s17058_s22  ;;  %v5630_v44 = vshll.u32 %v16374_v16, 16  ;;  %v5651_v46 = vrot.slane %v5649_v32, 1  ;;  %v6487_v35 = vrot.slane %v16377_v28, 1  ;;  %v16388_v16 = vld [vmem:[#allocation2 + $0x38] ss:$0 sps:$4 sm:$0x11]  }
 0x1ba   :  { %v5669_v57 = vsel %vm2029_vm9, %v5664_v34, %v5668_v52 }
 0x1bb   :  { %v3380_v26 = vpop.permute.xlu1 %3379  ;;  %v3390_v47 = vpop.permute.xlu0 %3389  ;;  %v5632_v54 = vrot.slane %v5630_v44, 1 }
 0x1bc   :  { %3459 = vst.msk [vmem:[#allocation3 + $0x88] sm:$0xff] %vm20682_vm14, %v3380_v26  ;;  %3464 = vst.msk [vmem:[#allocation3 + $0xb0] sm:$0xff] %vm20682_vm14, %v3390_v47  ;;  %v5642_v26 = vshll.u32 %v16376_v41, 16  ;;  %v16396_v41 = vld [vmem:[#allocation2 + $0x5c] ss:$0 sps:$4 sm:$0x11]  }
 0x1bd   :  { %4809 = vrot.lane.b32.xlu1 %v4726_v15, %s17058_s22  ;;  %4819 = vrot.lane.b32.xlu0 %v4741_v17, %s17058_s22  ;;  %v5633_v42 = vsel %vm2029_vm9, %v5628_v53, %v5632_v54  ;;  %v6496_v15 = vrot.slane %v16389_v5, 1  ;;  %v16387_v17 = vld [vmem:[#allocation2 + $0x30] sm:$0xfe]   ;;  %v6502_v53 = vrot.slane %v16399_v2, 1  ;;  %v6503_v54 = vrot.slane %v16400_v6, 1 }
 0x1be   :  { %v5644_v33 = vrot.slane %v5642_v26, 1  ;;  %v5690_v26 = vshll.u32 %v16396_v41, 16  ;;  %v6493_v45 = vrot.slane %v16387_v17, 1  ;;  %v6499_v5 = vrot.slane %v16397_v55, 1  ;;  %v16415_v17 = vld [vmem:[#allocation2 + $0x84] sm:$0xff]  }
 0x1bf   :  { %v3384_v25 = vpop.permute.xlu1 %3383  ;;  %v3394_v13 = vpop.permute.xlu0 %3393  ;;  %v6498_v14 = vsel %vm2895_vm10, %v6496_v15, %v6497_v62  ;;  %v16409_v15 = vld [vmem:[#allocation2 + $0x6c] sm:$0xfe]   ;;  %v5731_v2 = vshrl.u32 %v16415_v17, 16 }
 0x1c0   :  { %3461 = vst.msk [vmem:[#allocation3 + $0x98] sm:$0xff] %vm20682_vm14, %v3384_v25  ;;  %3466 = vst.msk [vmem:[#allocation3 + $0xc0] sm:$0xff] %vm20682_vm14, %v3394_v13  ;;  %v5645_v47 = vsel %vm2029_vm9, %v5640_v24, %v5644_v33  ;;  %v16378_v25 = vld [vmem:[#allocation2 + $0x20] ss:$0 sps:$4 sm:$0x11]   ;;  %v16392_v24 = vld [vmem:[#allocation2 + $0x54] sm:$0xff]  }
 0x1c1   :  { %4813 = vrot.lane.b32.xlu1 %v4732_v21, %s17058_s22  ;;  %5143 = vrot.lane.b32.xlu0 %v16372_v63, %s17059_s23  ;;  %v16384_v13 = vld [vmem:[#allocation2 + $0x38] ss:$0 sps:$4 sm:$0x11]   ;;  %v6488_v23 = vrot.slane %v16378_v25, 1  ;;  %v16381_v63 = vld [vmem:[#allocation2 + $0x30] sm:$0xff]   ;;  %v5652_v21 = vor.u32 %v5651_v46, %v5647_v58  ;;  %v5692_v44 = vrot.slane %v5690_v26, 1 }
 0x1c2   :  { %v5654_v4 = vshll.u32 %v16384_v13, 16  ;;  %v5678_v25 = vshll.u32 %v16394_v29, 16  ;;  %v16391_v13 = vld [vmem:[#allocation2 + $0x48] sm:$0xff]   ;;  %v5733_v26 = vshll.u32 %v16415_v17, 16  ;;  %v16407_v29 = vld [vmem:[#allocation2 + $0x60] sm:$0xfe]  }
 0x1c3   :  { %v3388_v30 = vpop.permute.xlu1 %3387  ;;  %v3398_v10 = vpop.permute.xlu0 %3397  ;;  %v6489_v12 = vsel %vm2895_vm10, %v6487_v35, %v6488_v23  ;;  %v6504_v35 = vsel %vm2895_vm10, %v6502_v53, %v6503_v54  ;;  %v16420_v54 = vld [vmem:[#allocation2 + $0x8c] ss:$0 sps:$4 sm:$0x11]  }
 0x1c4   :  { %3463 = vst.msk [vmem:[#allocation3 + $0xa8] sm:$0xff] %vm20682_vm14, %v3388_v30  ;;  %3468 = vst.msk [vmem:[#allocation3 + $0xd0] sm:$0xff] %vm20682_vm14, %v3398_v10  ;;  %v5656_v22 = vrot.slane %v5654_v4, 1  ;;  %v5680_v46 = vrot.slane %v5678_v25, 1  ;;  %v5735_v6 = vrot.slane %v5733_v26, 1  ;;  %v16435_v26 = vld [vmem:[#allocation2 + $0xb4] sm:$0xff]  }
 0x1c5   :  { %4817 = vrot.lane.b32.xlu1 %v4738_v36, %s17058_s22  ;;  %6008 = vrot.lane.b32.xlu0 %v5645_v47, %s17060_s24  ;;  %v5688_v36 = vor.u32 %v5687_v0, %v5683_v38  ;;  %v16404_v4 = vld [vmem:[#allocation2 + $0x68] ss:$0 sps:$4 sm:$0x11]   ;;  %v6508_v0 = vrot.slane %v16409_v15, 1 }
 0x1c6   :  { %v5657_v19 = vsel %vm2029_vm9, %v5652_v21, %v5656_v22  ;;  %v18416_v21 = vld [vmem:[#allocation2 + $0x78] sm:$0xff]  }
 0x1c7   :  { %v3392_v11 = vpop.permute.xlu1 %3391  ;;  %v3402_v60 = vpop.permute.xlu0 %3401 }
 0x1c8   :  { %3465 = vst.msk [vmem:[#allocation3 + $0xb8] sm:$0xff] %vm20682_vm14, %v3392_v11  ;;  %3470 = vst.msk [vmem:[#allocation3 + $0xe0] sm:$0xff] %vm20682_vm14, %v3402_v60 }
 0x1c9   :  { %5141 = vrot.lane.b32.xlu1 %v16371_v18, %s17059_s23  ;;  %6585 = vrot.lane.b32.xlu0 %v6492_v56, %s17061_s25  ;;  %v5671_v18 = vshrl.u32 %v16393_v43, 16  ;;  %v16405_v56 = vld [vmem:[#allocation2 + $0x6c] sm:$0xff]  }
 0x1ca   :  { %v5707_v23 = vshrl.u32 %v16405_v56, 16 }
 0x1cb   :  { %v3396_v37 = vpop.permute.xlu1 %3395  ;;  %v3406_v31 = vpop.permute.xlu0 %3405 }
 0x1cc   :  { %3467 = vst.msk [vmem:[#allocation3 + $0xc8] sm:$0xff] %vm20682_vm14, %v3396_v37  ;;  %3472 = vst.msk [vmem:[#allocation3 + $0xf0] sm:$0xff] %vm20682_vm14, %v3406_v31  ;;  %v5673_v31 = vshll.u32 %v16393_v43, 16 }
 0x1cd   :  { %6006 = vrot.lane.b32.xlu1 %v5633_v42, %s17060_s24  ;;  %5147 = vrot.lane.b32.xlu0 %v16382_v8, %s17059_s23  ;;  %v5709_v8 = vshll.u32 %v16405_v56, 16  ;;  %v16403_v42 = vld [vmem:[#allocation2 + $0x60] sm:$0xff]  }
 0x1ce   :  { %v5675_v28 = vrot.slane %v5673_v31, 1  ;;  %v16401_v31 = vld [vmem:[#allocation2 + $0x60] sm:$0xff]  }
 0x1cf   :  { %v3400_v50 = vpop.permute.xlu1 %3399  ;;  %v4211_v48 = vpop.permute.xlu0 %4210  ;;  %v5711_v34 = vrot.slane %v5709_v8, 1 }
 0x1d0   :  { %3469 = vst.msk [vmem:[#allocation3 + $0xd8] sm:$0xff] %vm20682_vm14, %v3400_v50  ;;  %v6494_v50 = vrot.slane %v16388_v16, 1  ;;  %v5676_v58 = vor.u32 %v5675_v28, %v5671_v18  ;;  %v5695_v16 = vshrl.u32 %v16403_v42, 16  ;;  %v16412_v28 = vld [vmem:[#allocation2 + $0x84] sm:$0xff]  }
 0x1d1   :  { %4307 = vst.msk [vmem:[#allocation3] sm:$0xff] %vm20681_vm15, %v4211_v48  ;;  %6583 = vrot.lane.b32.xlu1 %v6489_v12, %s17061_s25  ;;  %6012 = vrot.lane.b32.xlu0 %v5669_v57, %s17060_s24  ;;  %v5693_v48 = vsel %vm2029_vm9, %v5688_v36, %v5692_v44  ;;  %v5697_v12 = vshll.u32 %v16403_v42, 16  ;;  %v5712_v43 = vor.u32 %v5711_v34, %v5707_v23  ;;  %v16414_v44 = vld [vmem:[#allocation2 + $0x80] ss:$0 sps:$4 sm:$0x11]  }
 0x1d2   :  { %v6495_v40 = vsel %vm2895_vm10, %v6493_v45, %v6494_v50  ;;  %v5681_v62 = vsel %vm2029_vm9, %v5676_v58, %v5680_v46  ;;  %v16416_v45 = vld [vmem:[#allocation2 + $0x8c] ss:$0 sps:$4 sm:$0x11]   ;;  %v5726_v8 = vshll.u32 %v16414_v44, 16  ;;  %v18431_v58 = vld [vmem:[#allocation2 + $0x90] sm:$0xff]  }
 0x1d3   :  { %v3404_v51 = vpop.permute.xlu1 %3403  ;;  %v4215_v30 = vpop.permute.xlu0 %4214  ;;  %v5699_v41 = vrot.slane %v5697_v12, 1  ;;  %v5738_v18 = vshll.u32 %v16416_v45, 16 }
 0x1d4   :  { %3471 = vst.msk [vmem:[#allocation3 + $0xe8] sm:$0xff] %vm20682_vm14, %v3404_v51  ;;  %v16398_v51 = vld [vmem:[#allocation2 + $0x50] ss:$0 sps:$4 sm:$0x11]  }
 0x1d5   :  { %4309 = vst.msk [vmem:[#allocation3 + $0x10] sm:$0xff] %vm20681_vm15, %v4215_v30  ;;  %5145 = vrot.lane.b32.xlu1 %v16381_v63, %s17059_s23  ;;  %6589 = vrot.lane.b32.xlu0 %v6498_v14, %s17061_s25  ;;  %v6500_v9 = vrot.slane %v16398_v51, 1  ;;  %v16410_v63 = vld [vmem:[#allocation2 + $0x74] ss:$0 sps:$4 sm:$0x11]   ;;  %v5700_v50 = vor.u32 %v5699_v41, %v5695_v16  ;;  %v5740_v55 = vrot.slane %v5738_v18, 1 }
 0x1d6   :  { %v16408_v14 = vld [vmem:[#allocation2 + $0x68] ss:$0 sps:$4 sm:$0x11]   ;;  %v16422_v16 = vld [vmem:[#allocation2 + $0x9c] sm:$0xff]  }
 0x1d7   :  { %v3408_v61 = vpop.permute.xlu1 %3407  ;;  %v4219_v10 = vpop.permute.xlu0 %4218  ;;  %v6506_v25 = vrot.slane %v16408_v14, 1  ;;  %v16433_v18 = vld [vmem:[#allocation2 + $0xa8] sm:$0xff]  }
 0x1d8   :  { %3473 = vst.msk [vmem:[#allocation3 + $0xf8] sm:$0xff] %vm20682_vm14, %v3408_v61  ;;  %v16406_v61 = vld [vmem:[#allocation2 + $0x74] ss:$0 sps:$4 sm:$0x11]   ;;  %vm6764_vm14 = vcmask 293888  }
 0x1d9   :  { %4311 = vst.msk [vmem:[#allocation3 + $0x20] sm:$0xff] %vm20681_vm15, %v4219_v10  ;;  %6010 = vrot.lane.b32.xlu1 %v5657_v19, %s17060_s24  ;;  %5151 = vrot.lane.b32.xlu0 %v16392_v24, %s17059_s23  ;;  %v5714_v52 = vshll.u32 %v16406_v61, 16  ;;  %v6509_v24 = vrot.slane %v16410_v63, 1  ;;  %v5721_v19 = vshll.u32 %v18416_v21, 16  ;;  %v16417_v61 = vld [vmem:[#allocation2 + $0x78] sm:$0xfe]  }
 0x1da   :  { %v6511_v12 = vrot.slane %v16417_v61, 1  ;;  %v5769_v61 = vshll.u32 %v16433_v18, 16 }
 0x1db   :  { %v4213_v11 = vpop.permute.xlu1 %4212  ;;  %v4223_v60 = vpop.permute.xlu0 %4222  ;;  %v5716_v57 = vrot.slane %v5714_v52, 1  ;;  %v6510_v36 = vsel %vm2895_vm10, %v6508_v0, %v6509_v24  ;;  %v5723_v53 = vrot.slane %v5721_v19, 1  ;;  %v6515_v52 = vrot.slane %v16420_v54, 1 }
 0x1dc   :  { %4308 = vst.msk [vmem:[#allocation3 + $0x8] sm:$0xff] %vm20681_vm15, %v4213_v11  ;;  %4313 = vst.msk [vmem:[#allocation3 + $0x30] sm:$0xff] %vm20681_vm15, %v4223_v60  ;;  %v5702_v60 = vshll.u32 %v16404_v4, 16  ;;  %v16426_v4 = vld [vmem:[#allocation2 + $0xa4] ss:$0 sps:$4 sm:$0x11]  }
 0x1dd   :  { %6587 = vrot.lane.b32.xlu1 %v6495_v40, %s17061_s25  ;;  %6016 = vrot.lane.b32.xlu0 %v5693_v48, %s17060_s24  ;;  %v5717_v22 = vsel %vm2029_vm9, %v5712_v43, %v5716_v57  ;;  %v16419_v48 = vld [vmem:[#allocation2 + $0x84] sm:$0xfe]   ;;  %v5762_v17 = vshll.u32 %v16426_v4, 16 }
 0x1de   :  { %v6514_v42 = vrot.slane %v16419_v48, 1 }
 0x1df   :  { %v4217_v37 = vpop.permute.xlu1 %4216  ;;  %v4227_v32 = vpop.permute.xlu0 %4226  ;;  %v5764_v24 = vrot.slane %v5762_v17, 1  ;;  %v16438_v17 = vld [vmem:[#allocation2 + $0xb0] ss:$0 sps:$4 sm:$0x11]  }
 0x1e0   :  { %4310 = vst.msk [vmem:[#allocation3 + $0x18] sm:$0xff] %vm20681_vm15, %v4217_v37  ;;  %4315 = vst.msk [vmem:[#allocation3 + $0x40] sm:$0xff] %vm20681_vm15, %v4227_v32  ;;  %v6501_v37 = vsel %vm2895_vm10, %v6499_v5, %v6500_v9  ;;  %v5745_v5 = vshll.u32 %v18431_v58, 16  ;;  %v16411_v9 = vld [vmem:[#allocation2 + $0x78] sm:$0xff]   ;;  %v6516_v43 = vsel %vm2895_vm10, %v6514_v42, %v6515_v52 }
 0x1e1   :  { %5149 = vrot.lane.b32.xlu1 %v16391_v13, %s17059_s23  ;;  %6593 = vrot.lane.b32.xlu0 %v6504_v35, %s17061_s25  ;;  %v5736_v13 = vor.u32 %v5735_v6, %v5731_v2  ;;  %v16436_v2 = vld [vmem:[#allocation2 + $0xbc] ss:$0 sps:$4 sm:$0x11]   ;;  %v5781_v6 = vshll.u32 %v16435_v26, 16 }
 0x1e3   :  { %v4221_v33 = vpop.permute.xlu1 %4220  ;;  %v4231_v47 = vpop.permute.xlu0 %4230  ;;  %v5741_v34 = vsel %vm2029_vm9, %v5736_v13, %v5740_v55  ;;  %v5783_v13 = vrot.slane %v5781_v6, 1  ;;  %v16432_v55 = vld [vmem:[#allocation2 + $0xb4] sm:$0xff]  }
 0x1e4   :  { %4312 = vst.msk [vmem:[#allocation3 + $0x28] sm:$0xff] %vm20681_vm15, %v4221_v33  ;;  %4317 = vst.msk [vmem:[#allocation3 + $0x50] sm:$0xff] %vm20681_vm15, %v4231_v47  ;;  %v5704_v33 = vrot.slane %v5702_v60, 1  ;;  %v6505_v47 = vrot.slane %v16407_v29, 1  ;;  %v16427_v29 = vld [vmem:[#allocation2 + $0x90] sm:$0xfe]  }
 0x1e5   :  { %6014 = vrot.lane.b32.xlu1 %v5681_v62, %s17060_s24  ;;  %5155 = vrot.lane.b32.xlu0 %v16402_v59, %s17059_s23  ;;  %v16424_v60 = vld [vmem:[#allocation2 + $0x98] ss:$0 sps:$4 sm:$0x11]   ;;  %v6517_v48 = vrot.slane %v16427_v29, 1  ;;  %v6524_v29 = vrot.slane %v16438_v17, 1 }
 0x1e6   :  { %v5705_v56 = vsel %vm2029_vm9, %v5700_v50, %v5704_v33  ;;  %v6507_v23 = vsel %vm2895_vm10, %v6505_v47, %v6506_v25  ;;  %v16421_v47 = vld [vmem:[#allocation2 + $0x90] sm:$0xff]  }
 0x1e7   :  { %v4225_v39 = vpop.permute.xlu1 %4224  ;;  %v4235_v30 = vpop.permute.xlu0 %4234 }
 0x1e8   :  { %4314 = vst.msk [vmem:[#allocation3 + $0x38] sm:$0xff] %vm20681_vm15, %v4225_v39  ;;  %4319 = vst.msk [vmem:[#allocation3 + $0x60] sm:$0xff] %vm20681_vm15, %v4235_v30  ;;  %v5719_v39 = vshrl.u32 %v18416_v21, 16  ;;  %v16425_v30 = vld [vmem:[#allocation2 + $0x9c] sm:$0xff]  }
 0x1e9   :  { %6591 = vrot.lane.b32.xlu1 %v6501_v37, %s17061_s25  ;;  %6020 = vrot.lane.b32.xlu0 %v5717_v22, %s17060_s24  ;;  %v5757_v59 = vshll.u32 %v16425_v30, 16  ;;  %v5755_v15 = vshrl.u32 %v16425_v30, 16  ;;  %v5747_v37 = vrot.slane %v5745_v5, 1  ;;  %v16429_v22 = vld [vmem:[#allocation2 + $0x9c] sm:$0xfe]  }
 0x1ea   :  { %v5724_v62 = vor.u32 %v5723_v53, %v5719_v39  ;;  %v6520_v33 = vrot.slane %v16429_v22, 1  ;;  %v16434_v30 = vld [vmem:[#allocation2 + $0xb0] ss:$0 sps:$4 sm:$0x11]  }
 0x1eb   :  { %v4229_v7 = vpop.permute.xlu1 %4228  ;;  %v4239_v10 = vpop.permute.xlu0 %4238  ;;  %v5759_v63 = vrot.slane %v5757_v59, 1  ;;  %v206_v59 = vld [vmem:[#allocation2 + $0xd4] sm:$0x1]  ;;  %v16444_v22 = vld [vmem:[#allocation2 + $0xc8] ss:$0 sps:$4 sm:$0x11]  }
 0x1ec   :  { %4316 = vst.msk [vmem:[#allocation3 + $0x48] sm:$0xff] %vm20681_vm15, %v4229_v7  ;;  %4321 = vst.msk [vmem:[#allocation3 + $0x70] sm:$0xff] %vm20681_vm15, %v4239_v10  ;;  %v16418_v7 = vld [vmem:[#allocation2 + $0x80] ss:$0 sps:$4 sm:$0x11]   ;;  %v5728_v10 = vrot.slane %v5726_v8, 1 }
 0x1ed   :  { %5153 = vrot.lane.b32.xlu1 %v16401_v31, %s17059_s23  ;;  %6597 = vrot.lane.b32.xlu0 %v6510_v36, %s17061_s25  ;;  %v6512_v57 = vrot.slane %v16418_v7, 1  ;;  %v5760_v0 = vor.u32 %v5759_v63, %v5755_v15  ;;  %v5750_v31 = vshll.u32 %v16424_v60, 16  ;;  %v16439_v8 = vld [vmem:[#allocation2 + $0xb4] sm:$0xfe]   ;;  %v207_v4 = vsel %vm17122_vm5, 0, %v206_v59  ;;  %v16431_v60 = vld [vmem:[#allocation2 + $0xa8] sm:$0xff]  }
 0x1ee   :  { %v5729_v14 = vsel %vm2029_vm9, %v5724_v62, %v5728_v10  ;;  %208 = vst [vmem:[#allocation2 + $0xd4] sm:$0x1] %v207_v4  ;;  %v5771_v10 = vrot.slane %v5769_v61, 1  ;;  %v16451_v59 = vld [vmem:[#allocation2 + $0xf0] sm:$0xfe]  }
 0x1ef   :  { %v4233_v11 = vpop.permute.xlu1 %4232  ;;  %v4243_v20 = vpop.permute.xlu0 %4242  ;;  %v6513_v36 = vsel %vm2895_vm10, %v6511_v12, %v6512_v57  ;;  %v5765_v44 = vsel %vm2029_vm9, %v5760_v0, %v5764_v24  ;;  %v16437_v12 = vld [vmem:[#allocation2 + $0xa8] sm:$0xfe]   ;;  %v16459_v4 = vld [vmem:[#allocation2 + $0xf0] sm:$0xfe]  }
 0x1f0   :  { %4318 = vst.msk [vmem:[#allocation3 + $0x58] sm:$0xff] %vm20681_vm15, %v4233_v11  ;;  %4323 = vst.msk [vmem:[#allocation3 + $0x80] sm:$0xff] %vm20681_vm15, %v4243_v20  ;;  %v5743_v20 = vshrl.u32 %v18431_v58, 16  ;;  %v16440_v58 = vld [vmem:[#allocation2 + $0xbc] ss:$0 sps:$4 sm:$0x11]  }
 0x1f1   :  { %6018 = vrot.lane.b32.xlu1 %v5705_v56, %s17060_s24  ;;  %5159 = vrot.lane.b32.xlu0 %v16412_v28, %s17059_s23  ;;  %v5752_v28 = vrot.slane %v5750_v31, 1  ;;  %v5779_v56 = vshrl.u32 %v16435_v26, 16  ;;  %v6527_v63 = vrot.slane %v16440_v58, 1  ;;  %v16449_v26 = vld [vmem:[#allocation2 + $0xcc] sm:$0xfe]  }
 0x1f2   :  { %v5748_v39 = vor.u32 %v5747_v37, %v5743_v20  ;;  %v16448_v58 = vld [vmem:[#allocation2 + $0xc8] ss:$0 sps:$4 sm:$0x11]  }
 0x1f3   :  { %v4237_v38 = vpop.permute.xlu1 %4236  ;;  %v4247_v32 = vpop.permute.xlu0 %4246  ;;  %v5784_v52 = vor.u32 %v5783_v13, %v5779_v56  ;;  %v16441_v13 = vld [vmem:[#allocation2 + $0xc0] sm:$0xff]  }
 0x1f4   :  { %4320 = vst.msk [vmem:[#allocation3 + $0x68] sm:$0xff] %vm20681_vm15, %v4237_v38  ;;  %4325 = vst.msk [vmem:[#allocation3 + $0x90] sm:$0xff] %vm20681_vm15, %v4247_v32  ;;  %v16430_v38 = vld [vmem:[#allocation2 + $0xa4] ss:$0 sps:$4 sm:$0x11]  }
 0x1f5   :  { %6595 = vrot.lane.b32.xlu1 %v6507_v23, %s17061_s25  ;;  %6024 = vrot.lane.b32.xlu0 %v5741_v34, %s17060_s24  ;;  %v16428_v32 = vld [vmem:[#allocation2 + $0x98] ss:$0 sps:$4 sm:$0x11]   ;;  %v6521_v19 = vrot.slane %v16430_v38, 1  ;;  %v5753_v34 = vsel %vm2029_vm9, %v5748_v39, %v5752_v28  ;;  %v6523_v38 = vrot.slane %v16437_v12, 1  ;;  %v5798_v28 = vshll.u32 %v16444_v22, 16 }
 0x1f6   :  { %v6518_v53 = vrot.slane %v16428_v32, 1  ;;  %v16446_v24 = vld [vmem:[#allocation2 + $0xd4] ss:$0 sps:$4 sm:$0x11]   ;;  %v6532_v39 = vrot.slane %v16449_v26, 1  ;;  %v6530_v12 = vrot.slane %v16448_v58, 1 }
 0x1f7   :  { %v4251_v40 = vpop.permute.xlu0 %4250  ;;  %v4241_v51 = vpop.permute.xlu1 %4240  ;;  %v6522_v54 = vsel %vm2895_vm10, %v6520_v33, %v6521_v19  ;;  %v16450_v33 = vld [vmem:[#allocation2 + $0xd4] ss:$0 sps:$4 sm:$0x11]  }
 0x1f8   :  { %4327 = vst.msk [vmem:[#allocation3 + $0xa0] sm:$0xff] %vm20681_vm15, %v4251_v40  ;;  %4322 = vst.msk [vmem:[#allocation3 + $0x78] sm:$0xff] %vm20681_vm15, %v4241_v51  ;;  %v5786_v51 = vshll.u32 %v16436_v2, 16  ;;  %v6519_v15 = vsel %vm2895_vm10, %v6517_v48, %v6518_v53  ;;  %v16455_v2 = vld [vmem:[#allocation2 + $0xf0] sm:$0xff]   ;;  %v6525_v48 = vsel %vm2895_vm10, %v6523_v38, %v6524_v29  ;;  %v6533_v53 = vrot.slane %v16450_v33, 1 }
 0x1f9   :  { %5157 = vrot.lane.b32.xlu1 %v16411_v9, %s17059_s23  ;;  %6601 = vrot.lane.b32.xlu0 %v6516_v43, %s17061_s25  ;;  %v5767_v9 = vshrl.u32 %v16433_v18, 16  ;;  %v6526_v43 = vrot.slane %v16439_v8, 1  ;;  %v5800_v8 = vrot.slane %v5798_v28, 1  ;;  %v16464_v38 = vld [vmem:[#allocation2 + $0x104] ss:$0 sps:$4 sm:$0x11]  }
 0x1fa   :  { %v18514_v28 = vld [vmem:[#allocation2 + $0x108] sm:$0xfe]  }
 0x1fb   :  { %v4245_v46 = vpop.permute.xlu1 %4244  ;;  %v4255_v35 = vpop.permute.xlu0 %4254  ;;  %v5772_v37 = vor.u32 %v5771_v10, %v5767_v9  ;;  %v16453_v9 = vld [vmem:[#allocation2 + $0xf0] sm:$0xff]   ;;  %v16460_v10 = vld [vmem:[#allocation2 + $0xf8] ss:$0 sps:$4 sm:$0x11]  }
 0x1fc   :  { %4324 = vst.msk [vmem:[#allocation3 + $0x88] sm:$0xff] %vm20681_vm15, %v4245_v46  ;;  %4329 = vst.msk [vmem:[#allocation3 + $0xb0] sm:$0xff] %vm20681_vm15, %v4255_v35  ;;  %v96_v46 = vld [vmem:[#allocation2 + $0xcc] sm:$0x1]  ;;  %v5788_v35 = vrot.slane %v5786_v51, 1 }
 0x1fd   :  { %6022 = vrot.lane.b32.xlu1 %v5729_v14, %s17060_s24  ;;  %5163 = vrot.lane.b32.xlu0 %v16422_v16, %s17059_s23  ;;  %v97_v23 = vsel %vm17107_vm3, 0, %v96_v46  ;;  %v16443_v16 = vld [vmem:[#allocation2 + $0xc0] sm:$0xff]   ;;  %v6534_v46 = vsel %vm2895_vm10, %v6532_v39, %v6533_v53  ;;  %v16478_v39 = vld [vmem:[%s20674_s1 + $0x8] sm:$0xff]  }
 0x1fe   :  { %98 = vst [vmem:[#allocation2 + $0xcc] sm:$0x1] %v97_v23  ;;  %v5789_v62 = vsel %vm2029_vm9, %v5784_v52, %v5788_v35  ;;  %v5793_v0 = vshll.u32 %v16443_v16, 16  ;;  %v5791_v6 = vshrl.u32 %v16443_v16, 16  ;;  %v4742_v16 = vrot.slane %v16451_v59, 1 }
 0x1ff   :  { %v4249_v11 = vpop.permute.xlu1 %4248  ;;  %v4259_v41 = vpop.permute.xlu0 %4258 }
 0x200   :  { %4326 = vst.msk [vmem:[#allocation3 + $0x98] sm:$0xff] %vm20681_vm15, %v4249_v11  ;;  %4331 = vst.msk [vmem:[#allocation3 + $0xc0] sm:$0xff] %vm20681_vm15, %v4259_v41  ;;  %v5774_v11 = vshll.u32 %v16434_v30, 16  ;;  %v16447_v30 = vld [vmem:[#allocation2 + $0xc0] sm:$0xfe]  }
 0x201   :  { %6599 = vrot.lane.b32.xlu1 %v6513_v36, %s17061_s25  ;;  %6028 = vrot.lane.b32.xlu0 %v5765_v44, %s17060_s24 }
 0x202   :  { %v5776_v41 = vrot.slane %v5774_v11, 1  ;;  %v6529_v11 = vrot.slane %v16447_v30, 1 }
 0x203   :  { %v4253_v21 = vpop.permute.xlu1 %4252  ;;  %v4263_v45 = vpop.permute.xlu0 %4262 }
 0x204   :  { %4328 = vst.msk [vmem:[#allocation3 + $0xa8] sm:$0xff] %vm20681_vm15, %v4253_v21  ;;  %4333 = vst.msk [vmem:[#allocation3 + $0xd0] sm:$0xff] %vm20681_vm15, %v4263_v45  ;;  %v6528_v21 = vsel %vm2895_vm10, %v6526_v43, %v6527_v63  ;;  %v5777_v19 = vsel %vm2029_vm9, %v5772_v37, %v5776_v41  ;;  %v16458_v43 = vld [vmem:[#allocation2 + $0x104] ss:$0 sps:$4 sm:$0x11]   ;;  %v6536_v37 = vrot.slane %v16460_v10, 1  ;;  %v6531_v22 = vsel %vm2895_vm10, %v6529_v11, %v6530_v12 }
 0x205   :  { %5161 = vrot.lane.b32.xlu1 %v16421_v47, %s17059_s23  ;;  %6605 = vrot.lane.b32.xlu0 %v6522_v54, %s17061_s25  ;;  %v16445_v14 = vld [vmem:[#allocation2 + $0xcc] sm:$0xff]   ;;  %v5795_v47 = vrot.slane %v5793_v0, 1  ;;  %v5817_v54 = vshll.u32 %v16455_v2, 16  ;;  %v16463_v0 = vld [vmem:[#allocation2 + $0xfc] sm:$0xfe]  }
 0x206   :  { %v16442_v31 = vld [vmem:[#allocation2 + $0xcc] sm:$0xff]   ;;  %v5803_v32 = vshrl.u32 %v16445_v14, 16  ;;  %v5805_v45 = vshll.u32 %v16445_v14, 16  ;;  %v16479_v10 = vld [vmem:[#allocation2 + $0x114] sm:$0xfe]  }
 0x207   :  { %v4257_v50 = vpop.permute.xlu1 %4256  ;;  %v4267_v25 = vpop.permute.xlu0 %4266  ;;  %v5796_v61 = vor.u32 %v5795_v47, %v5791_v6  ;;  %v5819_v35 = vrot.slane %v5817_v54, 1  ;;  %v16473_v47 = vld [vmem:[%s20674_s1] sm:$0xff]   ;;  %v16480_v12 = vld [vmem:[#allocation2 + $0x11c] ss:$0 sps:$4 sm:$0x11]  }
 0x208   :  { %4330 = vst.msk [vmem:[#allocation3 + $0xb8] sm:$0xff] %vm20681_vm15, %v4257_v50  ;;  %4335 = vst.msk [vmem:[#allocation3 + $0xe0] sm:$0xff] %vm20681_vm15, %v4267_v25  ;;  %v5810_v50 = vshll.u32 %v16446_v24, 16  ;;  %v5807_v44 = vrot.slane %v5805_v45, 1  ;;  %15930 = vmatprep.subr.bf16.mxu0 %v16473_v47 }
 0x209   :  { %6026 = vrot.lane.b32.xlu1 %v5753_v34, %s17060_s24  ;;  %5167 = vrot.lane.b32.xlu0 %v16432_v55, %s17059_s23  ;;  %v16457_v34 = vld [vmem:[#allocation2 + $0xfc] sm:$0xff]  }
 0x20a   :  { %v5812_v18 = vrot.slane %v5810_v50, 1  ;;  %v5808_v25 = vor.u32 %v5807_v44, %v5803_v32  ;;  %v5829_v63 = vshll.u32 %v16457_v34, 16  ;;  %v5827_v26 = vshrl.u32 %v16457_v34, 16  ;;  %v16470_v32 = vld [vmem:[#allocation2 + $0x110] ss:$0 sps:$4 sm:$0x11]   ;;  %15931 = vmatpush3.bf16.msra.mxu0 %v16473_v47 }
 0x20b   :  { %v4261_v40 = vpop.permute.xlu1 %4260  ;;  %v4271_v42 = vpop.permute.xlu0 %4270  ;;  %v16461_v50 = vld [vmem:[#allocation2 + $0xfc] sm:$0xfe]   ;;  %v4745_v44 = vrot.slane %v16463_v0, 1  ;;  %15932 = vmatprep.subr.bf16.mxu0 %v16478_v39 }
 0x20c   :  { %4332 = vst.msk [vmem:[#allocation3 + $0xc8] sm:$0xff] %vm20681_vm15, %v4261_v40  ;;  %4337 = vst.msk [vmem:[#allocation3 + $0xf0] sm:$0xff] %vm20681_vm15, %v4271_v42  ;;  %v16456_v40 = vld [vmem:[#allocation2 + $0xf8] ss:$0 sps:$4 sm:$0x11]   ;;  %v5813_v51 = vsel %vm2029_vm9, %v5808_v25, %v5812_v18  ;;  %v5815_v42 = vshrl.u32 %v16455_v2, 16 }
 0x20d   :  { %6603 = vrot.lane.b32.xlu1 %v6519_v15, %s17061_s25  ;;  %6032 = vrot.lane.b32.xlu0 %v5789_v62, %s17060_s24  ;;  %v5822_v23 = vshll.u32 %v16456_v40, 16  ;;  %v5831_v29 = vrot.slane %v5829_v63, 1  ;;  %v4746_v2 = vrot.slane %v16464_v38, 1  ;;  %v5846_v25 = vshll.u32 %v16470_v32, 16  ;;  %v16454_v40 = vld [vmem:[#allocation2 + $0xfc] sm:$0xff]  }
 0x20e   :  { %v5820_v15 = vor.u32 %v5819_v35, %v5815_v42  ;;  %v6538_v30 = vrot.slane %v16461_v50, 1  ;;  %v16475_v35 = vld [vmem:[#allocation2 + $0x110] ss:$0 sps:$4 sm:$0x11]   ;;  %15933 = vmatpush3.bf16.msra.mxu0 %v16478_v39  ;;  %v16476_v38 = vld [vmem:[#allocation2 + $0x114] sm:$0xfe]  }
 0x20f   :  { %v4265_v7 = vpop.permute.xlu1 %4264  ;;  %v4788_v57 = vpop.permute.xlu0 %4787  ;;  %v5824_v62 = vrot.slane %v5822_v23, 1  ;;  %v4747_v54 = vsel %vm2895_vm10, %v4745_v44, %v4746_v2  ;;  %v5848_v42 = vrot.slane %v5846_v25, 1  ;;  %v16483_v63 = vld [vmem:[%s20674_s1 + $0x10] ss:$0 sps:$4 sm:$0x33]   ;;  %v16468_v50 = vld [vmem:[#allocation2 + $0x114] sm:$0xff]  }
 0x210   :  { %4334 = vst.msk [vmem:[#allocation3 + $0xd8] sm:$0xff] %vm20681_vm15, %v4265_v7  ;;  %v16452_v7 = vld [vmem:[#allocation2 + $0xf8] ss:$0 sps:$4 sm:$0x11]   ;;  %16070 = vmatprep.subr.msk.bf16.mxu0 %vm6861_vm6, %v16483_v63  ;;  %v6544_v47 = vrot.slane %v16476_v38, 1 }
 0x211   :  { %4884 = vst.msk [vmem:[#allocation3] sm:$0xff] %vm4883_vm1, %v4788_v57  ;;  %5165 = vrot.lane.b32.xlu1 %v16431_v60, %s17059_s23  ;;  %6609 = vrot.lane.b32.xlu0 %v6528_v21, %s17061_s25  ;;  %v5801_v57 = vsel %vm2029_vm9, %v5796_v61, %v5800_v8  ;;  %v4743_v60 = vrot.slane %v16452_v7, 1  ;;  %v16469_v21 = vld [vmem:[#allocation2 + $0x108] sm:$0xff]   ;;  %v5825_v14 = vsel %vm2029_vm9, %v5820_v15, %v5824_v62  ;;  %v16471_v8 = vld [vmem:[#allocation2 + $0x114] sm:$0xff]   ;;  %v4748_v7 = vrot.slane %v18514_v28, 1 }
 0x212   :  { %v5841_v6 = vshll.u32 %v16469_v21, 16  ;;  %v16467_v61 = vld [vmem:[#allocation2 + $0x108] sm:$0xff]   ;;  %v16477_v32 = vld [vmem:[#allocation2 + $0x11c] ss:$0 sps:$4 sm:$0x11]  }
 0x213   :  { %v4269_v5 = vpop.permute.xlu1 %4268  ;;  %v4792_v20 = vpop.permute.xlu0 %4791  ;;  %v4744_v45 = vsel %vm2895_vm10, %v4742_v16, %v4743_v60  ;;  %v5851_v60 = vshrl.u32 %v16471_v8, 16  ;;  %v16481_v25 = vld [vmem:[#allocation2 + $0x120] sm:$0xfe]   ;;  %v16489_v39 = vld [vmem:[#allocation2 + $0x134] ss:$0 sps:$4 sm:$0x11]  }
 0x214   :  { %4336 = vst.msk [vmem:[#allocation3 + $0xe8] sm:$0xff] %vm20681_vm15, %v4269_v5  ;;  %v16492_v38 = vld [vmem:[#allocation2 + $0x12c] sm:$0xfe]  }
 0x215   :  { %4886 = vst.msk [vmem:[#allocation3 + $0x10] sm:$0xff] %vm4883_vm1, %v4792_v20  ;;  %6030 = vrot.lane.b32.xlu1 %v5777_v19, %s17060_s24  ;;  %5171 = vrot.lane.b32.xlu0 %v16442_v31, %s17059_s23  ;;  %v6535_v20 = vrot.slane %v16459_v4, 1  ;;  %v5834_v31 = vshll.u32 %v16458_v43, 16  ;;  %v6542_v43 = vrot.slane %v16475_v35, 1  ;;  %v16494_v35 = vld [vmem:[#allocation2 + $0x12c] sm:$0xfe]  }
 0x217   :  { %v4796_v36 = vpop.permute.xlu0 %4795  ;;  %v4273_v56 = vpop.permute.xlu1 %4272  ;;  %v6537_v19 = vsel %vm2895_vm10, %v6535_v20, %v6536_v37 }
 0x218   :  { %4888 = vst.msk [vmem:[#allocation3 + $0x20] sm:$0xff] %vm4883_vm1, %v4796_v36  ;;  %v16462_v36 = vld [vmem:[#allocation2 + $0x104] ss:$0 sps:$4 sm:$0x11]  }
 0x219   :  { %4338 = vst.msk [vmem:[#allocation3 + $0xf8] sm:$0xff] %vm20681_vm15, %v4273_v56  ;;  %6607 = vrot.lane.b32.xlu1 %v6525_v48, %s17061_s25  ;;  %6036 = vrot.lane.b32.xlu0 %v5813_v51, %s17060_s24  ;;  %v5832_v48 = vor.u32 %v5831_v29, %v5827_v26  ;;  %v5836_v51 = vrot.slane %v5834_v31, 1  ;;  %v5839_v56 = vshrl.u32 %v16469_v21, 16  ;;  %v6539_v58 = vrot.slane %v16462_v36, 1 }
 0x21a   :  { %v4751_v21 = vrot.slane %v16479_v10, 1  ;;  %v16487_v26 = vld [vmem:[#allocation2 + $0x128] ss:$0 sps:$4 sm:$0x11]   ;;  %vm6679_vm15 = vcmask 294144  }
 0x21b   :  { %v4800_v55 = vpop.permute.xlu0 %4799  ;;  %v4790_v52 = vpop.permute.xlu1 %4789  ;;  %v5837_v23 = vsel %vm2029_vm9, %v5832_v48, %v5836_v51  ;;  %v6540_v11 = vsel %vm2895_vm10, %v6538_v30, %v6539_v58  ;;  %v16488_v48 = vld [vmem:[#allocation2 + $0x12c] sm:$0xff]   ;;  %v16482_v51 = vld [vmem:[#allocation2 + $0x128] ss:$0 sps:$4 sm:$0x11]  }
 0x21c   :  { %4890 = vst.msk [vmem:[#allocation3 + $0x30] sm:$0xff] %vm4883_vm1, %v4800_v55  ;;  %4885 = vst.msk [vmem:[#allocation3 + $0x8] sm:$0xff] %vm4883_vm1, %v4790_v52  ;;  %v16474_v52 = vld [vmem:[#allocation2 + $0x108] sm:$0xfe]   ;;  %v5877_v58 = vshll.u32 %v16488_v48, 16  ;;  %v5875_v10 = vshrl.u32 %v16488_v48, 16 }
 0x21d   :  { %5169 = vrot.lane.b32.xlu1 %v16441_v13, %s17059_s23  ;;  %6613 = vrot.lane.b32.xlu0 %v6534_v46, %s17061_s25  ;;  %v5843_v13 = vrot.slane %v5841_v6, 1  ;;  %v16466_v46 = vld [vmem:[#allocation2 + $0x110] ss:$0 sps:$4 sm:$0x11]   ;;  %v6541_v62 = vrot.slane %v16474_v52, 1  ;;  %v5870_v6 = vshll.u32 %v16487_v26, 16 }
 0x21e   :  { %v16491_v30 = vld [vmem:[#allocation2 + $0x128] ss:$0 sps:$4 sm:$0x11]  }
 0x21f   :  { %v4804_v5 = vpop.permute.xlu0 %4803  ;;  %v4794_v17 = vpop.permute.xlu1 %4793  ;;  %v5844_v34 = vor.u32 %v5843_v13, %v5839_v56  ;;  %v6543_v0 = vsel %vm2895_vm10, %v6541_v62, %v6542_v43  ;;  %v5872_v13 = vrot.slane %v5870_v6, 1 }
 0x220   :  { %4892 = vst.msk [vmem:[#allocation3 + $0x40] sm:$0xff] %vm4883_vm1, %v4804_v5  ;;  %4887 = vst.msk [vmem:[#allocation3 + $0x18] sm:$0xff] %vm4883_vm1, %v4794_v17  ;;  %v16472_v5 = vld [vmem:[#allocation2 + $0x11c] ss:$0 sps:$4 sm:$0x11]  }
 0x221   :  { %6034 = vrot.lane.b32.xlu1 %v5801_v57, %s17060_s24  ;;  %5173 = vrot.lane.b32.xlu0 %v16453_v9, %s17059_s23  ;;  %v5853_v9 = vshll.u32 %v16471_v8, 16  ;;  %v4749_v57 = vrot.slane %v16466_v46, 1  ;;  %v5849_v15 = vsel %vm2029_vm9, %v5844_v34, %v5848_v42  ;;  %v5858_v37 = vshll.u32 %v16472_v5, 16 }
 0x222   :  { %v5882_v46 = vshll.u32 %v16489_v39, 16  ;;  %v4754_v42 = vrot.slane %v16481_v25, 1  ;;  %v4755_v34 = vrot.slane %v16482_v51, 1 }
 0x223   :  { %v4808_v41 = vpop.permute.xlu0 %4807  ;;  %v4798_v24 = vpop.permute.xlu1 %4797  ;;  %v5855_v20 = vrot.slane %v5853_v9, 1 }
 0x224   :  { %4894 = vst.msk [vmem:[#allocation3 + $0x50] sm:$0xff] %vm4883_vm1, %v4808_v41  ;;  %4889 = vst.msk [vmem:[#allocation3 + $0x28] sm:$0xff] %vm4883_vm1, %v4798_v24  ;;  %v6863_v41 = vsel %vm6861_vm6, %v16483_v63, 0  ;;  %v16486_v24 = vld [vmem:[#allocation2 + $0x120] sm:$0xff]   ;;  %v4756_v43 = vsel %vm2895_vm10, %v4754_v42, %v4755_v34 }
 0x225   :  { %6611 = vrot.lane.b32.xlu1 %v6531_v22, %s17061_s25  ;;  %6038 = vrot.lane.b32.xlu0 %v5825_v14, %s17060_s24  ;;  %v4752_v22 = vrot.slane %v16480_v12, 1  ;;  %v4750_v14 = vsel %vm2895_vm10, %v4748_v7, %v4749_v57  ;;  %v5863_v44 = vshrl.u32 %v16486_v24, 16  ;;  %v5879_v12 = vrot.slane %v5877_v58, 1 }
 0x226   :  { %15935 = vmatpush3.bf16.msra.mxu0 %v6863_v41  ;;  %v5884_v57 = vrot.slane %v5882_v46, 1  ;;  %v16501_v41 = vld [vmem:[#allocation2 + $0x140] ss:$0 sps:$4 sm:$0x11]  }
 0x227   :  { %v4812_v33 = vpop.permute.xlu0 %4811  ;;  %v4802_v18 = vpop.permute.xlu1 %4801  ;;  %v4753_v36 = vsel %vm2895_vm10, %v4751_v21, %v4752_v22  ;;  %v16496_v21 = vld [vmem:[#allocation2 + $0x138] sm:$0xfe]  }
 0x228   :  { %4896 = vst.msk [vmem:[#allocation3 + $0x60] sm:$0xff] %vm4883_vm1, %v4812_v33  ;;  %4891 = vst.msk [vmem:[#allocation3 + $0x38] sm:$0xff] %vm4883_vm1, %v4802_v18  ;;  %v5856_v33 = vor.u32 %v5855_v20, %v5851_v60  ;;  %v16493_v20 = vld [vmem:[#allocation2 + $0x134] ss:$0 sps:$4 sm:$0x11]   ;;  %v4760_v25 = vrot.slane %v16496_v21, 1 }
 0x229   :  { %4821 = vrot.lane.b32.xlu1 %v4744_v45, %s17058_s22  ;;  %6615 = vrot.lane.b32.xlu0 %v6537_v19, %s17061_s25  ;;  %v5865_v45 = vshll.u32 %v16486_v24, 16  ;;  %v5860_v19 = vrot.slane %v5858_v37, 1 }
 0x22b   :  { %v4816_v53 = vpop.permute.xlu0 %4815  ;;  %v4806_v55 = vpop.permute.xlu1 %4805  ;;  %v5867_v2 = vrot.slane %v5865_v45, 1 }
 0x22c   :  { %4898 = vst.msk [vmem:[#allocation3 + $0x70] sm:$0xff] %vm4883_vm1, %v4816_v53  ;;  %4893 = vst.msk [vmem:[#allocation3 + $0x48] sm:$0xff] %vm4883_vm1, %v4806_v55  ;;  %v16484_v53 = vld [vmem:[#allocation2 + $0x120] sm:$0xff]  }
 0x22d   :  { %5175 = vrot.lane.b32.xlu1 %v16454_v40, %s17059_s23  ;;  %4823 = vrot.lane.b32.xlu0 %v4747_v54, %s17058_s22  ;;  %v6545_v40 = vrot.slane %v16477_v32, 1  ;;  %v5861_v54 = vsel %vm2029_vm9, %v5856_v33, %v5860_v19  ;;  %v5868_v56 = vor.u32 %v5867_v2, %v5863_v44  ;;  %v16490_v55 = vld [vmem:[#allocation2 + $0x120] sm:$0xfe]   ;;  %v16497_v32 = vld [vmem:[#allocation2 + $0x140] ss:$0 sps:$4 sm:$0x11]  }
 0x22e   :  { %v16498_v33 = vld [vmem:[#allocation2 + $0x138] sm:$0xff]   ;;  %v16502_v19 = vld [vmem:[#allocation2 + $0x144] sm:$0xff]   ;;  %v6551_v44 = vrot.slane %v16493_v20, 1  ;;  %v4761_v39 = vrot.slane %v16497_v32, 1 }
 0x22f   :  { %v4810_v59 = vpop.permute.xlu1 %4809  ;;  %v4820_v4 = vpop.permute.xlu0 %4819  ;;  %v6546_v7 = vsel %vm2895_vm10, %v6544_v47, %v6545_v40  ;;  %v5873_v52 = vsel %vm2029_vm9, %v5868_v56, %v5872_v13  ;;  %v16504_v2 = vld [vmem:[#allocation2 + $0x138] sm:$0xfe]   ;;  %v16505_v47 = vld [vmem:[#allocation2 + $0x140] ss:$0 sps:$4 sm:$0x11]  }
 0x230   :  { %4895 = vst.msk [vmem:[#allocation3 + $0x58] sm:$0xff] %vm4883_vm1, %v4810_v59  ;;  %4900 = vst.msk [vmem:[#allocation3 + $0x80] sm:$0xff] %vm4883_vm1, %v4820_v4  ;;  %v6547_v59 = vrot.slane %v16490_v55, 1  ;;  %v6548_v4 = vrot.slane %v16491_v30, 1  ;;  %v16508_v56 = vld [vmem:[#allocation2 + $0x144] sm:$0xfe]  }
 0x231   :  { %6040 = vrot.lane.b32.xlu1 %v5837_v23, %s17060_s24  ;;  %5177 = vrot.lane.b32.xlu0 %v16467_v61, %s17059_s23  ;;  %v16500_v23 = vld [vmem:[#allocation2 + $0x138] sm:$0xff]   ;;  %v6553_v55 = vrot.slane %v16504_v2, 1  ;;  %v6554_v30 = vrot.slane %v16505_v47, 1  ;;  %v4763_v34 = vrot.slane %v16508_v56, 1 }
 0x232   :  { %v5889_v62 = vshll.u32 %v16500_v23, 16  ;;  %v6549_v63 = vsel %vm2895_vm10, %v6547_v59, %v6548_v4  ;;  %v16515_v4 = vld [vmem:[#allocation2 + $0x158] ss:$0 sps:$4 sm:$0x11]  }
 0x233   :  { %v4814_v17 = vpop.permute.xlu1 %4813  ;;  %v5144_v16 = vpop.permute.xlu0 %5143  ;;  %v5918_v21 = vshll.u32 %v16515_v4, 16  ;;  %v18619_v4 = vld [vmem:[#allocation2 + $0x174] sm:$0xff]  }
 0x234   :  { %4897 = vst.msk [vmem:[#allocation3 + $0x68] sm:$0xff] %vm4883_vm1, %v4814_v17  ;;  %v5891_v45 = vrot.slane %v5889_v62, 1  ;;  %v16507_v62 = vld [vmem:[#allocation2 + $0x14c] ss:$0 sps:$4 sm:$0x11]  }
 0x235   :  { %5239 = vst.msk [vmem:[#allocation3 + $0x8] sm:$0xff] %vm5237_vm2, %v5144_v16  ;;  %6617 = vrot.lane.b32.xlu1 %v6540_v11, %s17061_s25  ;;  %6042 = vrot.lane.b32.xlu0 %v5849_v15, %s17060_s24  ;;  %v16495_v11 = vld [vmem:[#allocation2 + $0x134] ss:$0 sps:$4 sm:$0x11]   ;;  %v4757_v15 = vrot.slane %v16494_v35, 1  ;;  %v16485_v16 = vld [vmem:[#allocation2 + $0x12c] sm:$0xff]  }
 0x236   :  { %v4758_v37 = vrot.slane %v16495_v11, 1  ;;  %v6555_v11 = vsel %vm2895_vm10, %v6553_v55, %v6554_v30  ;;  %v16520_v30 = vld [vmem:[#allocation2 + $0x15c] sm:$0xfe]  }
 0x237   :  { %v4818_v29 = vpop.permute.xlu1 %4817  ;;  %v6009_v31 = vpop.permute.xlu0 %6008 }
 0x238   :  { %4899 = vst.msk [vmem:[#allocation3 + $0x78] sm:$0xff] %vm4883_vm1, %v4818_v29 }
 0x239   :  { %6104 = vst.msk [vmem:[#allocation3 + $0x8] sm:$0xff] %vm6102_vm4, %v6009_v31  ;;  %4825 = vrot.lane.b32.xlu1 %v4750_v14, %s17058_s22  ;;  %6619 = vrot.lane.b32.xlu0 %v6543_v0, %s17061_s25  ;;  %v5880_v14 = vor.u32 %v5879_v12, %v5875_v10  ;;  %v5887_v0 = vshrl.u32 %v16500_v23, 16  ;;  %v4759_v31 = vsel %vm2895_vm10, %v4757_v15, %v4758_v37  ;;  %v16506_v15 = vld [vmem:[#allocation2 + $0x144] sm:$0xfe]  }
 0x23b   :  { %v5142_v18 = vpop.permute.xlu1 %5141  ;;  %v6586_v28 = vpop.permute.xlu0 %6585  ;;  %v5885_v6 = vsel %vm2029_vm9, %v5880_v14, %v5884_v57  ;;  %v5892_v48 = vor.u32 %v5891_v45, %v5887_v0  ;;  %v16499_v57 = vld [vmem:[#allocation2 + $0x144] sm:$0xff]   ;;  %v6556_v14 = vrot.slane %v16506_v15, 1  ;;  %v6557_v0 = vrot.slane %v16507_v62, 1 }
 0x23c   :  { %5238 = vst.msk [vmem:[#allocation3] sm:$0xff] %vm5237_vm2, %v5142_v18  ;;  %v5899_v18 = vshrl.u32 %v16502_v19, 16 }
 0x23d   :  { %6681 = vst.msk [vmem:[#allocation3 + $0x8] sm:$0xff] %vm6679_vm15, %v6586_v28  ;;  %5179 = vrot.lane.b32.xlu1 %v16468_v50, %s17059_s23  ;;  %4827 = vrot.lane.b32.xlu0 %v4753_v36, %s17058_s22  ;;  %v5894_v50 = vshll.u32 %v16501_v41, 16  ;;  %v6550_v36 = vrot.slane %v16492_v38, 1 }
 0x23f   :  { %v6007_v61 = vpop.permute.xlu1 %6006  ;;  %v5148_v8 = vpop.permute.xlu0 %5147  ;;  %v5896_v51 = vrot.slane %v5894_v50, 1  ;;  %v6552_v13 = vsel %vm2895_vm10, %v6550_v36, %v6551_v44 }
 0x240   :  { %6103 = vst.msk [vmem:[#allocation3] sm:$0xff] %vm6102_vm4, %v6007_v61  ;;  %v16509_v61 = vld [vmem:[#allocation2 + $0x14c] ss:$0 sps:$4 sm:$0x11]  }
 0x241   :  { %5241 = vst.msk [vmem:[#allocation3 + $0x18] sm:$0xff] %vm5237_vm2, %v5148_v8  ;;  %6044 = vrot.lane.b32.xlu1 %v5861_v54, %s17060_s24  ;;  %5181 = vrot.lane.b32.xlu0 %v16484_v53, %s17059_s23  ;;  %v16503_v53 = vld [vmem:[#allocation2 + $0x14c] ss:$0 sps:$4 sm:$0x11]   ;;  %v5901_v54 = vshll.u32 %v16502_v19, 16  ;;  %v16514_v8 = vld [vmem:[#allocation2 + $0x150] sm:$0xff]  }
 0x242   :  { %v5906_v35 = vshll.u32 %v16503_v53, 16  ;;  %v4764_v59 = vrot.slane %v16509_v61, 1  ;;  %v5913_v12 = vshll.u32 %v16514_v8, 16  ;;  %v5911_v41 = vshrl.u32 %v16514_v8, 16 }
 0x243   :  { %v6584_v5 = vpop.permute.xlu1 %6583  ;;  %v6013_v9 = vpop.permute.xlu0 %6012  ;;  %v5903_v42 = vrot.slane %v5901_v54, 1  ;;  %v16519_v19 = vld [vmem:[#allocation2 + $0x158] ss:$0 sps:$4 sm:$0x11]  }
 0x244   :  { %6680 = vst.msk [vmem:[#allocation3] sm:$0xff] %vm6679_vm15, %v6584_v5  ;;  %v6713_v22 = vld [vmem:[#allocation3 + $0x8] sm:$0xff]  ;;  %v4765_v37 = vsel %vm2895_vm10, %v4763_v34, %v4764_v59  ;;  %v5915_v38 = vrot.slane %v5913_v12, 1  ;;  %v6560_v56 = vrot.slane %v16519_v19, 1 }
 0x245   :  { %6106 = vst.msk [vmem:[#allocation3 + $0x18] sm:$0xff] %vm6102_vm4, %v6013_v9  ;;  %6621 = vrot.lane.b32.xlu1 %v6546_v7, %s17061_s25  ;;  %6046 = vrot.lane.b32.xlu0 %v5873_v52, %s17060_s24  ;;  %v5897_v7 = vsel %vm2029_vm9, %v5892_v48, %v5896_v51  ;;  %v4762_v52 = vsel %vm2895_vm10, %v4760_v25, %v4761_v39  ;;  %v16523_v39 = vld [vmem:[#allocation2 + $0x164] ss:$0 sps:$4 sm:$0x11]   ;;  %v16513_v34 = vld [vmem:[#allocation2 + $0x15c] sm:$0xff]  }
 0x246   :  { %v5916_v50 = vor.u32 %v5915_v38, %v5911_v41  ;;  %v6558_v25 = vsel %vm2895_vm10, %v6556_v14, %v6557_v0  ;;  %v16529_v8 = vld [vmem:[#allocation2 + $0x170] ss:$0 sps:$4 sm:$0x11]   ;;  %v16521_v59 = vld [vmem:[#allocation2 + $0x164] ss:$0 sps:$4 sm:$0x11]  }
 0x247   :  { %v5146_v17 = vpop.permute.xlu1 %5145  ;;  %v6590_v60 = vpop.permute.xlu0 %6589  ;;  %v16532_v41 = vld [vmem:[#allocation2 + $0x168] sm:$0xfe]   ;;  %v16533_v38 = vld [vmem:[#allocation2 + $0x170] ss:$0 sps:$4 sm:$0x11]  }
 0x248   :  { %5240 = vst.msk [vmem:[#allocation3 + $0x10] sm:$0xff] %vm5237_vm2, %v5146_v17  ;;  %v16510_v17 = vld [vmem:[#allocation2 + $0x150] sm:$0xfe]   ;;  %v6565_v19 = vrot.slane %v16532_v41, 1 }
 0x249   :  { %6683 = vst.msk [vmem:[#allocation3 + $0x18] sm:$0xff] %vm6679_vm15, %v6590_v60  ;;  %4829 = vrot.lane.b32.xlu1 %v4756_v43, %s17058_s22  ;;  %6623 = vrot.lane.b32.xlu0 %v6549_v63, %s17061_s25  ;;  %v5904_v43 = vor.u32 %v5903_v42, %v5899_v18  ;;  %v5908_v63 = vrot.slane %v5906_v35, 1  ;;  %v4766_v36 = vrot.slane %v16510_v17, 1  ;;  %v16531_v17 = vld [vmem:[#allocation2 + $0x17c] ss:$0 sps:$4 sm:$0x11]  }
 0x24a   :  { %v16550_v41 = vld [vmem:[#allocation2 + $0x18c] sm:$0xfe]  }
 0x24b   :  { %v6011_v24 = vpop.permute.xlu1 %6010  ;;  %v6712_v26 = vld [vmem:[#allocation3] sm:$0xff]  ;;  %v5152_v29 = vpop.permute.xlu0 %5151 }
 0x24c   :  { %6105 = vst.msk [vmem:[#allocation3 + $0x10] sm:$0xff] %vm6102_vm4, %v6011_v24  ;;  %15936 = vmatprep.mubr.msk.bf16.mxu0 %vm6764_vm14, %v6712_v26  ;;  %v16512_v24 = vld [vmem:[#allocation2 + $0x150] sm:$0xff]  }
 0x24d   :  { %5243 = vst.msk [vmem:[#allocation3 + $0x28] sm:$0xff] %vm5237_vm2, %v5152_v29  ;;  %5183 = vrot.lane.b32.xlu1 %v16485_v16, %s17059_s23  ;;  %15937 = vmatmul.mubr.msk.bf16.vlgmr.msra.gmra.mrb[0].mxu0 %vm6764_vm14, %v6713_v22  ;;  %v16511_v16 = vld [vmem:[#allocation2 + $0x158] ss:$0 sps:$4 sm:$0x11]   ;;  %v16516_v22 = vld [vmem:[#allocation2 + $0x15c] sm:$0xff]   ;;  %v5909_v29 = vsel %vm2029_vm9, %v5904_v43, %v5908_v63  ;;  %v5942_v63 = vshll.u32 %v16529_v8, 16 }
 0x24e   :  { %4831 = vrot.lane.b32.xlu0 %v4759_v31, %s17058_s22  ;;  %v16518_v26 = vld [vmem:[#allocation2 + $0x150] sm:$0xfe]   ;;  %v16517_v31 = vld [vmem:[#allocation2 + $0x164] ss:$0 sps:$4 sm:$0x11]   ;;  %v4767_v44 = vrot.slane %v16511_v16, 1 }
 0x24f   :  { %v6588_v28 = vpop.permute.xlu1 %6587  ;;  %v6017_v40 = vpop.permute.xlu0 %6016  ;;  %v5923_v2 = vshrl.u32 %v16516_v22, 16  ;;  %v6559_v47 = vrot.slane %v16518_v26, 1  ;;  %v5930_v55 = vshll.u32 %v16517_v31, 16  ;;  %v5944_v26 = vrot.slane %v5942_v63, 1 }
 0x250   :  { %6682 = vst.msk [vmem:[#allocation3 + $0x10] sm:$0xff] %vm6679_vm15, %v6588_v28  ;;  %v6715_v23 = vld [vmem:[#allocation3 + $0x18] sm:$0xff]  ;;  %v16522_v28 = vld [vmem:[#allocation2 + $0x15c] sm:$0xfe]   ;;  %v4768_v61 = vsel %vm2895_vm10, %v4766_v36, %v4767_v44  ;;  %v6566_v36 = vrot.slane %v16533_v38, 1 }
 0x251   :  { %6108 = vst.msk [vmem:[#allocation3 + $0x28] sm:$0xff] %vm6102_vm4, %v6017_v40  ;;  %6048 = vrot.lane.b32.xlu1 %v5885_v6, %s17060_s24  ;;  %v5925_v6 = vshll.u32 %v16516_v22, 16  ;;  %v16528_v40 = vld [vmem:[#allocation2 + $0x168] sm:$0xff]   ;;  %v6561_v42 = vsel %vm2895_vm10, %v6559_v47, %v6560_v56  ;;  %v4769_v35 = vrot.slane %v16522_v28, 1  ;;  %v16536_v28 = vld [vmem:[#allocation2 + $0x174] sm:$0xfe]  }
 0x252   :  { %5185 = vrot.lane.b32.xlu0 %v16498_v33, %s17059_s23  ;;  %v5920_v33 = vrot.slane %v5918_v21, 1  ;;  %v5935_v12 = vshrl.u32 %v16528_v40, 16  ;;  %v16537_v44 = vld [vmem:[#allocation2 + $0x17c] ss:$0 sps:$4 sm:$0x11]   ;;  %v6567_v56 = vsel %vm2895_vm10, %v6565_v19, %v6566_v36  ;;  %v4781_v36 = vrot.slane %v16550_v41, 1 }
 0x253   :  { %v5150_v58 = vpop.permute.xlu1 %5149  ;;  %v6594_v46 = vpop.permute.xlu0 %6593 }
 0x254   :  { %5242 = vst.msk [vmem:[#allocation3 + $0x20] sm:$0xff] %vm5237_vm2, %v5150_v58  ;;  %v5921_v54 = vsel %vm2029_vm9, %v5916_v50, %v5920_v33  ;;  %v5937_v58 = vshll.u32 %v16528_v40, 16  ;;  %v5954_v50 = vshll.u32 %v16531_v17, 16 }
 0x255   :  { %6685 = vst.msk [vmem:[#allocation3 + $0x28] sm:$0xff] %vm6679_vm15, %v6594_v46  ;;  %6625 = vrot.lane.b32.xlu1 %v6552_v13, %s17061_s25  ;;  %v5927_v13 = vrot.slane %v5925_v6, 1 }
 0x256   :  { %6050 = vrot.lane.b32.xlu0 %v5897_v7, %s17060_s24  ;;  %v5956_v8 = vrot.slane %v5954_v50, 1  ;;  %v150_v50 = vld [vmem:[#allocation2 + $0x1a4] sm:$0x1] }
 0x257   :  { %v6015_v5 = vpop.permute.xlu1 %6014  ;;  %v6714_v9 = vld [vmem:[#allocation3 + $0x10] sm:$0xff]  ;;  %v5156_v10 = vpop.permute.xlu0 %5155 }
 0x258   :  { %6107 = vst.msk [vmem:[#allocation3 + $0x20] sm:$0xff] %vm6102_vm4, %v6015_v5  ;;  %15940 = vmatprep.mubr.msk.bf16.mxu0 %vm6764_vm14, %v6714_v9  ;;  %v5928_v5 = vor.u32 %v5927_v13, %v5923_v2  ;;  %v6562_v9 = vrot.slane %v16520_v30, 1  ;;  %v16542_v2 = vld [vmem:[#allocation2 + $0x180] sm:$0xff]   ;;  %v4775_v13 = vrot.slane %v16536_v28, 1  ;;  %v16527_v30 = vld [vmem:[#allocation2 + $0x174] sm:$0xff]  }
 0x259   :  { %5245 = vst.msk [vmem:[#allocation3 + $0x38] sm:$0xff] %vm5237_vm2, %v5156_v10  ;;  %4833 = vrot.lane.b32.xlu1 %v4762_v52, %s17058_s22  ;;  %15941 = vmatmul.mubr.msk.bf16.gmra.mrb[4].mxu0 %vm6764_vm14, %v6715_v23  ;;  %v4770_v23 = vrot.slane %v16523_v39, 1  ;;  %v5932_v52 = vrot.slane %v5930_v55, 1  ;;  %v16524_v10 = vld [vmem:[#allocation2 + $0x168] sm:$0xfe]   ;;  %v4776_v55 = vrot.slane %v16537_v44, 1 }
 0x25a   :  { %6627 = vrot.lane.b32.xlu0 %v6555_v11, %s17061_s25  ;;  %v16525_v11 = vld [vmem:[#allocation2 + $0x170] ss:$0 sps:$4 sm:$0x11]   ;;  %v16535_v39 = vld [vmem:[#allocation2 + $0x17c] ss:$0 sps:$4 sm:$0x11]  }
 0x25b   :  { %v6592_v60 = vpop.permute.xlu1 %6591  ;;  %v6021_v20 = vpop.permute.xlu0 %6020  ;;  %v4771_v43 = vsel %vm2895_vm10, %v4769_v35, %v4770_v23  ;;  %v5933_v21 = vsel %vm2029_vm9, %v5928_v5, %v5932_v52  ;;  %v4773_v31 = vrot.slane %v16525_v11, 1  ;;  %v16538_v35 = vld [vmem:[#allocation2 + $0x180] sm:$0xfe]   ;;  %v151_v44 = vsel %vm17107_vm3, 0, %v150_v50 }
 0x25c   :  { %6684 = vst.msk [vmem:[#allocation3 + $0x20] sm:$0xff] %vm6679_vm15, %v6592_v60  ;;  %v6717_v18 = vld [vmem:[#allocation3 + $0x28] sm:$0xff]  ;;  %v6563_v60 = vrot.slane %v16521_v59, 1  ;;  %v4777_v59 = vsel %vm2895_vm10, %v4775_v13, %v4776_v55  ;;  %v16540_v11 = vld [vmem:[#allocation2 + $0x180] sm:$0xff]   ;;  %152 = vst [vmem:[#allocation2 + $0x1a4] sm:$0x1] %v151_v44 }
 0x25d   :  { %6110 = vst.msk [vmem:[#allocation3 + $0x38] sm:$0xff] %vm6102_vm4, %v6021_v20  ;;  %5187 = vrot.lane.b32.xlu1 %v16499_v57, %s17059_s23  ;;  %v5939_v57 = vrot.slane %v5937_v58, 1  ;;  %v16526_v20 = vld [vmem:[#allocation2 + $0x168] sm:$0xff]   ;;  %v16552_v13 = vld [vmem:[#allocation2 + $0x198] sm:$0xfe]  }
 0x25e   :  { %4835 = vrot.lane.b32.xlu0 %v4765_v37, %s17058_s22  ;;  %v5949_v37 = vshll.u32 %v18619_v4, 16  ;;  %v6564_v33 = vsel %vm2895_vm10, %v6562_v9, %v6563_v60  ;;  %v16553_v55 = vld [vmem:[#allocation2 + $0x1a0] ss:$0 sps:$4 sm:$0x11]  }
 0x25f   :  { %v5154_v32 = vpop.permute.xlu1 %5153  ;;  %v6598_v45 = vpop.permute.xlu0 %6597 }
 0x260   :  { %5244 = vst.msk [vmem:[#allocation3 + $0x30] sm:$0xff] %vm5237_vm2, %v5154_v32  ;;  %v5947_v32 = vshrl.u32 %v18619_v4, 16  ;;  %v5959_v4 = vshrl.u32 %v16542_v2, 16 }
 0x261   :  { %6687 = vst.msk [vmem:[#allocation3 + $0x38] sm:$0xff] %vm6679_vm15, %v6598_v45  ;;  %6052 = vrot.lane.b32.xlu1 %v5909_v29, %s17060_s24  ;;  %v4772_v29 = vrot.slane %v16524_v10, 1  ;;  %v5951_v45 = vrot.slane %v5949_v37, 1  ;;  %v16539_v10 = vld [vmem:[#allocation2 + $0x188] ss:$0 sps:$4 sm:$0x11]  }
 0x262   :  { %5189 = vrot.lane.b32.xlu0 %v16512_v24, %s17059_s23  ;;  %v5940_v24 = vor.u32 %v5939_v57, %v5935_v12  ;;  %v16545_v57 = vld [vmem:[#allocation2 + $0x194] ss:$0 sps:$4 sm:$0x11]   ;;  %v4778_v37 = vrot.slane %v16538_v35, 1  ;;  %v4779_v38 = vrot.slane %v16539_v10, 1  ;;  %v16554_v35 = vld [vmem:[#allocation2 + $0x198] sm:$0xff]  }
 0x263   :  { %v6019_v48 = vpop.permute.xlu1 %6018  ;;  %v6716_v51 = vld [vmem:[#allocation3 + $0x20] sm:$0xff]  ;;  %v5160_v53 = vpop.permute.xlu0 %5159  ;;  %v4774_v40 = vsel %vm2895_vm10, %v4772_v29, %v4773_v31 }
 0x264   :  { %6109 = vst.msk [vmem:[#allocation3 + $0x30] sm:$0xff] %vm6102_vm4, %v6019_v48  ;;  %15944 = vmatprep.mubr.msk.bf16.mxu0 %vm6764_vm14, %v6716_v51  ;;  %v5945_v47 = vsel %vm2029_vm9, %v5940_v24, %v5944_v26  ;;  %v16543_v48 = vld [vmem:[#allocation2 + $0x188] ss:$0 sps:$4 sm:$0x11]   ;;  %v5961_v51 = vshll.u32 %v16542_v2, 16 }
 0x265   :  { %5247 = vst.msk [vmem:[#allocation3 + $0x48] sm:$0xff] %vm5237_vm2, %v5160_v53  ;;  %6629 = vrot.lane.b32.xlu1 %v6558_v25, %s17061_s25  ;;  %15945 = vmatmul.mubr.msk.bf16.gmra.mrb[8].mxu0 %vm6764_vm14, %v6717_v18  ;;  %v16534_v25 = vld [vmem:[#allocation2 + $0x174] sm:$0xfe]   ;;  %v5966_v9 = vshll.u32 %v16543_v48, 16  ;;  %v260_v2 = vld [vmem:[#allocation2 + $0x1ac] sm:$0x1] }
 0x266   :  { %6054 = vrot.lane.b32.xlu0 %v5921_v54, %s17060_s24  ;;  %v6568_v58 = vrot.slane %v16534_v25, 1  ;;  %v5963_v5 = vrot.slane %v5961_v51, 1  ;;  %v16551_v26 = vld [vmem:[#allocation2 + $0x194] ss:$0 sps:$4 sm:$0x11]   ;;  %v16541_v51 = vld [vmem:[#allocation2 + $0x18c] sm:$0xff]  }
 0x267   :  { %v6596_v46 = vpop.permute.xlu1 %6595  ;;  %v6025_v7 = vpop.permute.xlu0 %6024  ;;  %v5968_v60 = vrot.slane %v5966_v9, 1  ;;  %v4782_v48 = vrot.slane %v16551_v26, 1 }
 0x268   :  { %6686 = vst.msk [vmem:[#allocation3 + $0x30] sm:$0xff] %vm6679_vm15, %v6596_v46  ;;  %v6719_v16 = vld [vmem:[#allocation3 + $0x38] sm:$0xff] }
 0x269   :  { %6112 = vst.msk [vmem:[#allocation3 + $0x48] sm:$0xff] %vm6102_vm4, %v6025_v7  ;;  %4837 = vrot.lane.b32.xlu1 %v4768_v61, %s17058_s22  ;;  %v18647_v61 = vld [vmem:[#allocation2 + $0x18c] sm:$0xff]   ;;  %v5952_v7 = vor.u32 %v5951_v45, %v5947_v32 }
 0x26a   :  { %6631 = vrot.lane.b32.xlu0 %v6561_v42, %s17061_s25  ;;  %v6569_v42 = vrot.slane %v16535_v39, 1  ;;  %v5973_v12 = vshll.u32 %v18647_v61, 16 }
 0x26b   :  { %v5158_v15 = vpop.permute.xlu1 %5157  ;;  %v6602_v62 = vpop.permute.xlu0 %6601 }
 0x26c   :  { %5246 = vst.msk [vmem:[#allocation3 + $0x40] sm:$0xff] %vm5237_vm2, %v5158_v15  ;;  %v18658_v15 = vld [vmem:[#allocation2 + $0x198] sm:$0xff]  }
 0x26d   :  { %6689 = vst.msk [vmem:[#allocation3 + $0x48] sm:$0xff] %vm6679_vm15, %v6602_v62  ;;  %5191 = vrot.lane.b32.xlu1 %v16513_v34, %s17059_s23  ;;  %v5957_v62 = vsel %vm2029_vm9, %v5952_v7, %v5956_v8 }
 0x26e   :  { %4839 = vrot.lane.b32.xlu0 %v4771_v43, %s17058_s22  ;;  %v16546_v43 = vld [vmem:[#allocation2 + $0x180] sm:$0xfe]  }
 0x26f   :  { %v6023_v22 = vpop.permute.xlu1 %6022  ;;  %v6718_v14 = vld [vmem:[#allocation3 + $0x30] sm:$0xff]  ;;  %v5164_v0 = vpop.permute.xlu0 %5163  ;;  %v6571_v24 = vrot.slane %v16546_v43, 1 }
 0x270   :  { %6111 = vst.msk [vmem:[#allocation3 + $0x40] sm:$0xff] %vm6102_vm4, %v6023_v22  ;;  %15948 = vmatprep.mubr.msk.bf16.mxu0 %vm6764_vm14, %v6718_v14  ;;  %v5975_v22 = vrot.slane %v5973_v12, 1  ;;  %v5978_v14 = vshll.u32 %v16545_v57, 16 }
 0x271   :  { %5249 = vst.msk [vmem:[#allocation3 + $0x58] sm:$0xff] %vm5237_vm2, %v5164_v0  ;;  %6056 = vrot.lane.b32.xlu1 %v5933_v21, %s17060_s24  ;;  %15949 = vmatmul.mubr.msk.bf16.gmra.mrb[12].mxu0 %vm6764_vm14, %v6719_v16  ;;  %v5964_v16 = vor.u32 %v5963_v5, %v5959_v4  ;;  %v5971_v21 = vshrl.u32 %v18647_v61, 16  ;;  %v6570_v0 = vsel %vm2895_vm10, %v6568_v58, %v6569_v42  ;;  %v16561_v42 = vld [vmem:[#allocation2 + $0x1a0] ss:$0 sps:$4 sm:$0x11]  }
 0x272   :  { %5193 = vrot.lane.b32.xlu0 %v16526_v20, %s17059_s23  ;;  %v16547_v20 = vld [vmem:[#allocation2 + $0x188] ss:$0 sps:$4 sm:$0x11]   ;;  %v5980_v3 = vrot.slane %v5978_v14, 1  ;;  %v4783_v58 = vsel %vm2895_vm10, %v4781_v36, %v4782_v48 }
 0x273   :  { %v6600_v6 = vpop.permute.xlu1 %6599  ;;  %v6029_v18 = vpop.permute.xlu0 %6028  ;;  %v5969_v32 = vsel %vm2029_vm9, %v5964_v16, %v5968_v60  ;;  %v6572_v45 = vrot.slane %v16547_v20, 1 }
 0x274   :  { %6688 = vst.msk [vmem:[#allocation3 + $0x40] sm:$0xff] %vm6679_vm15, %v6600_v6  ;;  %v6721_v46 = vld [vmem:[#allocation3 + $0x48] sm:$0xff]  ;;  %v4780_v6 = vsel %vm2895_vm10, %v4778_v37, %v4779_v38 }
 0x275   :  { %6114 = vst.msk [vmem:[#allocation3 + $0x58] sm:$0xff] %vm6102_vm4, %v6029_v18  ;;  %6633 = vrot.lane.b32.xlu1 %v6564_v33, %s17061_s25  ;;  %v5985_v33 = vshll.u32 %v18658_v15, 16  ;;  %v16557_v18 = vld [vmem:[#allocation2 + $0x1a0] ss:$0 sps:$4 sm:$0x11]  }
 0x276   :  { %6058 = vrot.lane.b32.xlu0 %v5945_v47, %s17060_s24  ;;  %v261_v47 = vsel %vm17122_vm5, 0, %v260_v2  ;;  %v5990_v7 = vshll.u32 %v16557_v18, 16 }
 0x277   :  { %v5162_v53 = vpop.permute.xlu1 %5161  ;;  %v6606_v54 = vpop.permute.xlu0 %6605  ;;  %262 = vst [vmem:[#allocation2 + $0x1ac] sm:$0x1] %v261_v47 }
 0x278   :  { %5248 = vst.msk [vmem:[#allocation3 + $0x50] sm:$0xff] %vm5237_vm2, %v5162_v53  ;;  %v16548_v53 = vld [vmem:[#allocation2 + $0x18c] sm:$0xfe]   ;;  %v5992_v12 = vrot.slane %v5990_v7, 1  ;;  %v16564_v7 = vld [vmem:[#allocation2] sm:$0xff]  }
 0x279   :  { %6691 = vst.msk [vmem:[#allocation3 + $0x58] sm:$0xff] %vm6679_vm15, %v6606_v54  ;;  %4841 = vrot.lane.b32.xlu1 %v4774_v40, %s17058_s22  ;;  %v6573_v40 = vsel %vm2895_vm10, %v6571_v24, %v6572_v45  ;;  %v16549_v54 = vld [vmem:[#allocation2 + $0x194] ss:$0 sps:$4 sm:$0x11]   ;;  %v16555_v24 = vld [vmem:[#allocation2 + $0x1a4] sm:$0xff]  }
 0x27a   :  { %6635 = vrot.lane.b32.xlu0 %v6567_v56, %s17061_s25  ;;  %v5976_v56 = vor.u32 %v5975_v22, %v5971_v21  ;;  %v6575_v4 = vrot.slane %v16549_v54, 1 }
 0x27b   :  { %v6027_v23 = vpop.permute.xlu1 %6026  ;;  %v6720_v34 = vld [vmem:[#allocation3 + $0x40] sm:$0xff]  ;;  %v5168_v52 = vpop.permute.xlu0 %5167 }
 0x27c   :  { %6113 = vst.msk [vmem:[#allocation3 + $0x50] sm:$0xff] %vm6102_vm4, %v6027_v23  ;;  %15952 = vmatprep.mubr.msk.bf16.mxu0 %vm6764_vm14, %v6720_v34  ;;  %v16560_v23 = vld [vmem:[#allocation2 + $0x198] sm:$0xfe]   ;;  %v6574_v34 = vrot.slane %v16548_v53, 1 }
 0x27d   :  { %5251 = vst.msk [vmem:[#allocation3 + $0x68] sm:$0xff] %vm5237_vm2, %v5168_v52  ;;  %5195 = vrot.lane.b32.xlu1 %v16527_v30, %s17059_s23  ;;  %15953 = vmatmul.mubr.msk.bf16.gmra.mrb[16].mxu0 %vm6764_vm14, %v6721_v46  ;;  %v5983_v30 = vshrl.u32 %v18658_v15, 16  ;;  %v5987_v46 = vrot.slane %v5985_v33, 1  ;;  %v16558_v52 = vld [vmem:[#allocation2 + $0x1a4] sm:$0xff]   ;;  %v4784_v15 = vrot.slane %v16552_v13, 1  ;;  %v6577_v43 = vrot.slane %v16560_v23, 1 }
 0x27e   :  { %4843 = vrot.lane.b32.xlu0 %v4777_v59, %s17058_s22  ;;  %v5981_v59 = vsel %vm2029_vm9, %v5976_v56, %v5980_v3  ;;  %v16559_v5 = vld [vmem:[#allocation2 + $0x1ac] ss:$0 sps:$4 sm:$0x11]   ;;  %v5997_v57 = vshll.u32 %v16558_v52, 16  ;;  %v6576_v16 = vsel %vm2895_vm10, %v6574_v34, %v6575_v4  ;;  %v5995_v60 = vshrl.u32 %v16558_v52, 16 }
 0x27f   :  { %v6604_v63 = vpop.permute.xlu1 %6603  ;;  %v6033_v17 = vpop.permute.xlu0 %6032  ;;  %v6002_v20 = vshll.u32 %v16559_v5, 16  ;;  %v16563_v45 = vld [vmem:[#allocation2 + $0x1ac] ss:$0 sps:$4 sm:$0x11]   ;;  %v9057_v52 = vshrl.u32 %v16564_v7, 16 }
 0x280   :  { %6690 = vst.msk [vmem:[#allocation3 + $0x50] sm:$0xff] %vm6679_vm15, %v6604_v63  ;;  %v6723_v19 = vld [vmem:[#allocation3 + $0x58] sm:$0xff]  ;;  %v5999_v22 = vrot.slane %v5997_v57, 1 }
 0x281   :  { %6116 = vst.msk [vmem:[#allocation3 + $0x68] sm:$0xff] %vm6102_vm4, %v6033_v17  ;;  %6060 = vrot.lane.b32.xlu1 %v5957_v62, %s17060_s24  ;;  %v4785_v62 = vrot.slane %v16553_v55, 1  ;;  %v6578_v17 = vrot.slane %v16561_v42, 1  ;;  %v6004_v26 = vrot.slane %v6002_v20, 1 }
 0x282   :  { %5197 = vrot.lane.b32.xlu0 %v16540_v11, %s17059_s23  ;;  %v5988_v11 = vor.u32 %v5987_v46, %v5983_v30  ;;  %v6000_v50 = vor.u32 %v5999_v22, %v5995_v60  ;;  %v16565_v42 = vld [vmem:[#allocation2 + $0x8] ss:$0 sps:$4 sm:$0x11]  }
 0x283   :  { %v5166_v29 = vpop.permute.xlu1 %5165  ;;  %v6610_v31 = vpop.permute.xlu0 %6609  ;;  %v4786_v14 = vsel %vm2895_vm10, %v4784_v15, %v4785_v62  ;;  %v9064_v4 = vshll.u32 %v16565_v42, 16 }
 0x284   :  { %5250 = vst.msk [vmem:[#allocation3 + $0x60] sm:$0xff] %vm5237_vm2, %v5166_v29  ;;  %v5993_v21 = vsel %vm2029_vm9, %v5988_v11, %v5992_v12  ;;  %v6005_v36 = vsel %vm2029_vm9, %v6000_v50, %v6004_v26 }
 0x285   :  { %6693 = vst.msk [vmem:[#allocation3 + $0x68] sm:$0xff] %vm6679_vm15, %v6610_v31  ;;  %6637 = vrot.lane.b32.xlu1 %v6570_v0, %s17061_s25  ;;  %v6579_v31 = vsel %vm2895_vm10, %v6577_v43, %v6578_v17 }
 0x286   :  { %6062 = vrot.lane.b32.xlu0 %v5969_v32, %s17060_s24  ;;  %v16562_v32 = vld [vmem:[#allocation2 + $0x1a4] sm:$0xfe]  }
 0x287   :  { %v6031_v28 = vpop.permute.xlu1 %6030  ;;  %v6722_v25 = vld [vmem:[#allocation3 + $0x50] sm:$0xff]  ;;  %v5172_v39 = vpop.permute.xlu0 %5171  ;;  %v6580_v2 = vrot.slane %v16562_v32, 1 }
 0x288   :  { %6115 = vst.msk [vmem:[#allocation3 + $0x60] sm:$0xff] %vm6102_vm4, %v6031_v28  ;;  %15956 = vmatprep.mubr.msk.bf16.mxu0 %vm6764_vm14, %v6722_v25 }
 0x289   :  { %5253 = vst.msk [vmem:[#allocation3 + $0x78] sm:$0xff] %vm5237_vm2, %v5172_v39  ;;  %4845 = vrot.lane.b32.xlu1 %v4780_v6, %s17058_s22  ;;  %15957 = vmatmul.mubr.msk.bf16.gmra.mrb[20].mxu0 %vm6764_vm14, %v6723_v19  ;;  %v6581_v6 = vrot.slane %v16563_v45, 1 }
 0x28a   :  { %6639 = vrot.lane.b32.xlu0 %v6573_v40, %s17061_s25 }
 0x28b   :  { %v6608_v61 = vpop.permute.xlu1 %6607  ;;  %v6037_v8 = vpop.permute.xlu0 %6036  ;;  %v6582_v25 = vsel %vm2895_vm10, %v6580_v2, %v6581_v6 }
 0x28c   :  { %6692 = vst.msk [vmem:[#allocation3 + $0x60] sm:$0xff] %vm6679_vm15, %v6608_v61  ;;  %v6725_v63 = vld [vmem:[#allocation3 + $0x68] sm:$0xff] }
 0x28d   :  { %6118 = vst.msk [vmem:[#allocation3 + $0x78] sm:$0xff] %vm6102_vm4, %v6037_v8  ;;  %5199 = vrot.lane.b32.xlu1 %v16541_v51, %s17059_s23 }
 0x28e   :  { %4847 = vrot.lane.b32.xlu0 %v4783_v58, %s17058_s22 }
 0x28f   :  { %v5170_v9 = vpop.permute.xlu1 %5169  ;;  %v6614_v10 = vpop.permute.xlu0 %6613 }
 0x290   :  { %5252 = vst.msk [vmem:[#allocation3 + $0x70] sm:$0xff] %vm5237_vm2, %v5170_v9  ;;  %v9066_v9 = vrot.slane %v9064_v4, 1 }
 0x291   :  { %6695 = vst.msk [vmem:[#allocation3 + $0x78] sm:$0xff] %vm6679_vm15, %v6614_v10  ;;  %6064 = vrot.lane.b32.xlu1 %v5981_v59, %s17060_s24 }
 0x292   :  { %5201 = vrot.lane.b32.xlu0 %v16554_v35, %s17059_s23  ;;  %v9059_v35 = vshll.u32 %v16564_v7, 16 }
 0x293   :  { %v6035_v37 = vpop.permute.xlu1 %6034  ;;  %v6724_v41 = vld [vmem:[#allocation3 + $0x60] sm:$0xff]  ;;  %v5174_v38 = vpop.permute.xlu0 %5173 }
 0x294   :  { %6117 = vst.msk [vmem:[#allocation3 + $0x70] sm:$0xff] %vm6102_vm4, %v6035_v37  ;;  %15960 = vmatprep.mubr.msk.bf16.mxu0 %vm6764_vm14, %v6724_v41  ;;  %v9061_v59 = vrot.slane %v9059_v35, 1 }
 0x295   :  { %5254 = vst.msk [vmem:[#allocation3 + $0x80] sm:$0xff] %vm5237_vm2, %v5174_v38  ;;  %6641 = vrot.lane.b32.xlu1 %v6576_v16, %s17061_s25  ;;  %15961 = vmatmul.mubr.msk.bf16.gmra.mrb[24].mxu0 %vm6764_vm14, %v6725_v63 }
 0x296   :  { %6066 = vrot.lane.b32.xlu0 %v5993_v21, %s17060_s24  ;;  %v9062_v5 = vor.u32 %v9061_v59, %v9057_v52  ;;  %v18799_v52 = vld [vmem:[%s20675_s2] ss:$0 sm:$0xff] }
 0x297   :  { %v6612_v0 = vpop.permute.xlu1 %6611  ;;  %v6039_v29 = vpop.permute.xlu0 %6038 }
 0x298   :  { %6694 = vst.msk [vmem:[#allocation3 + $0x70] sm:$0xff] %vm6679_vm15, %v6612_v0  ;;  %v6727_v44 = vld [vmem:[#allocation3 + $0x78] sm:$0xff]  ;;  %v9067_v12 = vsel %vm2029_vm9, %v9062_v5, %v9066_v9  ;;  %v18805_v5 = vld [vmem:[%s20676_s3] ss:$0 sm:$0xff] }
 0x299   :  { %6119 = vst.msk [vmem:[#allocation3 + $0x80] sm:$0xff] %vm6102_vm4, %v6039_v29  ;;  %4849 = vrot.lane.b32.xlu1 %v4786_v14, %s17058_s22 }
 0x29a   :  { %6643 = vrot.lane.b32.xlu0 %v6579_v31, %s17061_s25 }
 0x29b   :  { %v4822_v33 = vpop.permute.xlu1 %4821  ;;  %v6616_v19 = vpop.permute.xlu0 %6615 }
 0x29c   :  { %4901 = vst.msk [vmem:[#allocation3 + $0x88] sm:$0xff] %vm4883_vm1, %v4822_v33 }
 0x29d   :  { %6696 = vst.msk [vmem:[#allocation3 + $0x80] sm:$0xff] %vm6679_vm15, %v6616_v19  ;;  %5203 = vrot.lane.b32.xlu1 %v16555_v24, %s17059_s23 }
 0x29e   :  { %9440 = vrot.lane.b32.xlu0 %v9067_v12, %s17054_s27 }
 0x29f   :  { %v5176_v18 = vpop.permute.xlu1 %5175  ;;  %v6726_v47 = vld [vmem:[#allocation3 + $0x70] sm:$0xff]  ;;  %v4824_v28 = vpop.permute.xlu0 %4823 }
 0x2a0   :  { %5255 = vst.msk [vmem:[#allocation3 + $0x88] sm:$0xff] %vm5237_vm2, %v5176_v18  ;;  %15964 = vmatprep.mubr.msk.bf16.mxu0 %vm6764_vm14, %v6726_v47 }
 0x2a1   :  { %4902 = vst.msk [vmem:[#allocation3 + $0x90] sm:$0xff] %vm4883_vm1, %v4824_v28  ;;  %6068 = vrot.lane.b32.xlu1 %v6005_v36, %s17060_s24  ;;  %15965 = vmatmul.mubr.msk.bf16.gmra.mrb[28].mxu0 %vm6764_vm14, %v6727_v44 }
 0x2a3   :  { %v6041_v39 = vpop.permute.xlu1 %6040  ;;  %v5178_v40 = vpop.permute.xlu0 %5177 }
 0x2a4   :  { %v6728_v48 = vld [vmem:[#allocation3 + $0x80] sm:$0xff]  ;;  %6120 = vst.msk [vmem:[#allocation3 + $0x88] sm:$0xff] %vm6102_vm4, %v6041_v39 }
 0x2a5   :  { %5256 = vst.msk [vmem:[#allocation3 + $0x90] sm:$0xff] %vm5237_vm2, %v5178_v40  ;;  %15968 = vmatprep.mubr.msk.bf16.mxu0 %vm6764_vm14, %v6728_v48  ;;  %6645 = vrot.lane.b32.xlu1 %v6582_v25, %s17061_s25 }
 0x2a7   :  { %v6618_v51 = vpop.permute.xlu1 %6617  ;;  %v6043_v53 = vpop.permute.xlu0 %6042 }
 0x2a8   :  { %6697 = vst.msk [vmem:[#allocation3 + $0x88] sm:$0xff] %vm6679_vm15, %v6618_v51 }
 0x2a9   :  { %6121 = vst.msk [vmem:[#allocation3 + $0x90] sm:$0xff] %vm6102_vm4, %v6043_v53 }
 0x2ab   :  { %v4826_v3 = vpop.permute.xlu1 %4825  ;;  %v6620_v54 = vpop.permute.xlu0 %6619 }
 0x2ac   :  { %4903 = vst.msk [vmem:[#allocation3 + $0x98] sm:$0xff] %vm4883_vm1, %v4826_v3 }
 0x2ad   :  { %6698 = vst.msk [vmem:[#allocation3 + $0x90] sm:$0xff] %vm6679_vm15, %v6620_v54 }
 0x2af   :  { %v5180_v56 = vpop.permute.xlu1 %5179  ;;  %v6729_v13 = vld [vmem:[#allocation3 + $0x88] sm:$0xff]  ;;  %v4828_v55 = vpop.permute.xlu0 %4827 }
 0x2b0   :  { %5257 = vst.msk [vmem:[#allocation3 + $0x98] sm:$0xff] %vm5237_vm2, %v5180_v56  ;;  %15969 = vmatmul.mubr.msk.bf16.gmra.mrb[32].mxu0 %vm6764_vm14, %v6729_v13 }
 0x2b1   :  { %4904 = vst.msk [vmem:[#allocation3 + $0xa0] sm:$0xff] %vm4883_vm1, %v4828_v55 }
 0x2b3   :  { %v6045_v30 = vpop.permute.xlu1 %6044  ;;  %v5182_v61 = vpop.permute.xlu0 %5181 }
 0x2b4   :  { %v6730_v8 = vld [vmem:[#allocation3 + $0x90] sm:$0xff]  ;;  %6122 = vst.msk [vmem:[#allocation3 + $0x98] sm:$0xff] %vm6102_vm4, %v6045_v30 }
 0x2b5   :  { %5258 = vst.msk [vmem:[#allocation3 + $0xa0] sm:$0xff] %vm5237_vm2, %v5182_v61  ;;  %15972 = vmatprep.mubr.msk.bf16.mxu0 %vm6764_vm14, %v6730_v8 }
 0x2b7   :  { %v6622_v58 = vpop.permute.xlu1 %6621  ;;  %v6047_v46 = vpop.permute.xlu0 %6046 }
 0x2b8   :  { %6699 = vst.msk [vmem:[#allocation3 + $0x98] sm:$0xff] %vm6679_vm15, %v6622_v58 }
 0x2b9   :  { %6123 = vst.msk [vmem:[#allocation3 + $0xa0] sm:$0xff] %vm6102_vm4, %v6047_v46 }
 0x2bb   :  { %v4830_v23 = vpop.permute.xlu1 %4829  ;;  %v6624_v34 = vpop.permute.xlu0 %6623 }
 0x2bc   :  { %4905 = vst.msk [vmem:[#allocation3 + $0xa8] sm:$0xff] %vm4883_vm1, %v4830_v23 }
 0x2bd   :  { %6700 = vst.msk [vmem:[#allocation3 + $0xa0] sm:$0xff] %vm6679_vm15, %v6624_v34 }
 0x2bf   :  { %v5184_v10 = vpop.permute.xlu1 %5183  ;;  %v6731_v11 = vld [vmem:[#allocation3 + $0x98] sm:$0xff] }
 0x2c0   :  { %5259 = vst.msk [vmem:[#allocation3 + $0xa8] sm:$0xff] %vm5237_vm2, %v5184_v10  ;;  %15973 = vmatmul.mubr.msk.bf16.gmra.mrb[36].mxu0 %vm6764_vm14, %v6731_v11  ;;  %v4832_v57 = vpop.permute.xlu0 %4831 }
 0x2c1   :  { %4906 = vst.msk [vmem:[#allocation3 + $0xb0] sm:$0xff] %vm4883_vm1, %v4832_v57 }
 0x2c3   :  { %v6049_v15 = vpop.permute.xlu1 %6048 }
 0x2c4   :  { %v6732_v62 = vld [vmem:[#allocation3 + $0xa0] sm:$0xff]  ;;  %6124 = vst.msk [vmem:[#allocation3 + $0xa8] sm:$0xff] %vm6102_vm4, %v6049_v15  ;;  %v5186_v43 = vpop.permute.xlu0 %5185 }
 0x2c5   :  { %15976 = vmatprep.mubr.msk.bf16.mxu0 %vm6764_vm14, %v6732_v62  ;;  %5260 = vst.msk [vmem:[#allocation3 + $0xb0] sm:$0xff] %vm5237_vm2, %v5186_v43 }
 0x2c7   :  { %v6626_v63 = vpop.permute.xlu1 %6625 }
 0x2c8   :  { %6701 = vst.msk [vmem:[#allocation3 + $0xa8] sm:$0xff] %vm6679_vm15, %v6626_v63  ;;  %v6051_v17 = vpop.permute.xlu0 %6050 }
 0x2c9   :  { %6125 = vst.msk [vmem:[#allocation3 + $0xb0] sm:$0xff] %vm6102_vm4, %v6051_v17 }
 0x2cb   :  { %v4834_v16 = vpop.permute.xlu1 %4833 }
 0x2cc   :  { %4907 = vst.msk [vmem:[#allocation3 + $0xb8] sm:$0xff] %vm4883_vm1, %v4834_v16  ;;  %v6628_v60 = vpop.permute.xlu0 %6627 }
 0x2cd   :  { %6702 = vst.msk [vmem:[#allocation3 + $0xb0] sm:$0xff] %vm6679_vm15, %v6628_v60 }
 0x2cf   :  { %v5188_v20 = vpop.permute.xlu1 %5187  ;;  %v6733_v37 = vld [vmem:[#allocation3 + $0xa8] sm:$0xff] }
 0x2d0   :  { %5261 = vst.msk [vmem:[#allocation3 + $0xb8] sm:$0xff] %vm5237_vm2, %v5188_v20  ;;  %15977 = vmatmul.mubr.msk.bf16.gmra.mrb[40].mxu0 %vm6764_vm14, %v6733_v37  ;;  %v4836_v41 = vpop.permute.xlu0 %4835 }
 0x2d1   :  { %4908 = vst.msk [vmem:[#allocation3 + $0xc0] sm:$0xff] %vm4883_vm1, %v4836_v41 }
 0x2d3   :  { %v6053_v38 = vpop.permute.xlu1 %6052 }
 0x2d4   :  { %6126 = vst.msk [vmem:[#allocation3 + $0xb8] sm:$0xff] %vm6102_vm4, %v6053_v38  ;;  %v5190_v21 = vpop.permute.xlu0 %5189  ;;  %v6734_v22 = vld [vmem:[#allocation3 + $0xb0] sm:$0xff] }
 0x2d5   :  { %5262 = vst.msk [vmem:[#allocation3 + $0xc0] sm:$0xff] %vm5237_vm2, %v5190_v21  ;;  %15980 = vmatprep.mubr.msk.bf16.mxu0 %vm6764_vm14, %v6734_v22 }
 0x2d7   :  { %v6630_v14 = vpop.permute.xlu1 %6629 }
 0x2d8   :  { %6703 = vst.msk [vmem:[#allocation3 + $0xb8] sm:$0xff] %vm6679_vm15, %v6630_v14  ;;  %v6055_v0 = vpop.permute.xlu0 %6054 }
 0x2d9   :  { %6127 = vst.msk [vmem:[#allocation3 + $0xc0] sm:$0xff] %vm6102_vm4, %v6055_v0 }
 0x2db   :  { %v4838_v24 = vpop.permute.xlu1 %4837 }
 0x2dc   :  { %4909 = vst.msk [vmem:[#allocation3 + $0xc8] sm:$0xff] %vm4883_vm1, %v4838_v24  ;;  %v6632_v26 = vpop.permute.xlu0 %6631 }
 0x2dd   :  { %6704 = vst.msk [vmem:[#allocation3 + $0xc0] sm:$0xff] %vm6679_vm15, %v6632_v26 }
 0x2df   :  { %v5192_v29 = vpop.permute.xlu1 %5191  ;;  %v6735_v31 = vld [vmem:[#allocation3 + $0xb8] sm:$0xff] }
 0x2e0   :  { %5263 = vst.msk [vmem:[#allocation3 + $0xc8] sm:$0xff] %vm5237_vm2, %v5192_v29  ;;  %15981 = vmatmul.mubr.msk.bf16.gmra.mrb[44].mxu0 %vm6764_vm14, %v6735_v31  ;;  %v4840_v32 = vpop.permute.xlu0 %4839  ;;  %v8199_v31 = vld [vmem:[#allocation2 + $0x18] sm:$0xf] }
 0x2e1   :  { %4910 = vst.msk [vmem:[#allocation3 + $0xd0] sm:$0xff] %vm4883_vm1, %v4840_v32 }
 0x2e3   :  { %v6057_v45 = vpop.permute.xlu1 %6056 }
 0x2e4   :  { %6128 = vst.msk [vmem:[#allocation3 + $0xc8] sm:$0xff] %vm6102_vm4, %v6057_v45  ;;  %v5194_v50 = vpop.permute.xlu0 %5193  ;;  %v6736_v33 = vld [vmem:[#allocation3 + $0xc0] sm:$0xff] }
 0x2e5   :  { %5264 = vst.msk [vmem:[#allocation3 + $0xd0] sm:$0xff] %vm5237_vm2, %v5194_v50  ;;  %15984 = vmatprep.mubr.msk.bf16.mxu0 %vm6764_vm14, %v6736_v33 }
 0x2e7   :  { %v6634_v19 = vpop.permute.xlu1 %6633 }
 0x2e8   :  { %6705 = vst.msk [vmem:[#allocation3 + $0xc8] sm:$0xff] %vm6679_vm15, %v6634_v19  ;;  %v6059_v36 = vpop.permute.xlu0 %6058 }
 0x2e9   :  { %6129 = vst.msk [vmem:[#allocation3 + $0xd0] sm:$0xff] %vm6102_vm4, %v6059_v36 }
 0x2eb   :  { %v4842_v44 = vpop.permute.xlu1 %4841 }
 0x2ec   :  { %4911 = vst.msk [vmem:[#allocation3 + $0xd8] sm:$0xff] %vm4883_vm1, %v4842_v44  ;;  %v6636_v2 = vpop.permute.xlu0 %6635 }
 0x2ed   :  { %6706 = vst.msk [vmem:[#allocation3 + $0xd0] sm:$0xff] %vm6679_vm15, %v6636_v2 }
 0x2ef   :  { %v5196_v6 = vpop.permute.xlu1 %5195  ;;  %v6737_v18 = vld [vmem:[#allocation3 + $0xc8] sm:$0xff] }
 0x2f0   :  { %5265 = vst.msk [vmem:[#allocation3 + $0xd8] sm:$0xff] %vm5237_vm2, %v5196_v6  ;;  %15985 = vmatmul.mubr.msk.bf16.gmra.mrb[48].mxu0 %vm6764_vm14, %v6737_v18  ;;  %v4844_v47 = vpop.permute.xlu0 %4843  ;;  %v8192_v18 = vld [vmem:[#allocation2 + $0xc] sm:$0xf] }
 0x2f1   :  { %4912 = vst.msk [vmem:[#allocation3 + $0xe0] sm:$0xff] %vm4883_vm1, %v4844_v47 }
 0x2f3   :  { %v6061_v28 = vpop.permute.xlu1 %6060 }
 0x2f4   :  { %6130 = vst.msk [vmem:[#allocation3 + $0xd8] sm:$0xff] %vm6102_vm4, %v6061_v28  ;;  %v5198_v25 = vpop.permute.xlu0 %5197  ;;  %v6738_v39 = vld [vmem:[#allocation3 + $0xd0] sm:$0xff] }
 0x2f5   :  { %5266 = vst.msk [vmem:[#allocation3 + $0xe0] sm:$0xff] %vm5237_vm2, %v5198_v25  ;;  %15988 = vmatprep.mubr.msk.bf16.mxu0 %vm6764_vm14, %v6738_v39 }
 0x2f7   :  { %v6638_v40 = vpop.permute.xlu1 %6637 }
 0x2f8   :  { %6707 = vst.msk [vmem:[#allocation3 + $0xd8] sm:$0xff] %vm6679_vm15, %v6638_v40  ;;  %v6063_v48 = vpop.permute.xlu0 %6062 }
 0x2f9   :  { %6131 = vst.msk [vmem:[#allocation3 + $0xe0] sm:$0xff] %vm6102_vm4, %v6063_v48  ;;  %v8203_v48 = vld [vmem:[#allocation2 + $0x20] sm:$0x1] }
 0x2fb   :  { %v4846_v51 = vpop.permute.xlu1 %4845 }
 0x2fc   :  { %4913 = vst.msk [vmem:[#allocation3 + $0xe8] sm:$0xff] %vm4883_vm1, %v4846_v51  ;;  %v6640_v53 = vpop.permute.xlu0 %6639 }
 0x2fd   :  { %6708 = vst.msk [vmem:[#allocation3 + $0xe0] sm:$0xff] %vm6679_vm15, %v6640_v53 }
 0x2ff   :  { %v5200_v3 = vpop.permute.xlu1 %5199  ;;  %v6739_v54 = vld [vmem:[#allocation3 + $0xd8] sm:$0xff] }
 0x300   :  { %5267 = vst.msk [vmem:[#allocation3 + $0xe8] sm:$0xff] %vm5237_vm2, %v5200_v3  ;;  %15989 = vmatmul.mubr.msk.bf16.gmra.mrb[52].mxu0 %vm6764_vm14, %v6739_v54  ;;  %v4848_v56 = vpop.permute.xlu0 %4847 }
 0x301   :  { %4914 = vst.msk [vmem:[#allocation3 + $0xf0] sm:$0xff] %vm4883_vm1, %v4848_v56 }
 0x303   :  { %v6065_v13 = vpop.permute.xlu1 %6064 }
 0x304   :  { %6132 = vst.msk [vmem:[#allocation3 + $0xe8] sm:$0xff] %vm6102_vm4, %v6065_v13  ;;  %v5202_v55 = vpop.permute.xlu0 %5201  ;;  %v6740_v30 = vld [vmem:[#allocation3 + $0xe0] sm:$0xff] }
 0x305   :  { %5268 = vst.msk [vmem:[#allocation3 + $0xf0] sm:$0xff] %vm5237_vm2, %v5202_v55  ;;  %15992 = vmatprep.mubr.msk.bf16.mxu0 %vm6764_vm14, %v6740_v30  ;;  %v8196_v55 = vld [vmem:[#allocation2 + $0x14] sm:$0x1] }
 0x307   :  { %v6642_v61 = vpop.permute.xlu1 %6641 }
 0x308   :  { %6709 = vst.msk [vmem:[#allocation3 + $0xe8] sm:$0xff] %vm6679_vm15, %v6642_v61  ;;  %v6067_v8 = vpop.permute.xlu0 %6066 }
 0x309   :  { %6133 = vst.msk [vmem:[#allocation3 + $0xf0] sm:$0xff] %vm6102_vm4, %v6067_v8 }
 0x30b   :  { %v4850_v58 = vpop.permute.xlu1 %4849 }
 0x30c   :  { %4915 = vst.msk [vmem:[#allocation3 + $0xf8] sm:$0xff] %vm4883_vm1, %v4850_v58  ;;  %v6644_v46 = vpop.permute.xlu0 %6643 }
 0x30d   :  { %6710 = vst.msk [vmem:[#allocation3 + $0xf0] sm:$0xff] %vm6679_vm15, %v6644_v46 }
 0x30f   :  { %v5204_v7 = vpop.permute.xlu1 %5203  ;;  %v6741_v42 = vld [vmem:[#allocation3 + $0xe8] sm:$0xff] }
 0x310   :  { %5269 = vst.msk [vmem:[#allocation3 + $0xf8] sm:$0xff] %vm5237_vm2, %v5204_v7  ;;  %15993 = vmatmul.mubr.msk.bf16.gmra.mrb[56].mxu0 %vm6764_vm14, %v6741_v42  ;;  %v16596_v42 = vld [vmem:[#allocation2 + $0xd8] sm:$0xff]  }
 0x313   :  { %v6069_v35 = vpop.permute.xlu1 %6068 }
 0x314   :  { %6134 = vst.msk [vmem:[#allocation3 + $0xf8] sm:$0xff] %vm6102_vm4, %v6069_v35  ;;  %v6742_v23 = vld [vmem:[#allocation3 + $0xf0] sm:$0xff] }
 0x315   :  { %15996 = vmatprep.mubr.msk.bf16.mxu0 %vm6764_vm14, %v6742_v23  ;;  %v16597_v35 = vld [vmem:[#allocation2 + $0xe0] ss:$0 sps:$4 sm:$0x11]  }
 0x317   :  { %v6646_v34 = vpop.permute.xlu1 %6645 }
 0x318   :  { %6711 = vst.msk [vmem:[#allocation3 + $0xf8] sm:$0xff] %vm6679_vm15, %v6646_v34 }
 0x31f   :  { %v6743_v59 = vld [vmem:[#allocation3 + $0xf8] sm:$0xff] }
 0x320   :  { %15997 = vmatmul.mubr.msk.bf16.gmra.mrb[60].mxu0 %vm6764_vm14, %v6743_v59  ;;  %v15938_v4 = vpop.f32.mrb[0].mxu0 }
 0x321   :  { %v7163_v9 = vmul.f32 %v15938_v4, %v18799_v52  ;;  %v6899_v10 = vpop.f32.mrb[1].mxu0 }
 0x322   :  { %v7161_v11 = vmul.f32 %v18799_v52, %v6899_v10  ;;  %v15939_v12 = vpop.f32.mrb[2].mxu0 }
 0x323   :  { %v7234_v57 = vadd.f32 %v18805_v5, %v7163_v9  ;;  %v7164_v15 = vmul.f32 %v15939_v12, %v18799_v52  ;;  %v6902_v62 = vpop.f32.mrb[3].mxu0 }
 0x324   :  { %v7232_v43 = vadd.f32 %v18805_v5, %v7161_v11  ;;  %v7162_v63 = vmul.f32 %v18799_v52, %v6902_v62  ;;  %v9251_v62 = vshll.u32 %v16596_v42, 16 }
 0x325   :  { %v7298_v17 = vmax.f32 %v7234_v57, 0.0  ;;  %v7235_v16 = vadd.f32 %v18805_v5, %v7164_v15 }
 0x326   :  { %v7296_v60 = vmax.f32 %v7232_v43, 0.0  ;;  %v7233_v20 = vadd.f32 %v18805_v5, %v7162_v63 }
 0x327   :  { %v15798_v37 = vpack.c.bf16 %v7298_v17, %v7298_v17  ;;  %v7299_v41 = vmax.f32 %v7235_v16, 0.0  ;;  %v9249_v17 = vshrl.u32 %v16596_v42, 16  ;;  %v9256_v16 = vshll.u32 %v16597_v35, 16 }
 0x328   :  { %v15796_v38 = vpack.c.bf16 %v7296_v60, %v7296_v60  ;;  %v7297_v21 = vmax.f32 %v7233_v20, 0.0 }
 0x329   :  { %v7570_v22 = vshrl.u32 %v15798_v37, 16  ;;  %v7573_v14 = vshll.u32 %v15798_v37, 16  ;;  %v15799_v0 = vpack.c.bf16 %v7299_v41, %v7299_v41  ;;  %v9253_v41 = vrot.slane %v9251_v62, 1 }
 0x32a   :  { %v7553_v24 = vshrl.u32 %v15796_v38, 16  ;;  %v15797_v26 = vpack.c.bf16 %v7297_v21, %v7297_v21  ;;  %v7556_v32 = vshll.u32 %v15796_v38, 16  ;;  %v8213_v38 = vld [vmem:[#allocation2 + $0x30] sm:$0xf] }
 0x32b   :  { %v7572_v29 = vrot.slane %v7570_v22, 7  ;;  %v7578_v45 = vshrl.u32 %v15799_v0, 16  ;;  %v7581_v33 = vshll.u32 %v15799_v0, 16 }
 0x32c   :  { %v7555_v50 = vrot.slane %v7553_v24, 7  ;;  %v7561_v19 = vshrl.u32 %v15797_v26, 16  ;;  %v7564_v36 = vshll.u32 %v15797_v26, 16  ;;  %v15942_v44 = vpop.f32.mrb[4].mxu0  ;;  %v8206_v24 = vld [vmem:[#allocation2 + $0x24] sm:$0xf] }
 0x32d   :  { %v7575_v2 = vor.u32 %v7573_v14, %v7572_v29  ;;  %v7576_v6 = vrot.slane %v7572_v29, 4  ;;  %v7580_v47 = vrot.slane %v7578_v45, 7  ;;  %v7167_v28 = vmul.f32 %v15942_v44, %v18799_v52  ;;  %v6915_v25 = vpop.f32.mrb[5].mxu0 }
 0x32e   :  { %v7558_v39 = vor.u32 %v7556_v32, %v7555_v50  ;;  %v7559_v40 = vrot.slane %v7555_v50, 4  ;;  %v7563_v51 = vrot.slane %v7561_v19, 7  ;;  %v7165_v53 = vmul.f32 %v18799_v52, %v6915_v25  ;;  %v15943_v3 = vpop.f32.mrb[6].mxu0 }
 0x32f   :  { %v8200_v54 = vsel %vm17153_vm7, %v7575_v2, %v8199_v31  ;;  %v7583_v56 = vor.u32 %v7581_v33, %v7580_v47  ;;  %v7585_v13 = vrot.slane %v7580_v47, 4  ;;  %v7238_v30 = vadd.f32 %v18805_v5, %v7167_v28  ;;  %v6918_v61 = vpop.f32.mrb[7].mxu0 }
 0x330   :  { %8201 = vst [vmem:[#allocation2 + $0x18] sm:$0xf] %v8200_v54  ;;  %v8193_v8 = vsel %vm17153_vm7, %v7558_v39, %v8192_v18  ;;  %v7566_v58 = vor.u32 %v7564_v36, %v7563_v51  ;;  %v7568_v46 = vrot.slane %v7563_v51, 4  ;;  %v7236_v7 = vadd.f32 %v18805_v5, %v7165_v53  ;;  %v8210_v51 = vld [vmem:[#allocation2 + $0x2c] sm:$0x1] }
 0x331   :  { %8194 = vst [vmem:[#allocation2 + $0xc] sm:$0xf] %v8193_v8  ;;  %v7584_v23 = vsel %vm17173_vm8, %v7576_v6, %v7583_v56  ;;  %v8204_v34 = vsel %vm17107_vm3, %v7585_v13, %v8203_v48  ;;  %v7302_v59 = vmax.f32 %v7238_v30, 0.0  ;;  %v7168_v4 = vmul.f32 %v15943_v3, %v18799_v52  ;;  %v8217_v48 = vld [vmem:[#allocation2 + $0x38] sm:$0x1] }
 0x332   :  { %8202 = vst.msk [vmem:[#allocation2 + $0x1c] sm:$0xf] %vm27_vm0, %v7584_v23  ;;  %8205 = vst [vmem:[#allocation2 + $0x20] sm:$0x1] %v8204_v34  ;;  %v7567_v9 = vsel %vm17173_vm8, %v7559_v40, %v7566_v58  ;;  %v8197_v10 = vsel %vm17107_vm3, %v7568_v46, %v8196_v55  ;;  %v7300_v11 = vmax.f32 %v7236_v7, 0.0  ;;  %v7166_v12 = vmul.f32 %v18799_v52, %v6918_v61 }
 0x333   :  { %8195 = vst.msk [vmem:[#allocation2 + $0x10] sm:$0xf] %vm27_vm0, %v7567_v9  ;;  %8198 = vst [vmem:[#allocation2 + $0x14] sm:$0x1] %v8197_v10  ;;  %v15802_v57 = vpack.c.bf16 %v7302_v59, %v7302_v59  ;;  %v7239_v15 = vadd.f32 %v18805_v5, %v7168_v4  ;;  %v18837_v29 = vrot.slane %v9256_v16, 1  ;;  %v18839_v50 = vor.u32 %v9253_v41, %v9249_v17  ;;  %v16602_v16 = vld [vmem:[#allocation2] sm:$0xff]  }
 0x334   :  { %v15800_v43 = vpack.c.bf16 %v7300_v11, %v7300_v11  ;;  %v7237_v63 = vadd.f32 %v18805_v5, %v7166_v12  ;;  %8672 = vst.msk [vmem:[#allocation3] sm:$0xff] %vm1644_vm11, %v16602_v16 }
 0x335   :  { %v7604_v60 = vshrl.u32 %v15802_v57, 16  ;;  %v7607_v20 = vshll.u32 %v15802_v57, 16  ;;  %v7303_v37 = vmax.f32 %v7239_v15, 0.0 }
 0x336   :  { %v7587_v21 = vshrl.u32 %v15800_v43, 16  ;;  %v7301_v22 = vmax.f32 %v7237_v63, 0.0  ;;  %v7590_v0 = vshll.u32 %v15800_v43, 16 }
 0x337   :  { %v7606_v14 = vrot.slane %v7604_v60, 7  ;;  %v15803_v26 = vpack.c.bf16 %v7303_v37, %v7303_v37 }
 0x338   :  { %v7589_v31 = vrot.slane %v7587_v21, 7  ;;  %v15801_v32 = vpack.c.bf16 %v7301_v22, %v7301_v22  ;;  %v15946_v45 = vpop.f32.mrb[8].mxu0 }
 0x339   :  { %v7609_v33 = vor.u32 %v7607_v20, %v7606_v14  ;;  %v7610_v19 = vrot.slane %v7606_v14, 4  ;;  %v7612_v36 = vshrl.u32 %v15803_v26, 16  ;;  %v7615_v44 = vshll.u32 %v15803_v26, 16  ;;  %v6931_v2 = vpop.f32.mrb[9].mxu0  ;;  %v18851_v7 = vld [vmem:[#allocation2 + $0x18] sm:$0xff]  }
 0x33a   :  { %v7592_v6 = vor.u32 %v7590_v0, %v7589_v31  ;;  %v7593_v18 = vrot.slane %v7589_v31, 4  ;;  %v7595_v47 = vshrl.u32 %v15801_v32, 16  ;;  %v7598_v28 = vshll.u32 %v15801_v32, 16  ;;  %v15947_v25 = vpop.f32.mrb[10].mxu0  ;;  %v18853_v35 = vld [vmem:[#allocation2 + $0xc] sm:$0xff]   ;;  %v16603_v9 = vld [vmem:[#allocation2 + $0x18] sm:$0xff]  }
 0x33b   :  { %v8214_v39 = vsel %vm17153_vm7, %v7609_v33, %v8213_v38  ;;  %v7614_v40 = vrot.slane %v7612_v36, 7  ;;  %v7171_v53 = vmul.f32 %v15946_v45, %v18799_v52  ;;  %v7169_v3 = vmul.f32 %v18799_v52, %v6931_v2  ;;  %v6934_v54 = vpop.f32.mrb[11].mxu0  ;;  %v16567_v42 = vld [vmem:[#allocation2 + $0x20] ss:$0 sps:$4 sm:$0x11]   ;;  %8674 = vst.msk [vmem:[#allocation3 + $0x10] sm:$0xff] %vm1644_vm11, %v16603_v9 }
 0x33c   :  { %8215 = vst [vmem:[#allocation2 + $0x30] sm:$0xf] %v8214_v39  ;;  %v8207_v56 = vsel %vm17153_vm7, %v7592_v6, %v8206_v24  ;;  %v7597_v13 = vrot.slane %v7595_v47, 7  ;;  %v7172_v55 = vmul.f32 %v15947_v25, %v18799_v52  ;;  %v7170_v30 = vmul.f32 %v18799_v52, %v6934_v54  ;;  %v18866_v17 = vld [vmem:[#allocation2 + $0x14] ss:$0 sps:$4 sm:$0x11]   ;;  %v9441_v24 = vpop.permute.xlu0 %9440 }
 0x33d   :  { %8208 = vst [vmem:[#allocation2 + $0x24] sm:$0xf] %v8207_v56  ;;  %v7617_v61 = vor.u32 %v7615_v44, %v7614_v40  ;;  %v7619_v8 = vrot.slane %v7614_v40, 4  ;;  %v7242_v58 = vadd.f32 %v18805_v5, %v7171_v53  ;;  %v7240_v46 = vadd.f32 %v18805_v5, %v7169_v3  ;;  %v16606_v60 = vld [vmem:[#allocation2 + $0xc] sm:$0xff]   ;;  %9536 = vst.msk [vmem:[#allocation3] sm:$0xff] %vm2510_vm12, %v9441_v24 }
 0x33e   :  { %v7600_v23 = vor.u32 %v7598_v28, %v7597_v13  ;;  %v7602_v34 = vrot.slane %v7597_v13, 4  ;;  %v7243_v59 = vadd.f32 %v18805_v5, %v7172_v55  ;;  %v7241_v4 = vadd.f32 %v18805_v5, %v7170_v30  ;;  %8673 = vst.msk [vmem:[#allocation3 + $0x8] sm:$0xff] %vm1644_vm11, %v16606_v60  ;;  %v8227_v33 = vld [vmem:[#allocation2 + $0x48] sm:$0xf]  ;;  %v8231_v25 = vld [vmem:[#allocation2 + $0x50] sm:$0x1] }
 0x33f   :  { %v7618_v10 = vsel %vm17173_vm8, %v7610_v19, %v7617_v61  ;;  %v8218_v11 = vsel %vm17107_vm3, %v7619_v8, %v8217_v48  ;;  %v7306_v12 = vmax.f32 %v7242_v58, 0.0  ;;  %v7304_v57 = vmax.f32 %v7240_v46, 0.0  ;;  %v8220_v19 = vld [vmem:[#allocation2 + $0x3c] sm:$0xf]  ;;  %v8224_v39 = vld [vmem:[#allocation2 + $0x44] sm:$0x1] }
 0x340   :  { %8216 = vst.msk [vmem:[#allocation2 + $0x34] sm:$0xf] %vm27_vm0, %v7618_v10  ;;  %8219 = vst [vmem:[#allocation2 + $0x38] sm:$0x1] %v8218_v11  ;;  %v7601_v15 = vsel %vm17173_vm8, %v7593_v18, %v7600_v23  ;;  %v8211_v62 = vsel %vm17107_vm3, %v7602_v34, %v8210_v51  ;;  %v7307_v43 = vmax.f32 %v7243_v59, 0.0  ;;  %v7305_v63 = vmax.f32 %v7241_v4, 0.0 }
 0x341   :  { %8209 = vst.msk [vmem:[#allocation2 + $0x28] sm:$0xf] %vm27_vm0, %v7601_v15  ;;  %8212 = vst [vmem:[#allocation2 + $0x2c] sm:$0x1] %v8211_v62  ;;  %v15806_v20 = vpack.c.bf16 %v7306_v12, %v7306_v12  ;;  %v15804_v37 = vpack.c.bf16 %v7304_v57, %v7304_v57  ;;  %v9081_v41 = vshrl.u32 %v18851_v7, 16  ;;  %v9083_v38 = vshll.u32 %v18851_v7, 16 }
 0x342   :  { %v15807_v21 = vpack.c.bf16 %v7307_v43, %v7307_v43  ;;  %v15805_v22 = vpack.c.bf16 %v7305_v63, %v7305_v63  ;;  %v9088_v14 = vshll.u32 %v16567_v42, 16  ;;  %v9069_v0 = vshrl.u32 %v18853_v35, 16 }
 0x343   :  { %v7638_v26 = vshrl.u32 %v15806_v20, 16  ;;  %v7641_v31 = vshll.u32 %v15806_v20, 16  ;;  %v7621_v32 = vshrl.u32 %v15804_v37, 16  ;;  %v7624_v45 = vshll.u32 %v15804_v37, 16 }
 0x344   :  { %v7646_v36 = vshrl.u32 %v15807_v21, 16  ;;  %v7649_v44 = vshll.u32 %v15807_v21, 16  ;;  %v7629_v2 = vshrl.u32 %v15805_v22, 16  ;;  %v7632_v6 = vshll.u32 %v15805_v22, 16  ;;  %v15950_v18 = vpop.f32.mrb[12].mxu0 }
 0x345   :  { %v7640_v47 = vrot.slane %v7638_v26, 7  ;;  %v7623_v28 = vrot.slane %v7621_v32, 7  ;;  %v9085_v40 = vrot.slane %v9083_v38, 1  ;;  %v9090_v48 = vrot.slane %v9088_v14, 1  ;;  %v6947_v51 = vpop.f32.mrb[13].mxu0 }
 0x346   :  { %v7648_v53 = vrot.slane %v7646_v36, 7  ;;  %v7631_v3 = vrot.slane %v7629_v2, 7  ;;  %v9071_v54 = vshll.u32 %v18853_v35, 16  ;;  %v9076_v56 = vshll.u32 %v18866_v17, 16  ;;  %v15951_v13 = vpop.f32.mrb[14].mxu0 }
 0x347   :  { %v7643_v55 = vor.u32 %v7641_v31, %v7640_v47  ;;  %v7644_v30 = vrot.slane %v7640_v47, 4  ;;  %v7626_v61 = vor.u32 %v7624_v45, %v7623_v28  ;;  %v7627_v8 = vrot.slane %v7623_v28, 4  ;;  %v6950_v58 = vpop.f32.mrb[15].mxu0  ;;  %v16570_v46 = vld [vmem:[#allocation2 + $0x30] sm:$0xff]  }
 0x348   :  { %v7651_v7 = vor.u32 %v7649_v44, %v7648_v53  ;;  %v7653_v42 = vrot.slane %v7648_v53, 4  ;;  %v7634_v23 = vor.u32 %v7632_v6, %v7631_v3  ;;  %v7636_v34 = vrot.slane %v7631_v3, 4  ;;  %v16571_v10 = vld [vmem:[#allocation2 + $0x38] ss:$0 sps:$4 sm:$0x11]   ;;  %v16572_v62 = vld [vmem:[#allocation2 + $0x24] sm:$0xff]  }
 0x349   :  { %v8228_v59 = vsel %vm17153_vm7, %v7643_v55, %v8227_v33  ;;  %v8221_v4 = vsel %vm17153_vm7, %v7626_v61, %v8220_v19  ;;  %v9086_v35 = vor.u32 %v9085_v40, %v9081_v41  ;;  %v9073_v9 = vrot.slane %v9071_v54, 1  ;;  %v16609_v60 = vld [vmem:[#allocation2 + $0x30] sm:$0xff]   ;;  %v16573_v21 = vld [vmem:[#allocation2 + $0x2c] ss:$0 sps:$4 sm:$0x11]   ;;  %v16610_v22 = vld [vmem:[#allocation2 + $0x24] sm:$0xff]  }
 0x34a   :  { %8229 = vst [vmem:[#allocation2 + $0x48] sm:$0xf] %v8228_v59  ;;  %8222 = vst [vmem:[#allocation2 + $0x3c] sm:$0xf] %v8221_v4  ;;  %v7652_v11 = vsel %vm17173_vm8, %v7644_v30, %v7651_v7  ;;  %v8232_v12 = vsel %vm17107_vm3, %v7653_v42, %v8231_v25  ;;  %v7635_v57 = vsel %vm17173_vm8, %v7627_v8, %v7634_v23  ;;  %v9078_v17 = vrot.slane %v9076_v56, 1 }
 0x34b   :  { %v8225_v15 = vsel %vm17107_vm3, %v7636_v34, %v8224_v39  ;;  %8230 = vst.msk [vmem:[#allocation2 + $0x4c] sm:$0xf] %vm27_vm0, %v7652_v11  ;;  %8233 = vst [vmem:[#allocation2 + $0x50] sm:$0x1] %v8232_v12  ;;  %v9091_v43 = vsel %vm2029_vm9, %v9086_v35, %v9090_v48  ;;  %v9074_v63 = vor.u32 %v9073_v9, %v9069_v0  ;;  %v9105_v38 = vshrl.u32 %v16570_v46, 16 }
 0x34c   :  { %8223 = vst.msk [vmem:[#allocation2 + $0x40] sm:$0xf] %vm27_vm0, %v7635_v57  ;;  %8226 = vst [vmem:[#allocation2 + $0x44] sm:$0x1] %v8225_v15  ;;  %v7175_v16 = vmul.f32 %v15950_v18, %v18799_v52  ;;  %9444 = vrot.lane.b32.xlu0 %v9091_v43, %s17054_s27  ;;  %v7173_v20 = vmul.f32 %v18799_v52, %v6947_v51  ;;  %v7176_v37 = vmul.f32 %v15951_v13, %v18799_v52  ;;  %v8241_v7 = vld [vmem:[#allocation2 + $0x60] sm:$0xf] }
 0x34d   :  { %v7174_v41 = vmul.f32 %v18799_v52, %v6950_v58  ;;  %v9079_v14 = vsel %vm2029_vm9, %v9074_v63, %v9078_v17  ;;  %v9107_v0 = vshll.u32 %v16570_v46, 16  ;;  %v9112_v26 = vshll.u32 %v16571_v10, 16  ;;  %8676 = vst.msk [vmem:[#allocation3 + $0x20] sm:$0xff] %vm1644_vm11, %v16609_v60  ;;  %8675 = vst.msk [vmem:[#allocation3 + $0x18] sm:$0xff] %vm1644_vm11, %v16610_v22  ;;  %v8234_v35 = vld [vmem:[#allocation2 + $0x54] sm:$0xf] }
 0x34e   :  { %v7246_v24 = vadd.f32 %v18805_v5, %v7175_v16  ;;  %9442 = vrot.lane.b32.xlu1 %v9079_v14, %s17054_s27  ;;  %v7244_v31 = vadd.f32 %v18805_v5, %v7173_v20  ;;  %v7247_v32 = vadd.f32 %v18805_v5, %v7176_v37  ;;  %v9093_v33 = vshrl.u32 %v16572_v62, 16  ;;  %v8245_v15 = vld [vmem:[#allocation2 + $0x68] sm:$0x1] }
 0x34f   :  { %v7245_v45 = vadd.f32 %v18805_v5, %v7174_v41  ;;  %v9109_v36 = vrot.slane %v9107_v0, 1  ;;  %v9114_v44 = vrot.slane %v9112_v26, 1  ;;  %v9095_v2 = vshll.u32 %v16572_v62, 16  ;;  %v8238_v62 = vld [vmem:[#allocation2 + $0x5c] sm:$0x1] }
 0x350   :  { %v7310_v19 = vmax.f32 %v7246_v24, 0.0  ;;  %v7308_v6 = vmax.f32 %v7244_v31, 0.0  ;;  %v7311_v18 = vmax.f32 %v7247_v32, 0.0  ;;  %v9100_v28 = vshll.u32 %v16573_v21, 16  ;;  %v15954_v25 = vpop.f32.mrb[16].mxu0 }
 0x351   :  { %v7309_v47 = vmax.f32 %v7245_v45, 0.0  ;;  %v9110_v40 = vor.u32 %v9109_v36, %v9105_v38  ;;  %v9097_v48 = vrot.slane %v9095_v2, 1  ;;  %v7179_v51 = vmul.f32 %v15954_v25, %v18799_v52  ;;  %v6963_v53 = vpop.f32.mrb[17].mxu0 }
 0x352   :  { %v15810_v39 = vpack.c.bf16 %v7310_v19, %v7310_v19  ;;  %v15808_v3 = vpack.c.bf16 %v7308_v6, %v7308_v6  ;;  %v15811_v54 = vpack.c.bf16 %v7311_v18, %v7311_v18  ;;  %v9102_v13 = vrot.slane %v9100_v28, 1  ;;  %v15955_v55 = vpop.f32.mrb[18].mxu0  ;;  %v16575_v37 = vld [vmem:[#allocation2 + $0x50] ss:$0 sps:$4 sm:$0x11]   ;;  %v16574_v14 = vld [vmem:[#allocation2 + $0x48] sm:$0xff]  }
 0x353   :  { %v15809_v56 = vpack.c.bf16 %v7309_v47, %v7309_v47  ;;  %v9115_v8 = vsel %vm2029_vm9, %v9110_v40, %v9114_v44  ;;  %v9098_v58 = vor.u32 %v9097_v48, %v9093_v33  ;;  %v6966_v46 = vpop.f32.mrb[19].mxu0  ;;  %v7250_v43 = vadd.f32 %v18805_v5, %v7179_v51  ;;  %v18914_v24 = vld [vmem:[#allocation2 + $0x3c] sm:$0xff]   ;;  %v16615_v45 = vld [vmem:[#allocation2 + $0x48] sm:$0xff]  }
 0x354   :  { %v7672_v30 = vshrl.u32 %v15810_v39, 16  ;;  %v7675_v61 = vshll.u32 %v15810_v39, 16  ;;  %v7655_v42 = vshrl.u32 %v15808_v3, 16  ;;  %v7658_v23 = vshll.u32 %v15808_v3, 16  ;;  %9448 = vrot.lane.b32.xlu0 %v9115_v8, %s17054_s27  ;;  %v16616_v33 = vld [vmem:[#allocation2 + $0x3c] sm:$0xff]   ;;  %8678 = vst.msk [vmem:[#allocation3 + $0x30] sm:$0xff] %vm1644_vm11, %v16615_v45 }
 0x355   :  { %v7680_v34 = vshrl.u32 %v15811_v54, 16  ;;  %v7683_v59 = vshll.u32 %v15811_v54, 16  ;;  %v7663_v9 = vshrl.u32 %v15809_v56, 16  ;;  %v7666_v10 = vshll.u32 %v15809_v56, 16  ;;  %8677 = vst.msk [vmem:[#allocation3 + $0x28] sm:$0xff] %vm1644_vm11, %v16616_v33 }
 0x356   :  { %v7674_v4 = vrot.slane %v7672_v30, 7  ;;  %v9103_v11 = vsel %vm2029_vm9, %v9098_v58, %v9102_v13  ;;  %v7657_v12 = vrot.slane %v7655_v42, 7  ;;  %v7177_v63 = vmul.f32 %v18799_v52, %v6963_v53  ;;  %v16577_v13 = vld [vmem:[#allocation2 + $0x44] ss:$0 sps:$4 sm:$0x11]  }
 0x357   :  { %v7682_v57 = vrot.slane %v7680_v34, 7  ;;  %9446 = vrot.lane.b32.xlu1 %v9103_v11, %s17054_s27  ;;  %v7665_v60 = vrot.slane %v7663_v9, 7  ;;  %v7180_v20 = vmul.f32 %v15955_v55, %v18799_v52  ;;  %v7314_v32 = vmax.f32 %v7250_v43, 0.0  ;;  %v8255_v30 = vld [vmem:[#allocation2 + $0x78] sm:$0xf] }
 0x358   :  { %v7677_v17 = vor.u32 %v7675_v61, %v7674_v4  ;;  %v7678_v16 = vrot.slane %v7674_v4, 4  ;;  %v7660_v41 = vor.u32 %v7658_v23, %v7657_v12  ;;  %v7661_v38 = vrot.slane %v7657_v12, 4 }
 0x359   :  { %v7685_v21 = vor.u32 %v7683_v59, %v7682_v57  ;;  %v7687_v22 = vrot.slane %v7682_v57, 4  ;;  %v7668_v26 = vor.u32 %v7666_v10, %v7665_v60  ;;  %v7670_v31 = vrot.slane %v7665_v60, 4 }
 0x35a   :  { %v8242_v0 = vsel %vm17153_vm7, %v7677_v17, %v8241_v7  ;;  %v8235_v19 = vsel %vm17153_vm7, %v7660_v41, %v8234_v35  ;;  %v7248_v2 = vadd.f32 %v18805_v5, %v7177_v63  ;;  %v15814_v47 = vpack.c.bf16 %v7314_v32, %v7314_v32  ;;  %v8259_v41 = vld [vmem:[#allocation2 + $0x80] sm:$0x1] }
 0x35b   :  { %8243 = vst [vmem:[#allocation2 + $0x60] sm:$0xf] %v8242_v0  ;;  %v7686_v36 = vsel %vm17173_vm8, %v7678_v16, %v7685_v21  ;;  %v8246_v44 = vsel %vm17107_vm3, %v7687_v22, %v8245_v15  ;;  %8236 = vst [vmem:[#allocation2 + $0x54] sm:$0xf] %v8235_v19  ;;  %v7669_v6 = vsel %vm17173_vm8, %v7661_v38, %v7668_v26  ;;  %v9129_v40 = vshrl.u32 %v16574_v14, 16 }
 0x35c   :  { %8244 = vst.msk [vmem:[#allocation2 + $0x64] sm:$0xf] %vm27_vm0, %v7686_v36  ;;  %8247 = vst [vmem:[#allocation2 + $0x68] sm:$0x1] %v8246_v44  ;;  %v8239_v18 = vsel %vm17107_vm3, %v7670_v31, %v8238_v62  ;;  %v7251_v28 = vadd.f32 %v18805_v5, %v7180_v20  ;;  %v7312_v25 = vmax.f32 %v7248_v2, 0.0  ;;  %v7178_v39 = vmul.f32 %v18799_v52, %v6966_v46  ;;  %v15958_v51 = vpop.f32.mrb[20].mxu0 }
 0x35d   :  { %8237 = vst.msk [vmem:[#allocation2 + $0x58] sm:$0xf] %vm27_vm0, %v7669_v6  ;;  %8240 = vst [vmem:[#allocation2 + $0x5c] sm:$0x1] %v8239_v18  ;;  %v9131_v48 = vshll.u32 %v16574_v14, 16  ;;  %v7706_v53 = vshrl.u32 %v15814_v47, 16  ;;  %v7183_v21 = vmul.f32 %v15958_v51, %v18799_v52 }
 0x35e   :  { %v7709_v3 = vshll.u32 %v15814_v47, 16  ;;  %v7315_v54 = vmax.f32 %v7251_v28, 0.0  ;;  %v9136_v56 = vshll.u32 %v16575_v37, 16  ;;  %v6979_v55 = vpop.f32.mrb[21].mxu0  ;;  %v15812_v61 = vpack.c.bf16 %v7312_v25, %v7312_v25  ;;  %v8248_v20 = vld [vmem:[#allocation2 + $0x6c] sm:$0xf] }
 0x35f   :  { %v7249_v8 = vadd.f32 %v18805_v5, %v7178_v39  ;;  %v9133_v58 = vrot.slane %v9131_v48, 1  ;;  %v9117_v7 = vshrl.u32 %v18914_v24, 16  ;;  %v15959_v42 = vpop.f32.mrb[22].mxu0  ;;  %v7708_v23 = vrot.slane %v7706_v53, 7  ;;  %v8252_v47 = vld [vmem:[#allocation2 + $0x74] sm:$0x1] }
 0x360   :  { %v15815_v34 = vpack.c.bf16 %v7315_v54, %v7315_v54  ;;  %v9138_v46 = vrot.slane %v9136_v56, 1  ;;  %v9119_v59 = vshll.u32 %v18914_v24, 16  ;;  %v6982_v4 = vpop.f32.mrb[23].mxu0  ;;  %v7689_v35 = vshrl.u32 %v15812_v61, 16 }
 0x361   :  { %v7692_v9 = vshll.u32 %v15812_v61, 16  ;;  %v7313_v10 = vmax.f32 %v7249_v8, 0.0  ;;  %v9134_v11 = vor.u32 %v9133_v58, %v9129_v40  ;;  %v7711_v12 = vor.u32 %v7709_v3, %v7708_v23 }
 0x362   :  { %v7712_v57 = vrot.slane %v7708_v23, 4  ;;  %v7714_v15 = vshrl.u32 %v15815_v34, 16  ;;  %v7717_v62 = vshll.u32 %v15815_v34, 16  ;;  %v7691_v43 = vrot.slane %v7689_v35, 7 }
 0x363   :  { %v15813_v63 = vpack.c.bf16 %v7313_v10, %v7313_v10  ;;  %v9139_v17 = vsel %vm2029_vm9, %v9134_v11, %v9138_v46  ;;  %v9121_v16 = vrot.slane %v9119_v59, 1  ;;  %v8256_v60 = vsel %vm17153_vm7, %v7711_v12, %v8255_v30  ;;  %v16578_v26 = vld [vmem:[#allocation2 + $0x60] sm:$0xff]   ;;  %v16579_v39 = vld [vmem:[#allocation2 + $0x68] ss:$0 sps:$4 sm:$0x11]  }
 0x364   :  { %v7716_v37 = vrot.slane %v7714_v15, 7  ;;  %9452 = vrot.lane.b32.xlu0 %v9139_v17, %s17054_s27  ;;  %v9124_v38 = vshll.u32 %v16577_v13, 16  ;;  %8257 = vst [vmem:[#allocation2 + $0x78] sm:$0xf] %v8256_v60  ;;  %v7694_v22 = vor.u32 %v7692_v9, %v7691_v43  ;;  %v7695_v14 = vrot.slane %v7691_v43, 4  ;;  %v18953_v40 = vld [vmem:[#allocation2 + $0x54] sm:$0xff]  }
 0x365   :  { %v7697_v24 = vshrl.u32 %v15813_v63, 16  ;;  %v7700_v0 = vshll.u32 %v15813_v63, 16  ;;  %v9122_v45 = vor.u32 %v9121_v16, %v9117_v7  ;;  %v7254_v44 = vadd.f32 %v18805_v5, %v7183_v21  ;;  %v16621_v56 = vld [vmem:[#allocation2 + $0x60] sm:$0xff]   ;;  %v16622_v58 = vld [vmem:[#allocation2 + $0x54] sm:$0xff]   ;;  %v8269_v43 = vld [vmem:[#allocation2 + $0x90] sm:$0xf] }
 0x366   :  { %v7719_v31 = vor.u32 %v7717_v62, %v7716_v37  ;;  %v7721_v32 = vrot.slane %v7716_v37, 4  ;;  %v9126_v33 = vrot.slane %v9124_v38, 1  ;;  %v8249_v19 = vsel %vm17153_vm7, %v7694_v22, %v8248_v20  ;;  %8680 = vst.msk [vmem:[#allocation3 + $0x40] sm:$0xff] %vm1644_vm11, %v16621_v56  ;;  %v16581_v10 = vld [vmem:[#allocation2 + $0x5c] ss:$0 sps:$4 sm:$0x11]  }
 0x367   :  { %v7699_v36 = vrot.slane %v7697_v24, 7  ;;  %v7181_v2 = vmul.f32 %v18799_v52, %v6979_v55  ;;  %8250 = vst [vmem:[#allocation2 + $0x6c] sm:$0xf] %v8249_v19  ;;  %v7184_v25 = vmul.f32 %v15959_v42, %v18799_v52  ;;  %v7318_v53 = vmax.f32 %v7254_v44, 0.0  ;;  %8679 = vst.msk [vmem:[#allocation3 + $0x38] sm:$0xff] %vm1644_vm11, %v16622_v58 }
 0x368   :  { %v7720_v6 = vsel %vm17173_vm8, %v7712_v57, %v7719_v31  ;;  %v8260_v18 = vsel %vm17107_vm3, %v7721_v32, %v8259_v41  ;;  %v9127_v28 = vsel %vm2029_vm9, %v9122_v45, %v9126_v33  ;;  %v18958_v54 = vpop.f32.mrb[24].mxu0  ;;  %v7182_v55 = vmul.f32 %v18799_v52, %v6982_v4  ;;  %v8262_v31 = vld [vmem:[#allocation2 + $0x84] sm:$0xf] }
 0x369   :  { %8258 = vst.msk [vmem:[#allocation2 + $0x7c] sm:$0xf] %vm27_vm0, %v7720_v6  ;;  %8261 = vst [vmem:[#allocation2 + $0x80] sm:$0x1] %v8260_v18  ;;  %v7702_v48 = vor.u32 %v7700_v0, %v7699_v36  ;;  %v7704_v51 = vrot.slane %v7699_v36, 4  ;;  %9450 = vrot.lane.b32.xlu1 %v9127_v28, %s17054_s27  ;;  %v7252_v3 = vadd.f32 %v18805_v5, %v7181_v2  ;;  %v9153_v30 = vshrl.u32 %v16578_v26, 16 }
 0x36a   :  { %v7255_v13 = vadd.f32 %v18805_v5, %v7184_v25  ;;  %v9155_v61 = vshll.u32 %v16578_v26, 16  ;;  %v6995_v8 = vpop.f32.mrb[25].mxu0  ;;  %v15818_v23 = vpack.c.bf16 %v7318_v53, %v7318_v53  ;;  %v7253_v4 = vadd.f32 %v18805_v5, %v7182_v55  ;;  %v8273_v18 = vld [vmem:[#allocation2 + $0x98] sm:$0x1]  ;;  %v8266_v53 = vld [vmem:[#allocation2 + $0x8c] sm:$0x1] }
 0x36b   :  { %v7703_v7 = vsel %vm17173_vm8, %v7695_v14, %v7702_v48  ;;  %v8253_v42 = vsel %vm17107_vm3, %v7704_v51, %v8252_v47  ;;  %v7316_v34 = vmax.f32 %v7252_v3, 0.0  ;;  %v15963_v46 = vpop.f32.mrb[26].mxu0  ;;  %v9160_v9 = vshll.u32 %v16579_v39, 16 }
 0x36c   :  { %8251 = vst.msk [vmem:[#allocation2 + $0x70] sm:$0xf] %vm27_vm0, %v7703_v7  ;;  %8254 = vst [vmem:[#allocation2 + $0x74] sm:$0x1] %v8253_v42  ;;  %v7319_v59 = vmax.f32 %v7255_v13, 0.0  ;;  %v9157_v35 = vrot.slane %v9155_v61, 1  ;;  %v7187_v3 = vmul.f32 %v18958_v54, %v18799_v52  ;;  %v7185_v56 = vmul.f32 %v18799_v52, %v6995_v8 }
 0x36d   :  { %v18969_v11 = vpop.f32.mrb[27].mxu0  ;;  %v7740_v12 = vshrl.u32 %v15818_v23, 16  ;;  %v7743_v57 = vshll.u32 %v15818_v23, 16  ;;  %v15816_v15 = vpack.c.bf16 %v7316_v34, %v7316_v34  ;;  %v9141_v62 = vshrl.u32 %v18953_v40, 16  ;;  %v18999_v8 = vld [vmem:[%s20676_s3] ss:$0 sm:$0xff] }
 0x36e   :  { %v15819_v63 = vpack.c.bf16 %v7319_v59, %v7319_v59  ;;  %v7317_v17 = vmax.f32 %v7253_v4, 0.0  ;;  %v9158_v16 = vor.u32 %v9157_v35, %v9153_v30  ;;  %v9162_v60 = vrot.slane %v9160_v9, 1 }
 0x36f   :  { %v7742_v20 = vrot.slane %v7740_v12, 7  ;;  %v7723_v37 = vshrl.u32 %v15816_v15, 16  ;;  %v7726_v5 = vshll.u32 %v15816_v15, 16  ;;  %v9143_v41 = vshll.u32 %v18953_v40, 16  ;;  %v19014_v15 = vld [vmem:[%s20675_s2] ss:$0 sm:$0xff] }
 0x370   :  { %v7748_v38 = vshrl.u32 %v15819_v63, 16  ;;  %v7751_v21 = vshll.u32 %v15819_v63, 16  ;;  %v15817_v22 = vpack.c.bf16 %v7317_v17, %v7317_v17  ;;  %v9163_v14 = vsel %vm2029_vm9, %v9158_v16, %v9162_v60  ;;  %v18978_v48 = vld [vmem:[#allocation2 + $0x78] sm:$0xff]   ;;  %v16583_v55 = vld [vmem:[#allocation2 + $0x80] ss:$0 sps:$4 sm:$0x11]  }
 0x371   :  { %v7745_v24 = vor.u32 %v7743_v57, %v7742_v20  ;;  %v7746_v0 = vrot.slane %v7742_v20, 4  ;;  %v7725_v26 = vrot.slane %v7723_v37, 7  ;;  %9456 = vrot.lane.b32.xlu0 %v9163_v14, %s17054_s27  ;;  %v9145_v32 = vrot.slane %v9143_v41, 1  ;;  %v16623_v54 = vld [vmem:[#allocation2 + $0x78] sm:$0xff]  }
 0x372   :  { %v7750_v45 = vrot.slane %v7748_v38, 7  ;;  %v7731_v33 = vshrl.u32 %v15817_v22, 16  ;;  %v7734_v19 = vshll.u32 %v15817_v22, 16  ;;  %v9148_v36 = vshll.u32 %v16581_v10, 16  ;;  %8682 = vst.msk [vmem:[#allocation3 + $0x50] sm:$0xff] %vm1644_vm11, %v16623_v54 }
 0x373   :  { %v8270_v44 = vsel %vm17153_vm7, %v7745_v24, %v8269_v43  ;;  %v7728_v2 = vor.u32 %v7726_v5, %v7725_v26  ;;  %v7729_v6 = vrot.slane %v7725_v26, 4  ;;  %v9146_v47 = vor.u32 %v9145_v32, %v9141_v62  ;;  %v16584_v23 = vld [vmem:[#allocation2 + $0x6c] sm:$0xff]   ;;  %v16585_v9 = vld [vmem:[#allocation2 + $0x74] ss:$0 sps:$4 sm:$0x11]  }
 0x374   :  { %8271 = vst [vmem:[#allocation2 + $0x90] sm:$0xf] %v8270_v44  ;;  %v7753_v28 = vor.u32 %v7751_v21, %v7750_v45  ;;  %v7755_v25 = vrot.slane %v7750_v45, 4  ;;  %v7733_v39 = vrot.slane %v7731_v33, 7  ;;  %v9150_v40 = vrot.slane %v9148_v36, 1  ;;  %v18986_v30 = vpop.f32.mrb[28].mxu0 }
 0x375   :  { %v8263_v51 = vsel %vm17153_vm7, %v7728_v2, %v8262_v31  ;;  %v7188_v13 = vmul.f32 %v15963_v46, %v18799_v52  ;;  %v18992_v34 = vpop.f32.mrb[29].mxu0  ;;  %v16626_v59 = vld [vmem:[#allocation2 + $0x6c] sm:$0xff]   ;;  %v7258_v46 = vadd.f32 %v18999_v8, %v7187_v3  ;;  %v7256_v4 = vadd.f32 %v18999_v8, %v7185_v56  ;;  %v8283_v36 = vld [vmem:[#allocation2 + $0xa8] sm:$0xf]  ;;  %v8276_v44 = vld [vmem:[#allocation2 + $0x9c] sm:$0xf] }
 0x376   :  { %8264 = vst [vmem:[#allocation2 + $0x84] sm:$0xf] %v8263_v51  ;;  %v7754_v61 = vsel %vm17173_vm8, %v7746_v0, %v7753_v28  ;;  %v8274_v58 = vsel %vm17107_vm3, %v7755_v25, %v8273_v18  ;;  %v7736_v7 = vor.u32 %v7734_v19, %v7733_v39  ;;  %v7738_v42 = vrot.slane %v7733_v39, 4  ;;  %v19004_v10 = vpop.f32.mrb[30].mxu0  ;;  %8681 = vst.msk [vmem:[#allocation3 + $0x48] sm:$0xff] %vm1644_vm11, %v16626_v59 }
 0x377   :  { %8272 = vst.msk [vmem:[#allocation2 + $0x94] sm:$0xf] %vm27_vm0, %v7754_v61  ;;  %8275 = vst [vmem:[#allocation2 + $0x98] sm:$0x1] %v8274_v58  ;;  %v9151_v52 = vsel %vm2029_vm9, %v9146_v47, %v9150_v40  ;;  %v7259_v35 = vadd.f32 %v18999_v8, %v7188_v13  ;;  %v7186_v62 = vmul.f32 %v19014_v15, %v18969_v11  ;;  %v9177_v43 = vshrl.u32 %v18978_v48, 16  ;;  %v19019_v63 = vpop.f32.mrb[31].mxu0 }
 0x378   :  { %v7737_v12 = vsel %vm17173_vm8, %v7729_v6, %v7736_v7  ;;  %v8267_v57 = vsel %vm17107_vm3, %v7738_v42, %v8266_v53  ;;  %9454 = vrot.lane.b32.xlu1 %v9151_v52, %s17054_s27  ;;  %v7322_v17 = vmax.f32 %v7258_v46, 0.0  ;;  %v7320_v16 = vmax.f32 %v7256_v4, 0.0  ;;  %v8287_v51 = vld [vmem:[#allocation2 + $0xb0] sm:$0x1]  ;;  %v8280_v7 = vld [vmem:[#allocation2 + $0xa4] sm:$0x1] }
 0x379   :  { %8265 = vst.msk [vmem:[#allocation2 + $0x88] sm:$0xf] %vm27_vm0, %v7737_v12  ;;  %8268 = vst [vmem:[#allocation2 + $0x8c] sm:$0x1] %v8267_v57  ;;  %v7323_v60 = vmax.f32 %v7259_v35, 0.0  ;;  %v9179_v20 = vshll.u32 %v18978_v48, 16  ;;  %v7257_v37 = vadd.f32 %v18999_v8, %v7186_v62  ;;  %v7189_v12 = vmul.f32 %v19014_v15, %v18992_v34 }
 0x37a   :  { %v9184_v5 = vshll.u32 %v16583_v55, 16  ;;  %v9165_v11 = vshrl.u32 %v16584_v23, 16  ;;  %v9167_v41 = vshll.u32 %v16584_v23, 16  ;;  %v15822_v38 = vpack.c.bf16 %v7322_v17, %v7322_v17 }
 0x37b   :  { %v15820_v21 = vpack.c.bf16 %v7320_v16, %v7320_v16  ;;  %v15823_v22 = vpack.c.bf16 %v7323_v60, %v7323_v60  ;;  %v9181_v14 = vrot.slane %v9179_v20, 1  ;;  %v7321_v24 = vmax.f32 %v7257_v37, 0.0 }
 0x37c   :  { %v9186_v0 = vrot.slane %v9184_v5, 1  ;;  %v9169_v26 = vrot.slane %v9167_v41, 1  ;;  %v9172_v31 = vshll.u32 %v16585_v9, 16  ;;  %v7774_v32 = vshrl.u32 %v15822_v38, 16 }
 0x37d   :  { %v7777_v45 = vshll.u32 %v15822_v38, 16  ;;  %v7757_v33 = vshrl.u32 %v15820_v21, 16  ;;  %v7760_v19 = vshll.u32 %v15820_v21, 16  ;;  %v7782_v2 = vshrl.u32 %v15823_v22, 16 }
 0x37e   :  { %v7785_v6 = vshll.u32 %v15823_v22, 16  ;;  %v15821_v18 = vpack.c.bf16 %v7321_v24, %v7321_v24  ;;  %v9182_v47 = vor.u32 %v9181_v14, %v9177_v43  ;;  %v7776_v28 = vrot.slane %v7774_v32, 7  ;;  %v16586_v52 = vld [vmem:[#allocation2 + $0x90] sm:$0xff]   ;;  %v16587_v46 = vld [vmem:[#allocation2 + $0x98] ss:$0 sps:$4 sm:$0x11]  }
 0x37f   :  { %v7759_v25 = vrot.slane %v7757_v33, 7  ;;  %v9170_v39 = vor.u32 %v9169_v26, %v9165_v11  ;;  %v9174_v40 = vrot.slane %v9172_v31, 1  ;;  %v7784_v48 = vrot.slane %v7782_v2, 7  ;;  %v16629_v57 = vld [vmem:[#allocation2 + $0x90] sm:$0xff]  }
 0x380   :  { %v7765_v53 = vshrl.u32 %v15821_v18, 16  ;;  %v7768_v3 = vshll.u32 %v15821_v18, 16  ;;  %v9187_v56 = vsel %vm2029_vm9, %v9182_v47, %v9186_v0  ;;  %v7779_v13 = vor.u32 %v7777_v45, %v7776_v28  ;;  %v16588_v60 = vld [vmem:[#allocation2 + $0x84] sm:$0xff]   ;;  %8684 = vst.msk [vmem:[#allocation3 + $0x60] sm:$0xff] %vm1644_vm11, %v16629_v57 }
 0x381   :  { %v7780_v55 = vrot.slane %v7776_v28, 4  ;;  %v7762_v61 = vor.u32 %v7760_v19, %v7759_v25  ;;  %v7763_v58 = vrot.slane %v7759_v25, 4  ;;  %9460 = vrot.lane.b32.xlu0 %v9187_v56, %s17054_s27  ;;  %v7787_v42 = vor.u32 %v7785_v6, %v7784_v48  ;;  %v16630_v37 = vld [vmem:[#allocation2 + $0x84] sm:$0xff]   ;;  %v16589_v24 = vld [vmem:[#allocation2 + $0x8c] ss:$0 sps:$4 sm:$0x11]  }
 0x382   :  { %v7789_v23 = vrot.slane %v7784_v48, 4  ;;  %v7767_v54 = vrot.slane %v7765_v53, 7  ;;  %v9175_v59 = vsel %vm2029_vm9, %v9170_v39, %v9174_v40  ;;  %v8284_v4 = vsel %vm17153_vm7, %v7779_v13, %v8283_v36  ;;  %8683 = vst.msk [vmem:[#allocation3 + $0x58] sm:$0xff] %vm1644_vm11, %v16630_v37 }
 0x383   :  { %v8277_v35 = vsel %vm17153_vm7, %v7762_v61, %v8276_v44  ;;  %9458 = vrot.lane.b32.xlu1 %v9175_v59, %s17054_s27  ;;  %v7191_v9 = vmul.f32 %v19014_v15, %v18986_v30  ;;  %8285 = vst [vmem:[#allocation2 + $0xa8] sm:$0xf] %v8284_v4  ;;  %v7788_v62 = vsel %vm17173_vm8, %v7780_v55, %v7787_v42  ;;  %v15970_v20 = vpop.f32.mrb[32].mxu0  ;;  %v9201_v22 = vshrl.u32 %v16586_v52, 16  ;;  %v8290_v42 = vld [vmem:[#allocation2 + $0xb4] sm:$0xf] }
 0x384   :  { %8278 = vst [vmem:[#allocation2 + $0x9c] sm:$0xf] %v8277_v35  ;;  %v8288_v43 = vsel %vm17107_vm3, %v7789_v23, %v8287_v51  ;;  %v7770_v17 = vor.u32 %v7768_v3, %v7767_v54  ;;  %v7772_v16 = vrot.slane %v7767_v54, 4  ;;  %8286 = vst.msk [vmem:[#allocation2 + $0xac] sm:$0xf] %vm27_vm0, %v7788_v62  ;;  %v7260_v34 = vadd.f32 %v18999_v8, %v7189_v12  ;;  %v19049_v41 = vpop.f32.mrb[33].mxu0 }
 0x385   :  { %8289 = vst [vmem:[#allocation2 + $0xb0] sm:$0x1] %v8288_v43  ;;  %v7262_v30 = vadd.f32 %v18999_v8, %v7191_v9  ;;  %v7192_v5 = vmul.f32 %v19014_v15, %v19004_v10  ;;  %v7190_v11 = vmul.f32 %v19014_v15, %v19019_v63  ;;  %v9203_v14 = vshll.u32 %v16586_v52, 16  ;;  %v15971_v0 = vpop.f32.mrb[34].mxu0  ;;  %v8297_v3 = vld [vmem:[#allocation2 + $0xc0] sm:$0xf] }
 0x386   :  { %v7771_v38 = vsel %vm17173_vm8, %v7763_v58, %v7770_v17  ;;  %v8281_v21 = vsel %vm17107_vm3, %v7772_v16, %v8280_v7  ;;  %v7324_v63 = vmax.f32 %v7260_v34, 0.0  ;;  %v7030_v32 = vpop.f32.mrb[35].mxu0  ;;  %v9208_v33 = vshll.u32 %v16587_v46, 16  ;;  %v8301_v62 = vld [vmem:[#allocation2 + $0xc8] sm:$0x1] }
 0x387   :  { %8279 = vst.msk [vmem:[#allocation2 + $0xa0] sm:$0xf] %vm27_vm0, %v7771_v38  ;;  %8282 = vst [vmem:[#allocation2 + $0xa4] sm:$0x1] %v8281_v21  ;;  %v7326_v10 = vmax.f32 %v7262_v30, 0.0  ;;  %v7263_v26 = vadd.f32 %v18999_v8, %v7192_v5  ;;  %v7261_v31 = vadd.f32 %v18999_v8, %v7190_v11  ;;  %v9205_v45 = vrot.slane %v9203_v14, 1 }
 0x388   :  { %v9189_v19 = vshrl.u32 %v16588_v60, 16  ;;  %v9191_v36 = vshll.u32 %v16588_v60, 16  ;;  %v15824_v2 = vpack.c.bf16 %v7324_v63, %v7324_v63  ;;  %v9210_v28 = vrot.slane %v9208_v33, 1  ;;  %v8294_v43 = vld [vmem:[#allocation2 + $0xbc] sm:$0x1] }
 0x389   :  { %v15826_v44 = vpack.c.bf16 %v7326_v10, %v7326_v10  ;;  %v7327_v6 = vmax.f32 %v7263_v26, 0.0  ;;  %v7325_v18 = vmax.f32 %v7261_v31, 0.0  ;;  %v9206_v47 = vor.u32 %v9205_v45, %v9201_v22 }
 0x38a   :  { %v9193_v25 = vrot.slane %v9191_v36, 1  ;;  %v9196_v39 = vshll.u32 %v16589_v24, 16  ;;  %v7791_v51 = vshrl.u32 %v15824_v2, 16  ;;  %v7794_v53 = vshll.u32 %v15824_v2, 16 }
 0x38b   :  { %v7808_v40 = vshrl.u32 %v15826_v44, 16  ;;  %v7811_v48 = vshll.u32 %v15826_v44, 16  ;;  %v15827_v56 = vpack.c.bf16 %v7327_v6, %v7327_v6  ;;  %v15825_v13 = vpack.c.bf16 %v7325_v18, %v7325_v18  ;;  %v16590_v30 = vld [vmem:[#allocation2 + $0xa8] sm:$0xff]  }
 0x38c   :  { %v9211_v55 = vsel %vm2029_vm9, %v9206_v47, %v9210_v28  ;;  %v9194_v61 = vor.u32 %v9193_v25, %v9189_v19  ;;  %v7793_v7 = vrot.slane %v7791_v51, 7  ;;  %v9198_v23 = vrot.slane %v9196_v39, 1  ;;  %v16591_v34 = vld [vmem:[#allocation2 + $0xb0] ss:$0 sps:$4 sm:$0x11]   ;;  %v16635_v22 = vld [vmem:[#allocation2 + $0xa8] sm:$0xff]  }
 0x38d   :  { %v7810_v58 = vrot.slane %v7808_v40, 7  ;;  %9464 = vrot.lane.b32.xlu0 %v9211_v55, %s17054_s27  ;;  %v7195_v54 = vmul.f32 %v19014_v15, %v15970_v20  ;;  %v7816_v59 = vshrl.u32 %v15827_v56, 16  ;;  %v7819_v52 = vshll.u32 %v15827_v56, 16  ;;  %8686 = vst.msk [vmem:[#allocation3 + $0x70] sm:$0xff] %vm1644_vm11, %v16635_v22  ;;  %v8315_v22 = vld [vmem:[#allocation2 + $0xf8] sm:$0x1] }
 0x38e   :  { %v7799_v46 = vshrl.u32 %v15825_v13, 16  ;;  %v7802_v4 = vshll.u32 %v15825_v13, 16  ;;  %v7796_v12 = vor.u32 %v7794_v53, %v7793_v7  ;;  %v7797_v57 = vrot.slane %v7793_v7, 4  ;;  %v19065_v5 = vld [vmem:[#allocation2 + $0x9c] sm:$0xff]  }
 0x38f   :  { %v7813_v35 = vor.u32 %v7811_v48, %v7810_v58  ;;  %v7814_v9 = vrot.slane %v7810_v58, 4  ;;  %v7818_v17 = vrot.slane %v7816_v59, 7  ;;  %v9199_v60 = vsel %vm2029_vm9, %v9194_v61, %v9198_v23  ;;  %v16636_v19 = vld [vmem:[#allocation2 + $0x9c] sm:$0xff]   ;;  %v8311_v61 = vld [vmem:[#allocation2 + $0xf0] sm:$0xf] }
 0x390   :  { %v7801_v16 = vrot.slane %v7799_v46, 7  ;;  %v7266_v37 = vadd.f32 %v18999_v8, %v7195_v54  ;;  %v8291_v11 = vsel %vm17153_vm7, %v7796_v12, %v8290_v42  ;;  %9462 = vrot.lane.b32.xlu1 %v9199_v60, %s17054_s27  ;;  %v7193_v38 = vmul.f32 %v19014_v15, %v19049_v41  ;;  %8685 = vst.msk [vmem:[#allocation3 + $0x68] sm:$0xff] %vm1644_vm11, %v16636_v19  ;;  %v8308_v19 = vld [vmem:[#allocation2 + $0xec] sm:$0x1] }
 0x391   :  { %v8298_v20 = vsel %vm17153_vm7, %v7813_v35, %v8297_v3  ;;  %v7196_v21 = vmul.f32 %v19014_v15, %v15971_v0  ;;  %8292 = vst [vmem:[#allocation2 + $0xb4] sm:$0xf] %v8291_v11  ;;  %v7821_v14 = vor.u32 %v7819_v52, %v7818_v17  ;;  %v7823_v24 = vrot.slane %v7818_v17, 4 }
 0x392   :  { %8299 = vst [vmem:[#allocation2 + $0xc0] sm:$0xf] %v8298_v20  ;;  %v7804_v10 = vor.u32 %v7802_v4, %v7801_v16  ;;  %v7806_v63 = vrot.slane %v7801_v16, 4  ;;  %v7330_v26 = vmax.f32 %v7266_v37, 0.0  ;;  %v7264_v31 = vadd.f32 %v18999_v8, %v7193_v38  ;;  %v8304_v4 = vld [vmem:[#allocation2 + $0xe4] sm:$0xf] }
 0x393   :  { %v7267_v45 = vadd.f32 %v18999_v8, %v7196_v21  ;;  %v7194_v33 = vmul.f32 %v19014_v15, %v7030_v32  ;;  %v7822_v41 = vsel %vm17173_vm8, %v7814_v9, %v7821_v14  ;;  %v8302_v0 = vsel %vm17107_vm3, %v7823_v24, %v8301_v62  ;;  %v15974_v2 = vpop.f32.mrb[36].mxu0 }
 0x394   :  { %v7805_v36 = vsel %vm17173_vm8, %v7797_v57, %v7804_v10  ;;  %v8295_v44 = vsel %vm17107_vm3, %v7806_v63, %v8294_v43  ;;  %8300 = vst.msk [vmem:[#allocation2 + $0xc4] sm:$0xf] %vm27_vm0, %v7822_v41  ;;  %8303 = vst [vmem:[#allocation2 + $0xc8] sm:$0x1] %v8302_v0  ;;  %v15830_v32 = vpack.c.bf16 %v7330_v26, %v7330_v26  ;;  %v7328_v6 = vmax.f32 %v7264_v31, 0.0  ;;  %v7043_v28 = vpop.f32.mrb[37].mxu0 }
 0x395   :  { %8293 = vst.msk [vmem:[#allocation2 + $0xb8] sm:$0xf] %vm27_vm0, %v7805_v36  ;;  %8296 = vst [vmem:[#allocation2 + $0xbc] sm:$0x1] %v8295_v44  ;;  %v7331_v18 = vmax.f32 %v7267_v45, 0.0  ;;  %v7265_v47 = vadd.f32 %v18999_v8, %v7194_v33  ;;  %v9225_v25 = vshrl.u32 %v16590_v30, 16  ;;  %v7199_v26 = vmul.f32 %v19014_v15, %v15974_v2 }
 0x396   :  { %v9227_v39 = vshll.u32 %v16590_v30, 16  ;;  %v9232_v40 = vshll.u32 %v16591_v34, 16  ;;  %v9213_v48 = vshrl.u32 %v19065_v5, 16  ;;  %v15975_v51 = vpop.f32.mrb[38].mxu0  ;;  %v7842_v53 = vshrl.u32 %v15830_v32, 16  ;;  %v16648_v31 = vld [vmem:[#allocation2 + $0xd8] sm:$0xff]  }
 0x397   :  { %v7845_v3 = vshll.u32 %v15830_v32, 16  ;;  %v15828_v56 = vpack.c.bf16 %v7328_v6, %v7328_v6  ;;  %v15831_v13 = vpack.c.bf16 %v7331_v18, %v7331_v18  ;;  %v7046_v55 = vpop.f32.mrb[39].mxu0  ;;  %v7329_v58 = vmax.f32 %v7265_v47, 0.0  ;;  %v16593_v57 = vld [vmem:[#allocation2 + $0xa4] ss:$0 sps:$4 sm:$0x11]  }
 0x398   :  { %v9229_v7 = vrot.slane %v9227_v39, 1  ;;  %v9234_v42 = vrot.slane %v9232_v40, 1  ;;  %v9215_v23 = vshll.u32 %v19065_v5, 16  ;;  %v7844_v54 = vrot.slane %v7842_v53, 7  ;;  %8688 = vst.msk [vmem:[#allocation3 + $0x80] sm:$0xff] %vm1644_vm11, %v16648_v31 }
 0x399   :  { %v7825_v59 = vshrl.u32 %v15828_v56, 16  ;;  %v7828_v52 = vshll.u32 %v15828_v56, 16  ;;  %v7850_v46 = vshrl.u32 %v15831_v13, 16  ;;  %v7853_v35 = vshll.u32 %v15831_v13, 16 }
 0x39a   :  { %v15829_v9 = vpack.c.bf16 %v7329_v58, %v7329_v58  ;;  %v9230_v12 = vor.u32 %v9229_v7, %v9225_v25  ;;  %v9217_v62 = vrot.slane %v9215_v23, 1  ;;  %v7847_v43 = vor.u32 %v7845_v3, %v7844_v54 }
 0x39b   :  { %v7848_v17 = vrot.slane %v7844_v54, 4  ;;  %v7827_v16 = vrot.slane %v7825_v59, 7  ;;  %v7852_v60 = vrot.slane %v7850_v46, 7  ;;  %v9220_v63 = vshll.u32 %v16593_v57, 16 }
 0x39c   :  { %v7833_v37 = vshrl.u32 %v15829_v9, 16  ;;  %v7836_v30 = vshll.u32 %v15829_v9, 16  ;;  %v9235_v34 = vsel %vm2029_vm9, %v9230_v12, %v9234_v42  ;;  %v9218_v20 = vor.u32 %v9217_v62, %v9213_v48  ;;  %v16643_v14 = vld [vmem:[#allocation2 + $0xb4] sm:$0xff]   ;;  %v16595_v36 = vld [vmem:[#allocation2 + $0xbc] ss:$0 sps:$4 sm:$0x11]  }
 0x39d   :  { %v8312_v5 = vsel %vm17153_vm7, %v7847_v43, %v8311_v61  ;;  %v7830_v11 = vor.u32 %v7828_v52, %v7827_v16  ;;  %v7831_v38 = vrot.slane %v7827_v16, 4  ;;  %v7855_v21 = vor.u32 %v7853_v35, %v7852_v60  ;;  %9468 = vrot.lane.b32.xlu0 %v9235_v34, %s17054_s27  ;;  %8687 = vst.msk [vmem:[#allocation3 + $0x78] sm:$0xff] %vm1644_vm11, %v16643_v14  ;;  %v16594_v18 = vld [vmem:[#allocation2 + $0xb4] sm:$0xff]  }
 0x39e   :  { %8313 = vst [vmem:[#allocation2 + $0xf0] sm:$0xf] %v8312_v5  ;;  %v7857_v24 = vrot.slane %v7852_v60, 4  ;;  %v7835_v10 = vrot.slane %v7833_v37, 7  ;;  %v7197_v41 = vmul.f32 %v19014_v15, %v7043_v28  ;;  %v7200_v0 = vmul.f32 %v19014_v15, %v15975_v51 }
 0x39f   :  { %v8305_v45 = vsel %vm17153_vm7, %v7830_v11, %v8304_v4  ;;  %v7856_v33 = vsel %vm17173_vm8, %v7848_v17, %v7855_v21  ;;  %v9222_v6 = vrot.slane %v9220_v63, 1  ;;  %v7270_v47 = vadd.f32 %v18999_v8, %v7199_v26 }
 0x3a0   :  { %8306 = vst [vmem:[#allocation2 + $0xe4] sm:$0xf] %v8305_v45  ;;  %v8316_v44 = vsel %vm17107_vm3, %v7857_v24, %v8315_v22  ;;  %8314 = vst.msk [vmem:[#allocation2 + $0xf4] sm:$0xf] %vm27_vm0, %v7856_v33  ;;  %v7838_v2 = vor.u32 %v7836_v30, %v7835_v10  ;;  %v7840_v32 = vrot.slane %v7835_v10, 4  ;;  %v7268_v28 = vadd.f32 %v18999_v8, %v7197_v41 }
 0x3a1   :  { %8317 = vst [vmem:[#allocation2 + $0xf8] sm:$0x1] %v8316_v44  ;;  %v7271_v25 = vadd.f32 %v18999_v8, %v7200_v0  ;;  %v7198_v39 = vmul.f32 %v19014_v15, %v7046_v55  ;;  %v9223_v51 = vsel %vm2029_vm9, %v9218_v20, %v9222_v6  ;;  %v7334_v53 = vmax.f32 %v7270_v47, 0.0  ;;  %v8322_v0 = vld [vmem:[#allocation2 + $0x104] sm:$0x1] }
 0x3a2   :  { %v7839_v40 = vsel %vm17173_vm8, %v7831_v38, %v7838_v2  ;;  %v8309_v48 = vsel %vm17107_vm3, %v7840_v32, %v8308_v19  ;;  %9466 = vrot.lane.b32.xlu1 %v9223_v51, %s17054_s27  ;;  %v7332_v3 = vmax.f32 %v7268_v28, 0.0  ;;  %v9237_v61 = vshrl.u32 %v16594_v18, 16  ;;  %v8329_v38 = vld [vmem:[#allocation2 + $0x110] sm:$0x1] }
 0x3a3   :  { %8307 = vst.msk [vmem:[#allocation2 + $0xe8] sm:$0xf] %vm27_vm0, %v7839_v40  ;;  %8310 = vst [vmem:[#allocation2 + $0xec] sm:$0x1] %v8309_v48  ;;  %v7335_v56 = vmax.f32 %v7271_v25, 0.0  ;;  %v7269_v13 = vadd.f32 %v18999_v8, %v7198_v39  ;;  %v9239_v55 = vshll.u32 %v16594_v18, 16  ;;  %v9259_v7 = vsel %vm2029_vm9, %v18839_v50, %v18837_v29 }
 0x3a4   :  { %v9244_v58 = vshll.u32 %v16595_v36, 16  ;;  %v15978_v42 = vpop.f32.mrb[40].mxu0  ;;  %v15834_v23 = vpack.c.bf16 %v7334_v53, %v7334_v53  ;;  %v15832_v54 = vpack.c.bf16 %v7332_v3, %v7332_v3  ;;  %9472 = vrot.lane.b32.xlu0 %v9259_v7, %s17054_s27  ;;  %v8325_v29 = vld [vmem:[#allocation2 + $0x108] sm:$0xf]  ;;  %v8318_v50 = vld [vmem:[#allocation2 + $0xfc] sm:$0xf] }
 0x3a5   :  { %v15835_v59 = vpack.c.bf16 %v7335_v56, %v7335_v56  ;;  %v7333_v52 = vmax.f32 %v7269_v13, 0.0  ;;  %v7059_v46 = vpop.f32.mrb[41].mxu0  ;;  %v9241_v4 = vrot.slane %v9239_v55, 1  ;;  %v7203_v9 = vmul.f32 %v19014_v15, %v15978_v42 }
 0x3a6   :  { %v9246_v35 = vrot.slane %v9244_v58, 1  ;;  %v7201_v12 = vmul.f32 %v19014_v15, %v7059_v46  ;;  %v15979_v57 = vpop.f32.mrb[42].mxu0  ;;  %v7876_v62 = vshrl.u32 %v15834_v23, 16  ;;  %v7879_v43 = vshll.u32 %v15834_v23, 16 }
 0x3a7   :  { %v7859_v17 = vshrl.u32 %v15832_v54, 16  ;;  %v7862_v16 = vshll.u32 %v15832_v54, 16  ;;  %v7884_v60 = vshrl.u32 %v15835_v59, 16  ;;  %v7887_v37 = vshll.u32 %v15835_v59, 16  ;;  %v7062_v20 = vpop.f32.mrb[43].mxu0  ;;  %v16653_v14 = vld [vmem:[#allocation2 + $0xf0] sm:$0xff]  }
 0x3a8   :  { %v15833_v30 = vpack.c.bf16 %v7333_v52, %v7333_v52  ;;  %v9242_v34 = vor.u32 %v9241_v4, %v9237_v61  ;;  %v7878_v5 = vrot.slane %v7876_v62, 7  ;;  %v7274_v21 = vadd.f32 %v18999_v8, %v7203_v9  ;;  %v16598_v31 = vld [vmem:[#allocation2 + $0xf0] sm:$0xff]   ;;  %8690 = vst.msk [vmem:[#allocation3 + $0x90] sm:$0xff] %vm1644_vm11, %v16653_v14  ;;  %v16599_v6 = vld [vmem:[#allocation2 + $0xf8] ss:$0 sps:$4 sm:$0x11]  }
 0x3a9   :  { %v7861_v11 = vrot.slane %v7859_v17, 7  ;;  %v7272_v22 = vadd.f32 %v18999_v8, %v7201_v12  ;;  %v7886_v24 = vrot.slane %v7884_v60, 7  ;;  %v7204_v25 = vmul.f32 %v19014_v15, %v15979_v57 }
 0x3aa   :  { %v7867_v10 = vshrl.u32 %v15833_v30, 16  ;;  %v7870_v63 = vshll.u32 %v15833_v30, 16  ;;  %v9247_v26 = vsel %vm2029_vm9, %v9242_v34, %v9246_v35  ;;  %v7881_v45 = vor.u32 %v7879_v43, %v7878_v5  ;;  %v16654_v53 = vld [vmem:[#allocation2 + $0xe4] sm:$0xff]   ;;  %v16601_v58 = vld [vmem:[#allocation2 + $0xec] ss:$0 sps:$4 sm:$0x11]  }
 0x3ab   :  { %v7882_v33 = vrot.slane %v7878_v5, 4  ;;  %v7864_v19 = vor.u32 %v7862_v16, %v7861_v11  ;;  %v7865_v41 = vrot.slane %v7861_v11, 4  ;;  %9470 = vrot.lane.b32.xlu1 %v9247_v26, %s17054_s27  ;;  %v7889_v36 = vor.u32 %v7887_v37, %v7886_v24  ;;  %v16600_v55 = vld [vmem:[#allocation2 + $0xe4] sm:$0xff]   ;;  %8689 = vst.msk [vmem:[#allocation3 + $0x88] sm:$0xff] %vm1644_vm11, %v16654_v53 }
 0x3ac   :  { %v7891_v44 = vrot.slane %v7886_v24, 4  ;;  %v7869_v2 = vrot.slane %v7867_v10, 7  ;;  %v7338_v32 = vmax.f32 %v7274_v21, 0.0  ;;  %v8326_v18 = vsel %vm17153_vm7, %v7881_v45, %v8325_v29  ;;  %v8339_v29 = vld [vmem:[#allocation2 + $0x120] sm:$0xf] }
 0x3ad   :  { %v8319_v47 = vsel %vm17153_vm7, %v7864_v19, %v8318_v50  ;;  %v7336_v28 = vmax.f32 %v7272_v22, 0.0  ;;  %8327 = vst [vmem:[#allocation2 + $0x108] sm:$0xf] %v8326_v18  ;;  %v7890_v39 = vsel %vm17173_vm8, %v7882_v33, %v7889_v36  ;;  %v7275_v13 = vadd.f32 %v18999_v8, %v7204_v25  ;;  %v8332_v50 = vld [vmem:[#allocation2 + $0x114] sm:$0xf] }
 0x3ae   :  { %8320 = vst [vmem:[#allocation2 + $0xfc] sm:$0xf] %v8319_v47  ;;  %v8330_v40 = vsel %vm17107_vm3, %v7891_v44, %v8329_v38  ;;  %v7872_v48 = vor.u32 %v7870_v63, %v7869_v2  ;;  %v7874_v51 = vrot.slane %v7869_v2, 4  ;;  %8328 = vst.msk [vmem:[#allocation2 + $0x10c] sm:$0xf] %vm27_vm0, %v7890_v39  ;;  %v15838_v3 = vpack.c.bf16 %v7338_v32, %v7338_v32 }
 0x3af   :  { %8331 = vst [vmem:[#allocation2 + $0x110] sm:$0x1] %v8330_v40  ;;  %v15836_v56 = vpack.c.bf16 %v7336_v28, %v7336_v28  ;;  %v9273_v61 = vshrl.u32 %v16598_v31, 16  ;;  %v9275_v23 = vshll.u32 %v16598_v31, 16  ;;  %v9280_v54 = vshll.u32 %v16599_v6, 16 }
 0x3b0   :  { %v7873_v7 = vsel %vm17173_vm8, %v7865_v41, %v7872_v48  ;;  %v8323_v42 = vsel %vm17107_vm3, %v7874_v51, %v8322_v0  ;;  %v7910_v59 = vshrl.u32 %v15838_v3, 16  ;;  %v7913_v52 = vshll.u32 %v15838_v3, 16  ;;  %v8343_v33 = vld [vmem:[#allocation2 + $0x128] sm:$0x1]  ;;  %v8336_v3 = vld [vmem:[#allocation2 + $0x11c] sm:$0x1] }
 0x3b1   :  { %8321 = vst.msk [vmem:[#allocation2 + $0x100] sm:$0xf] %vm27_vm0, %v7873_v7  ;;  %8324 = vst [vmem:[#allocation2 + $0x104] sm:$0x1] %v8323_v42  ;;  %v7893_v46 = vshrl.u32 %v15836_v56, 16  ;;  %v7896_v4 = vshll.u32 %v15836_v56, 16  ;;  %v7202_v57 = vmul.f32 %v19014_v15, %v7062_v20 }
 0x3b2   :  { %v7339_v35 = vmax.f32 %v7275_v13, 0.0  ;;  %v9277_v9 = vrot.slane %v9275_v23, 1  ;;  %v9282_v12 = vrot.slane %v9280_v54, 1  ;;  %v7912_v62 = vrot.slane %v7910_v59, 7 }
 0x3b3   :  { %v19150_v43 = vrot.slane %v7893_v46, 7  ;;  %v9261_v17 = vshrl.u32 %v16600_v55, 16  ;;  %v9263_v16 = vshll.u32 %v16600_v55, 16  ;;  %v7273_v30 = vadd.f32 %v18999_v8, %v7202_v57  ;;  %v15982_v5 = vpop.f32.mrb[44].mxu0 }
 0x3b4   :  { %v15839_v60 = vpack.c.bf16 %v7339_v35, %v7339_v35  ;;  %v9278_v37 = vor.u32 %v9277_v9, %v9273_v61  ;;  %v9268_v34 = vshll.u32 %v16601_v58, 16  ;;  %v7915_v11 = vor.u32 %v7913_v52, %v7912_v62  ;;  %v7075_v20 = vpop.f32.mrb[45].mxu0 }
 0x3b5   :  { %v7916_v38 = vrot.slane %v7912_v62, 4  ;;  %v7898_v21 = vor.u32 %v7896_v4, %v19150_v43  ;;  %v7899_v22 = vrot.slane %v19150_v43, 4  ;;  %v7337_v63 = vmax.f32 %v7273_v30, 0.0  ;;  %v15983_v26 = vpop.f32.mrb[46].mxu0  ;;  %v16604_v0 = vld [vmem:[#allocation2 + $0x108] sm:$0xff]  }
 0x3b6   :  { %v7918_v14 = vshrl.u32 %v15839_v60, 16  ;;  %v7921_v24 = vshll.u32 %v15839_v60, 16  ;;  %v9283_v10 = vsel %vm2029_vm9, %v9278_v37, %v9282_v12  ;;  %v8340_v31 = vsel %vm17153_vm7, %v7915_v11, %v8339_v29  ;;  %v7078_v36 = vpop.f32.mrb[47].mxu0  ;;  %v16605_v18 = vld [vmem:[#allocation2 + $0x110] ss:$0 sps:$4 sm:$0x11]  }
 0x3b7   :  { %v8333_v45 = vsel %vm17153_vm7, %v7898_v21, %v8332_v50  ;;  %9476 = vrot.lane.b32.xlu0 %v9283_v10, %s17054_s27  ;;  %v9265_v19 = vrot.slane %v9263_v16, 1  ;;  %v9270_v41 = vrot.slane %v9268_v34, 1  ;;  %8341 = vst [vmem:[#allocation2 + $0x120] sm:$0xf] %v8340_v31  ;;  %v15837_v2 = vpack.c.bf16 %v7337_v63, %v7337_v63  ;;  %v16671_v60 = vld [vmem:[#allocation2 + $0x108] sm:$0xff]  }
 0x3b8   :  { %8334 = vst [vmem:[#allocation2 + $0x114] sm:$0xf] %v8333_v45  ;;  %v7920_v44 = vrot.slane %v7918_v14, 7  ;;  %v7207_v32 = vmul.f32 %v19014_v15, %v15982_v5  ;;  %v7205_v6 = vmul.f32 %v19014_v15, %v7075_v20  ;;  %v7208_v28 = vmul.f32 %v19014_v15, %v15983_v26  ;;  %v19168_v58 = vld [vmem:[#allocation2 + $0xfc] sm:$0xff]   ;;  %8692 = vst.msk [vmem:[#allocation3 + $0xa0] sm:$0xff] %vm1644_vm11, %v16671_v60 }
 0x3b9   :  { %v9266_v47 = vor.u32 %v9265_v19, %v9261_v17  ;;  %v9297_v25 = vshrl.u32 %v16604_v0, 16  ;;  %v9299_v39 = vshll.u32 %v16604_v0, 16  ;;  %v7901_v51 = vshrl.u32 %v15837_v2, 16  ;;  %v16608_v62 = vld [vmem:[#allocation2 + $0x104] ss:$0 sps:$4 sm:$0x11]  }
 0x3ba   :  { %v7923_v40 = vor.u32 %v7921_v24, %v7920_v44  ;;  %v7925_v48 = vrot.slane %v7920_v44, 4  ;;  %v7904_v53 = vshll.u32 %v15837_v2, 16  ;;  %v7278_v13 = vadd.f32 %v18999_v8, %v7207_v32  ;;  %v8346_v24 = vld [vmem:[#allocation2 + $0x12c] sm:$0xf] }
 0x3bb   :  { %v9271_v56 = vsel %vm2029_vm9, %v9266_v47, %v9270_v41  ;;  %v7276_v61 = vadd.f32 %v18999_v8, %v7205_v6  ;;  %v7279_v55 = vadd.f32 %v18999_v8, %v7208_v28  ;;  %v7903_v23 = vrot.slane %v7901_v51, 7 }
 0x3bc   :  { %v7924_v7 = vsel %vm17173_vm8, %v7916_v38, %v7923_v40  ;;  %v8344_v42 = vsel %vm17107_vm3, %v7925_v48, %v8343_v33  ;;  %9474 = vrot.lane.b32.xlu1 %v9271_v56, %s17054_s27  ;;  %v9301_v54 = vrot.slane %v9299_v39, 1  ;;  %v7342_v59 = vmax.f32 %v7278_v13, 0.0  ;;  %v8357_v33 = vld [vmem:[#allocation2 + $0x140] sm:$0x1] }
 0x3bd   :  { %8342 = vst.msk [vmem:[#allocation2 + $0x124] sm:$0xf] %vm27_vm0, %v7924_v7  ;;  %8345 = vst [vmem:[#allocation2 + $0x128] sm:$0x1] %v8344_v42  ;;  %v7340_v52 = vmax.f32 %v7276_v61, 0.0  ;;  %v7343_v46 = vmax.f32 %v7279_v55, 0.0  ;;  %v7906_v35 = vor.u32 %v7904_v53, %v7903_v23  ;;  %v7206_v57 = vmul.f32 %v19014_v15, %v7078_v36 }
 0x3be   :  { %v9304_v4 = vshll.u32 %v16605_v18, 16  ;;  %v7908_v9 = vrot.slane %v7903_v23, 4  ;;  %v9302_v12 = vor.u32 %v9301_v54, %v9297_v25  ;;  %v15842_v43 = vpack.c.bf16 %v7342_v59, %v7342_v59  ;;  %v9445_v29 = vpop.permute.xlu0 %9444  ;;  %v16672_v15 = vld [vmem:[#allocation2 + $0xfc] sm:$0xff]  }
 0x3bf   :  { %v15840_v17 = vpack.c.bf16 %v7340_v52, %v7340_v52  ;;  %v15843_v16 = vpack.c.bf16 %v7343_v46, %v7343_v46  ;;  %v7907_v37 = vsel %vm17173_vm8, %v7899_v22, %v7906_v35  ;;  %9538 = vst.msk [vmem:[#allocation3 + $0x10] sm:$0xff] %vm2510_vm12, %v9445_v29  ;;  %v7277_v34 = vadd.f32 %v18999_v8, %v7206_v57  ;;  %v8353_v22 = vld [vmem:[#allocation2 + $0x138] sm:$0xf]  ;;  %v19203_v54 = vld [vmem:[%s20675_s2] ss:$0 sm:$0xff] }
 0x3c0   :  { %v9306_v50 = vrot.slane %v9304_v4, 1  ;;  %v8337_v30 = vsel %vm17107_vm3, %v7908_v9, %v8336_v3  ;;  %v9285_v5 = vshrl.u32 %v19168_v58, 16  ;;  %8335 = vst.msk [vmem:[#allocation2 + $0x118] sm:$0xf] %vm27_vm0, %v7907_v37  ;;  %v7944_v11 = vshrl.u32 %v15842_v43, 16  ;;  %v9443_v14 = vpop.permute.xlu1 %9442 }
 0x3c1   :  { %8338 = vst [vmem:[#allocation2 + $0x11c] sm:$0x1] %v8337_v30  ;;  %v7947_v38 = vshll.u32 %v15842_v43, 16  ;;  %v7927_v21 = vshrl.u32 %v15840_v17, 16  ;;  %v7930_v20 = vshll.u32 %v15840_v17, 16  ;;  %v7952_v10 = vshrl.u32 %v15843_v16, 16 }
 0x3c2   :  { %v7955_v63 = vshll.u32 %v15843_v16, 16  ;;  %v9307_v26 = vsel %vm2029_vm9, %v9302_v12, %v9306_v50  ;;  %v7341_v8 = vmax.f32 %v7277_v34, 0.0  ;;  %9537 = vst.msk [vmem:[#allocation3 + $0x8] sm:$0xff] %vm2510_vm12, %v9443_v14  ;;  %v7946_v31 = vrot.slane %v7944_v11, 7  ;;  %v8350_v52 = vld [vmem:[#allocation2 + $0x134] sm:$0x1] }
 0x3c3   :  { %8691 = vst.msk [vmem:[#allocation3 + $0x98] sm:$0xff] %vm1644_vm11, %v16672_v15  ;;  %v7929_v45 = vrot.slane %v7927_v21, 7  ;;  %9480 = vrot.lane.b32.xlu0 %v9307_v26, %s17054_s27  ;;  %v9287_v19 = vshll.u32 %v19168_v58, 16  ;;  %v9292_v41 = vshll.u32 %v16608_v62, 16  ;;  %v7954_v0 = vrot.slane %v7952_v10, 7  ;;  %v15986_v44 = vpop.f32.mrb[48].mxu0 }
 0x3c4   :  { %v15841_v36 = vpack.c.bf16 %v7341_v8, %v7341_v8  ;;  %v7949_v2 = vor.u32 %v7947_v38, %v7946_v31  ;;  %v7950_v32 = vrot.slane %v7946_v31, 4  ;;  %v7091_v47 = vpop.f32.mrb[49].mxu0  ;;  %v16611_v28 = vld [vmem:[#allocation2 + $0x120] sm:$0xff]   ;;  %v16612_v55 = vld [vmem:[#allocation2 + $0x128] ss:$0 sps:$4 sm:$0x11]   ;;  %v7211_v59 = vmul.f32 %v19203_v54, %v15986_v44 }
 0x3c5   :  { %v7932_v6 = vor.u32 %v7930_v20, %v7929_v45  ;;  %v7933_v18 = vrot.slane %v7929_v45, 4  ;;  %v7957_v25 = vor.u32 %v7955_v63, %v7954_v0  ;;  %v7959_v39 = vrot.slane %v7954_v0, 4  ;;  %v15987_v51 = vpop.f32.mrb[50].mxu0  ;;  %v19213_v43 = vld [vmem:[%s20676_s3] ss:$0 sm:$0xff] }
 0x3c6   :  { %v7935_v40 = vshrl.u32 %v15841_v36, 16  ;;  %v7938_v48 = vshll.u32 %v15841_v36, 16  ;;  %v8354_v53 = vsel %vm17153_vm7, %v7949_v2, %v8353_v22  ;;  %v9289_v56 = vrot.slane %v9287_v19, 1  ;;  %v9449_v61 = vpop.permute.xlu0 %9448  ;;  %v7094_v58 = vpop.f32.mrb[51].mxu0  ;;  %v16688_v50 = vld [vmem:[#allocation2 + $0x120] sm:$0xff]  }
 0x3c7   :  { %v8347_v3 = vsel %vm17153_vm7, %v7932_v6, %v8346_v24  ;;  %v9294_v13 = vrot.slane %v9292_v41, 1  ;;  %8355 = vst [vmem:[#allocation2 + $0x138] sm:$0xf] %v8354_v53  ;;  %v7958_v7 = vsel %vm17173_vm8, %v7950_v32, %v7957_v25  ;;  %v8358_v42 = vsel %vm17107_vm3, %v7959_v39, %v8357_v33  ;;  %9540 = vst.msk [vmem:[#allocation3 + $0x20] sm:$0xff] %vm2510_vm12, %v9449_v61  ;;  %v16613_v29 = vld [vmem:[#allocation2 + $0x114] sm:$0xff]  }
 0x3c8   :  { %8348 = vst [vmem:[#allocation2 + $0x12c] sm:$0xf] %v8347_v3  ;;  %v7937_v23 = vrot.slane %v7935_v40, 7  ;;  %8356 = vst.msk [vmem:[#allocation2 + $0x13c] sm:$0xf] %vm27_vm0, %v7958_v7  ;;  %v9290_v46 = vor.u32 %v9289_v56, %v9285_v5  ;;  %v7209_v35 = vmul.f32 %v19203_v54, %v7091_v47  ;;  %v7212_v9 = vmul.f32 %v19203_v54, %v15987_v51  ;;  %v16689_v10 = vld [vmem:[#allocation2 + $0x114] sm:$0xff]  }
 0x3c9   :  { %8359 = vst [vmem:[#allocation2 + $0x140] sm:$0x1] %v8358_v42  ;;  %v9447_v4 = vpop.permute.xlu1 %9446  ;;  %v9321_v12 = vshrl.u32 %v16611_v28, 16  ;;  %v7282_v17 = vadd.f32 %v19213_v43, %v7211_v59  ;;  %v9323_v16 = vshll.u32 %v16611_v28, 16  ;;  %v9328_v34 = vshll.u32 %v16612_v55, 16  ;;  %8694 = vst.msk [vmem:[#allocation3 + $0xb0] sm:$0xff] %vm1644_vm11, %v16688_v50 }
 0x3ca   :  { %v7940_v57 = vor.u32 %v7938_v48, %v7937_v23  ;;  %v7942_v62 = vrot.slane %v7937_v23, 4  ;;  %9539 = vst.msk [vmem:[#allocation3 + $0x18] sm:$0xff] %vm2510_vm12, %v9447_v4  ;;  %v9295_v60 = vsel %vm2029_vm9, %v9290_v46, %v9294_v13  ;;  %v7280_v37 = vadd.f32 %v19213_v43, %v7209_v35  ;;  %v16614_v5 = vld [vmem:[#allocation2 + $0x11c] ss:$0 sps:$4 sm:$0x11]  }
 0x3cb   :  { %v7283_v30 = vadd.f32 %v19213_v43, %v7212_v9  ;;  %9478 = vrot.lane.b32.xlu1 %v9295_v60, %s17054_s27  ;;  %v7346_v38 = vmax.f32 %v7282_v17, 0.0  ;;  %v9325_v21 = vrot.slane %v9323_v16, 1  ;;  %v9330_v22 = vrot.slane %v9328_v34, 1  ;;  %8693 = vst.msk [vmem:[#allocation3 + $0xa8] sm:$0xff] %vm1644_vm11, %v16689_v10  ;;  %v8367_v6 = vld [vmem:[#allocation2 + $0x150] sm:$0xf] }
 0x3cc   :  { %v7941_v15 = vsel %vm17173_vm8, %v7933_v18, %v7940_v57  ;;  %v8351_v11 = vsel %vm17107_vm3, %v7942_v62, %v8350_v52  ;;  %v7344_v20 = vmax.f32 %v7280_v37, 0.0  ;;  %v7210_v24 = vmul.f32 %v19203_v54, %v7094_v58  ;;  %v8360_v40 = vld [vmem:[#allocation2 + $0x144] sm:$0xf]  ;;  %v8371_v13 = vld [vmem:[#allocation2 + $0x158] sm:$0x1] }
 0x3cd   :  { %8349 = vst.msk [vmem:[#allocation2 + $0x130] sm:$0xf] %vm27_vm0, %v7941_v15  ;;  %8352 = vst [vmem:[#allocation2 + $0x134] sm:$0x1] %v8351_v11  ;;  %v7347_v14 = vmax.f32 %v7283_v30, 0.0  ;;  %v15846_v63 = vpack.c.bf16 %v7346_v38, %v7346_v38  ;;  %v9326_v26 = vor.u32 %v9325_v21, %v9321_v12  ;;  %v9309_v8 = vshrl.u32 %v16613_v29, 16 }
 0x3ce   :  { %v9311_v31 = vshll.u32 %v16613_v29, 16  ;;  %v15844_v45 = vpack.c.bf16 %v7344_v20, %v7344_v20  ;;  %v7281_v19 = vadd.f32 %v19213_v43, %v7210_v24  ;;  %v9316_v41 = vshll.u32 %v16614_v5, 16  ;;  %v8364_v5 = vld [vmem:[#allocation2 + $0x14c] sm:$0x1] }
 0x3cf   :  { %v15847_v33 = vpack.c.bf16 %v7347_v14, %v7347_v14  ;;  %v7978_v0 = vshrl.u32 %v15846_v63, 16  ;;  %v7981_v36 = vshll.u32 %v15846_v63, 16  ;;  %v9331_v44 = vsel %vm2029_vm9, %v9326_v26, %v9330_v22  ;;  %v19230_v32 = vld [vmem:[#allocation2 + $0x138] sm:$0xff]  }
 0x3d0   :  { %v9313_v2 = vrot.slane %v9311_v31, 1  ;;  %v7961_v18 = vshrl.u32 %v15844_v45, 16  ;;  %v7964_v47 = vshll.u32 %v15844_v45, 16  ;;  %9484 = vrot.lane.b32.xlu0 %v9331_v44, %s17054_s27  ;;  %v7345_v48 = vmax.f32 %v7281_v19, 0.0 }
 0x3d1   :  { %v7986_v28 = vshrl.u32 %v15847_v33, 16  ;;  %v7989_v25 = vshll.u32 %v15847_v33, 16  ;;  %v7980_v39 = vrot.slane %v7978_v0, 7  ;;  %v9318_v53 = vrot.slane %v9316_v41, 1 }
 0x3d2   :  { %v9314_v51 = vor.u32 %v9313_v2, %v9309_v8  ;;  %v7963_v3 = vrot.slane %v7961_v18, 7  ;;  %v16618_v61 = vld [vmem:[#allocation2 + $0x140] ss:$0 sps:$4 sm:$0x11]   ;;  %v9345_v55 = vshrl.u32 %v19230_v32, 16  ;;  %v9347_v58 = vshll.u32 %v19230_v32, 16 }
 0x3d3   :  { %v7988_v56 = vrot.slane %v7986_v28, 7  ;;  %v7983_v7 = vor.u32 %v7981_v36, %v7980_v39  ;;  %v7984_v42 = vrot.slane %v7980_v39, 4  ;;  %v15845_v23 = vpack.c.bf16 %v7345_v48, %v7345_v48  ;;  %v15990_v52 = vpop.f32.mrb[52].mxu0  ;;  %v16702_v8 = vld [vmem:[#allocation2 + $0x138] sm:$0xff]  }
 0x3d4   :  { %v9319_v59 = vsel %vm2029_vm9, %v9314_v51, %v9318_v53  ;;  %v7966_v46 = vor.u32 %v7964_v47, %v7963_v3  ;;  %v7967_v4 = vrot.slane %v7963_v3, 4  ;;  %v7107_v12 = vpop.f32.mrb[53].mxu0  ;;  %v19237_v57 = vld [vmem:[#allocation2 + $0x12c] sm:$0xff]   ;;  %v7215_v50 = vmul.f32 %v19203_v54, %v15990_v52  ;;  %v16620_v63 = vld [vmem:[#allocation2 + $0x134] ss:$0 sps:$4 sm:$0x11]  }
 0x3d5   :  { %v7991_v35 = vor.u32 %v7989_v25, %v7988_v56  ;;  %v7993_v9 = vrot.slane %v7988_v56, 4  ;;  %9482 = vrot.lane.b32.xlu1 %v9319_v59, %s17054_s27  ;;  %v8368_v62 = vsel %vm17153_vm7, %v7983_v7, %v8367_v6  ;;  %v7969_v17 = vshrl.u32 %v15845_v23, 16  ;;  %v15991_v60 = vpop.f32.mrb[54].mxu0  ;;  %8696 = vst.msk [vmem:[#allocation3 + $0xc0] sm:$0xff] %vm1644_vm11, %v16702_v8  ;;  %v16703_v56 = vld [vmem:[#allocation2 + $0x12c] sm:$0xff]  }
 0x3d6   :  { %v7972_v16 = vshll.u32 %v15845_v23, 16  ;;  %v9453_v29 = vpop.permute.xlu0 %9452  ;;  %8369 = vst [vmem:[#allocation2 + $0x150] sm:$0xf] %v8368_v62  ;;  %v8361_v37 = vsel %vm17153_vm7, %v7966_v46, %v8360_v40  ;;  %v7213_v15 = vmul.f32 %v19203_v54, %v7107_v12  ;;  %v7110_v11 = vpop.f32.mrb[55].mxu0  ;;  %v7286_v21 = vadd.f32 %v19213_v43, %v7215_v50  ;;  %v8374_v59 = vld [vmem:[#allocation2 + $0x15c] sm:$0xf] }
 0x3d7   :  { %v7992_v30 = vsel %vm17173_vm8, %v7984_v42, %v7991_v35  ;;  %v8372_v34 = vsel %vm17107_vm3, %v7993_v9, %v8371_v13  ;;  %9542 = vst.msk [vmem:[#allocation3 + $0x30] sm:$0xff] %vm2510_vm12, %v9453_v29  ;;  %8362 = vst [vmem:[#allocation2 + $0x144] sm:$0xf] %v8361_v37  ;;  %v7971_v38 = vrot.slane %v7969_v17, 7  ;;  %v7216_v20 = vmul.f32 %v19203_v54, %v15991_v60  ;;  %v8381_v13 = vld [vmem:[#allocation2 + $0x168] sm:$0xf] }
 0x3d8   :  { %8370 = vst.msk [vmem:[#allocation2 + $0x154] sm:$0xf] %vm27_vm0, %v7992_v30  ;;  %8373 = vst [vmem:[#allocation2 + $0x158] sm:$0x1] %v8372_v34  ;;  %v9349_v14 = vrot.slane %v9347_v58, 1  ;;  %v7284_v22 = vadd.f32 %v19213_v43, %v7213_v15  ;;  %v9352_v24 = vshll.u32 %v16618_v61, 16  ;;  %v7214_v10 = vmul.f32 %v19203_v54, %v7110_v11 }
 0x3d9   :  { %v9333_v26 = vshrl.u32 %v19237_v57, 16  ;;  %v7974_v31 = vor.u32 %v7972_v16, %v7971_v38  ;;  %v7976_v45 = vrot.slane %v7971_v38, 4  ;;  %v7350_v33 = vmax.f32 %v7286_v21, 0.0  ;;  %8695 = vst.msk [vmem:[#allocation3 + $0xb8] sm:$0xff] %vm1644_vm11, %v16703_v56  ;;  %v8385_v9 = vld [vmem:[#allocation2 + $0x170] sm:$0x1] }
 0x3da   :  { %v7287_v19 = vadd.f32 %v19213_v43, %v7216_v20  ;;  %v7348_v0 = vmax.f32 %v7284_v22, 0.0  ;;  %v9350_v36 = vor.u32 %v9349_v14, %v9345_v55  ;;  %v9354_v44 = vrot.slane %v9352_v24, 1  ;;  %v8378_v50 = vld [vmem:[#allocation2 + $0x164] sm:$0x1] }
 0x3db   :  { %v9451_v41 = vpop.permute.xlu1 %9450  ;;  %v7285_v2 = vadd.f32 %v19213_v43, %v7214_v10  ;;  %v7975_v32 = vsel %vm17173_vm8, %v7967_v4, %v7974_v31  ;;  %v8365_v6 = vsel %vm17107_vm3, %v7976_v45, %v8364_v5  ;;  %v15850_v18 = vpack.c.bf16 %v7350_v33, %v7350_v33 }
 0x3dc   :  { %9541 = vst.msk [vmem:[#allocation3 + $0x28] sm:$0xff] %vm2510_vm12, %v9451_v41  ;;  %v7351_v47 = vmax.f32 %v7287_v19, 0.0  ;;  %8366 = vst [vmem:[#allocation2 + $0x14c] sm:$0x1] %v8365_v6  ;;  %v15848_v28 = vpack.c.bf16 %v7348_v0, %v7348_v0  ;;  %v9355_v25 = vsel %vm2029_vm9, %v9350_v36, %v9354_v44  ;;  %v9335_v40 = vshll.u32 %v19237_v57, 16 }
 0x3dd   :  { %8363 = vst.msk [vmem:[#allocation2 + $0x148] sm:$0xf] %vm27_vm0, %v7975_v32  ;;  %v7349_v39 = vmax.f32 %v7285_v2, 0.0  ;;  %v8012_v48 = vshrl.u32 %v15850_v18, 16  ;;  %v8015_v51 = vshll.u32 %v15850_v18, 16  ;;  %9488 = vrot.lane.b32.xlu0 %v9355_v25, %s17054_s27  ;;  %v9340_v3 = vshll.u32 %v16620_v63, 16 }
 0x3de   :  { %v15851_v53 = vpack.c.bf16 %v7351_v47, %v7351_v47  ;;  %v7995_v61 = vshrl.u32 %v15848_v28, 16  ;;  %v7998_v55 = vshll.u32 %v15848_v28, 16  ;;  %v9337_v7 = vrot.slane %v9335_v40, 1 }
 0x3df   :  { %v15849_v58 = vpack.c.bf16 %v7349_v39, %v7349_v39  ;;  %v16624_v42 = vld [vmem:[#allocation2 + $0x150] sm:$0xff]   ;;  %v8014_v23 = vrot.slane %v8012_v48, 7  ;;  %v9342_v4 = vrot.slane %v9340_v3, 1  ;;  %v16625_v38 = vld [vmem:[#allocation2 + $0x158] ss:$0 sps:$4 sm:$0x11]  }
 0x3e0   :  { %v8020_v52 = vshrl.u32 %v15851_v53, 16  ;;  %v8023_v46 = vshll.u32 %v15851_v53, 16  ;;  %v7997_v35 = vrot.slane %v7995_v61, 7  ;;  %v9338_v62 = vor.u32 %v9337_v7, %v9333_v26  ;;  %v16718_v37 = vld [vmem:[#allocation2 + $0x150] sm:$0xff]  }
 0x3e1   :  { %v8003_v12 = vshrl.u32 %v15849_v58, 16  ;;  %v8006_v57 = vshll.u32 %v15849_v58, 16  ;;  %v8017_v17 = vor.u32 %v8015_v51, %v8014_v23  ;;  %v8018_v16 = vrot.slane %v8014_v23, 4  ;;  %8698 = vst.msk [vmem:[#allocation3 + $0xd0] sm:$0xff] %vm1644_vm11, %v16718_v37  ;;  %v8388_v37 = vld [vmem:[#allocation2 + $0x174] sm:$0xf] }
 0x3e2   :  { %v8022_v29 = vrot.slane %v8020_v52, 7  ;;  %v9369_v60 = vshrl.u32 %v16624_v42, 16  ;;  %v8000_v30 = vor.u32 %v7998_v55, %v7997_v35  ;;  %v8001_v34 = vrot.slane %v7997_v35, 4 }
 0x3e3   :  { %v8005_v5 = vrot.slane %v8003_v12, 7  ;;  %v9343_v15 = vsel %vm2029_vm9, %v9338_v62, %v9342_v4  ;;  %v9457_v11 = vpop.permute.xlu0 %9456  ;;  %v8382_v21 = vsel %vm17153_vm7, %v8017_v17, %v8381_v13  ;;  %v15994_v22 = vpop.f32.mrb[56].mxu0  ;;  %v9371_v24 = vshll.u32 %v16624_v42, 16  ;;  %v16628_v44 = vld [vmem:[#allocation2 + $0x14c] ss:$0 sps:$4 sm:$0x11]  }
 0x3e4   :  { %v8025_v20 = vor.u32 %v8023_v46, %v8022_v29  ;;  %v8027_v14 = vrot.slane %v8022_v29, 4  ;;  %9486 = vrot.lane.b32.xlu1 %v9343_v15, %s17054_s27  ;;  %9544 = vst.msk [vmem:[#allocation3 + $0x40] sm:$0xff] %vm2510_vm12, %v9457_v11  ;;  %v16627_v10 = vld [vmem:[#allocation2 + $0x144] sm:$0xff]   ;;  %8383 = vst [vmem:[#allocation2 + $0x168] sm:$0xf] %v8382_v21  ;;  %v8375_v63 = vsel %vm17153_vm7, %v8000_v30, %v8374_v59  ;;  %v7123_v45 = vpop.f32.mrb[57].mxu0 }
 0x3e5   :  { %v8008_v26 = vor.u32 %v8006_v57, %v8005_v5  ;;  %v8010_v8 = vrot.slane %v8005_v5, 4  ;;  %v7219_v31 = vmul.f32 %v19203_v54, %v15994_v22  ;;  %8376 = vst [vmem:[#allocation2 + $0x15c] sm:$0xf] %v8375_v63  ;;  %v7217_v41 = vmul.f32 %v19203_v54, %v7123_v45  ;;  %v15995_v0 = vpop.f32.mrb[58].mxu0  ;;  %v16719_v2 = vld [vmem:[#allocation2 + $0x144] sm:$0xff]  }
 0x3e6   :  { %v8026_v33 = vsel %vm17173_vm8, %v8018_v16, %v8025_v20  ;;  %v8386_v19 = vsel %vm17107_vm3, %v8027_v14, %v8385_v9  ;;  %v9373_v36 = vrot.slane %v9371_v24, 1  ;;  %v7220_v47 = vmul.f32 %v19203_v54, %v15995_v0  ;;  %v7126_v28 = vpop.f32.mrb[59].mxu0  ;;  %8697 = vst.msk [vmem:[#allocation3 + $0xc8] sm:$0xff] %vm1644_vm11, %v16719_v2  ;;  %v8395_v17 = vld [vmem:[#allocation2 + $0x180] sm:$0xf] }
 0x3e7   :  { %8384 = vst.msk [vmem:[#allocation2 + $0x16c] sm:$0xf] %vm27_vm0, %v8026_v33  ;;  %8387 = vst [vmem:[#allocation2 + $0x170] sm:$0x1] %v8386_v19  ;;  %v8009_v32 = vsel %vm17173_vm8, %v8001_v34, %v8008_v26  ;;  %v8379_v6 = vsel %vm17107_vm3, %v8010_v8, %v8378_v50  ;;  %v7290_v18 = vadd.f32 %v19213_v43, %v7219_v31  ;;  %v9376_v40 = vshll.u32 %v16625_v38, 16 }
 0x3e8   :  { %8377 = vst.msk [vmem:[#allocation2 + $0x160] sm:$0xf] %vm27_vm0, %v8009_v32  ;;  %8380 = vst [vmem:[#allocation2 + $0x164] sm:$0x1] %v8379_v6  ;;  %v7288_v25 = vadd.f32 %v19213_v43, %v7217_v41  ;;  %v9374_v39 = vor.u32 %v9373_v36, %v9369_v60  ;;  %v7218_v48 = vmul.f32 %v19203_v54, %v7126_v28  ;;  %v9359_v3 = vshll.u32 %v16627_v10, 16 }
 0x3e9   :  { %v7354_v51 = vmax.f32 %v7290_v18, 0.0  ;;  %v7291_v53 = vadd.f32 %v19213_v43, %v7220_v47  ;;  %v9378_v61 = vrot.slane %v9376_v40, 1  ;;  %v9364_v58 = vshll.u32 %v16628_v44, 16  ;;  %v8399_v38 = vld [vmem:[#allocation2 + $0x188] sm:$0x1] }
 0x3ea   :  { %v9455_v56 = vpop.permute.xlu1 %9454  ;;  %v7352_v13 = vmax.f32 %v7288_v25, 0.0  ;;  %v7289_v55 = vadd.f32 %v19213_v43, %v7218_v48  ;;  %v9357_v23 = vshrl.u32 %v16627_v10, 16  ;;  %v9361_v59 = vrot.slane %v9359_v3, 1  ;;  %v8392_v63 = vld [vmem:[#allocation2 + $0x17c] sm:$0x1] }
 0x3eb   :  { %9543 = vst.msk [vmem:[#allocation3 + $0x38] sm:$0xff] %vm2510_vm12, %v9455_v56  ;;  %v15854_v7 = vpack.c.bf16 %v7354_v51, %v7354_v51  ;;  %v7355_v42 = vmax.f32 %v7291_v53, 0.0  ;;  %v9379_v46 = vsel %vm2029_vm9, %v9374_v39, %v9378_v61  ;;  %v9366_v35 = vrot.slane %v9364_v58, 1 }
 0x3ec   :  { %v15852_v52 = vpack.c.bf16 %v7352_v13, %v7352_v13  ;;  %v7353_v4 = vmax.f32 %v7289_v55, 0.0  ;;  %9492 = vrot.lane.b32.xlu0 %v9379_v46, %s17054_s27  ;;  %v9362_v62 = vor.u32 %v9361_v59, %v9357_v23 }
 0x3ed   :  { %v8046_v9 = vshrl.u32 %v15854_v7, 16  ;;  %v8049_v12 = vshll.u32 %v15854_v7, 16  ;;  %v15855_v57 = vpack.c.bf16 %v7355_v42, %v7355_v42 }
 0x3ee   :  { %v8029_v16 = vshrl.u32 %v15852_v52, 16  ;;  %v8032_v29 = vshll.u32 %v15852_v52, 16  ;;  %v15853_v50 = vpack.c.bf16 %v7353_v4, %v7353_v4  ;;  %v9367_v5 = vsel %vm2029_vm9, %v9362_v62, %v9366_v35  ;;  %v16631_v15 = vld [vmem:[#allocation2 + $0x168] sm:$0xff]   ;;  %v16632_v14 = vld [vmem:[#allocation2 + $0x170] ss:$0 sps:$4 sm:$0x11]  }
 0x3ef   :  { %v8048_v60 = vrot.slane %v8046_v9, 7  ;;  %v8054_v30 = vshrl.u32 %v15855_v57, 16  ;;  %v8057_v34 = vshll.u32 %v15855_v57, 16  ;;  %9490 = vrot.lane.b32.xlu1 %v9367_v5, %s17054_s27  ;;  %v9393_v26 = vshrl.u32 %v16631_v15, 16  ;;  %v16633_v8 = vld [vmem:[#allocation2 + $0x15c] sm:$0xff]   ;;  %v16734_v39 = vld [vmem:[#allocation2 + $0x168] sm:$0xff]  }
 0x3f0   :  { %v8031_v11 = vrot.slane %v8029_v16, 7  ;;  %v8037_v21 = vshrl.u32 %v15853_v50, 16  ;;  %v8040_v20 = vshll.u32 %v15853_v50, 16  ;;  %v9395_v19 = vshll.u32 %v16631_v15, 16  ;;  %8700 = vst.msk [vmem:[#allocation3 + $0xe0] sm:$0xff] %vm1644_vm11, %v16734_v39  ;;  %v16735_v46 = vld [vmem:[#allocation2 + $0x15c] sm:$0xff]  }
 0x3f1   :  { %v8051_v22 = vor.u32 %v8049_v12, %v8048_v60  ;;  %v8052_v24 = vrot.slane %v8048_v60, 4  ;;  %v8056_v10 = vrot.slane %v8054_v30, 7  ;;  %v16634_v41 = vld [vmem:[#allocation2 + $0x164] ss:$0 sps:$4 sm:$0x11]   ;;  %v9400_v32 = vshll.u32 %v16632_v14, 16 }
 0x3f2   :  { %v8034_v31 = vor.u32 %v8032_v29, %v8031_v11  ;;  %v8035_v45 = vrot.slane %v8031_v11, 4  ;;  %v8039_v33 = vrot.slane %v8037_v21, 7  ;;  %v9397_v25 = vrot.slane %v9395_v19, 1  ;;  %v19327_v29 = vld [vmem:[#allocation2] sm:$0xfe]   ;;  %8699 = vst.msk [vmem:[#allocation3 + $0xd8] sm:$0xff] %vm1644_vm11, %v16735_v46 }
 0x3f3   :  { %v8396_v0 = vsel %vm17153_vm7, %v8051_v22, %v8395_v17  ;;  %v8059_v36 = vor.u32 %v8057_v34, %v8056_v10  ;;  %v8061_v44 = vrot.slane %v8056_v10, 4  ;;  %v9461_v2 = vpop.permute.xlu0 %9460  ;;  %v15998_v28 = vpop.f32.mrb[60].mxu0  ;;  %v9402_v56 = vrot.slane %v9400_v32, 1  ;;  %v8409_v22 = vld [vmem:[#allocation2 + $0x198] sm:$0xf] }
 0x3f4   :  { %8397 = vst [vmem:[#allocation2 + $0x180] sm:$0xf] %v8396_v0  ;;  %v8389_v6 = vsel %vm17153_vm7, %v8034_v31, %v8388_v37  ;;  %9546 = vst.msk [vmem:[#allocation3 + $0x50] sm:$0xff] %vm2510_vm12, %v9461_v2  ;;  %v8042_v18 = vor.u32 %v8040_v20, %v8039_v33  ;;  %v8044_v47 = vrot.slane %v8039_v33, 4  ;;  %v7223_v53 = vmul.f32 %v19203_v54, %v15998_v28  ;;  %v7139_v3 = vpop.f32.mrb[61].mxu0 }
 0x3f5   :  { %8390 = vst [vmem:[#allocation2 + $0x174] sm:$0xf] %v8389_v6  ;;  %v8060_v40 = vsel %vm17173_vm8, %v8052_v24, %v8059_v36  ;;  %v8400_v48 = vsel %vm17107_vm3, %v8061_v44, %v8399_v38  ;;  %v9459_v51 = vpop.permute.xlu1 %9458  ;;  %v7221_v55 = vmul.f32 %v19203_v54, %v7139_v3  ;;  %v15999_v58 = vpop.f32.mrb[62].mxu0  ;;  %v9398_v7 = vor.u32 %v9397_v25, %v9393_v26  ;;  %v19331_v37 = vld [vmem:[#allocation2 + $0x8] ss:$0 sps:$4 sm:$0x11]  }
 0x3f6   :  { %8398 = vst.msk [vmem:[#allocation2 + $0x184] sm:$0xf] %vm27_vm0, %v8060_v40  ;;  %8401 = vst [vmem:[#allocation2 + $0x188] sm:$0x1] %v8400_v48  ;;  %v8043_v13 = vsel %vm17173_vm8, %v8035_v45, %v8042_v18  ;;  %v8393_v61 = vsel %vm17107_vm3, %v8044_v47, %v8392_v63  ;;  %v7294_v42 = vadd.f32 %v19213_v43, %v7223_v53  ;;  %v7142_v59 = vpop.f32.mrb[63].mxu0  ;;  %v9383_v52 = vshll.u32 %v16633_v8, 16 }
 0x3f7   :  { %9545 = vst.msk [vmem:[#allocation3 + $0x48] sm:$0xff] %vm2510_vm12, %v9459_v51  ;;  %8394 = vst [vmem:[#allocation2 + $0x17c] sm:$0x1] %v8393_v61  ;;  %v7224_v23 = vmul.f32 %v19203_v54, %v15999_v58  ;;  %v7292_v4 = vadd.f32 %v19213_v43, %v7221_v55  ;;  %v9403_v35 = vsel %vm2029_vm9, %v9398_v7, %v9402_v56  ;;  %v9388_v12 = vshll.u32 %v16634_v41, 16  ;;  %v8402_v19 = vld [vmem:[#allocation2 + $0x18c] sm:$0xf] }
 0x3f8   :  { %8391 = vst.msk [vmem:[#allocation2 + $0x178] sm:$0xf] %vm27_vm0, %v8043_v13  ;;  %v7222_v9 = vmul.f32 %v19203_v54, %v7142_v59  ;;  %v7358_v57 = vmax.f32 %v7294_v42, 0.0  ;;  %9496 = vrot.lane.b32.xlu0 %v9403_v35, %s17054_s27  ;;  %v9381_v17 = vshrl.u32 %v16633_v8, 16  ;;  %v9385_v16 = vrot.slane %v9383_v52, 1 }
 0x3f9   :  { %v7295_v62 = vadd.f32 %v19213_v43, %v7224_v23  ;;  %v7356_v50 = vmax.f32 %v7292_v4, 0.0  ;;  %v9390_v5 = vrot.slane %v9388_v12, 1  ;;  %v9920_v14 = vrot.slane %v19327_v29, 1  ;;  %v8413_v18 = vld [vmem:[#allocation2 + $0x1a0] sm:$0x1] }
 0x3fa   :  { %v7293_v60 = vadd.f32 %v19213_v43, %v7222_v9  ;;  %v15858_v30 = vpack.c.bf16 %v7358_v57, %v7358_v57  ;;  %v9386_v54 = vor.u32 %v9385_v16, %v9381_v17  ;;  %v9921_v26 = vrot.slane %v19331_v37, 1  ;;  %v8406_v55 = vld [vmem:[#allocation2 + $0x194] sm:$0x1]  ;;  %v16644_v17 = vld [vmem:[#allocation2 + $0x18] sm:$0xfe]  }
 0x3fb   :  { %v7359_v34 = vmax.f32 %v7295_v62, 0.0  ;;  %v15856_v15 = vpack.c.bf16 %v7356_v50, %v7356_v50 }
 0x3fc   :  { %v7357_v11 = vmax.f32 %v7293_v60, 0.0  ;;  %v8080_v38 = vshrl.u32 %v15858_v30, 16  ;;  %v9391_v20 = vsel %vm2029_vm9, %v9386_v54, %v9390_v5  ;;  %v8083_v45 = vshll.u32 %v15858_v30, 16  ;;  %v16645_v60 = vld [vmem:[#allocation2 + $0x20] ss:$0 sps:$4 sm:$0x11]  }
 0x3fd   :  { %v15859_v21 = vpack.c.bf16 %v7359_v34, %v7359_v34  ;;  %v8063_v24 = vshrl.u32 %v15856_v15, 16  ;;  %9494 = vrot.lane.b32.xlu1 %v9391_v20, %s17054_s27  ;;  %v16637_v43 = vld [vmem:[#allocation2 + $0x180] sm:$0xff]   ;;  %v16638_v63 = vld [vmem:[#allocation2 + $0x188] ss:$0 sps:$4 sm:$0x11]   ;;  %v8066_v33 = vshll.u32 %v15856_v15, 16  ;;  %v9922_v1 = vsel %vm2895_vm10, %v9920_v14, %v9921_v26 }
 0x3fe   :  { %v15857_v10 = vpack.c.bf16 %v7357_v11, %v7357_v11  ;;  %v8082_v31 = vrot.slane %v8080_v38, 7  ;;  %v9417_v47 = vshrl.u32 %v16637_v43, 16  ;;  %v9419_v28 = vshll.u32 %v16637_v43, 16  ;;  %v16640_v53 = vld [vmem:[#allocation2 + $0x17c] ss:$0 sps:$4 sm:$0x11]  }
 0x3ff   :  { %v9465_v8 = vpop.permute.xlu0 %9464  ;;  %v8088_v41 = vshrl.u32 %v15859_v21, 16  ;;  %v8065_v0 = vrot.slane %v8063_v24, 7  ;;  %v8091_v36 = vshll.u32 %v15859_v21, 16  ;;  %v16639_v25 = vld [vmem:[#allocation2 + $0x174] sm:$0xff]   ;;  %v9424_v51 = vshll.u32 %v16638_v63, 16  ;;  %v16748_v9 = vld [vmem:[#allocation2 + $0x180] sm:$0xff]  }
 0x400   :  { %9548 = vst.msk [vmem:[#allocation3 + $0x60] sm:$0xff] %vm2510_vm12, %v9465_v8  ;;  %v8071_v44 = vshrl.u32 %v15857_v10, 16  ;;  %v8074_v2 = vshll.u32 %v15857_v10, 16  ;;  %v8085_v32 = vor.u32 %v8083_v45, %v8082_v31  ;;  %v8086_v39 = vrot.slane %v8082_v31, 4  ;;  %v16749_v16 = vld [vmem:[#allocation2 + $0x174] sm:$0xff]  }
 0x401   :  { %v8090_v6 = vrot.slane %v8088_v41, 7  ;;  %v8068_v40 = vor.u32 %v8066_v33, %v8065_v0  ;;  %v9421_v58 = vrot.slane %v9419_v28, 1  ;;  %v8069_v7 = vrot.slane %v8065_v0, 4  ;;  %8702 = vst.msk [vmem:[#allocation3 + $0xf0] sm:$0xff] %vm1644_vm11, %v16748_v9  ;;  %8701 = vst.msk [vmem:[#allocation3 + $0xe8] sm:$0xff] %vm1644_vm11, %v16749_v16 }
 0x402   :  { %v8073_v48 = vrot.slane %v8071_v44, 7  ;;  %v9463_v3 = vpop.permute.xlu1 %9462  ;;  %v8410_v56 = vsel %vm17153_vm7, %v8085_v32, %v8409_v22  ;;  %v9426_v35 = vrot.slane %v9424_v51, 1  ;;  %v9407_v57 = vshll.u32 %v16639_v25, 16  ;;  %v16646_v30 = vld [vmem:[#allocation2 + $0x30] sm:$0xfe]  }
 0x403   :  { %v8093_v13 = vor.u32 %v8091_v36, %v8090_v6  ;;  %v8095_v61 = vrot.slane %v8090_v6, 4  ;;  %9547 = vst.msk [vmem:[#allocation3 + $0x58] sm:$0xff] %vm2510_vm12, %v9463_v3  ;;  %8411 = vst [vmem:[#allocation2 + $0x198] sm:$0xf] %v8410_v56  ;;  %v8403_v42 = vsel %vm17153_vm7, %v8068_v40, %v8402_v19  ;;  %v9422_v4 = vor.u32 %v9421_v58, %v9417_v47  ;;  %v16649_v21 = vld [vmem:[#allocation2 + $0x48] sm:$0xfe]  }
 0x404   :  { %v8076_v23 = vor.u32 %v8074_v2, %v8073_v48  ;;  %v8078_v59 = vrot.slane %v8073_v48, 4  ;;  %8404 = vst [vmem:[#allocation2 + $0x18c] sm:$0xf] %v8403_v42  ;;  %v9412_v62 = vshll.u32 %v16640_v53, 16  ;;  %v9405_v37 = vshrl.u32 %v16639_v25, 16 }
 0x405   :  { %v8094_v52 = vsel %vm17173_vm8, %v8086_v39, %v8093_v13  ;;  %v8414_v46 = vsel %vm17107_vm3, %v8095_v61, %v8413_v18  ;;  %v9427_v50 = vsel %vm2029_vm9, %v9422_v4, %v9426_v35  ;;  %v9409_v49 = vrot.slane %v9407_v57, 1  ;;  %v16647_v34 = vld [vmem:[#allocation2 + $0x38] ss:$0 sps:$4 sm:$0x11]   ;;  %v16657_v26 = vld [vmem:[#allocation2 + $0xc] sm:$0xfe]  }
 0x406   :  { %8412 = vst.msk [vmem:[#allocation2 + $0x19c] sm:$0xf] %vm27_vm0, %v8094_v52  ;;  %8415 = vst [vmem:[#allocation2 + $0x1a0] sm:$0x1] %v8414_v46  ;;  %v8077_v12 = vsel %vm17173_vm8, %v8069_v7, %v8076_v23  ;;  %v8407_v27 = vsel %vm17107_vm3, %v8078_v59, %v8406_v55  ;;  %9500 = vrot.lane.b32.xlu0 %v9427_v50, %s17054_s27  ;;  %v9414_v5 = vrot.slane %v9412_v62, 1  ;;  %v9926_v15 = vrot.slane %v16644_v17, 1 }
 0x407   :  { %8405 = vst.msk [vmem:[#allocation2 + $0x190] sm:$0xf] %vm27_vm0, %v8077_v12  ;;  %8408 = vst [vmem:[#allocation2 + $0x194] sm:$0x1] %v8407_v27  ;;  %v9410_v54 = vor.u32 %v9409_v49, %v9405_v37  ;;  %v9927_v11 = vrot.slane %v16645_v60, 1  ;;  %v9932_v10 = vrot.slane %v16646_v30, 1 }
 0x408   :  { %v16650_v20 = vld [vmem:[#allocation2 + $0x50] ss:$0 sps:$4 sm:$0x11]   ;;  %v9933_v14 = vrot.slane %v16647_v34, 1  ;;  %v9938_v0 = vrot.slane %v16649_v21, 1  ;;  %v9923_v40 = vrot.slane %v16657_v26, 1 }
 0x409   :  { %v9415_v38 = vsel %vm2029_vm9, %v9410_v54, %v9414_v5  ;;  %v9928_v29 = vsel %vm2895_vm10, %v9926_v15, %v9927_v11  ;;  %v16658_v31 = vld [vmem:[#allocation2 + $0x14] ss:$0 sps:$4 sm:$0x11]   ;;  %v16656_v19 = vld [vmem:[#allocation2 + $0x68] ss:$0 sps:$4 sm:$0x11]  }
 0x40a   :  { %10016 = vrot.lane.b32.xlu0 %v9922_v1, %s17055_s11  ;;  %9498 = vrot.lane.b32.xlu1 %v9415_v38, %s17054_s27  ;;  %v9934_v41 = vsel %vm2895_vm10, %v9932_v10, %v9933_v14  ;;  %v9939_v36 = vrot.slane %v16650_v20, 1  ;;  %v16655_v44 = vld [vmem:[#allocation2 + $0x60] sm:$0xfe]   ;;  %v16662_v18 = vld [vmem:[#allocation2 + $0x2c] ss:$0 sps:$4 sm:$0x11]  }
 0x40b   :  { %v16661_v6 = vld [vmem:[#allocation2 + $0x24] sm:$0xfe]   ;;  %v16660_v25 = vld [vmem:[#allocation2 + $0x80] ss:$0 sps:$4 sm:$0x11]   ;;  %v9924_v48 = vrot.slane %v16658_v31, 1 }
 0x40c   :  { %v16659_v51 = vld [vmem:[#allocation2 + $0x78] sm:$0xfe]   ;;  %v9940_v3 = vsel %vm2895_vm10, %v9938_v0, %v9939_v36  ;;  %v9944_v56 = vrot.slane %v16655_v44, 1  ;;  %v9945_v13 = vrot.slane %v16656_v19, 1  ;;  %v9929_v7 = vrot.slane %v16661_v6, 1 }
 0x40d   :  { %v16665_v61 = vld [vmem:[#allocation2 + $0x3c] sm:$0xfe]   ;;  %v16666_v55 = vld [vmem:[#allocation2 + $0x44] ss:$0 sps:$4 sm:$0x11]   ;;  %v9925_v58 = vsel %vm2895_vm10, %v9923_v40, %v9924_v48  ;;  %v9930_v42 = vrot.slane %v16662_v18, 1 }
 0x40e   :  { %v16651_v22 = vld [vmem:[#allocation2 + $0x18c] sm:$0xff]   ;;  %v16652_v43 = vld [vmem:[#allocation2 + $0x194] ss:$0 sps:$4 sm:$0x11]   ;;  %10020 = vrot.lane.b32.xlu0 %v9928_v29, %s17055_s11  ;;  %v9946_v59 = vsel %vm2895_vm10, %v9944_v56, %v9945_v13  ;;  %v9950_v52 = vrot.slane %v16659_v51, 1  ;;  %v9951_v46 = vrot.slane %v16660_v25, 1 }
 0x40f   :  { %v9469_v24 = vpop.permute.xlu0 %9468  ;;  %v9431_v63 = vshll.u32 %v16651_v22, 16  ;;  %v9436_v8 = vshll.u32 %v16652_v43, 16  ;;  %v9429_v45 = vshrl.u32 %v16651_v22, 16  ;;  %v16764_v47 = vld [vmem:[#allocation2 + $0x18c] sm:$0xff]   ;;  %v9931_v57 = vsel %vm2895_vm10, %v9929_v7, %v9930_v42  ;;  %v16669_v16 = vld [vmem:[#allocation2 + $0x54] sm:$0xfe]  }
 0x410   :  { %9550 = vst.msk [vmem:[#allocation3 + $0x70] sm:$0xff] %vm2510_vm12, %v9469_v24  ;;  %v16663_v23 = vld [vmem:[#allocation2 + $0x90] sm:$0xfe]   ;;  %v16664_v4 = vld [vmem:[#allocation2 + $0x98] ss:$0 sps:$4 sm:$0x11]   ;;  %v9952_v50 = vsel %vm2895_vm10, %v9950_v52, %v9951_v46 }
 0x411   :  { %v9433_v33 = vrot.slane %v9431_v63, 1  ;;  %v9438_v32 = vrot.slane %v9436_v8, 1  ;;  %8703 = vst.msk [vmem:[#allocation3 + $0xf8] sm:$0xff] %vm1644_vm11, %v16764_v47  ;;  %v16667_v9 = vld [vmem:[#allocation2 + $0xa8] sm:$0xfe]   ;;  %v9935_v62 = vrot.slane %v16665_v61, 1 }
 0x412   :  { %10024 = vrot.lane.b32.xlu0 %v9934_v41, %s17055_s11  ;;  %v16668_v12 = vld [vmem:[#allocation2 + $0xb0] ss:$0 sps:$4 sm:$0x11]   ;;  %v16670_v27 = vld [vmem:[#allocation2 + $0x5c] ss:$0 sps:$4 sm:$0x11]  }
 0x413   :  { %v9434_v2 = vor.u32 %v9433_v33, %v9429_v45  ;;  %v9936_v17 = vrot.slane %v16666_v55, 1  ;;  %v9956_v60 = vrot.slane %v16663_v23, 1  ;;  %v9957_v37 = vrot.slane %v16664_v4, 1  ;;  %v16673_v49 = vld [vmem:[#allocation2 + $0xd8] sm:$0xfe]   ;;  %v16694_v47 = vld [vmem:[#allocation2 + $0xc] sm:$0xff]  }
 0x414   :  { %v9467_v28 = vpop.permute.xlu1 %9466  ;;  %v16674_v1 = vld [vmem:[#allocation2 + $0xe0] ss:$0 sps:$4 sm:$0x11]   ;;  %v16675_v30 = vld [vmem:[#allocation2 + $0x6c] sm:$0xfe]   ;;  %v9941_v5 = vrot.slane %v16669_v16, 1 }
 0x415   :  { %9549 = vst.msk [vmem:[#allocation3 + $0x68] sm:$0xff] %vm2510_vm12, %v9467_v28  ;;  %v9439_v39 = vsel %vm2029_vm9, %v9434_v2, %v9438_v32  ;;  %v16676_v34 = vld [vmem:[#allocation2 + $0x74] ss:$0 sps:$4 sm:$0x11]   ;;  %v9937_v54 = vsel %vm2895_vm10, %v9935_v62, %v9936_v17  ;;  %v9942_v15 = vrot.slane %v16670_v27, 1  ;;  %v16680_v11 = vld [vmem:[#allocation2 + $0x18] sm:$0xff]   ;;  %v9958_v38 = vsel %vm2895_vm10, %v9956_v60, %v9957_v37 }
 0x416   :  { %v9473_v53 = vpop.permute.xlu0 %9472  ;;  %9502 = vrot.lane.b32.xlu1 %v9439_v39, %s17054_s27  ;;  %10028 = vrot.lane.b32.xlu0 %v9940_v3, %s17055_s11  ;;  %v9962_v21 = vrot.slane %v16667_v9, 1  ;;  %v9963_v20 = vrot.slane %v16668_v12, 1  ;;  %v9968_v22 = vrot.slane %v16673_v49, 1  ;;  %v16678_v24 = vld [vmem:[#allocation2 + $0x84] sm:$0xfe]   ;;  %v9969_v10 = vrot.slane %v16674_v1, 1 }
 0x417   :  { %9552 = vst.msk [vmem:[#allocation3 + $0x80] sm:$0xff] %vm2510_vm12, %v9473_v53  ;;  %v16679_v29 = vld [vmem:[#allocation2 + $0x8c] ss:$0 sps:$4 sm:$0x11]   ;;  %v9947_v14 = vrot.slane %v16675_v30, 1  ;;  %v9943_v43 = vsel %vm2895_vm10, %v9941_v5, %v9942_v15  ;;  %v9948_v63 = vrot.slane %v16676_v34, 1 }
 0x418   :  { %v10863_v26 = vshll.u32 %v16680_v11, 16  ;;  %v9964_v8 = vsel %vm2895_vm10, %v9962_v21, %v9963_v20  ;;  %v16681_v31 = vld [vmem:[#allocation2 + $0x20] ss:$0 sps:$4 sm:$0x11]   ;;  %v9970_v19 = vsel %vm2895_vm10, %v9968_v22, %v9969_v10  ;;  %v9953_v0 = vrot.slane %v16678_v24, 1  ;;  %v16677_v32 = vld [vmem:[#allocation2 + $0x18] sm:$0xff]  }
 0x419   :  { %v16683_v45 = vld [vmem:[#allocation2 + $0xa4] ss:$0 sps:$4 sm:$0x11]   ;;  %v9949_v41 = vsel %vm2895_vm10, %v9947_v14, %v9948_v63  ;;  %v9954_v36 = vrot.slane %v16679_v29, 1  ;;  %v16682_v44 = vld [vmem:[#allocation2 + $0x9c] sm:$0xfe]  }
 0x41a   :  { %10018 = vrot.lane.b32.xlu1 %v9925_v58, %s17055_s11  ;;  %10032 = vrot.lane.b32.xlu0 %v9946_v59, %s17055_s11  ;;  %v10865_v2 = vrot.slane %v10863_v26, 1  ;;  %v10868_v6 = vshll.u32 %v16681_v31, 16  ;;  %v16687_v18 = vld [vmem:[#allocation2 + $0xbc] ss:$0 sps:$4 sm:$0x11]   ;;  %v10861_v28 = vshrl.u32 %v16680_v11, 16 }
 0x41b   :  { %v16684_v25 = vld [vmem:[#allocation2 + $0x18] sm:$0xfe]   ;;  %v16685_v39 = vld [vmem:[#allocation2 + $0x20] ss:$0 sps:$4 sm:$0x11]   ;;  %v16692_v40 = vld [vmem:[#allocation2 + $0x24] sm:$0xff]   ;;  %v9955_v51 = vsel %vm2895_vm10, %v9953_v0, %v9954_v36 }
 0x41c   :  { %v9959_v53 = vrot.slane %v16682_v44, 1  ;;  %v9960_v3 = vrot.slane %v16683_v45, 1  ;;  %v16686_v56 = vld [vmem:[#allocation2 + $0xb4] sm:$0xfe]   ;;  %v10866_v13 = vor.u32 %v10865_v2, %v10861_v28  ;;  %v10870_v61 = vrot.slane %v10868_v6, 1  ;;  %v16690_v1 = vld [vmem:[#allocation2 + $0x24] sm:$0xff]  }
 0x41d   :  { %v9471_v35 = vpop.permute.xlu1 %9470  ;;  %v16693_v55 = vld [vmem:[#allocation2 + $0x2c] ss:$0 sps:$4 sm:$0x11]   ;;  %v16695_v58 = vld [vmem:[#allocation2 + $0x14] ss:$0 sps:$4 sm:$0x11]  }
 0x41e   :  { %9551 = vst.msk [vmem:[#allocation3 + $0x78] sm:$0xff] %vm2510_vm12, %v9471_v35  ;;  %10022 = vrot.lane.b32.xlu1 %v9931_v57, %s17055_s11  ;;  %10036 = vrot.lane.b32.xlu0 %v9952_v50, %s17055_s11  ;;  %v9961_v7 = vsel %vm2895_vm10, %v9959_v53, %v9960_v3  ;;  %v9965_v42 = vrot.slane %v16686_v56, 1  ;;  %v9966_v23 = vrot.slane %v16687_v18, 1  ;;  %v10851_v59 = vshll.u32 %v16694_v47, 16  ;;  %v16691_v50 = vld [vmem:[#allocation2 + $0xc] sm:$0xff]   ;;  %v16706_v34 = vld [vmem:[#allocation2 + $0x18] sm:$0xff]  }
 0x41f   :  { %v10871_v52 = vsel %vm2029_vm9, %v10866_v13, %v10870_v61  ;;  %v11715_v46 = vrot.slane %v16684_v25, 1  ;;  %v11716_v4 = vrot.slane %v16685_v39, 1  ;;  %v12655_v35 = vshll.u32 %v16692_v40, 16  ;;  %v16696_v49 = vld [vmem:[#allocation2 + $0x24] sm:$0xfe]   ;;  %v16704_v11 = vld [vmem:[#allocation2 + $0x30] sm:$0xff]  }
 0x420   :  { %v12653_v12 = vshrl.u32 %v16692_v40, 16  ;;  %v12660_v27 = vshll.u32 %v16693_v55, 16  ;;  %v9967_v57 = vsel %vm2895_vm10, %v9965_v42, %v9966_v23  ;;  %v10849_v62 = vshrl.u32 %v16694_v47, 16  ;;  %v16698_v30 = vld [vmem:[#allocation2 + $0xc] sm:$0xfe]   ;;  %v16714_v56 = vld [vmem:[#allocation2 + $0x3c] sm:$0xff]  }
 0x421   :  { %v10853_v17 = vrot.slane %v10851_v59, 1  ;;  %v11717_v16 = vsel %vm2895_vm10, %v11715_v46, %v11716_v4  ;;  %v12657_v60 = vrot.slane %v12655_v35, 1  ;;  %v10856_v37 = vshll.u32 %v16695_v58, 16  ;;  %v16699_v15 = vld [vmem:[#allocation2 + $0x14] ss:$0 sps:$4 sm:$0x11]  }
 0x422   :  { %10026 = vrot.lane.b32.xlu1 %v9937_v54, %s17055_s11  ;;  %10040 = vrot.lane.b32.xlu0 %v9958_v38, %s17055_s11  ;;  %v16697_v54 = vld [vmem:[#allocation2 + $0x2c] ss:$0 sps:$4 sm:$0x11]   ;;  %v16705_v20 = vld [vmem:[#allocation2 + $0x38] ss:$0 sps:$4 sm:$0x11]  }
 0x423   :  { %v10854_v5 = vor.u32 %v10853_v17, %v10849_v62  ;;  %v12658_v38 = vor.u32 %v12657_v60, %v12653_v12  ;;  %v10858_v21 = vrot.slane %v10856_v37, 1  ;;  %v12662_v22 = vrot.slane %v12660_v27, 1  ;;  %v16707_v63 = vld [vmem:[#allocation2 + $0x20] ss:$0 sps:$4 sm:$0x11]   ;;  %v16700_v28 = vld [vmem:[#allocation2 + $0x30] sm:$0xff]  }
 0x424   :  { %v13507_v24 = vrot.slane %v16696_v49, 1  ;;  %v11712_v14 = vrot.slane %v16698_v30, 1  ;;  %v12643_v26 = vshll.u32 %v16706_v34, 16  ;;  %v13508_v31 = vrot.slane %v16697_v54, 1  ;;  %v16708_v47 = vld [vmem:[#allocation2 + $0x30] sm:$0xfe]  }
 0x425   :  { %v10859_v10 = vsel %vm2029_vm9, %v10854_v5, %v10858_v21  ;;  %v10887_v45 = vshll.u32 %v16704_v11, 16  ;;  %v12641_v0 = vshrl.u32 %v16706_v34, 16  ;;  %v12648_v18 = vshll.u32 %v16707_v63, 16  ;;  %v16710_v25 = vld [vmem:[#allocation2 + $0x18] sm:$0xfe]   ;;  %v16728_v17 = vld [vmem:[#allocation2 + $0x30] sm:$0xff]  }
 0x426   :  { %10030 = vrot.lane.b32.xlu1 %v9943_v43, %s17055_s11  ;;  %10044 = vrot.lane.b32.xlu0 %v9964_v8, %s17055_s11  ;;  %v11713_v43 = vrot.slane %v16699_v15, 1  ;;  %v12663_v8 = vsel %vm2029_vm9, %v12658_v38, %v12662_v22  ;;  %v12645_v36 = vrot.slane %v12643_v26, 1  ;;  %v13509_v2 = vsel %vm2895_vm10, %v13507_v24, %v13508_v31  ;;  %v16711_v40 = vld [vmem:[#allocation2 + $0x20] ss:$0 sps:$4 sm:$0x11]  }
 0x427   :  { %v10889_v6 = vrot.slane %v10887_v45, 1  ;;  %v16709_v3 = vld [vmem:[#allocation2 + $0x38] ss:$0 sps:$4 sm:$0x11]   ;;  %v12650_v13 = vrot.slane %v12648_v18, 1  ;;  %v11721_v55 = vrot.slane %v16708_v47, 1 }
 0x428   :  { %v12646_v39 = vor.u32 %v12645_v36, %v12641_v0  ;;  %v13505_v42 = vrot.slane %v16711_v40, 1  ;;  %v12679_v46 = vshll.u32 %v16714_v56, 16  ;;  %v16715_v4 = vld [vmem:[#allocation2 + $0x44] ss:$0 sps:$4 sm:$0x11]   ;;  %v12677_v60 = vshrl.u32 %v16714_v56, 16 }
 0x429   :  { %v9477_v33 = vpop.permute.xlu0 %9476  ;;  %v16717_v35 = vld [vmem:[#allocation2 + $0x2c] ss:$0 sps:$4 sm:$0x11]   ;;  %v12684_v37 = vshll.u32 %v16715_v4, 16  ;;  %v16720_v30 = vld [vmem:[#allocation2 + $0x3c] sm:$0xfe]  }
 0x42a   :  { %9554 = vst.msk [vmem:[#allocation3 + $0x90] sm:$0xff] %vm2510_vm12, %v9477_v33  ;;  %10034 = vrot.lane.b32.xlu1 %v9949_v41, %s17055_s11  ;;  %10048 = vrot.lane.b32.xlu0 %v9970_v19, %s17055_s11  ;;  %v10885_v33 = vshrl.u32 %v16704_v11, 16  ;;  %v10892_v19 = vshll.u32 %v16705_v20, 16  ;;  %v11714_v41 = vsel %vm2895_vm10, %v11712_v14, %v11713_v43  ;;  %v12651_v58 = vsel %vm2029_vm9, %v12646_v39, %v12650_v13  ;;  %v16721_v34 = vld [vmem:[#allocation2 + $0x44] ss:$0 sps:$4 sm:$0x11]  }
 0x42b   :  { %v12681_v62 = vrot.slane %v12679_v46, 1  ;;  %v16722_v54 = vld [vmem:[#allocation2 + $0x24] sm:$0xfe]   ;;  %v16723_v15 = vld [vmem:[#allocation2 + $0x2c] ss:$0 sps:$4 sm:$0x11]  }
 0x42c   :  { %v10890_v53 = vor.u32 %v10889_v6, %v10885_v33  ;;  %v10894_v61 = vrot.slane %v10892_v19, 1  ;;  %v16726_v11 = vld [vmem:[#allocation2 + $0x48] sm:$0xff]   ;;  %v12686_v21 = vrot.slane %v12684_v37, 1  ;;  %v16727_v22 = vld [vmem:[#allocation2 + $0x50] ss:$0 sps:$4 sm:$0x11]  }
 0x42d   :  { %v12682_v38 = vor.u32 %v12681_v62, %v12677_v60  ;;  %v12667_v24 = vshll.u32 %v16728_v17, 16  ;;  %v11718_v14 = vrot.slane %v16722_v54, 1  ;;  %v11719_v43 = vrot.slane %v16723_v15, 1  ;;  %v16729_v45 = vld [vmem:[#allocation2 + $0x38] ss:$0 sps:$4 sm:$0x11]  }
 0x42e   :  { %v9475_v48 = vpop.permute.xlu1 %9474  ;;  %10038 = vrot.lane.b32.xlu1 %v9955_v51, %s17055_s11  ;;  %10370 = vrot.lane.b32.xlu0 %v16677_v32, %s17056_s16  ;;  %v16701_v32 = vld [vmem:[#allocation2 + $0x18] sm:$0xff]   ;;  %v10895_v59 = vsel %vm2029_vm9, %v10890_v53, %v10894_v61  ;;  %v13513_v26 = vrot.slane %v16720_v30, 1  ;;  %v10911_v31 = vshll.u32 %v16726_v11, 16  ;;  %v10916_v19 = vshll.u32 %v16727_v22, 16  ;;  %v16732_v18 = vld [vmem:[#allocation2 + $0x30] sm:$0xfe]  }
 0x42f   :  { %9553 = vst.msk [vmem:[#allocation3 + $0x88] sm:$0xff] %vm2510_vm12, %v9475_v48  ;;  %v16716_v48 = vld [vmem:[#allocation2 + $0x24] sm:$0xff]   ;;  %v12687_v63 = vsel %vm2029_vm9, %v12682_v38, %v12686_v21  ;;  %v19440_v33 = vld [vmem:[#allocation2 + $0x54] sm:$0xff]   ;;  %v11720_v0 = vsel %vm2895_vm10, %v11718_v14, %v11719_v43  ;;  %v16740_v36 = vld [vmem:[#allocation2 + $0x3c] sm:$0xff]   ;;  %v12672_v6 = vshll.u32 %v16729_v45, 16  ;;  %v10909_v39 = vshrl.u32 %v16726_v11, 16 }
 0x430   :  { %v10875_v23 = vshll.u32 %v16716_v48, 16  ;;  %v10873_v49 = vshrl.u32 %v16716_v48, 16  ;;  %v16724_v47 = vld [vmem:[#allocation2 + $0x48] sm:$0xff]   ;;  %v12703_v40 = vshll.u32 %v19440_v33, 16  ;;  %v10918_v48 = vrot.slane %v10916_v19, 1  ;;  %v16737_v30 = vld [vmem:[#allocation2 + $0x3c] sm:$0xff]  }
 0x431   :  { %v16731_v53 = vld [vmem:[#allocation2 + $0x50] ss:$0 sps:$4 sm:$0x11]   ;;  %v12674_v13 = vrot.slane %v12672_v6, 1  ;;  %v16730_v61 = vld [vmem:[#allocation2 + $0x48] sm:$0xfe]  }
 0x432   :  { %10042 = vrot.lane.b32.xlu1 %v9961_v7, %s17055_s11  ;;  %11234 = vrot.lane.b32.xlu0 %v10871_v52, %s17057_s21  ;;  %v13504_v7 = vrot.slane %v16710_v25, 1  ;;  %v11722_v52 = vrot.slane %v16709_v3, 1  ;;  %v10877_v12 = vrot.slane %v10875_v23, 1  ;;  %v16733_v25 = vld [vmem:[#allocation2 + $0x38] ss:$0 sps:$4 sm:$0x11]  }
 0x433   :  { %v16741_v23 = vld [vmem:[#allocation2 + $0x44] ss:$0 sps:$4 sm:$0x11]   ;;  %v11727_v4 = vrot.slane %v16730_v61, 1  ;;  %v16736_v54 = vld [vmem:[#allocation2 + $0x54] sm:$0xff]   ;;  %v16752_v38 = vld [vmem:[#allocation2 + $0x48] sm:$0xff]  }
 0x434   :  { %v11723_v27 = vsel %vm2895_vm10, %v11721_v55, %v11722_v52  ;;  %v10878_v5 = vor.u32 %v10877_v12, %v10873_v49  ;;  %v13510_v55 = vrot.slane %v16732_v18, 1  ;;  %v10904_v62 = vshll.u32 %v16741_v23, 16  ;;  %v16743_v37 = vld [vmem:[#allocation2 + $0x5c] ss:$0 sps:$4 sm:$0x11]   ;;  %v19468_v19 = vld [vmem:[#allocation2 + $0x6c] sm:$0xff]  }
 0x435   :  { %v9481_v9 = vpop.permute.xlu0 %9480  ;;  %v16745_v49 = vld [vmem:[#allocation2 + $0x44] ss:$0 sps:$4 sm:$0x11]   ;;  %v16751_v43 = vld [vmem:[#allocation2 + $0x68] ss:$0 sps:$4 sm:$0x11]  }
 0x436   :  { %9556 = vst.msk [vmem:[#allocation3 + $0xa0] sm:$0xff] %vm2510_vm12, %v9481_v9  ;;  %10046 = vrot.lane.b32.xlu1 %v9967_v57, %s17055_s11  ;;  %11810 = vrot.lane.b32.xlu0 %v11717_v16, %s17058_s22  ;;  %v13506_v9 = vsel %vm2895_vm10, %v13504_v7, %v13505_v42  ;;  %v16713_v57 = vld [vmem:[#allocation2 + $0x24] sm:$0xff]   ;;  %v10899_v7 = vshll.u32 %v16740_v36, 16  ;;  %v16739_v42 = vld [vmem:[#allocation2 + $0x5c] ss:$0 sps:$4 sm:$0x11]  }
 0x437   :  { %v12708_v12 = vshll.u32 %v16739_v42, 16  ;;  %v10906_v22 = vrot.slane %v10904_v62, 1  ;;  %v11725_v14 = vrot.slane %v16745_v49, 1  ;;  %v16756_v18 = vld [vmem:[#allocation2 + $0x48] sm:$0xfe]   ;;  %v16759_v49 = vld [vmem:[#allocation2 + $0x54] sm:$0xff]  }
 0x438   :  { %v16763_v23 = vld [vmem:[#allocation2 + $0x5c] ss:$0 sps:$4 sm:$0x11]   ;;  %v16766_v62 = vld [vmem:[#allocation2 + $0x74] ss:$0 sps:$4 sm:$0x11]  }
 0x439   :  { %vm20691_vm0 = vcmask 130144   ;;  %vm20692_vm3 = vcmask 162944  }
 0x43a   :  { %10368 = vrot.lane.b32.xlu1 %v16691_v50, %s17056_s16  ;;  %12162 = vrot.lane.b32.xlu0 %v16690_v1, %s17059_s23  ;;  %v16712_v50 = vld [vmem:[#allocation2 + $0x3c] sm:$0xff]   ;;  %v10880_v1 = vshll.u32 %v16717_v35, 16  ;;  %v11728_v35 = vrot.slane %v16731_v53, 1  ;;  %vm20693_vm5 = vmmov %vm20691_vm0 }
 0x43b   :  { %vm20694_vm7 = vmmov %vm20692_vm3 }
 0x43c   :  { %v10882_v20 = vrot.slane %v10880_v1, 1  ;;  %v11729_v60 = vsel %vm2895_vm10, %v11727_v4, %v11728_v35  ;;  %v16744_v1 = vld [vmem:[#allocation2 + $0x3c] sm:$0xfe]   ;;  %vm20695_vm8 = vmmov %vm20691_vm0 }
 0x43d   :  { %v9479_v29 = vpop.permute.xlu1 %9478 }
 0x43e   :  { %9555 = vst.msk [vmem:[#allocation3 + $0x98] sm:$0xff] %vm2510_vm12, %v9479_v29  ;;  %11232 = vrot.lane.b32.xlu1 %v10859_v10, %s17057_s21  ;;  %13026 = vrot.lane.b32.xlu0 %v12663_v8, %s17060_s24  ;;  %v10883_v10 = vsel %vm2029_vm9, %v10878_v5, %v10882_v20  ;;  %v13514_v8 = vrot.slane %v16721_v34, 1  ;;  %v12701_v34 = vshrl.u32 %v19440_v33, 16  ;;  %v12710_v5 = vrot.slane %v12708_v12, 1  ;;  %v19482_v12 = vld [vmem:[#allocation2 + $0x78] sm:$0xff]  }
 0x442   :  { %v9485_v44 = vpop.permute.xlu0 %9484  ;;  %11808 = vrot.lane.b32.xlu1 %v11714_v41, %s17058_s22  ;;  %13602 = vrot.lane.b32.xlu0 %v13509_v2, %s17061_s25  ;;  %v12669_v41 = vrot.slane %v12667_v24, 1  ;;  %v16725_v2 = vld [vmem:[#allocation2 + $0x30] sm:$0xff]  }
 0x443   :  { %9558 = vst.msk [vmem:[#allocation3 + $0xb0] sm:$0xff] %vm2510_vm12, %v9485_v44  ;;  %v13515_v44 = vsel %vm2895_vm10, %v13513_v26, %v13514_v8  ;;  %v16753_v26 = vld [vmem:[#allocation2 + $0x50] ss:$0 sps:$4 sm:$0x11]   ;;  %v12691_v8 = vshll.u32 %v16752_v38, 16 }
 0x446   :  { %12160 = vrot.lane.b32.xlu1 %v16701_v32, %s17059_s23  ;;  %10374 = vrot.lane.b32.xlu0 %v16700_v28, %s17056_s16  ;;  %v10913_v32 = vrot.slane %v10911_v31, 1  ;;  %v12665_v28 = vshrl.u32 %v16728_v17, 16  ;;  %v16742_v17 = vld [vmem:[#allocation2 + $0x54] sm:$0xfe]  }
 0x447   :  { %v9483_v51 = vpop.permute.xlu1 %9482  ;;  %v13519_v11 = vrot.slane %v16742_v17, 1 }
 0x448   :  { %9557 = vst.msk [vmem:[#allocation3 + $0xa8] sm:$0xff] %vm2510_vm12, %v9483_v51  ;;  %v12670_v51 = vor.u32 %v12669_v41, %v12665_v28  ;;  %v10914_v56 = vor.u32 %v10913_v32, %v10909_v39  ;;  %v16762_v32 = vld [vmem:[#allocation2 + $0x54] sm:$0xff]   ;;  %v16747_v28 = vld [vmem:[#allocation2 + $0x48] sm:$0xff]   ;;  %v12689_v39 = vshrl.u32 %v16752_v38, 16 }
 0x44a   :  { %13024 = vrot.lane.b32.xlu1 %v12651_v58, %s17060_s24  ;;  %11238 = vrot.lane.b32.xlu0 %v10895_v59, %s17057_s21  ;;  %v13511_v58 = vrot.slane %v16733_v25, 1  ;;  %v12675_v52 = vsel %vm2029_vm9, %v12670_v51, %v12674_v13  ;;  %v10919_v46 = vsel %vm2029_vm9, %v10914_v56, %v10918_v48  ;;  %v16757_v48 = vld [vmem:[#allocation2 + $0x50] ss:$0 sps:$4 sm:$0x11]   ;;  %v12727_v51 = vshll.u32 %v19468_v19, 16 }
 0x44b   :  { %v13517_v42 = vrot.slane %v16757_v48, 1 }
 0x44e   :  { %13600 = vrot.lane.b32.xlu1 %v13506_v9, %s17061_s25  ;;  %11814 = vrot.lane.b32.xlu0 %v11723_v27, %s17058_s22  ;;  %v12705_v9 = vrot.slane %v12703_v40, 1  ;;  %v10897_v27 = vshrl.u32 %v16740_v36, 16  ;;  %v12693_v36 = vrot.slane %v12691_v8, 1  ;;  %v16755_v40 = vld [vmem:[#allocation2 + $0x68] ss:$0 sps:$4 sm:$0x11]  }
 0x44f   :  { %v9489_v16 = vpop.permute.xlu0 %9488  ;;  %v11734_v4 = vrot.slane %v16755_v40, 1 }
 0x450   :  { %9560 = vst.msk [vmem:[#allocation3 + $0xc0] sm:$0xff] %vm2510_vm12, %v9489_v16  ;;  %v16750_v16 = vld [vmem:[#allocation2 + $0x60] sm:$0xff]   ;;  %v12706_v20 = vor.u32 %v12705_v9, %v12701_v34  ;;  %v12725_v34 = vshrl.u32 %v19468_v19, 16  ;;  %v16774_v19 = vld [vmem:[#allocation2 + $0x68] ss:$0 sps:$4 sm:$0x11]  }
 0x451   :  { %v10935_v24 = vshll.u32 %v16750_v16, 16  ;;  %v10933_v25 = vshrl.u32 %v16750_v16, 16 }
 0x452   :  { %10372 = vrot.lane.b32.xlu1 %v16713_v57, %s17056_s16  ;;  %12166 = vrot.lane.b32.xlu0 %v16712_v50, %s17059_s23  ;;  %v10901_v57 = vrot.slane %v10899_v7, 1  ;;  %v13512_v50 = vsel %vm2895_vm10, %v13510_v55, %v13511_v58  ;;  %v12711_v31 = vsel %vm2029_vm9, %v12706_v20, %v12710_v5  ;;  %v13516_v55 = vrot.slane %v16756_v18, 1  ;;  %v16761_v58 = vld [vmem:[#allocation2 + $0x74] ss:$0 sps:$4 sm:$0x11]  }
 0x453   :  { %v10937_v33 = vrot.slane %v10935_v24, 1  ;;  %v10923_v7 = vshll.u32 %v16762_v32, 16  ;;  %v12732_v35 = vshll.u32 %v16761_v58, 16  ;;  %v10959_v5 = vshll.u32 %v19482_v12, 16  ;;  %v16781_v58 = vld [vmem:[#allocation2 + $0x84] sm:$0xff]  }
 0x454   :  { %v10902_v15 = vor.u32 %v10901_v57, %v10897_v27  ;;  %v10928_v27 = vshll.u32 %v16763_v23, 16  ;;  %v16765_v57 = vld [vmem:[#allocation2 + $0x6c] sm:$0xfe]   ;;  %v13518_v16 = vsel %vm2895_vm10, %v13516_v55, %v13517_v42  ;;  %v13526_v24 = vrot.slane %v16766_v62, 1 }
 0x455   :  { %v10938_v13 = vor.u32 %v10937_v33, %v10933_v25  ;;  %v10925_v9 = vrot.slane %v10923_v7, 1  ;;  %v10961_v18 = vrot.slane %v10959_v5, 1  ;;  %v16769_v25 = vld [vmem:[#allocation2 + $0x78] sm:$0xff]   ;;  %v16783_v7 = vld [vmem:[#allocation2 + $0x6c] sm:$0xff]   ;;  %v12751_v62 = vshll.u32 %v16781_v58, 16 }
 0x456   :  { %v9487_v29 = vpop.permute.xlu1 %9486  ;;  %11236 = vrot.lane.b32.xlu1 %v10883_v10, %s17057_s21  ;;  %13030 = vrot.lane.b32.xlu0 %v12687_v63, %s17060_s24  ;;  %v11724_v10 = vrot.slane %v16744_v1, 1  ;;  %v10907_v63 = vsel %vm2029_vm9, %v10902_v15, %v10906_v22  ;;  %v12729_v1 = vrot.slane %v12727_v51, 1  ;;  %v16773_v15 = vld [vmem:[#allocation2 + $0x60] sm:$0xff]   ;;  %v10930_v38 = vrot.slane %v10928_v27, 1 }
 0x457   :  { %9559 = vst.msk [vmem:[#allocation3 + $0xb8] sm:$0xff] %vm2510_vm12, %v9487_v29  ;;  %v13520_v29 = vrot.slane %v16743_v37, 1  ;;  %v13525_v22 = vrot.slane %v16765_v57, 1  ;;  %v12713_v40 = vshrl.u32 %v16773_v15, 16  ;;  %v10957_v51 = vshrl.u32 %v19482_v12, 16 }
 0x458   :  { %v11726_v41 = vsel %vm2895_vm10, %v11724_v10, %v11725_v14  ;;  %v12730_v14 = vor.u32 %v12729_v1, %v12725_v34  ;;  %v16819_v42 = vld [vmem:[%s20677_s4 + $0x10] ss:$0 sps:$4 sm:$0x33]   ;;  %v16784_v12 = vld [vmem:[#allocation2 + $0x74] ss:$0 sps:$4 sm:$0x11]  }
 0x459   :  { %v13521_v6 = vsel %vm2895_vm10, %v13519_v11, %v13520_v29  ;;  %v12734_v11 = vrot.slane %v12732_v35, 1  ;;  %v16768_v29 = vld [vmem:[#allocation2 + $0x5c] ss:$0 sps:$4 sm:$0x11]   ;;  %v10962_v23 = vor.u32 %v10961_v18, %v10957_v51  ;;  %v10952_v5 = vshll.u32 %v16784_v12, 16 }
 0x45a   :  { %11812 = vrot.lane.b32.xlu1 %v11720_v0, %s17058_s22  ;;  %13606 = vrot.lane.b32.xlu0 %v13515_v44, %s17061_s25  ;;  %v10940_v0 = vshll.u32 %v16751_v43, 16  ;;  %v12696_v44 = vshll.u32 %v16753_v26, 16  ;;  %v16772_v43 = vld [vmem:[#allocation2 + $0x80] ss:$0 sps:$4 sm:$0x11]  }
 0x45b   :  { %v12735_v33 = vsel %vm2029_vm9, %v12730_v14, %v12734_v11  ;;  %v16785_v11 = vld [vmem:[#allocation2 + $0x84] sm:$0xfe]   ;;  %v16788_v14 = vld [vmem:[#allocation2 + $0x74] ss:$0 sps:$4 sm:$0x11]  }
 0x45c   :  { %v10942_v53 = vrot.slane %v10940_v0, 1  ;;  %v12698_v56 = vrot.slane %v12696_v44, 1 }
 0x45e   :  { %v9493_v3 = vpop.permute.xlu0 %9492  ;;  %12164 = vrot.lane.b32.xlu1 %v16725_v2, %s17059_s23  ;;  %10378 = vrot.lane.b32.xlu0 %v16724_v47, %s17056_s16  ;;  %v16754_v2 = vld [vmem:[#allocation2 + $0x60] sm:$0xfe]  }
 0x45f   :  { %9562 = vst.msk [vmem:[#allocation3 + $0xd0] sm:$0xff] %vm2510_vm12, %v9493_v3  ;;  %v16746_v47 = vld [vmem:[#allocation2 + $0x60] sm:$0xff]   ;;  %v12694_v3 = vor.u32 %v12693_v36, %v12689_v39  ;;  %v11733_v61 = vrot.slane %v16754_v2, 1  ;;  %v10964_v2 = vshll.u32 %v16772_v43, 16 }
 0x460   :  { %v16770_v39 = vld [vmem:[#allocation2 + $0x60] sm:$0xff]  }
 0x461   :  { %v9491_v59 = vpop.permute.xlu1 %9490  ;;  %v11735_v37 = vsel %vm2895_vm10, %v11733_v61, %v11734_v4  ;;  %v10966_v61 = vrot.slane %v10964_v2, 1  ;;  %v13877_v4 = vsel %vm6861_vm6, %v16819_v42, 0 }
 0x462   :  { %9561 = vst.msk [vmem:[#allocation3 + $0xc8] sm:$0xff] %vm2510_vm12, %v9491_v59  ;;  %13028 = vrot.lane.b32.xlu1 %v12675_v52, %s17060_s24  ;;  %11242 = vrot.lane.b32.xlu0 %v10919_v46, %s17057_s21  ;;  %v12699_v52 = vsel %vm2029_vm9, %v12694_v3, %v12698_v56  ;;  %v10943_v46 = vsel %vm2029_vm9, %v10938_v13, %v10942_v53  ;;  %v16775_v53 = vld [vmem:[#allocation2 + $0x78] sm:$0xfe]   ;;  %v16776_v3 = vld [vmem:[#allocation2 + $0x80] ss:$0 sps:$4 sm:$0x11]  }
 0x463   :  { %v16778_v56 = vld [vmem:[#allocation2 + $0x68] ss:$0 sps:$4 sm:$0x11]  }
 0x466   :  { %13604 = vrot.lane.b32.xlu1 %v13512_v50, %s17061_s25  ;;  %11818 = vrot.lane.b32.xlu0 %v11729_v60, %s17058_s22  ;;  %v16767_v50 = vld [vmem:[#allocation2 + $0x54] sm:$0xfe]  }
 0x467   :  { %v11730_v10 = vrot.slane %v16767_v50, 1  ;;  %v11739_v50 = vrot.slane %v16775_v53, 1 }
 0x46a   :  { %v9497_v21 = vpop.permute.xlu0 %9496  ;;  %10376 = vrot.lane.b32.xlu1 %v16737_v30, %s17056_s16  ;;  %12170 = vrot.lane.b32.xlu0 %v16736_v54, %s17059_s23  ;;  %v16758_v30 = vld [vmem:[#allocation2 + $0x6c] sm:$0xff]   ;;  %v10921_v54 = vshrl.u32 %v16762_v32, 16 }
 0x46b   :  { %9564 = vst.msk [vmem:[#allocation3 + $0xe0] sm:$0xff] %vm2510_vm12, %v9497_v21 }
 0x46c   :  { %v10926_v20 = vor.u32 %v10925_v9, %v10921_v54  ;;  %v13523_v9 = vrot.slane %v16778_v56, 1 }
 0x46e   :  { %11240 = vrot.lane.b32.xlu1 %v10907_v63, %s17057_s21  ;;  %13034 = vrot.lane.b32.xlu0 %v12711_v31, %s17060_s24  ;;  %v16810_v63 = vld [vmem:[%s20677_s4] sm:$0xff]   ;;  %v10931_v8 = vsel %vm2029_vm9, %v10926_v20, %v10930_v38  ;;  %v11731_v31 = vrot.slane %v16768_v29, 1  ;;  %v16786_v38 = vld [vmem:[#allocation2 + $0x8c] ss:$0 sps:$4 sm:$0x11]  }
 0x46f   :  { %v9495_v45 = vpop.permute.xlu1 %9494  ;;  %16000 = vmatprep.subr.bf16.mxu1 %v16810_v63  ;;  %v16780_v20 = vld [vmem:[#allocation2 + $0x6c] sm:$0xff]  }
 0x470   :  { %9563 = vst.msk [vmem:[#allocation3 + $0xd8] sm:$0xff] %vm2510_vm12, %v9495_v45  ;;  %v12715_v45 = vshll.u32 %v16773_v15, 16  ;;  %16001 = vmatpush3.bf16.msra.mxu1 %v16810_v63  ;;  %v11732_v44 = vsel %vm2895_vm10, %v11730_v10, %v11731_v31  ;;  %v12749_v10 = vshrl.u32 %v16781_v58, 16 }
 0x472   :  { %11816 = vrot.lane.b32.xlu1 %v11726_v41, %s17058_s22  ;;  %13610 = vrot.lane.b32.xlu0 %v13521_v6, %s17061_s25  ;;  %v16814_v41 = vld [vmem:[%s20677_s4 + $0x8] sm:$0xff]   ;;  %v12717_v32 = vrot.slane %v12715_v45, 1  ;;  %v13527_v6 = vsel %vm2895_vm10, %v13525_v22, %v13526_v24  ;;  %v10945_v22 = vshrl.u32 %v16783_v7, 16  ;;  %v10954_v45 = vrot.slane %v10952_v5, 1 }
 0x473   :  { %16002 = vmatprep.subr.bf16.mxu1 %v16814_v41  ;;  %v16787_v24 = vld [vmem:[#allocation2 + $0x6c] sm:$0xfe]  }
 0x474   :  { %16003 = vmatpush3.bf16.msra.mxu1 %v16814_v41  ;;  %v12718_v55 = vor.u32 %v12717_v32, %v12713_v40 }
 0x475   :  { %16071 = vmatprep.subr.msk.bf16.mxu1 %vm6861_vm6, %v16819_v42  ;;  %v16798_v42 = vld [vmem:[#allocation2 + $0x80] ss:$0 sps:$4 sm:$0x11]   ;;  %vm20697_vm6 = vmmov %vm20691_vm0 }
 0x476   :  { %12168 = vrot.lane.b32.xlu1 %v16747_v28, %s17059_s23  ;;  %10382 = vrot.lane.b32.xlu0 %v16746_v47, %s17056_s16  ;;  %v12720_v47 = vshll.u32 %v16774_v19, 16  ;;  %v16777_v28 = vld [vmem:[#allocation2 + $0x60] sm:$0xfe]   ;;  %v16791_v19 = vld [vmem:[#allocation2 + $0x90] sm:$0xff]  }
 0x478   :  { %v9501_v59 = vpop.permute.xlu0 %9500  ;;  %16005 = vmatpush3.bf16.msra.mxu1 %v13877_v4 }
 0x479   :  { %9566 = vst.msk [vmem:[#allocation3 + $0xf0] sm:$0xff] %vm2510_vm12, %v9501_v59  ;;  %v12722_v59 = vrot.slane %v12720_v47, 1 }
 0x47a   :  { %13032 = vrot.lane.b32.xlu1 %v12699_v52, %s17060_s24  ;;  %11246 = vrot.lane.b32.xlu0 %v10943_v46, %s17057_s21  ;;  %v13522_v52 = vrot.slane %v16777_v28, 1  ;;  %v16782_v46 = vld [vmem:[#allocation2 + $0x8c] ss:$0 sps:$4 sm:$0x11]   ;;  %v10983_v28 = vshll.u32 %v16791_v19, 16 }
 0x47b   :  { %v12723_v57 = vsel %vm2029_vm9, %v12718_v55, %v12722_v59  ;;  %v12756_v34 = vshll.u32 %v16782_v46, 16  ;;  %v16789_v55 = vld [vmem:[#allocation2 + $0x90] sm:$0xff]   ;;  %v10981_v59 = vshrl.u32 %v16791_v19, 16  ;;  %v16806_v19 = vld [vmem:[#allocation2 + $0xa4] ss:$0 sps:$4 sm:$0x11]  }
 0x47c   :  { %v10017_v17 = vpop.permute.xlu0 %10016  ;;  %v9499_v60 = vpop.permute.xlu1 %9498  ;;  %v10985_v56 = vrot.slane %v10983_v28, 1 }
 0x47d   :  { %10112 = vst.msk [vmem:[#allocation3] sm:$0xff] %vm3088_vm13, %v10017_v17  ;;  %v10947_v17 = vshll.u32 %v16783_v7, 16  ;;  %v12758_v31 = vrot.slane %v12756_v34, 1  ;;  %v16797_v7 = vld [vmem:[#allocation2 + $0x78] sm:$0xfe]  }
 0x47e   :  { %13608 = vrot.lane.b32.xlu1 %v13518_v16, %s17061_s25  ;;  %9565 = vst.msk [vmem:[#allocation3 + $0xe8] sm:$0xff] %vm2510_vm12, %v9499_v60  ;;  %11822 = vrot.lane.b32.xlu0 %v11735_v37, %s17058_s22  ;;  %v10967_v16 = vsel %vm2029_vm9, %v10962_v23, %v10966_v61  ;;  %v11740_v60 = vrot.slane %v16776_v3, 1  ;;  %v16790_v3 = vld [vmem:[#allocation2 + $0x78] sm:$0xff]   ;;  %v10986_v12 = vor.u32 %v10985_v56, %v10981_v59 }
 0x47f   :  { %v10949_v54 = vrot.slane %v10947_v17, 1  ;;  %v13528_v17 = vrot.slane %v16797_v7, 1 }
 0x480   :  { %v10021_v21 = vpop.permute.xlu0 %10020  ;;  %v11741_v15 = vsel %vm2895_vm10, %v11739_v50, %v11740_v60  ;;  %v13529_v50 = vrot.slane %v16798_v42, 1 }
 0x481   :  { %10114 = vst.msk [vmem:[#allocation3 + $0x10] sm:$0xff] %vm3088_vm13, %v10021_v21  ;;  %v16779_v21 = vld [vmem:[#allocation2 + $0x84] sm:$0xff]   ;;  %v10950_v63 = vor.u32 %v10949_v54, %v10945_v22 }
 0x482   :  { %10380 = vrot.lane.b32.xlu1 %v16759_v49, %s17056_s16  ;;  %12174 = vrot.lane.b32.xlu0 %v16758_v30, %s17059_s23  ;;  %v13524_v49 = vsel %vm2895_vm10, %v13522_v52, %v13523_v9  ;;  %v12753_v30 = vrot.slane %v12751_v62, 1  ;;  %v16801_v52 = vld [vmem:[#allocation2 + $0x9c] sm:$0xff]   ;;  %v16803_v9 = vld [vmem:[#allocation2 + $0x84] sm:$0xff]  }
 0x483   :  { %v10955_v32 = vsel %vm2029_vm9, %v10950_v63, %v10954_v45  ;;  %v12775_v60 = vshll.u32 %v16801_v52, 16  ;;  %v16808_v63 = vld [vmem:[#allocation2 + $0x8c] ss:$0 sps:$4 sm:$0x11]  }
 0x484   :  { %v10025_v26 = vpop.permute.xlu0 %10024 }
 0x485   :  { %10116 = vst.msk [vmem:[#allocation3 + $0x20] sm:$0xff] %vm3088_vm13, %v10025_v26  ;;  %v16793_v26 = vld [vmem:[#allocation2 + $0x78] sm:$0xff]  }
 0x486   :  { %11244 = vrot.lane.b32.xlu1 %v10931_v8, %s17057_s21  ;;  %13038 = vrot.lane.b32.xlu0 %v12735_v33, %s17060_s24  ;;  %v12754_v8 = vor.u32 %v12753_v30, %v12749_v10  ;;  %v13531_v33 = vrot.slane %v16785_v11, 1  ;;  %v12739_v18 = vshll.u32 %v16793_v26, 16  ;;  %v12737_v61 = vshrl.u32 %v16793_v26, 16  ;;  %v16799_v26 = vld [vmem:[#allocation2 + $0x9c] sm:$0xff]  }
 0x487   :  { %v10971_v30 = vshll.u32 %v16803_v9, 16 }
 0x488   :  { %v9503_v0 = vpop.permute.xlu1 %9502  ;;  %v10029_v36 = vpop.permute.xlu0 %10028  ;;  %v12759_v47 = vsel %vm2029_vm9, %v12754_v8, %v12758_v31  ;;  %v12741_v51 = vrot.slane %v12739_v18, 1  ;;  %v16812_v31 = vld [vmem:[#allocation2 + $0xa8] sm:$0xff]  }
 0x489   :  { %9567 = vst.msk [vmem:[#allocation3 + $0xf8] sm:$0xff] %vm2510_vm12, %v9503_v0  ;;  %v13532_v0 = vrot.slane %v16786_v38, 1  ;;  %v12777_v38 = vrot.slane %v12775_v60, 1  ;;  %v16826_v60 = vld [vmem:[#allocation2 + $0x9c] sm:$0xff]   ;;  %vm20696_vm12 = vmmov %vm20692_vm3 }
 0x48a   :  { %10118 = vst.msk [vmem:[#allocation3 + $0x30] sm:$0xff] %vm3088_vm13, %v10029_v36  ;;  %11820 = vrot.lane.b32.xlu1 %v11732_v44, %s17058_s22  ;;  %13614 = vrot.lane.b32.xlu0 %v13527_v6, %s17061_s25  ;;  %v11736_v36 = vrot.slane %v16787_v24, 1  ;;  %v16792_v44 = vld [vmem:[#allocation2 + $0x98] ss:$0 sps:$4 sm:$0x11]   ;;  %v11737_v6 = vrot.slane %v16788_v14, 1  ;;  %v12742_v4 = vor.u32 %v12741_v51, %v12737_v61 }
 0x48b   :  { %v13533_v53 = vsel %vm2895_vm10, %v13531_v33, %v13532_v0  ;;  %v10973_v24 = vrot.slane %v10971_v30, 1  ;;  %v16800_v14 = vld [vmem:[#allocation2 + $0x84] sm:$0xff]   ;;  %v12773_v33 = vshrl.u32 %v16801_v52, 16 }
 0x48c   :  { %v10019_v48 = vpop.permute.xlu1 %10018  ;;  %v10033_v13 = vpop.permute.xlu0 %10032 }
 0x48d   :  { %10113 = vst.msk [vmem:[#allocation3 + $0x8] sm:$0xff] %vm3088_vm13, %v10019_v48  ;;  %10120 = vst.msk [vmem:[#allocation3 + $0x40] sm:$0xff] %vm3088_vm13, %v10033_v13  ;;  %v11738_v48 = vsel %vm2895_vm10, %v11736_v36, %v11737_v6  ;;  %v10988_v13 = vshll.u32 %v16792_v44, 16  ;;  %v16805_v44 = vld [vmem:[#allocation2 + $0x9c] sm:$0xfe]  }
 0x48e   :  { %12172 = vrot.lane.b32.xlu1 %v16770_v39, %s17059_s23  ;;  %10386 = vrot.lane.b32.xlu0 %v16769_v25, %s17056_s16  ;;  %v16794_v25 = vld [vmem:[#allocation2 + $0x80] ss:$0 sps:$4 sm:$0x11]   ;;  %v16813_v6 = vld [vmem:[#allocation2 + $0xb0] ss:$0 sps:$4 sm:$0x11]  }
 0x48f   :  { %v12744_v58 = vshll.u32 %v16794_v25, 16  ;;  %v11743_v25 = vrot.slane %v16808_v63, 1  ;;  %v13537_v56 = vrot.slane %v16805_v44, 1  ;;  %v11012_v7 = vshll.u32 %v16813_v6, 16 }
 0x490   :  { %v10023_v35 = vpop.permute.xlu1 %10022  ;;  %v10037_v27 = vpop.permute.xlu0 %10036  ;;  %v16829_v44 = vld [vmem:[#allocation2 + $0xbc] ss:$0 sps:$4 sm:$0x11]  }
 0x491   :  { %10115 = vst.msk [vmem:[#allocation3 + $0x18] sm:$0xff] %vm3088_vm13, %v10023_v35  ;;  %10122 = vst.msk [vmem:[#allocation3 + $0x50] sm:$0xff] %vm3088_vm13, %v10037_v27  ;;  %v16795_v35 = vld [vmem:[#allocation2 + $0x90] sm:$0xfe]   ;;  %v12746_v62 = vrot.slane %v12744_v58, 1 }
 0x492   :  { %13036 = vrot.lane.b32.xlu1 %v12723_v57, %s17060_s24  ;;  %11250 = vrot.lane.b32.xlu0 %v10967_v16, %s17057_s21  ;;  %v16796_v27 = vld [vmem:[#allocation2 + $0x98] ss:$0 sps:$4 sm:$0x11]   ;;  %v10990_v57 = vrot.slane %v10988_v13, 1  ;;  %v11745_v54 = vrot.slane %v16795_v35, 1  ;;  %v13538_v13 = vrot.slane %v16806_v19, 1 }
 0x493   :  { %v11746_v5 = vrot.slane %v16796_v27, 1  ;;  %v16811_v35 = vld [vmem:[#allocation2 + $0x90] sm:$0xff]  }
 0x494   :  { %v10027_v37 = vpop.permute.xlu1 %10026  ;;  %v10041_v1 = vpop.permute.xlu0 %10040  ;;  %v10991_v34 = vsel %vm2029_vm9, %v10986_v12, %v10990_v57  ;;  %v16809_v12 = vld [vmem:[#allocation2 + $0xa8] sm:$0xff]   ;;  %v19583_v57 = vld [vmem:[#allocation2 + $0xb4] sm:$0xff]  }
 0x495   :  { %10117 = vst.msk [vmem:[#allocation3 + $0x28] sm:$0xff] %vm3088_vm13, %v10027_v37  ;;  %10124 = vst.msk [vmem:[#allocation3 + $0x60] sm:$0xff] %vm3088_vm13, %v10041_v1  ;;  %v16802_v1 = vld [vmem:[#allocation2 + $0xa4] ss:$0 sps:$4 sm:$0x11]   ;;  %v11747_v10 = vsel %vm2895_vm10, %v11745_v54, %v11746_v5 }
 0x496   :  { %13612 = vrot.lane.b32.xlu1 %v13524_v49, %s17061_s25  ;;  %11826 = vrot.lane.b32.xlu0 %v11741_v15, %s17058_s22  ;;  %v12747_v49 = vsel %vm2029_vm9, %v12742_v4, %v12746_v62  ;;  %v16804_v15 = vld [vmem:[#allocation2 + $0x8c] ss:$0 sps:$4 sm:$0x11]   ;;  %v12780_v22 = vshll.u32 %v16802_v1, 16  ;;  %v13539_v4 = vsel %vm2895_vm10, %v13537_v56, %v13538_v13  ;;  %v16820_v1 = vld [vmem:[#allocation2 + $0x90] sm:$0xfe]  }
 0x497   :  { %v10976_v8 = vshll.u32 %v16804_v15, 16  ;;  %v16825_v5 = vld [vmem:[#allocation2 + $0xbc] ss:$0 sps:$4 sm:$0x11]   ;;  %v12799_v15 = vshll.u32 %v19583_v57, 16  ;;  %v13544_v13 = vrot.slane %v16829_v44, 1 }
 0x498   :  { %v10031_v29 = vpop.permute.xlu1 %10030  ;;  %v10045_v43 = vpop.permute.xlu0 %10044  ;;  %v16828_v19 = vld [vmem:[#allocation2 + $0xb4] sm:$0xfe]  }
 0x499   :  { %10119 = vst.msk [vmem:[#allocation3 + $0x38] sm:$0xff] %vm3088_vm13, %v10031_v29  ;;  %10126 = vst.msk [vmem:[#allocation3 + $0x70] sm:$0xff] %vm3088_vm13, %v10045_v43  ;;  %v16807_v29 = vld [vmem:[#allocation2 + $0x84] sm:$0xfe]   ;;  %v10969_v43 = vshrl.u32 %v16803_v9, 16  ;;  %v10978_v18 = vrot.slane %v10976_v8, 1 }
 0x49a   :  { %10384 = vrot.lane.b32.xlu1 %v16780_v20, %s17056_s16  ;;  %12178 = vrot.lane.b32.xlu0 %v16779_v21, %s17059_s23  ;;  %v13530_v20 = vsel %vm2895_vm10, %v13528_v17, %v13529_v50  ;;  %v16817_v9 = vld [vmem:[#allocation2 + $0xa8] sm:$0xfe]   ;;  %v11014_v17 = vrot.slane %v11012_v7, 1  ;;  %v16821_v50 = vld [vmem:[#allocation2 + $0x98] ss:$0 sps:$4 sm:$0x11]  }
 0x49b   :  { %v10974_v36 = vor.u32 %v10973_v24, %v10969_v43  ;;  %v16827_v24 = vld [vmem:[#allocation2 + $0xa4] ss:$0 sps:$4 sm:$0x11]   ;;  %v12801_v63 = vrot.slane %v12799_v15, 1  ;;  %v13543_v56 = vrot.slane %v16828_v19, 1 }
 0x49c   :  { %v10035_v41 = vpop.permute.xlu1 %10034  ;;  %v10049_v2 = vpop.permute.xlu0 %10048 }
 0x49d   :  { %10121 = vst.msk [vmem:[#allocation3 + $0x48] sm:$0xff] %vm3088_vm13, %v10035_v41  ;;  %10128 = vst.msk [vmem:[#allocation3 + $0x80] sm:$0xff] %vm3088_vm13, %v10049_v2  ;;  %v16815_v41 = vld [vmem:[#allocation2 + $0x90] sm:$0xff]   ;;  %v12778_v2 = vor.u32 %v12777_v38, %v12773_v33 }
 0x49e   :  { %11248 = vrot.lane.b32.xlu1 %v10955_v32, %s17057_s21  ;;  %13042 = vrot.lane.b32.xlu0 %v12759_v47, %s17060_s24  ;;  %v12782_v32 = vrot.slane %v12780_v22, 1  ;;  %v11742_v47 = vrot.slane %v16807_v29, 1  ;;  %v12761_v27 = vshrl.u32 %v16815_v41, 16  ;;  %v13535_v22 = vrot.slane %v16821_v50, 1 }
 0x49f   :  { %v10995_v29 = vshll.u32 %v16826_v60, 16 }
 0x4a0   :  { %v10039_v39 = vpop.permute.xlu1 %10038  ;;  %v10371_v40 = vpop.permute.xlu0 %10370  ;;  %v11744_v59 = vsel %vm2895_vm10, %v11742_v47, %v11743_v25  ;;  %v16831_v47 = vld [vmem:[#allocation2 + $0xa4] ss:$0 sps:$4 sm:$0x11]  }
 0x4a1   :  { %10123 = vst.msk [vmem:[#allocation3 + $0x58] sm:$0xff] %vm3088_vm13, %v10039_v39  ;;  %v11007_v39 = vshll.u32 %v16812_v31, 16  ;;  %v10997_v33 = vrot.slane %v10995_v29, 1 }
 0x4a2   :  { %10465 = vst.msk [vmem:[#allocation3 + $0x8] sm:$0xff] %vm20691_vm0, %v10371_v40  ;;  %11824 = vrot.lane.b32.xlu1 %v11738_v48, %s17058_s22  ;;  %13618 = vrot.lane.b32.xlu0 %v13533_v53, %s17061_s25  ;;  %v16816_v40 = vld [vmem:[#allocation2 + $0x98] ss:$0 sps:$4 sm:$0x11]   ;;  %v12763_v48 = vshll.u32 %v16815_v41, 16  ;;  %v10979_v53 = vsel %vm2029_vm9, %v10974_v36, %v10978_v18  ;;  %v11000_v36 = vshll.u32 %v16827_v24, 16  ;;  %vm20698_vm0 = vmmov %vm20692_vm3 }
 0x4a3   :  { %v11009_v58 = vrot.slane %v11007_v39, 1  ;;  %v12768_v42 = vshll.u32 %v16816_v40, 16 }
 0x4a4   :  { %v10043_v23 = vpop.permute.xlu1 %10042  ;;  %v11235_v46 = vpop.permute.xlu0 %11234  ;;  %v12765_v52 = vrot.slane %v12763_v48, 1  ;;  %v16836_v48 = vld [vmem:[#allocation2 + $0xa8] sm:$0xff]  }
 0x4a5   :  { %10125 = vst.msk [vmem:[#allocation3 + $0x68] sm:$0xff] %vm3088_vm13, %v10043_v23 }
 0x4a6   :  { %11329 = vst.msk [vmem:[#allocation3 + $0x8] sm:$0xff] %vm20692_vm3, %v11235_v46  ;;  %12176 = vrot.lane.b32.xlu1 %v16790_v3, %s17059_s23  ;;  %10390 = vrot.lane.b32.xlu0 %v16789_v55, %s17056_s16  ;;  %v12783_v3 = vsel %vm2029_vm9, %v12778_v2, %v12782_v32  ;;  %v11005_v55 = vshrl.u32 %v16812_v31, 16  ;;  %v16818_v46 = vld [vmem:[#allocation2 + $0xb0] ss:$0 sps:$4 sm:$0x11]   ;;  %v16822_v2 = vld [vmem:[#allocation2 + $0xb4] sm:$0xff]   ;;  %vm20699_vm3 = vmmov %vm20693_vm5 }
 0x4a7   :  { %v11752_v54 = vrot.slane %v16818_v46, 1  ;;  %v16830_v32 = vld [vmem:[#allocation2 + $0x9c] sm:$0xfe]  }
 0x4a8   :  { %v10047_v16 = vpop.permute.xlu1 %10046  ;;  %v11811_v37 = vpop.permute.xlu0 %11810  ;;  %v11010_v30 = vor.u32 %v11009_v58, %v11005_v55  ;;  %v11748_v55 = vrot.slane %v16830_v32, 1  ;;  %v16835_v58 = vld [vmem:[#allocation2 + $0xc8] ss:$0 sps:$4 sm:$0x11]  }
 0x4a9   :  { %10127 = vst.msk [vmem:[#allocation3 + $0x78] sm:$0xff] %vm3088_vm13, %v10047_v16  ;;  %v12770_v16 = vrot.slane %v12768_v42, 1 }
 0x4aa   :  { %11905 = vst.msk [vmem:[#allocation3 + $0x8] sm:$0xff] %vm4883_vm1, %v11811_v37  ;;  %13040 = vrot.lane.b32.xlu1 %v12747_v49, %s17060_s24  ;;  %11254 = vrot.lane.b32.xlu0 %v10991_v34, %s17057_s21  ;;  %v12766_v49 = vor.u32 %v12765_v52, %v12761_v27  ;;  %v11751_v34 = vrot.slane %v16817_v9, 1  ;;  %v11036_v27 = vshll.u32 %v16835_v58, 16 }
 0x4ac   :  { %v10369_v11 = vpop.permute.xlu1 %10368  ;;  %v12163_v21 = vpop.permute.xlu0 %12162  ;;  %v11753_v41 = vsel %vm2895_vm10, %v11751_v34, %v11752_v54  ;;  %v16838_v54 = vld [vmem:[#allocation2 + $0xc0] sm:$0xfe]  }
 0x4ad   :  { %10464 = vst.msk [vmem:[#allocation3] sm:$0xff] %vm20693_vm5, %v10369_v11  ;;  %vm20700_vm5 = vmmov %vm20698_vm0  ;;  %v11757_v19 = vrot.slane %v16838_v54, 1 }
 0x4ae   :  { %12257 = vst.msk [vmem:[#allocation3 + $0x8] sm:$0xff] %vm5237_vm2, %v12163_v21  ;;  %13616 = vrot.lane.b32.xlu1 %v13530_v20, %s17061_s25  ;;  %11830 = vrot.lane.b32.xlu0 %v11747_v10, %s17058_s22  ;;  %v12771_v21 = vsel %vm2029_vm9, %v12766_v49, %v12770_v16  ;;  %v13534_v20 = vrot.slane %v16820_v1, 1  ;;  %v11015_v10 = vsel %vm2029_vm9, %v11010_v30, %v11014_v17  ;;  %v16833_v17 = vld [vmem:[#allocation2 + $0xa8] sm:$0xff]   ;;  %v16841_v1 = vld [vmem:[#allocation2 + $0xb0] ss:$0 sps:$4 sm:$0x11]  }
 0x4af   :  { %v16840_v49 = vld [vmem:[#allocation2 + $0xa8] sm:$0xfe]  }
 0x4b0   :  { %v11233_v45 = vpop.permute.xlu1 %11232  ;;  %v13027_v0 = vpop.permute.xlu0 %13026  ;;  %v13536_v31 = vsel %vm2895_vm10, %v13534_v20, %v13535_v22  ;;  %v11038_v22 = vrot.slane %v11036_v27, 1  ;;  %v13540_v29 = vrot.slane %v16840_v49, 1  ;;  %v16855_v49 = vld [vmem:[#allocation2 + $0xec] ss:$0 sps:$4 sm:$0x11]  }
 0x4b1   :  { %11328 = vst.msk [vmem:[#allocation3] sm:$0xff] %vm20694_vm7, %v11233_v45  ;;  %v12804_v45 = vshll.u32 %v16825_v5, 16  ;;  %v16844_v5 = vld [vmem:[#allocation2 + $0xcc] sm:$0xff]   ;;  %vm20701_vm7 = vmmov %vm20699_vm3 }
 0x4b2   :  { %13121 = vst.msk [vmem:[#allocation3 + $0x8] sm:$0xff] %vm6102_vm4, %v13027_v0  ;;  %10388 = vrot.lane.b32.xlu1 %v16800_v14, %s17056_s16  ;;  %12182 = vrot.lane.b32.xlu0 %v16799_v26, %s17059_s23  ;;  %v12797_v14 = vshrl.u32 %v19583_v57, 16  ;;  %v10993_v26 = vshrl.u32 %v16826_v60, 16  ;;  %v16823_v0 = vld [vmem:[#allocation2 + $0x9c] sm:$0xff]  }
 0x4b3   :  { %v12806_v39 = vrot.slane %v12804_v45, 1  ;;  %v16832_v60 = vld [vmem:[#allocation2 + $0xc0] sm:$0xff]  }
 0x4b4   :  { %v11809_v28 = vpop.permute.xlu1 %11808  ;;  %v13603_v51 = vpop.permute.xlu0 %13602  ;;  %v10998_v40 = vor.u32 %v10997_v33, %v10993_v26 }
 0x4b5   :  { %11904 = vst.msk [vmem:[#allocation3] sm:$0xff] %vm4883_vm1, %v11809_v28 }
 0x4b6   :  { %13697 = vst.msk [vmem:[#allocation3 + $0x8] sm:$0xff] %vm6679_vm15, %v13603_v51  ;;  %11252 = vrot.lane.b32.xlu1 %v10979_v53, %s17057_s21  ;;  %13046 = vrot.lane.b32.xlu0 %v12783_v3, %s17060_s24  ;;  %v12802_v51 = vor.u32 %v12801_v63, %v12797_v14  ;;  %v11002_v53 = vrot.slane %v11000_v36, 1  ;;  %v16834_v3 = vld [vmem:[#allocation2 + $0xc0] sm:$0xff]   ;;  %v12823_v63 = vshll.u32 %v16844_v5, 16  ;;  %v12821_v36 = vshrl.u32 %v16844_v5, 16 }
 0x4b7   :  { %v11031_v46 = vshll.u32 %v16834_v3, 16  ;;  %v11029_v34 = vshrl.u32 %v16834_v3, 16  ;;  %v16851_v3 = vld [vmem:[#allocation2 + $0xbc] ss:$0 sps:$4 sm:$0x11]   ;;  %v16852_v5 = vld [vmem:[#allocation2 + $0xe4] sm:$0xff]  }
 0x4b8   :  { %v12161_v61 = vpop.permute.xlu1 %12160  ;;  %v10375_v23 = vpop.permute.xlu0 %10374  ;;  %v11003_v42 = vsel %vm2029_vm9, %v10998_v40, %v11002_v53  ;;  %v12807_v52 = vsel %vm2029_vm9, %v12802_v51, %v12806_v39  ;;  %v12825_v44 = vrot.slane %v12823_v63, 1  ;;  %v16843_v39 = vld [vmem:[#allocation2 + $0xb4] sm:$0xff]   ;;  %v16848_v40 = vld [vmem:[#allocation2 + $0xcc] sm:$0xfe]  }
 0x4b9   :  { %12256 = vst.msk [vmem:[#allocation3] sm:$0xff] %vm5237_vm2, %v12161_v61  ;;  %v11033_v16 = vrot.slane %v11031_v46, 1  ;;  %v16850_v51 = vld [vmem:[#allocation2 + $0xb4] sm:$0xfe]  }
 0x4ba   :  { %10467 = vst.msk [vmem:[#allocation3 + $0x18] sm:$0xff] %vm20695_vm8, %v10375_v23  ;;  %11828 = vrot.lane.b32.xlu1 %v11744_v59, %s17058_s22  ;;  %13622 = vrot.lane.b32.xlu0 %v13539_v4, %s17061_s25  ;;  %v11749_v23 = vrot.slane %v16831_v47, 1  ;;  %v12787_v59 = vshll.u32 %v16836_v48, 16  ;;  %v16837_v4 = vld [vmem:[#allocation2 + $0xb0] ss:$0 sps:$4 sm:$0x11]   ;;  %vm20702_vm8 = vmmov %vm20698_vm0 }
 0x4bb   :  { %v12792_v50 = vshll.u32 %v16837_v4, 16  ;;  %v11034_v20 = vor.u32 %v11033_v16, %v11029_v34  ;;  %v16865_v63 = vld [vmem:[#allocation2 + $0xf0] sm:$0xff]  }
 0x4bc   :  { %v13025_v62 = vpop.permute.xlu1 %13024  ;;  %v11239_v37 = vpop.permute.xlu0 %11238  ;;  %v12789_v57 = vrot.slane %v12787_v59, 1  ;;  %v16856_v59 = vld [vmem:[#allocation2 + $0xc0] sm:$0xff]  }
 0x4bd   :  { %13120 = vst.msk [vmem:[#allocation3] sm:$0xff] %vm6102_vm4, %v13025_v62  ;;  %v13729_v25 = vld [vmem:[#allocation3 + $0x8] sm:$0xff]  ;;  %v13545_v62 = vsel %vm2895_vm10, %v13543_v56, %v13544_v13  ;;  %v12794_v24 = vrot.slane %v12792_v50, 1  ;;  %v11039_v33 = vsel %vm2029_vm9, %v11034_v20, %v11038_v22  ;;  %v12811_v16 = vshll.u32 %v16856_v59, 16 }
 0x4be   :  { %11331 = vst.msk [vmem:[#allocation3 + $0x18] sm:$0xff] %vm20696_vm12, %v11239_v37  ;;  %12180 = vrot.lane.b32.xlu1 %v16811_v35, %s17059_s23  ;;  %10394 = vrot.lane.b32.xlu0 %v16809_v12, %s17056_s16  ;;  %v11750_v12 = vsel %vm2895_vm10, %v11748_v55, %v11749_v23  ;;  %v12785_v37 = vshrl.u32 %v16836_v48, 16  ;;  %v16849_v48 = vld [vmem:[#allocation2 + $0xd4] ss:$0 sps:$4 sm:$0x11]   ;;  %v16854_v23 = vld [vmem:[#allocation2 + $0xe4] sm:$0xff]   ;;  %vm20703_vm12 = vmmov %vm20699_vm3 }
 0x4bf   :  { %v11043_v50 = vshll.u32 %v16854_v23, 16  ;;  %v12813_v34 = vrot.slane %v12811_v16, 1  ;;  %v11041_v20 = vshrl.u32 %v16854_v23, 16  ;;  %v11048_v22 = vshll.u32 %v16855_v49, 16 }
 0x4c0   :  { %v13601_v11 = vpop.permute.xlu1 %13600  ;;  %v11815_v38 = vpop.permute.xlu0 %11814  ;;  %v16873_v16 = vld [vmem:[#allocation2 + $0xf8] ss:$0 sps:$4 sm:$0x11]  }
 0x4c1   :  { %13696 = vst.msk [vmem:[#allocation3] sm:$0xff] %vm6679_vm15, %v13601_v11  ;;  %v12790_v11 = vor.u32 %v12789_v57, %v12785_v37  ;;  %v11045_v54 = vrot.slane %v11043_v50, 1  ;;  %v16874_v50 = vld [vmem:[#allocation2 + $0xf0] sm:$0xfe]  }
 0x4c2   :  { %11907 = vst.msk [vmem:[#allocation3 + $0x18] sm:$0xff] %vm4883_vm1, %v11815_v38  ;;  %13044 = vrot.lane.b32.xlu1 %v12771_v21, %s17060_s24  ;;  %11258 = vrot.lane.b32.xlu0 %v11015_v10, %s17057_s21  ;;  %v16839_v38 = vld [vmem:[#allocation2 + $0xc8] ss:$0 sps:$4 sm:$0x11]   ;;  %v16846_v21 = vld [vmem:[#allocation2 + $0xb4] sm:$0xff]  }
 0x4c3   :  { %v16845_v10 = vld [vmem:[#allocation2 + $0xd4] ss:$0 sps:$4 sm:$0x11]   ;;  %v11019_v45 = vshll.u32 %v16846_v21, 16  ;;  %v11017_v47 = vshrl.u32 %v16846_v21, 16 }
 0x4c4   :  { %v10373_v43 = vpop.permute.xlu1 %10372  ;;  %v12167_v8 = vpop.permute.xlu0 %12166  ;;  %v16875_v49 = vld [vmem:[#allocation2 + $0xf8] ss:$0 sps:$4 sm:$0x11]  }
 0x4c5   :  { %10466 = vst.msk [vmem:[#allocation3 + $0x10] sm:$0xff] %vm20697_vm6, %v10373_v43  ;;  %v13541_v43 = vrot.slane %v16841_v1, 1  ;;  %vm20704_vm6 = vmmov %vm20698_vm0 }
 0x4c6   :  { %12259 = vst.msk [vmem:[#allocation3 + $0x18] sm:$0xff] %vm5237_vm2, %v12167_v8  ;;  %13620 = vrot.lane.b32.xlu1 %v13536_v31, %s17061_s25  ;;  %11834 = vrot.lane.b32.xlu0 %v11753_v41, %s17058_s22  ;;  %v12795_v8 = vsel %vm2029_vm9, %v12790_v11, %v12794_v24  ;;  %v16847_v31 = vld [vmem:[#allocation2 + $0xbc] ss:$0 sps:$4 sm:$0x11]   ;;  %v11758_v41 = vrot.slane %v16839_v38, 1  ;;  %v12809_v11 = vshrl.u32 %v16856_v59, 16 }
 0x4c7   :  { %v11024_v53 = vshll.u32 %v16847_v31, 16  ;;  %v16859_v24 = vld [vmem:[#allocation2 + $0xec] ss:$0 sps:$4 sm:$0x11]   ;;  %v16863_v31 = vld [vmem:[#allocation2 + $0xe4] sm:$0xfe]  }
 0x4c8   :  { %v11237_v6 = vpop.permute.xlu1 %11236  ;;  %v13728_v18 = vld [vmem:[#allocation3] sm:$0xff]  ;;  %v13031_v28 = vpop.permute.xlu0 %13030 }
 0x4c9   :  { %11330 = vst.msk [vmem:[#allocation3 + $0x10] sm:$0xff] %vm20698_vm0, %v11237_v6  ;;  %16006 = vmatprep.mubr.msk.bf16.mxu1 %vm6764_vm14, %v13728_v18  ;;  %v13542_v6 = vsel %vm2895_vm10, %v13540_v29, %v13541_v43  ;;  %v16842_v18 = vld [vmem:[#allocation2 + $0xcc] sm:$0xff]   ;;  %v16860_v29 = vld [vmem:[#allocation2 + $0xc0] sm:$0xfe]   ;;  %vm20705_vm0 = vmmov %vm20699_vm3 }
 0x4ca   :  { %13123 = vst.msk [vmem:[#allocation3 + $0x18] sm:$0xff] %vm6102_vm4, %v13031_v28  ;;  %10392 = vrot.lane.b32.xlu1 %v16823_v0, %s17056_s16  ;;  %16007 = vmatmul.mubr.msk.bf16.vlgmr.msra.gmra.mrb[0].mxu1 %vm6764_vm14, %v13729_v25  ;;  %v11021_v28 = vrot.slane %v11019_v45, 1  ;;  %v11759_v25 = vsel %vm2895_vm10, %v11757_v19, %v11758_v41  ;;  %v16861_v43 = vld [vmem:[#allocation2 + $0xc8] ss:$0 sps:$4 sm:$0x11]   ;;  %v11050_v41 = vrot.slane %v11048_v22, 1 }
 0x4cb   :  { %12186 = vrot.lane.b32.xlu0 %v16822_v2, %s17059_s23  ;;  %v12828_v2 = vshll.u32 %v16845_v10, 16  ;;  %v16868_v59 = vld [vmem:[#allocation2 + $0xf0] sm:$0xfe]   ;;  %v9975_v22 = vrot.slane %v16873_v16, 1 }
 0x4cc   :  { %v11813_v61 = vpop.permute.xlu1 %11812  ;;  %v13607_v7 = vpop.permute.xlu0 %13606 }
 0x4cd   :  { %11906 = vst.msk [vmem:[#allocation3 + $0x10] sm:$0xff] %vm4883_vm1, %v11813_v61  ;;  %v12826_v61 = vor.u32 %v12825_v44, %v12821_v36  ;;  %v12830_v55 = vrot.slane %v12828_v2, 1  ;;  %v13546_v2 = vrot.slane %v16860_v29, 1  ;;  %v16879_v29 = vld [vmem:[#allocation2 + $0x104] ss:$0 sps:$4 sm:$0x11]  }
 0x4ce   :  { %13699 = vst.msk [vmem:[#allocation3 + $0x18] sm:$0xff] %vm6679_vm15, %v13607_v7  ;;  %11256 = vrot.lane.b32.xlu1 %v11003_v42, %s17057_s21  ;;  %v11022_v42 = vor.u32 %v11021_v28, %v11017_v47  ;;  %v11761_v47 = vrot.slane %v16859_v24, 1  ;;  %v16866_v28 = vld [vmem:[#allocation2 + $0xf8] ss:$0 sps:$4 sm:$0x11]   ;;  %v11763_v24 = vrot.slane %v16874_v50, 1 }
 0x4cf   :  { %13050 = vrot.lane.b32.xlu0 %v12807_v52, %s17060_s24  ;;  %v11026_v52 = vrot.slane %v11024_v53, 1  ;;  %v12831_v4 = vsel %vm2029_vm9, %v12826_v61, %v12830_v55  ;;  %v16862_v55 = vld [vmem:[#allocation2 + $0xf0] sm:$0xff]  }
 0x4d0   :  { %v12165_v35 = vpop.permute.xlu1 %12164  ;;  %v10379_v9 = vpop.permute.xlu0 %10378 }
 0x4d1   :  { %12258 = vst.msk [vmem:[#allocation3 + $0x10] sm:$0xff] %vm5237_vm2, %v12165_v35  ;;  %v13549_v35 = vrot.slane %v16848_v40, 1  ;;  %v11027_v57 = vsel %vm2029_vm9, %v11022_v42, %v11026_v52  ;;  %v9971_v40 = vrot.slane %v16863_v31, 1  ;;  %v16869_v52 = vld [vmem:[#allocation2 + $0xf8] ss:$0 sps:$4 sm:$0x11]  }
 0x4d2   :  { %10469 = vst.msk [vmem:[#allocation3 + $0x28] sm:$0xff] %vm20699_vm3, %v10379_v9  ;;  %11832 = vrot.lane.b32.xlu1 %v11750_v12, %s17058_s22  ;;  %v13550_v9 = vrot.slane %v16849_v48, 1  ;;  %v11754_v12 = vrot.slane %v16850_v51, 1  ;;  %v16871_v51 = vld [vmem:[#allocation2 + $0xf8] ss:$0 sps:$4 sm:$0x11]   ;;  %vm20706_vm3 = vmmov %vm20700_vm5 }
 0x4d3   :  { %13626 = vrot.lane.b32.xlu0 %v13545_v62, %s17061_s25  ;;  %v11755_v62 = vrot.slane %v16851_v3, 1  ;;  %v16881_v31 = vld [vmem:[#allocation2 + $0x104] ss:$0 sps:$4 sm:$0x11]  }
 0x4d4   :  { %v13029_v30 = vpop.permute.xlu1 %13028  ;;  %v11243_v15 = vpop.permute.xlu0 %11242  ;;  %v13551_v37 = vsel %vm2895_vm10, %v13549_v35, %v13550_v9 }
 0x4d5   :  { %13122 = vst.msk [vmem:[#allocation3 + $0x10] sm:$0xff] %vm6102_vm4, %v13029_v30  ;;  %v13731_v7 = vld [vmem:[#allocation3 + $0x18] sm:$0xff]  ;;  %v11756_v30 = vsel %vm2895_vm10, %v11754_v12, %v11755_v62  ;;  %v16867_v62 = vld [vmem:[#allocation2 + $0xf0] sm:$0xff]  }
 0x4d6   :  { %11333 = vst.msk [vmem:[#allocation3 + $0x28] sm:$0xff] %vm20700_vm5, %v11243_v15  ;;  %12184 = vrot.lane.b32.xlu1 %v16833_v17, %s17059_s23  ;;  %v16857_v17 = vld [vmem:[#allocation2 + $0xc8] ss:$0 sps:$4 sm:$0x11]   ;;  %v16853_v15 = vld [vmem:[#allocation2 + $0xc0] sm:$0xff]   ;;  %vm20707_vm5 = vmmov %vm20705_vm0 }
 0x4d7   :  { %10398 = vrot.lane.b32.xlu0 %v16832_v60, %s17056_s16  ;;  %v12816_v38 = vshll.u32 %v16857_v17, 16  ;;  %v11060_v17 = vshll.u32 %v16871_v51, 16 }
 0x4d8   :  { %v13605_v14 = vpop.permute.xlu1 %13604  ;;  %v11819_v26 = vpop.permute.xlu0 %11818 }
 0x4d9   :  { %13698 = vst.msk [vmem:[#allocation3 + $0x10] sm:$0xff] %vm6679_vm15, %v13605_v14  ;;  %v12814_v14 = vor.u32 %v12813_v34, %v12809_v11  ;;  %v12818_v45 = vrot.slane %v12816_v38, 1  ;;  %v16880_v34 = vld [vmem:[#allocation2 + $0xfc] sm:$0xff]   ;;  %v11062_v38 = vrot.slane %v11060_v17, 1 }
 0x4da   :  { %11909 = vst.msk [vmem:[#allocation3 + $0x28] sm:$0xff] %vm4883_vm1, %v11819_v26  ;;  %13048 = vrot.lane.b32.xlu1 %v12795_v8, %s17060_s24  ;;  %v11046_v26 = vor.u32 %v11045_v54, %v11041_v20  ;;  %v16858_v8 = vld [vmem:[#allocation2 + $0xe4] sm:$0xfe]   ;;  %v16878_v11 = vld [vmem:[#allocation2 + $0xfc] sm:$0xff]  }
 0x4db   :  { %11262 = vrot.lane.b32.xlu0 %v11039_v33, %s17057_s21  ;;  %v16864_v33 = vld [vmem:[#allocation2 + $0xec] ss:$0 sps:$4 sm:$0x11]   ;;  %v12819_v44 = vsel %vm2029_vm9, %v12814_v14, %v12818_v45 }
 0x4dc   :  { %v10377_v0 = vpop.permute.xlu1 %10376  ;;  %v12171_v32 = vpop.permute.xlu0 %12170  ;;  %v9972_v48 = vrot.slane %v16864_v33, 1 }
 0x4dd   :  { %10468 = vst.msk [vmem:[#allocation3 + $0x20] sm:$0xff] %vm20701_vm7, %v10377_v0  ;;  %v16870_v0 = vld [vmem:[#allocation2 + $0xf0] sm:$0xff]   ;;  %vm20708_vm7 = vmmov %vm20706_vm3 }
 0x4de   :  { %12261 = vst.msk [vmem:[#allocation3 + $0x28] sm:$0xff] %vm5237_vm2, %v12171_v32  ;;  %13624 = vrot.lane.b32.xlu1 %v13542_v6, %s17061_s25  ;;  %v13547_v32 = vrot.slane %v16861_v43, 1  ;;  %v11051_v6 = vsel %vm2029_vm9, %v11046_v26, %v11050_v41  ;;  %v11055_v53 = vshll.u32 %v16870_v0, 16  ;;  %v9973_v35 = vsel %vm2895_vm10, %v9971_v40, %v9972_v48  ;;  %v16884_v48 = vld [vmem:[#allocation2 + $0xfc] sm:$0xfe]  }
 0x4df   :  { %11838 = vrot.lane.b32.xlu0 %v11759_v25, %s17058_s22  ;;  %v12835_v25 = vshll.u32 %v16865_v63, 16  ;;  %v11764_v43 = vrot.slane %v16875_v49, 1 }
 0x4e0   :  { %v11241_v56 = vpop.permute.xlu1 %11240  ;;  %v13730_v13 = vld [vmem:[#allocation3 + $0x10] sm:$0xff]  ;;  %v13035_v58 = vpop.permute.xlu0 %13034  ;;  %v11057_v12 = vrot.slane %v11055_v53, 1 }
 0x4e1   :  { %11332 = vst.msk [vmem:[#allocation3 + $0x20] sm:$0xff] %vm20702_vm8, %v11241_v56  ;;  %16010 = vmatprep.mubr.msk.bf16.mxu1 %vm6764_vm14, %v13730_v13  ;;  %v13548_v56 = vsel %vm2895_vm10, %v13546_v2, %v13547_v32  ;;  %v12837_v61 = vrot.slane %v12835_v25, 1  ;;  %v11765_v41 = vsel %vm2895_vm10, %v11763_v24, %v11764_v43  ;;  %v11072_v32 = vshll.u32 %v16879_v29, 16  ;;  %v16885_v25 = vld [vmem:[#allocation2 + $0x104] ss:$0 sps:$4 sm:$0x11]   ;;  %vm20709_vm8 = vmmov %vm20705_vm0 }
 0x4e2   :  { %13125 = vst.msk [vmem:[#allocation3 + $0x28] sm:$0xff] %vm6102_vm4, %v13035_v58  ;;  %10396 = vrot.lane.b32.xlu1 %v16843_v39, %s17056_s16  ;;  %16011 = vmatmul.mubr.msk.bf16.gmra.mrb[4].mxu1 %vm6764_vm14, %v13731_v7  ;;  %v12833_v58 = vshrl.u32 %v16865_v63, 16  ;;  %v12840_v7 = vshll.u32 %v16866_v28, 16  ;;  %v12847_v63 = vshll.u32 %v16880_v34, 16  ;;  %v16876_v53 = vld [vmem:[#allocation2 + $0xfc] sm:$0xff]  }
 0x4e3   :  { %12190 = vrot.lane.b32.xlu0 %v16842_v18, %s17059_s23  ;;  %v11760_v18 = vrot.slane %v16858_v8, 1  ;;  %v11067_v8 = vshll.u32 %v16878_v11, 16  ;;  %v16883_v28 = vld [vmem:[#allocation2 + $0x104] ss:$0 sps:$4 sm:$0x11]  }
 0x4e4   :  { %v11817_v46 = vpop.permute.xlu1 %11816  ;;  %v13611_v27 = vpop.permute.xlu0 %13610 }
 0x4e5   :  { %11908 = vst.msk [vmem:[#allocation3 + $0x20] sm:$0xff] %vm4883_vm1, %v11817_v46  ;;  %v11762_v13 = vsel %vm2895_vm10, %v11760_v18, %v11761_v47  ;;  %v11053_v46 = vshrl.u32 %v16870_v0, 16  ;;  %v11065_v0 = vshrl.u32 %v16878_v11, 16  ;;  %v11069_v2 = vrot.slane %v11067_v8, 1  ;;  %v16882_v47 = vld [vmem:[#allocation2 + $0xfc] sm:$0xfe]  }
 0x4e6   :  { %13701 = vst.msk [vmem:[#allocation3 + $0x28] sm:$0xff] %vm6679_vm15, %v13611_v27  ;;  %11260 = vrot.lane.b32.xlu1 %v11027_v57, %s17057_s21  ;;  %v16872_v27 = vld [vmem:[#allocation2 + $0xf0] sm:$0xfe]   ;;  %v12838_v57 = vor.u32 %v12837_v61, %v12833_v58  ;;  %v12852_v18 = vshll.u32 %v16881_v31, 16  ;;  %v16898_v31 = vld [vmem:[#allocation2 + $0x108] sm:$0xfe]  }
 0x4e7   :  { %13054 = vrot.lane.b32.xlu0 %v12831_v4, %s17060_s24  ;;  %v11070_v61 = vor.u32 %v11069_v2, %v11065_v0  ;;  %v16902_v0 = vld [vmem:[#allocation2 + $0x114] sm:$0xff]  }
 0x4e8   :  { %v12169_v60 = vpop.permute.xlu1 %12168  ;;  %v10383_v1 = vpop.permute.xlu0 %10382  ;;  %v12854_v58 = vrot.slane %v12852_v18, 1 }
 0x4e9   :  { %12260 = vst.msk [vmem:[#allocation3 + $0x20] sm:$0xff] %vm5237_vm2, %v12169_v60 }
 0x4ea   :  { %10471 = vst.msk [vmem:[#allocation3 + $0x38] sm:$0xff] %vm20703_vm12, %v10383_v1  ;;  %11836 = vrot.lane.b32.xlu1 %v11756_v30, %s17058_s22  ;;  %v11058_v30 = vor.u32 %v11057_v12, %v11053_v46  ;;  %v16894_v12 = vld [vmem:[#allocation2 + $0x108] sm:$0xff]   ;;  %vm20710_vm12 = vmmov %vm20706_vm3 }
 0x4eb   :  { %13630 = vrot.lane.b32.xlu0 %v13551_v37, %s17061_s25  ;;  %v12842_v37 = vrot.slane %v12840_v7, 1 }
 0x4ec   :  { %v13033_v21 = vpop.permute.xlu1 %13032  ;;  %v11247_v10 = vpop.permute.xlu0 %11246  ;;  %v11063_v14 = vsel %vm2029_vm9, %v11058_v30, %v11062_v38  ;;  %v11079_v30 = vshll.u32 %v16894_v12, 16 }
 0x4ed   :  { %13124 = vst.msk [vmem:[#allocation3 + $0x20] sm:$0xff] %vm6102_vm4, %v13033_v21  ;;  %v13733_v9 = vld [vmem:[#allocation3 + $0x28] sm:$0xff]  ;;  %v12843_v54 = vsel %vm2029_vm9, %v12838_v57, %v12842_v37  ;;  %v9974_v21 = vrot.slane %v16872_v27, 1 }
 0x4ee   :  { %11335 = vst.msk [vmem:[#allocation3 + $0x38] sm:$0xff] %vm20704_vm6, %v11247_v10  ;;  %12188 = vrot.lane.b32.xlu1 %v16853_v15, %s17059_s23  ;;  %v13553_v15 = vrot.slane %v16869_v52, 1  ;;  %v11081_v29 = vrot.slane %v11079_v30, 1  ;;  %vm20711_vm6 = vmmov %vm20705_vm0 }
 0x4ef   :  { %10400 = vrot.lane.b32.xlu0 %v16852_v5, %s17056_s16  ;;  %v13552_v5 = vrot.slane %v16868_v59, 1  ;;  %v11766_v59 = vrot.slane %v16882_v47, 1 }
 0x4f0   :  { %v13609_v19 = vpop.permute.xlu1 %13608  ;;  %v11823_v36 = vpop.permute.xlu0 %11822 }
 0x4f1   :  { %13700 = vst.msk [vmem:[#allocation3 + $0x20] sm:$0xff] %vm6679_vm15, %v13609_v19  ;;  %v13554_v26 = vsel %vm2895_vm10, %v13552_v5, %v13553_v15  ;;  %v9976_v19 = vsel %vm2895_vm10, %v9974_v21, %v9975_v22  ;;  %v16886_v5 = vld [vmem:[#allocation2 + $0x108] sm:$0xff]   ;;  %v16895_v15 = vld [vmem:[#allocation2 + $0x110] ss:$0 sps:$4 sm:$0x11]  }
 0x4f2   :  { %11911 = vst.msk [vmem:[#allocation3 + $0x38] sm:$0xff] %vm4883_vm1, %v11823_v36  ;;  %13052 = vrot.lane.b32.xlu1 %v12819_v44, %s17060_s24  ;;  %v12849_v36 = vrot.slane %v12847_v63, 1  ;;  %v16877_v44 = vld [vmem:[#allocation2 + $0xfc] sm:$0xff]   ;;  %v16893_v21 = vld [vmem:[#allocation2 + $0x110] ss:$0 sps:$4 sm:$0x11]  }
 0x4f3   :  { %11264 = vrot.lane.b32.xlu0 %v11051_v6, %s17057_s21  ;;  %v12845_v6 = vshrl.u32 %v16880_v34, 16  ;;  %v11077_v63 = vshrl.u32 %v16894_v12, 16  ;;  %v11084_v8 = vshll.u32 %v16895_v15, 16  ;;  %v16901_v12 = vld [vmem:[#allocation2 + $0x114] sm:$0xff]  }
 0x4f4   :  { %v10381_v39 = vpop.permute.xlu1 %10380  ;;  %v12175_v3 = vpop.permute.xlu0 %12174  ;;  %v16912_v15 = vld [vmem:[#allocation2 + $0x11c] ss:$0 sps:$4 sm:$0x11]  }
 0x4f5   :  { %10470 = vst.msk [vmem:[#allocation3 + $0x30] sm:$0xff] %vm20705_vm0, %v10381_v39  ;;  %v16889_v39 = vld [vmem:[#allocation2 + $0x108] sm:$0xff]   ;;  %v11082_v2 = vor.u32 %v11081_v29, %v11077_v63  ;;  %v11086_v47 = vrot.slane %v11084_v8, 1  ;;  %vm20712_vm0 = vmmov %vm20706_vm3 }
 0x4f6   :  { %12263 = vst.msk [vmem:[#allocation3 + $0x38] sm:$0xff] %vm5237_vm2, %v12175_v3  ;;  %13628 = vrot.lane.b32.xlu1 %v13548_v56, %s17061_s25  ;;  %v12850_v3 = vor.u32 %v12849_v36, %v12845_v6  ;;  %v16887_v56 = vld [vmem:[#allocation2 + $0xfc] sm:$0xfe]   ;;  %v12859_v7 = vshll.u32 %v16889_v39, 16  ;;  %v12857_v38 = vshrl.u32 %v16889_v39, 16  ;;  %v16904_v36 = vld [vmem:[#allocation2 + $0x114] sm:$0xff]  }
 0x4f7   :  { %11840 = vrot.lane.b32.xlu0 %v11762_v13, %s17058_s22  ;;  %v16888_v13 = vld [vmem:[#allocation2 + $0x104] ss:$0 sps:$4 sm:$0x11]   ;;  %v9977_v57 = vrot.slane %v16887_v56, 1 }
 0x4f8   :  { %v11245_v42 = vpop.permute.xlu1 %11244  ;;  %v13732_v23 = vld [vmem:[#allocation3 + $0x20] sm:$0xff]  ;;  %v13039_v4 = vpop.permute.xlu0 %13038  ;;  %v12855_v46 = vsel %vm2029_vm9, %v12850_v3, %v12854_v58  ;;  %v12861_v17 = vrot.slane %v12859_v7, 1  ;;  %v16905_v6 = vld [vmem:[#allocation2 + $0x11c] ss:$0 sps:$4 sm:$0x11]  }
 0x4f9   :  { %11334 = vst.msk [vmem:[#allocation3 + $0x30] sm:$0xff] %vm20706_vm3, %v11245_v42  ;;  %16014 = vmatprep.mubr.msk.bf16.mxu1 %vm6764_vm14, %v13732_v23  ;;  %v11074_v23 = vrot.slane %v11072_v32, 1  ;;  %v16903_v32 = vld [vmem:[#allocation2 + $0x11c] ss:$0 sps:$4 sm:$0x11]   ;;  %vm20713_vm3 = vmmov %vm20707_vm5 }
 0x4fa   :  { %13127 = vst.msk [vmem:[#allocation3 + $0x38] sm:$0xff] %vm6102_vm4, %v13039_v4  ;;  %10050 = vrot.lane.b32.xlu1 %v9973_v35, %s17055_s11  ;;  %16015 = vmatmul.mubr.msk.bf16.gmra.mrb[8].mxu1 %vm6764_vm14, %v13733_v9  ;;  %v11767_v4 = vrot.slane %v16883_v28, 1  ;;  %v13555_v35 = vrot.slane %v16884_v48, 1  ;;  %v13556_v9 = vrot.slane %v16885_v25, 1  ;;  %v11769_v48 = vrot.slane %v16898_v31, 1 }
 0x4fb   :  { %12192 = vrot.lane.b32.xlu0 %v16862_v55, %s17059_s23  ;;  %v16890_v55 = vld [vmem:[#allocation2 + $0x110] ss:$0 sps:$4 sm:$0x11]   ;;  %v11075_v27 = vsel %vm2029_vm9, %v11070_v61, %v11074_v23  ;;  %v11096_v61 = vshll.u32 %v16903_v32, 16  ;;  %v16906_v7 = vld [vmem:[#allocation2 + $0x114] sm:$0xfe]  }
 0x4fc   :  { %v11821_v60 = vpop.permute.xlu1 %11820  ;;  %v13615_v1 = vpop.permute.xlu0 %13614  ;;  %v13557_v49 = vsel %vm2895_vm10, %v13555_v35, %v13556_v9  ;;  %v11768_v34 = vsel %vm2895_vm10, %v11766_v59, %v11767_v4  ;;  %v16908_v35 = vld [vmem:[#allocation2 + $0x114] sm:$0xfe]   ;;  %v16919_v63 = vld [vmem:[#allocation2 + $0x128] ss:$0 sps:$4 sm:$0x11]  }
 0x4fd   :  { %11910 = vst.msk [vmem:[#allocation3 + $0x30] sm:$0xff] %vm4883_vm1, %v11821_v60  ;;  %v12864_v60 = vshll.u32 %v16890_v55, 16  ;;  %v12876_v55 = vshll.u32 %v16905_v6, 16  ;;  %v16900_v9 = vld [vmem:[#allocation2 + $0x114] sm:$0xff]   ;;  %v16916_v32 = vld [vmem:[#allocation2 + $0x120] sm:$0xfe]  }
 0x4fe   :  { %13703 = vst.msk [vmem:[#allocation3 + $0x38] sm:$0xff] %vm6679_vm15, %v13615_v1  ;;  %10402 = vrot.lane.b32.xlu1 %v16867_v62, %s17056_s16  ;;  %v9978_v62 = vrot.slane %v16888_v13, 1  ;;  %v11091_v13 = vshll.u32 %v16902_v0, 16 }
 0x4ff   :  { %13056 = vrot.lane.b32.xlu0 %v12843_v54, %s17060_s24  ;;  %v16892_v54 = vld [vmem:[#allocation2 + $0x108] sm:$0xfe]   ;;  %v12866_v24 = vrot.slane %v12864_v60, 1 }
 0x500   :  { %v12173_v20 = vpop.permute.xlu1 %12172  ;;  %v10387_v10 = vpop.permute.xlu0 %10386  ;;  %v9979_v22 = vsel %vm2895_vm10, %v9977_v57, %v9978_v62  ;;  %v13558_v43 = vrot.slane %v16892_v54, 1  ;;  %v11093_v4 = vrot.slane %v11091_v13, 1  ;;  %v11098_v57 = vrot.slane %v11096_v61, 1 }
 0x501   :  { %12262 = vst.msk [vmem:[#allocation3 + $0x30] sm:$0xff] %vm5237_vm2, %v12173_v20  ;;  %v12869_v62 = vshrl.u32 %v16904_v36, 16  ;;  %v13561_v54 = vrot.slane %v16908_v35, 1  ;;  %v13564_v13 = vrot.slane %v16916_v32, 1  ;;  %v16942_v32 = vld [vmem:[#allocation2 + $0x138] sm:$0xff]  }
 0x502   :  { %10473 = vst.msk [vmem:[#allocation3 + $0x48] sm:$0xff] %vm20707_vm5, %v10387_v10  ;;  %11266 = vrot.lane.b32.xlu1 %v11063_v14, %s17057_s21  ;;  %v12862_v10 = vor.u32 %v12861_v17, %v12857_v38  ;;  %v16891_v14 = vld [vmem:[#allocation2 + $0x108] sm:$0xff]   ;;  %vm20714_vm5 = vmmov %vm20712_vm0 }
 0x503   :  { %13632 = vrot.lane.b32.xlu0 %v13554_v26, %s17061_s25  ;;  %v16896_v26 = vld [vmem:[#allocation2 + $0x108] sm:$0xfe]  }
 0x504   :  { %v13037_v45 = vpop.permute.xlu1 %13036  ;;  %v11251_v33 = vpop.permute.xlu0 %11250  ;;  %v12867_v18 = vsel %vm2029_vm9, %v12862_v10, %v12866_v24  ;;  %v9980_v25 = vrot.slane %v16896_v26, 1  ;;  %v16914_v10 = vld [vmem:[#allocation2 + $0x128] ss:$0 sps:$4 sm:$0x11]  }
 0x505   :  { %13126 = vst.msk [vmem:[#allocation3 + $0x30] sm:$0xff] %vm6102_vm4, %v13037_v45  ;;  %v13735_v1 = vld [vmem:[#allocation3 + $0x38] sm:$0xff]  ;;  %v16899_v45 = vld [vmem:[#allocation2 + $0x110] ss:$0 sps:$4 sm:$0x11]  }
 0x506   :  { %11337 = vst.msk [vmem:[#allocation3 + $0x48] sm:$0xff] %vm20708_vm7, %v11251_v33  ;;  %11842 = vrot.lane.b32.xlu1 %v11765_v41, %s17058_s22  ;;  %v16897_v41 = vld [vmem:[#allocation2 + $0x110] ss:$0 sps:$4 sm:$0x11]   ;;  %vm20715_vm7 = vmmov %vm20713_vm3 }
 0x507   :  { %10052 = vrot.lane.b32.xlu0 %v9976_v19, %s17055_s11  ;;  %v13559_v19 = vrot.slane %v16893_v21, 1  ;;  %v9981_v56 = vrot.slane %v16897_v41, 1  ;;  %v16917_v41 = vld [vmem:[#allocation2 + $0x128] ss:$0 sps:$4 sm:$0x11]  }
 0x508   :  { %v13613_v40 = vpop.permute.xlu1 %13612  ;;  %v11827_v51 = vpop.permute.xlu0 %11826  ;;  %v13565_v61 = vrot.slane %v16917_v41, 1 }
 0x509   :  { %13702 = vst.msk [vmem:[#allocation3 + $0x30] sm:$0xff] %vm6679_vm15, %v13613_v40  ;;  %v11087_v40 = vsel %vm2029_vm9, %v11082_v2, %v11086_v47  ;;  %v13560_v3 = vsel %vm2895_vm10, %v13558_v43, %v13559_v19  ;;  %v9984_v19 = vrot.slane %v16912_v15, 1  ;;  %v16910_v2 = vld [vmem:[#allocation2 + $0x120] sm:$0xff]  }
 0x50a   :  { %11913 = vst.msk [vmem:[#allocation3 + $0x48] sm:$0xff] %vm4883_vm1, %v11827_v51  ;;  %12194 = vrot.lane.b32.xlu1 %v16877_v44, %s17059_s23  ;;  %v11770_v51 = vrot.slane %v16899_v45, 1 }
 0x50b   :  { %10404 = vrot.lane.b32.xlu0 %v16876_v53, %s17056_s16  ;;  %v12871_v53 = vshll.u32 %v16904_v36, 16 }
 0x50c   :  { %v10385_v42 = vpop.permute.xlu1 %10384  ;;  %v12179_v52 = vpop.permute.xlu0 %12178  ;;  %v11771_v23 = vsel %vm2895_vm10, %v11769_v48, %v11770_v51  ;;  %v16922_v48 = vld [vmem:[#allocation2 + $0x120] sm:$0xfe]  }
 0x50d   :  { %10472 = vst.msk [vmem:[#allocation3 + $0x40] sm:$0xff] %vm20709_vm8, %v10385_v42  ;;  %v12873_v59 = vrot.slane %v12871_v53, 1  ;;  %v16915_v53 = vld [vmem:[#allocation2 + $0x120] sm:$0xff]   ;;  %vm20716_vm8 = vmmov %vm20712_vm0 }
 0x50e   :  { %12265 = vst.msk [vmem:[#allocation3 + $0x48] sm:$0xff] %vm5237_vm2, %v12179_v52  ;;  %13058 = vrot.lane.b32.xlu1 %v12855_v46, %s17060_s24  ;;  %v16907_v52 = vld [vmem:[#allocation2 + $0x11c] ss:$0 sps:$4 sm:$0x11]   ;;  %v9982_v46 = vsel %vm2895_vm10, %v9980_v25, %v9981_v56  ;;  %v19753_v25 = vld [vmem:[#allocation2 + $0x12c] sm:$0xff]  }
 0x50f   :  { %11268 = vrot.lane.b32.xlu0 %v11075_v27, %s17057_s21  ;;  %v11089_v27 = vshrl.u32 %v16902_v0, 16 }
 0x510   :  { %v11249_v16 = vpop.permute.xlu1 %11248  ;;  %v13734_v50 = vld [vmem:[#allocation3 + $0x30] sm:$0xff]  ;;  %v13043_v37 = vpop.permute.xlu0 %13042 }
 0x511   :  { %11336 = vst.msk [vmem:[#allocation3 + $0x40] sm:$0xff] %vm20710_vm12, %v11249_v16  ;;  %16018 = vmatprep.mubr.msk.bf16.mxu1 %vm6764_vm14, %v13734_v50  ;;  %v12878_v16 = vrot.slane %v12876_v55, 1  ;;  %v16909_v50 = vld [vmem:[#allocation2 + $0x11c] ss:$0 sps:$4 sm:$0x11]   ;;  %v11094_v30 = vor.u32 %v11093_v4, %v11089_v27  ;;  %v11115_v4 = vshll.u32 %v19753_v25, 16  ;;  %vm20717_vm12 = vmmov %vm20713_vm3 }
 0x512   :  { %13129 = vst.msk [vmem:[#allocation3 + $0x48] sm:$0xff] %vm6102_vm4, %v13043_v37  ;;  %13634 = vrot.lane.b32.xlu1 %v13557_v49, %s17061_s25  ;;  %16019 = vmatmul.mubr.msk.bf16.gmra.mrb[12].mxu1 %vm6764_vm14, %v13735_v1  ;;  %v12874_v37 = vor.u32 %v12873_v59, %v12869_v62  ;;  %v11772_v49 = vrot.slane %v16906_v7, 1  ;;  %v16913_v1 = vld [vmem:[#allocation2 + $0x120] sm:$0xff]  }
 0x513   :  { %11844 = vrot.lane.b32.xlu0 %v11768_v34, %s17058_s22  ;;  %v11773_v34 = vrot.slane %v16907_v52, 1  ;;  %v12883_v43 = vshll.u32 %v16913_v1, 16  ;;  %v16920_v7 = vld [vmem:[#allocation2 + $0x120] sm:$0xfe]  }
 0x514   :  { %v11825_v11 = vpop.permute.xlu1 %11824  ;;  %v13619_v20 = vpop.permute.xlu0 %13618  ;;  %v12879_v24 = vsel %vm2029_vm9, %v12874_v37, %v12878_v16 }
 0x515   :  { %11912 = vst.msk [vmem:[#allocation3 + $0x40] sm:$0xff] %vm4883_vm1, %v11825_v11  ;;  %v16918_v11 = vld [vmem:[#allocation2 + $0x120] sm:$0xff]   ;;  %v11774_v0 = vsel %vm2895_vm10, %v11772_v49, %v11773_v34  ;;  %v12885_v36 = vrot.slane %v12883_v43, 1  ;;  %v16929_v49 = vld [vmem:[#allocation2 + $0x134] ss:$0 sps:$4 sm:$0x11]  }
 0x516   :  { %13705 = vst.msk [vmem:[#allocation3 + $0x48] sm:$0xff] %vm6679_vm15, %v13619_v20  ;;  %10054 = vrot.lane.b32.xlu1 %v9979_v22, %s17055_s11  ;;  %v13562_v20 = vrot.slane %v16909_v50, 1  ;;  %v11103_v8 = vshll.u32 %v16918_v11, 16  ;;  %v11101_v55 = vshrl.u32 %v16918_v11, 16  ;;  %v13566_v50 = vsel %vm2895_vm10, %v13564_v13, %v13565_v61 }
 0x517   :  { %12196 = vrot.lane.b32.xlu0 %v16886_v5, %s17059_s23  ;;  %v16911_v5 = vld [vmem:[#allocation2 + $0x114] sm:$0xfe]  }
 0x518   :  { %v12177_v33 = vpop.permute.xlu1 %12176  ;;  %v10391_v44 = vpop.permute.xlu0 %10390  ;;  %v13563_v45 = vsel %vm2895_vm10, %v13561_v54, %v13562_v20  ;;  %v11105_v47 = vrot.slane %v11103_v8, 1  ;;  %v12900_v20 = vshll.u32 %v16929_v49, 16  ;;  %v16947_v49 = vld [vmem:[#allocation2 + $0x140] ss:$0 sps:$4 sm:$0x11]  }
 0x519   :  { %12264 = vst.msk [vmem:[#allocation3 + $0x40] sm:$0xff] %vm5237_vm2, %v12177_v33  ;;  %v9983_v33 = vrot.slane %v16911_v5, 1  ;;  %v16930_v5 = vld [vmem:[#allocation2 + $0x12c] sm:$0xfe]  }
 0x51a   :  { %10475 = vst.msk [vmem:[#allocation3 + $0x58] sm:$0xff] %vm20711_vm6, %v10391_v44  ;;  %10406 = vrot.lane.b32.xlu1 %v16891_v14, %s17056_s16  ;;  %v11099_v14 = vsel %vm2029_vm9, %v11094_v30, %v11098_v57  ;;  %v12888_v44 = vshll.u32 %v16914_v10, 16  ;;  %v11106_v52 = vor.u32 %v11105_v47, %v11101_v55  ;;  %v16927_v57 = vld [vmem:[#allocation2 + $0x134] ss:$0 sps:$4 sm:$0x11]   ;;  %v11117_v30 = vrot.slane %v11115_v4, 1  ;;  %vm20718_vm6 = vmmov %vm20712_vm0 }
 0x51b   :  { %13060 = vrot.lane.b32.xlu0 %v12867_v18, %s17060_s24  ;;  %v12881_v18 = vshrl.u32 %v16913_v1, 16  ;;  %v11120_v34 = vshll.u32 %v16927_v57, 16  ;;  %v11113_v10 = vshrl.u32 %v19753_v25, 16  ;;  %v12902_v41 = vrot.slane %v12900_v20, 1 }
 0x51c   :  { %v13041_v28 = vpop.permute.xlu1 %13040  ;;  %v11255_v39 = vpop.permute.xlu0 %11254  ;;  %v12890_v56 = vrot.slane %v12888_v44, 1  ;;  %v16938_v47 = vld [vmem:[#allocation2 + $0x140] ss:$0 sps:$4 sm:$0x11]  }
 0x51d   :  { %13128 = vst.msk [vmem:[#allocation3 + $0x40] sm:$0xff] %vm6102_vm4, %v13041_v28  ;;  %v13737_v29 = vld [vmem:[#allocation3 + $0x48] sm:$0xff]  ;;  %v11108_v28 = vshll.u32 %v16919_v63, 16  ;;  %v12886_v51 = vor.u32 %v12885_v36, %v12881_v18  ;;  %v16936_v18 = vld [vmem:[#allocation2 + $0x134] ss:$0 sps:$4 sm:$0x11]  }
 0x51e   :  { %11339 = vst.msk [vmem:[#allocation3 + $0x58] sm:$0xff] %vm20712_vm0, %v11255_v39  ;;  %11270 = vrot.lane.b32.xlu1 %v11087_v40, %s17057_s21  ;;  %v9985_v40 = vsel %vm2895_vm10, %v9983_v33, %v9984_v19  ;;  %v11122_v33 = vrot.slane %v11120_v34, 1  ;;  %vm20719_vm0 = vmmov %vm20713_vm3  ;;  %v16946_v34 = vld [vmem:[#allocation2 + $0x138] sm:$0xfe]  }
 0x51f   :  { %13636 = vrot.lane.b32.xlu0 %v13560_v3, %s17061_s25  ;;  %v16923_v3 = vld [vmem:[#allocation2 + $0x128] ss:$0 sps:$4 sm:$0x11]   ;;  %v12891_v35 = vsel %vm2029_vm9, %v12886_v51, %v12890_v56  ;;  %v12912_v56 = vshll.u32 %v16938_v47, 16 }
 0x520   :  { %v13617_v58 = vpop.permute.xlu1 %13616  ;;  %v11831_v42 = vpop.permute.xlu0 %11830  ;;  %v16949_v47 = vld [vmem:[#allocation2 + $0x144] sm:$0xff]  }
 0x521   :  { %13704 = vst.msk [vmem:[#allocation3 + $0x40] sm:$0xff] %vm6679_vm15, %v13617_v58 }
 0x522   :  { %11915 = vst.msk [vmem:[#allocation3 + $0x58] sm:$0xff] %vm4883_vm1, %v11831_v42  ;;  %11846 = vrot.lane.b32.xlu1 %v11771_v23, %s17058_s22  ;;  %v16921_v42 = vld [vmem:[#allocation2 + $0x128] ss:$0 sps:$4 sm:$0x11]   ;;  %v16928_v23 = vld [vmem:[#allocation2 + $0x12c] sm:$0xff]  }
 0x523   :  { %10056 = vrot.lane.b32.xlu0 %v9982_v46, %s17055_s11  ;;  %v11110_v46 = vrot.slane %v11108_v28, 1  ;;  %v12895_v62 = vshll.u32 %v16928_v23, 16  ;;  %v9987_v37 = vrot.slane %v16921_v42, 1 }
 0x524   :  { %v10389_v17 = vpop.permute.xlu1 %10388  ;;  %v12183_v60 = vpop.permute.xlu0 %12182 }
 0x525   :  { %10474 = vst.msk [vmem:[#allocation3 + $0x50] sm:$0xff] %vm20713_vm3, %v10389_v17  ;;  %v11111_v16 = vsel %vm2029_vm9, %v11106_v52, %v11110_v46  ;;  %v12897_v54 = vrot.slane %v12895_v62, 1  ;;  %v16934_v52 = vld [vmem:[#allocation2 + $0x138] sm:$0xff]   ;;  %v11125_v46 = vshrl.u32 %v16942_v32, 16  ;;  %vm20720_vm3 = vmmov %vm20714_vm5 }
 0x526   :  { %12267 = vst.msk [vmem:[#allocation3 + $0x58] sm:$0xff] %vm5237_vm2, %v12183_v60  ;;  %12198 = vrot.lane.b32.xlu1 %v16901_v12, %s17059_s23  ;;  %v11776_v12 = vrot.slane %v16923_v3, 1  ;;  %v9986_v60 = vrot.slane %v16920_v7, 1 }
 0x527   :  { %10408 = vrot.lane.b32.xlu0 %v16900_v9, %s17056_s16  ;;  %v11775_v9 = vrot.slane %v16922_v48, 1 }
 0x528   :  { %v11253_v38 = vpop.permute.xlu1 %11252  ;;  %v13736_v21 = vld [vmem:[#allocation3 + $0x40] sm:$0xff]  ;;  %v13047_v22 = vpop.permute.xlu0 %13046 }
 0x529   :  { %11338 = vst.msk [vmem:[#allocation3 + $0x50] sm:$0xff] %vm20714_vm5, %v11253_v38  ;;  %16022 = vmatprep.mubr.msk.bf16.mxu1 %vm6764_vm14, %v13736_v21  ;;  %v11777_v11 = vsel %vm2895_vm10, %v11775_v9, %v11776_v12  ;;  %v16932_v38 = vld [vmem:[#allocation2 + $0x12c] sm:$0xfe]   ;;  %v9988_v21 = vsel %vm2895_vm10, %v9986_v60, %v9987_v37  ;;  %v12914_v9 = vrot.slane %v12912_v56, 1  ;;  %v16940_v12 = vld [vmem:[#allocation2 + $0x138] sm:$0xfe]   ;;  %vm20721_vm5 = vmmov %vm20719_vm0 }
 0x52a   :  { %13131 = vst.msk [vmem:[#allocation3 + $0x58] sm:$0xff] %vm6102_vm4, %v13047_v22  ;;  %13062 = vrot.lane.b32.xlu1 %v12879_v24, %s17060_s24  ;;  %16023 = vmatmul.mubr.msk.bf16.gmra.mrb[16].mxu1 %vm6764_vm14, %v13737_v29  ;;  %v16933_v22 = vld [vmem:[#allocation2 + $0x134] ss:$0 sps:$4 sm:$0x11]   ;;  %v16924_v24 = vld [vmem:[#allocation2 + $0x12c] sm:$0xff]   ;;  %v13567_v36 = vrot.slane %v16932_v38, 1 }
 0x52b   :  { %11272 = vrot.lane.b32.xlu0 %v11099_v14, %s17057_s21  ;;  %v16925_v29 = vld [vmem:[#allocation2 + $0x12c] sm:$0xff]   ;;  %v12893_v14 = vshrl.u32 %v16928_v23, 16  ;;  %v13568_v44 = vrot.slane %v16933_v22, 1  ;;  %v16945_v37 = vld [vmem:[#allocation2 + $0x140] ss:$0 sps:$4 sm:$0x11]  }
 0x52c   :  { %v11829_v26 = vpop.permute.xlu1 %11828  ;;  %v13623_v31 = vpop.permute.xlu0 %13622  ;;  %v16948_v56 = vld [vmem:[#allocation2 + $0x144] sm:$0xff]  }
 0x52d   :  { %11914 = vst.msk [vmem:[#allocation3 + $0x50] sm:$0xff] %vm4883_vm1, %v11829_v26  ;;  %v16931_v26 = vld [vmem:[#allocation2 + $0x134] ss:$0 sps:$4 sm:$0x11]   ;;  %v12898_v19 = vor.u32 %v12897_v54, %v12893_v14  ;;  %v13569_v61 = vsel %vm2895_vm10, %v13567_v36, %v13568_v44  ;;  %v11781_v14 = vrot.slane %v16946_v34, 1 }
 0x52e   :  { %13707 = vst.msk [vmem:[#allocation3 + $0x58] sm:$0xff] %vm6679_vm15, %v13623_v31  ;;  %13638 = vrot.lane.b32.xlu1 %v13563_v45, %s17061_s25  ;;  %v11118_v45 = vor.u32 %v11117_v30, %v11113_v10  ;;  %v11779_v48 = vrot.slane %v16931_v26, 1  ;;  %v9993_v10 = vrot.slane %v16945_v37, 1  ;;  %v11782_v26 = vrot.slane %v16947_v49, 1 }
 0x52f   :  { %11848 = vrot.lane.b32.xlu0 %v11774_v0, %s17058_s22  ;;  %v11778_v0 = vrot.slane %v16930_v5, 1  ;;  %v12903_v25 = vsel %vm2029_vm9, %v12898_v19, %v12902_v41  ;;  %v13570_v5 = vrot.slane %v16940_v12, 1 }
 0x530   :  { %v12181_v6 = vpop.permute.xlu1 %12180  ;;  %v10395_v39 = vpop.permute.xlu0 %10394 }
 0x531   :  { %12266 = vst.msk [vmem:[#allocation3 + $0x50] sm:$0xff] %vm5237_vm2, %v12181_v6  ;;  %v11780_v42 = vsel %vm2895_vm10, %v11778_v0, %v11779_v48  ;;  %v16957_v48 = vld [vmem:[#allocation2 + $0x14c] ss:$0 sps:$4 sm:$0x11]  }
 0x532   :  { %10477 = vst.msk [vmem:[#allocation3 + $0x68] sm:$0xff] %vm20715_vm7, %v10395_v39  ;;  %10058 = vrot.lane.b32.xlu1 %v9985_v40, %s17055_s11  ;;  %v16935_v39 = vld [vmem:[#allocation2 + $0x12c] sm:$0xfe]   ;;  %v11123_v40 = vsel %vm2029_vm9, %v11118_v45, %v11122_v33  ;;  %vm20722_vm7 = vmmov %vm20720_vm3  ;;  %v13574_v12 = vrot.slane %v16957_v48, 1 }
 0x533   :  { %12200 = vrot.lane.b32.xlu0 %v16910_v2, %s17059_s23  ;;  %v16937_v2 = vld [vmem:[#allocation2 + $0x138] sm:$0xff]   ;;  %v9989_v55 = vrot.slane %v16935_v39, 1  ;;  %v16954_v39 = vld [vmem:[#allocation2 + $0x144] sm:$0xfe]  }
 0x534   :  { %v13045_v58 = vpop.permute.xlu1 %13044  ;;  %v11259_v59 = vpop.permute.xlu0 %11258  ;;  %v12907_v51 = vshll.u32 %v16937_v2, 16  ;;  %v12905_v7 = vshrl.u32 %v16937_v2, 16  ;;  %v11783_v2 = vsel %vm2895_vm10, %v11781_v14, %v11782_v26  ;;  %v16968_v26 = vld [vmem:[#allocation2 + $0x150] sm:$0xfe]  }
 0x535   :  { %13130 = vst.msk [vmem:[#allocation3 + $0x50] sm:$0xff] %vm6102_vm4, %v13045_v58  ;;  %v13739_v31 = vld [vmem:[#allocation3 + $0x58] sm:$0xff]  ;;  %v9990_v58 = vrot.slane %v16936_v18, 1 }
 0x536   :  { %11341 = vst.msk [vmem:[#allocation3 + $0x68] sm:$0xff] %vm20716_vm8, %v11259_v59  ;;  %10410 = vrot.lane.b32.xlu1 %v16915_v53, %s17056_s16  ;;  %v11127_v53 = vshll.u32 %v16942_v32, 16  ;;  %v12909_v23 = vrot.slane %v12907_v51, 1  ;;  %v16943_v59 = vld [vmem:[#allocation2 + $0x140] ss:$0 sps:$4 sm:$0x11]   ;;  %vm20723_vm8 = vmmov %vm20719_vm0 }
 0x537   :  { %13064 = vrot.lane.b32.xlu0 %v12891_v35, %s17060_s24  ;;  %v9991_v62 = vsel %vm2895_vm10, %v9989_v55, %v9990_v58  ;;  %v11132_v60 = vshll.u32 %v16943_v59, 16 }
 0x538   :  { %v13621_v27 = vpop.permute.xlu1 %13620  ;;  %v11835_v17 = vpop.permute.xlu0 %11834  ;;  %v11129_v4 = vrot.slane %v11127_v53, 1  ;;  %v16956_v53 = vld [vmem:[#allocation2 + $0x144] sm:$0xfe]  }
 0x539   :  { %13706 = vst.msk [vmem:[#allocation3 + $0x50] sm:$0xff] %vm6679_vm15, %v13621_v27  ;;  %v16941_v27 = vld [vmem:[#allocation2 + $0x140] ss:$0 sps:$4 sm:$0x11]   ;;  %v11134_v20 = vrot.slane %v11132_v60, 1 }
 0x53a   :  { %11917 = vst.msk [vmem:[#allocation3 + $0x68] sm:$0xff] %vm4883_vm1, %v11835_v17  ;;  %11274 = vrot.lane.b32.xlu1 %v11111_v16, %s17057_s21  ;;  %v16944_v17 = vld [vmem:[#allocation2 + $0x138] sm:$0xfe]   ;;  %v12910_v16 = vor.u32 %v12909_v23, %v12905_v7  ;;  %v16955_v7 = vld [vmem:[#allocation2 + $0x14c] ss:$0 sps:$4 sm:$0x11]  }
 0x53b   :  { %13640 = vrot.lane.b32.xlu0 %v13566_v50, %s17061_s25  ;;  %v16939_v50 = vld [vmem:[#allocation2 + $0x138] sm:$0xff]   ;;  %v9992_v22 = vrot.slane %v16944_v17, 1  ;;  %v16961_v23 = vld [vmem:[#allocation2 + $0x150] sm:$0xff]  }
 0x53c   :  { %v10393_v1 = vpop.permute.xlu1 %10392  ;;  %v12915_v38 = vsel %vm2029_vm9, %v12910_v16, %v12914_v9  ;;  %v12931_v17 = vshll.u32 %v16961_v23, 16  ;;  %v16962_v60 = vld [vmem:[#allocation2 + $0x158] ss:$0 sps:$4 sm:$0x11]  }
 0x53d   :  { %v12187_v15 = vpop.permute.xlu0 %12186  ;;  %10476 = vst.msk [vmem:[#allocation3 + $0x60] sm:$0xff] %vm20717_vm12, %v10393_v1  ;;  %v16950_v1 = vld [vmem:[#allocation2 + $0x144] sm:$0xff]   ;;  %v9994_v18 = vsel %vm2895_vm10, %v9992_v22, %v9993_v10  ;;  %vm20724_vm12 = vmmov %vm20720_vm3  ;;  %v16965_v22 = vld [vmem:[#allocation2 + $0x158] ss:$0 sps:$4 sm:$0x11]  }
 0x53e   :  { %12269 = vst.msk [vmem:[#allocation3 + $0x68] sm:$0xff] %vm5237_vm2, %v12187_v15  ;;  %11850 = vrot.lane.b32.xlu1 %v11777_v11, %s17058_s22  ;;  %v11130_v15 = vor.u32 %v11129_v4, %v11125_v46  ;;  %v16952_v11 = vld [vmem:[#allocation2 + $0x144] sm:$0xff]   ;;  %v11137_v0 = vshrl.u32 %v16950_v1, 16  ;;  %v16960_v4 = vld [vmem:[#allocation2 + $0x14c] ss:$0 sps:$4 sm:$0x11]  }
 0x53f   :  { %10060 = vrot.lane.b32.xlu0 %v9988_v21, %s17055_s11  ;;  %v13571_v21 = vrot.slane %v16941_v27, 1  ;;  %v12919_v45 = vshll.u32 %v16952_v11, 16  ;;  %v16959_v46 = vld [vmem:[#allocation2 + $0x144] sm:$0xfe]   ;;  %v16966_v27 = vld [vmem:[#allocation2 + $0x150] sm:$0xff]  }
 0x540   :  { %v11257_v43 = vpop.permute.xlu1 %11256  ;;  %v13738_v63 = vld [vmem:[#allocation3 + $0x50] sm:$0xff]  ;;  %v16964_v10 = vld [vmem:[#allocation2 + $0x150] sm:$0xfe]  }
 0x541   :  { %v13051_v8 = vpop.permute.xlu0 %13050  ;;  %11340 = vst.msk [vmem:[#allocation3 + $0x60] sm:$0xff] %vm20718_vm6, %v11257_v43  ;;  %16026 = vmatprep.mubr.msk.bf16.mxu1 %vm6764_vm14, %v13738_v63  ;;  %v11135_v63 = vsel %vm2029_vm9, %v11130_v15, %v11134_v20  ;;  %v13572_v33 = vsel %vm2895_vm10, %v13570_v5, %v13571_v21  ;;  %v12933_v5 = vrot.slane %v12931_v17, 1  ;;  %v16967_v15 = vld [vmem:[#allocation2 + $0x158] ss:$0 sps:$4 sm:$0x11]   ;;  %v12936_v20 = vshll.u32 %v16962_v60, 16  ;;  %vm20725_vm6 = vmmov %vm20719_vm0 }
 0x542   :  { %13133 = vst.msk [vmem:[#allocation3 + $0x68] sm:$0xff] %vm6102_vm4, %v13051_v8  ;;  %12202 = vrot.lane.b32.xlu1 %v16925_v29, %s17059_s23  ;;  %16027 = vmatmul.mubr.msk.bf16.gmra.mrb[20].mxu1 %vm6764_vm14, %v13739_v31  ;;  %v11139_v8 = vshll.u32 %v16950_v1, 16  ;;  %v16953_v31 = vld [vmem:[#allocation2 + $0x14c] ss:$0 sps:$4 sm:$0x11]   ;;  %v9996_v1 = vrot.slane %v16960_v4, 1 }
 0x543   :  { %10412 = vrot.lane.b32.xlu0 %v16924_v24, %s17056_s16  ;;  %v16951_v24 = vld [vmem:[#allocation2 + $0x14c] ss:$0 sps:$4 sm:$0x11]   ;;  %v16981_v17 = vld [vmem:[#allocation2 + $0x164] ss:$0 sps:$4 sm:$0x11]  }
 0x544   :  { %v11833_v6 = vpop.permute.xlu1 %11832  ;;  %v11144_v36 = vshll.u32 %v16951_v24, 16  ;;  %v16979_v60 = vld [vmem:[#allocation2 + $0x164] ss:$0 sps:$4 sm:$0x11]  }
 0x545   :  { %v13627_v28 = vpop.permute.xlu0 %13626  ;;  %11916 = vst.msk [vmem:[#allocation3 + $0x60] sm:$0xff] %vm4883_vm1, %v11833_v6  ;;  %v12921_v6 = vrot.slane %v12919_v45, 1  ;;  %v16971_v45 = vld [vmem:[#allocation2 + $0x158] ss:$0 sps:$4 sm:$0x11]  }
 0x546   :  { %13709 = vst.msk [vmem:[#allocation3 + $0x68] sm:$0xff] %vm6679_vm15, %v13627_v28  ;;  %13066 = vrot.lane.b32.xlu1 %v12903_v25, %s17060_s24  ;;  %v11141_v28 = vrot.slane %v11139_v8, 1  ;;  %v12924_v25 = vshll.u32 %v16953_v31, 16  ;;  %v16970_v8 = vld [vmem:[#allocation2 + $0x150] sm:$0xfe]   ;;  %v11156_v31 = vshll.u32 %v16967_v15, 16 }
 0x547   :  { %11276 = vrot.lane.b32.xlu0 %v11123_v40, %s17057_s21  ;;  %v12917_v40 = vshrl.u32 %v16952_v11, 16  ;;  %v11149_v11 = vshrl.u32 %v16966_v27, 16 }
 0x548   :  { %v12185_v3 = vpop.permute.xlu1 %12184  ;;  %v11142_v55 = vor.u32 %v11141_v28, %v11137_v0  ;;  %v12926_v58 = vrot.slane %v12924_v25, 1  ;;  %v16969_v0 = vld [vmem:[#allocation2 + $0x158] ss:$0 sps:$4 sm:$0x11]   ;;  %v9998_v25 = vrot.slane %v16968_v26, 1 }
 0x549   :  { %v10399_v13 = vpop.permute.xlu0 %10398  ;;  %12268 = vst.msk [vmem:[#allocation3 + $0x60] sm:$0xff] %vm5237_vm2, %v12185_v3 }
 0x54a   :  { %10479 = vst.msk [vmem:[#allocation3 + $0x78] sm:$0xff] %vm20719_vm0, %v10399_v13  ;;  %13642 = vrot.lane.b32.xlu1 %v13569_v61, %s17061_s25  ;;  %v11146_v13 = vrot.slane %v11144_v36, 1  ;;  %v12922_v61 = vor.u32 %v12921_v6, %v12917_v40  ;;  %v13576_v6 = vrot.slane %v16964_v10, 1  ;;  %vm20726_vm0 = vmmov %vm20720_vm3 }
 0x54b   :  { %11852 = vrot.lane.b32.xlu0 %v11780_v42, %s17058_s22  ;;  %v11784_v42 = vrot.slane %v16954_v39, 1  ;;  %v11787_v39 = vrot.slane %v16970_v8, 1 }
 0x54c   :  { %v13049_v35 = vpop.permute.xlu1 %13048  ;;  %v12927_v9 = vsel %vm2029_vm9, %v12922_v61, %v12926_v58  ;;  %v9999_v58 = vrot.slane %v16969_v0, 1 }
 0x54d   :  { %v11263_v57 = vpop.permute.xlu0 %11262  ;;  %13132 = vst.msk [vmem:[#allocation3 + $0x60] sm:$0xff] %vm6102_vm4, %v13049_v35  ;;  %v13741_v32 = vld [vmem:[#allocation3 + $0x68] sm:$0xff] }
 0x54e   :  { %11343 = vst.msk [vmem:[#allocation3 + $0x78] sm:$0xff] %vm20720_vm3, %v11263_v57  ;;  %10062 = vrot.lane.b32.xlu1 %v9991_v62, %s17055_s11  ;;  %v11147_v57 = vsel %vm2029_vm9, %v11142_v55, %v11146_v13  ;;  %v11785_v62 = vrot.slane %v16955_v7, 1  ;;  %v16975_v13 = vld [vmem:[#allocation2 + $0x164] ss:$0 sps:$4 sm:$0x11]   ;;  %vm20727_vm3 = vmmov %vm20721_vm5 }
 0x54f   :  { %12204 = vrot.lane.b32.xlu0 %v16934_v52, %s17059_s23  ;;  %v13573_v52 = vrot.slane %v16956_v53, 1  ;;  %v11788_v53 = vrot.slane %v16971_v45, 1  ;;  %v16977_v7 = vld [vmem:[#allocation2 + $0x164] ss:$0 sps:$4 sm:$0x11]  }
 0x550   :  { %v13625_v30 = vpop.permute.xlu1 %13624  ;;  %v11786_v34 = vsel %vm2895_vm10, %v11784_v42, %v11785_v62 }
 0x551   :  { %v11839_v54 = vpop.permute.xlu0 %11838  ;;  %13708 = vst.msk [vmem:[#allocation3 + $0x60] sm:$0xff] %vm6679_vm15, %v13625_v30  ;;  %v13575_v49 = vsel %vm2895_vm10, %v13573_v52, %v13574_v12  ;;  %v11151_v30 = vshll.u32 %v16966_v27, 16  ;;  %v11168_v12 = vshll.u32 %v16975_v13, 16  ;;  %v12948_v27 = vshll.u32 %v16977_v7, 16 }
 0x552   :  { %11919 = vst.msk [vmem:[#allocation3 + $0x78] sm:$0xff] %vm4883_vm1, %v11839_v54  ;;  %10414 = vrot.lane.b32.xlu1 %v16939_v50, %s17056_s16  ;;  %v9995_v50 = vrot.slane %v16959_v46, 1  ;;  %v12929_v54 = vshrl.u32 %v16961_v23, 16  ;;  %v11789_v46 = vsel %vm2895_vm10, %v11787_v39, %v11788_v53  ;;  %v16982_v39 = vld [vmem:[#allocation2 + $0x168] sm:$0xff]  }
 0x553   :  { %13068 = vrot.lane.b32.xlu0 %v12915_v38, %s17060_s24  ;;  %v16958_v38 = vld [vmem:[#allocation2 + $0x150] sm:$0xff]   ;;  %v11153_v14 = vrot.slane %v11151_v30, 1 }
 0x554   :  { %v10397_v29 = vpop.permute.xlu1 %10396 }
 0x555   :  { %v12191_v43 = vpop.permute.xlu0 %12190  ;;  %10478 = vst.msk [vmem:[#allocation3 + $0x70] sm:$0xff] %vm20721_vm5, %v10397_v29  ;;  %v9997_v29 = vsel %vm2895_vm10, %v9995_v50, %v9996_v1  ;;  %v16973_v50 = vld [vmem:[#allocation2 + $0x15c] sm:$0xff]   ;;  %vm20728_vm5 = vmmov %vm20726_vm0 }
 0x556   :  { %12271 = vst.msk [vmem:[#allocation3 + $0x78] sm:$0xff] %vm5237_vm2, %v12191_v43  ;;  %11278 = vrot.lane.b32.xlu1 %v11135_v63, %s17057_s21  ;;  %v19839_v43 = vld [vmem:[#allocation2 + $0x15c] sm:$0xff]   ;;  %v12934_v63 = vor.u32 %v12933_v5, %v12929_v54  ;;  %v12950_v54 = vrot.slane %v12948_v27, 1 }
 0x557   :  { %13644 = vrot.lane.b32.xlu0 %v13572_v33, %s17061_s25  ;;  %v11163_v40 = vshll.u32 %v19839_v43, 16  ;;  %v11161_v23 = vshrl.u32 %v19839_v43, 16 }
 0x558   :  { %v11261_v19 = vpop.permute.xlu1 %11260  ;;  %v13740_v41 = vld [vmem:[#allocation3 + $0x60] sm:$0xff] }
 0x559   :  { %v13055_v44 = vpop.permute.xlu0 %13054  ;;  %11342 = vst.msk [vmem:[#allocation3 + $0x70] sm:$0xff] %vm20722_vm7, %v11261_v19  ;;  %16030 = vmatprep.mubr.msk.bf16.mxu1 %vm6764_vm14, %v13740_v41  ;;  %v12938_v19 = vrot.slane %v12936_v20, 1  ;;  %v16963_v41 = vld [vmem:[#allocation2 + $0x150] sm:$0xff]   ;;  %v11165_v4 = vrot.slane %v11163_v40, 1  ;;  %vm20729_vm7 = vmmov %vm20727_vm3 }
 0x55a   :  { %13135 = vst.msk [vmem:[#allocation3 + $0x78] sm:$0xff] %vm6102_vm4, %v13055_v44  ;;  %11854 = vrot.lane.b32.xlu1 %v11783_v2, %s17058_s22  ;;  %16031 = vmatmul.mubr.msk.bf16.gmra.mrb[24].mxu1 %vm6764_vm14, %v13741_v32  ;;  %v11154_v44 = vor.u32 %v11153_v14, %v11149_v11  ;;  %v16976_v2 = vld [vmem:[#allocation2 + $0x15c] sm:$0xff]   ;;  %v16985_v11 = vld [vmem:[#allocation2 + $0x168] sm:$0xff]   ;;  %v16984_v20 = vld [vmem:[#allocation2 + $0x164] ss:$0 sps:$4 sm:$0x11]  }
 0x55b   :  { %10064 = vrot.lane.b32.xlu0 %v9994_v18, %s17055_s11  ;;  %v12939_v32 = vsel %vm2029_vm9, %v12934_v63, %v12938_v19  ;;  %v13577_v18 = vrot.slane %v16965_v22, 1  ;;  %v12943_v61 = vshll.u32 %v16976_v2, 16  ;;  %v12941_v62 = vshrl.u32 %v16976_v2, 16  ;;  %v16990_v22 = vld [vmem:[#allocation2 + $0x168] sm:$0xff]  }
 0x55c   :  { %v11837_v51 = vpop.permute.xlu1 %11836  ;;  %v11166_v1 = vor.u32 %v11165_v4, %v11161_v23  ;;  %v13580_v14 = vrot.slane %v16981_v17, 1  ;;  %v11791_v63 = vrot.slane %v16979_v60, 1  ;;  %v12955_v26 = vshll.u32 %v16985_v11, 16  ;;  %v16991_v2 = vld [vmem:[#allocation2 + $0x170] ss:$0 sps:$4 sm:$0x11]  }
 0x55d   :  { %v13631_v3 = vpop.permute.xlu0 %13630  ;;  %11918 = vst.msk [vmem:[#allocation3 + $0x70] sm:$0xff] %vm4883_vm1, %v11837_v51  ;;  %v13578_v55 = vsel %vm2895_vm10, %v13576_v6, %v13577_v18  ;;  %v11175_v0 = vshll.u32 %v16990_v22, 16  ;;  %v11173_v53 = vshrl.u32 %v16990_v22, 16  ;;  %v16994_v23 = vld [vmem:[#allocation2 + $0x168] sm:$0xfe]   ;;  %v16997_v22 = vld [vmem:[#allocation2 + $0x174] sm:$0xff]  }
 0x55e   :  { %13711 = vst.msk [vmem:[#allocation3 + $0x78] sm:$0xff] %vm6679_vm15, %v13631_v3  ;;  %12206 = vrot.lane.b32.xlu1 %v16949_v47, %s17059_s23  ;;  %v11158_v47 = vrot.slane %v11156_v31, 1  ;;  %v16986_v31 = vld [vmem:[#allocation2 + $0x170] ss:$0 sps:$4 sm:$0x11]  }
 0x55f   :  { %10416 = vrot.lane.b32.xlu0 %v16948_v56, %s17056_s16  ;;  %v12960_v18 = vshll.u32 %v16986_v31, 16  ;;  %v16992_v4 = vld [vmem:[#allocation2 + $0x168] sm:$0xfe]   ;;  %v16996_v31 = vld [vmem:[#allocation2 + $0x174] sm:$0xff]  }
 0x560   :  { %v12189_v59 = vpop.permute.xlu1 %12188  ;;  %v11159_v56 = vsel %vm2029_vm9, %v11154_v44, %v11158_v47  ;;  %v12957_v44 = vrot.slane %v12955_v26, 1  ;;  %v16988_v47 = vld [vmem:[#allocation2 + $0x168] sm:$0xfe]   ;;  %v17005_v26 = vld [vmem:[#allocation2 + $0x17c] ss:$0 sps:$4 sm:$0x11]  }
 0x561   :  { %v10401_v35 = vpop.permute.xlu0 %10400  ;;  %12270 = vst.msk [vmem:[#allocation3 + $0x70] sm:$0xff] %vm5237_vm2, %v12189_v59  ;;  %v16978_v59 = vld [vmem:[#allocation2 + $0x15c] sm:$0xfe]   ;;  %v12962_v13 = vrot.slane %v12960_v18, 1 }
 0x562   :  { %10480 = vst.msk [vmem:[#allocation3 + $0x80] sm:$0xff] %vm20723_vm8, %v10401_v35  ;;  %13070 = vrot.lane.b32.xlu1 %v12927_v9, %s17060_s24  ;;  %v12945_v35 = vrot.slane %v12943_v61, 1  ;;  %v10000_v9 = vsel %vm2895_vm10, %v9998_v25, %v9999_v58  ;;  %v11790_v5 = vrot.slane %v16978_v59, 1  ;;  %v16987_v61 = vld [vmem:[#allocation2 + $0x168] sm:$0xff]   ;;  %vm20730_vm8 = vmmov %vm20726_vm0  ;;  %v19911_v18 = vld [vmem:[#allocation2 + $0x180] sm:$0xff]  }
 0x563   :  { %11280 = vrot.lane.b32.xlu0 %v11147_v57, %s17057_s21  ;;  %v16980_v57 = vld [vmem:[#allocation2 + $0x15c] sm:$0xfe]   ;;  %v16995_v59 = vld [vmem:[#allocation2 + $0x170] ss:$0 sps:$4 sm:$0x11]  }
 0x564   :  { %v13053_v16 = vpop.permute.xlu1 %13052  ;;  %v12946_v30 = vor.u32 %v12945_v35, %v12941_v62  ;;  %v13579_v15 = vrot.slane %v16980_v57, 1  ;;  %v16993_v35 = vld [vmem:[#allocation2 + $0x170] ss:$0 sps:$4 sm:$0x11]  }
 0x565   :  { %v11265_v37 = vpop.permute.xlu0 %11264  ;;  %13134 = vst.msk [vmem:[#allocation3 + $0x70] sm:$0xff] %vm6102_vm4, %v13053_v16  ;;  %v13743_v28 = vld [vmem:[#allocation3 + $0x78] sm:$0xff] }
 0x566   :  { %11344 = vst.msk [vmem:[#allocation3 + $0x80] sm:$0xff] %vm20724_vm12, %v11265_v37  ;;  %13646 = vrot.lane.b32.xlu1 %v13575_v49, %s17061_s25  ;;  %v16972_v49 = vld [vmem:[#allocation2 + $0x15c] sm:$0xff]   ;;  %v12951_v10 = vsel %vm2029_vm9, %v12946_v30, %v12950_v54  ;;  %vm20731_vm12 = vmmov %vm20727_vm3 }
 0x567   :  { %11856 = vrot.lane.b32.xlu0 %v11786_v34, %s17058_s22  ;;  %v11170_v34 = vrot.slane %v11168_v12, 1 }
 0x568   :  { %v13629_v21 = vpop.permute.xlu1 %13628 }
 0x569   :  { %v11841_v24 = vpop.permute.xlu0 %11840  ;;  %13710 = vst.msk [vmem:[#allocation3 + $0x70] sm:$0xff] %vm6679_vm15, %v13629_v21  ;;  %v16983_v21 = vld [vmem:[#allocation2 + $0x15c] sm:$0xfe]   ;;  %v11171_v43 = vsel %vm2029_vm9, %v11166_v1, %v11170_v34  ;;  %v10005_v1 = vrot.slane %v16993_v35, 1 }
 0x56a   :  { %11920 = vst.msk [vmem:[#allocation3 + $0x80] sm:$0xff] %vm4883_vm1, %v11841_v24  ;;  %10066 = vrot.lane.b32.xlu1 %v9997_v29, %s17055_s11  ;;  %v10001_v19 = vrot.slane %v16983_v21, 1  ;;  %v17001_v34 = vld [vmem:[#allocation2 + $0x17c] ss:$0 sps:$4 sm:$0x11]  }
 0x56b   :  { %12208 = vrot.lane.b32.xlu0 %v16958_v38, %s17059_s23 }
 0x56c   :  { %v10051_v33 = vpop.permute.xlu1 %10050 }
 0x56d   :  { %v12193_v36 = vpop.permute.xlu0 %12192  ;;  %10129 = vst.msk [vmem:[#allocation3 + $0x88] sm:$0xff] %vm3088_vm13, %v10051_v33  ;;  %v13581_v33 = vsel %vm2895_vm10, %v13579_v15, %v13580_v14 }
 0x56e   :  { %12272 = vst.msk [vmem:[#allocation3 + $0x80] sm:$0xff] %vm5237_vm2, %v12193_v36  ;;  %10418 = vrot.lane.b32.xlu1 %v16963_v41, %s17056_s16  ;;  %v10002_v41 = vrot.slane %v16984_v20, 1  ;;  %v11792_v36 = vsel %vm2895_vm10, %v11790_v5, %v11791_v63  ;;  %v16999_v5 = vld [vmem:[#allocation2 + $0x17c] ss:$0 sps:$4 sm:$0x11]  }
 0x56f   :  { %13072 = vrot.lane.b32.xlu0 %v12939_v32, %s17060_s24  ;;  %v12953_v32 = vshrl.u32 %v16985_v11, 16  ;;  %v17004_v63 = vld [vmem:[#allocation2 + $0x174] sm:$0xfe]  }
 0x570   :  { %v10403_v48 = vpop.permute.xlu1 %10402  ;;  %v13742_v51 = vld [vmem:[#allocation3 + $0x70] sm:$0xff]  ;;  %v10003_v40 = vsel %vm2895_vm10, %v10001_v19, %v10002_v41  ;;  %v17002_v19 = vld [vmem:[#allocation2 + $0x174] sm:$0xfe]   ;;  %v17003_v41 = vld [vmem:[#allocation2 + $0x17c] ss:$0 sps:$4 sm:$0x11]  }
 0x571   :  { %v13057_v3 = vpop.permute.xlu0 %13056  ;;  %10481 = vst.msk [vmem:[#allocation3 + $0x88] sm:$0xff] %vm20725_vm6, %v10403_v48  ;;  %16034 = vmatprep.mubr.msk.bf16.mxu1 %vm6764_vm14, %v13742_v51  ;;  %v11177_v48 = vrot.slane %v11175_v0, 1  ;;  %v12958_v51 = vor.u32 %v12957_v44, %v12953_v32  ;;  %v19908_v0 = vld [vmem:[#allocation2 + $0x180] sm:$0xff]   ;;  %v13585_v32 = vrot.slane %v17004_v63, 1  ;;  %vm20732_vm6 = vmmov %vm20726_vm0 }
 0x572   :  { %13136 = vst.msk [vmem:[#allocation3 + $0x80] sm:$0xff] %vm6102_vm4, %v13057_v3  ;;  %11282 = vrot.lane.b32.xlu1 %v11159_v56, %s17057_s21  ;;  %16035 = vmatmul.mubr.msk.bf16.gmra.mrb[28].mxu1 %vm6764_vm14, %v13743_v28  ;;  %v16989_v28 = vld [vmem:[#allocation2 + $0x170] ss:$0 sps:$4 sm:$0x11]   ;;  %v11180_v3 = vshll.u32 %v16991_v2, 16 }
 0x573   :  { %13648 = vrot.lane.b32.xlu0 %v13578_v55, %s17061_s25  ;;  %v13582_v55 = vrot.slane %v16988_v47, 1  ;;  %v13583_v58 = vrot.slane %v16989_v28, 1 }
 0x574   :  { %v11267_v42 = vpop.permute.xlu1 %11266  ;;  %v11182_v12 = vrot.slane %v11180_v3, 1  ;;  %v12979_v3 = vshll.u32 %v19908_v0, 16 }
 0x575   :  { %v13633_v52 = vpop.permute.xlu0 %13632  ;;  %11345 = vst.msk [vmem:[#allocation3 + $0x88] sm:$0xff] %vm20726_vm0, %v11267_v42  ;;  %v11178_v42 = vor.u32 %v11177_v48, %v11173_v53  ;;  %v11797_v53 = vrot.slane %v17003_v41, 1  ;;  %vm20733_vm0 = vmmov %vm20727_vm3 }
 0x576   :  { %13712 = vst.msk [vmem:[#allocation3 + $0x80] sm:$0xff] %vm6679_vm15, %v13633_v52  ;;  %11858 = vrot.lane.b32.xlu1 %v11789_v46, %s17058_s22  ;;  %v17000_v52 = vld [vmem:[#allocation2 + $0x174] sm:$0xff]   ;;  %v12963_v46 = vsel %vm2029_vm9, %v12958_v51, %v12962_v13  ;;  %v11796_v51 = vrot.slane %v17002_v19, 1  ;;  %v17010_v13 = vld [vmem:[#allocation2 + $0x188] ss:$0 sps:$4 sm:$0x11]  }
 0x577   :  { %10068 = vrot.lane.b32.xlu0 %v10000_v9, %s17055_s11  ;;  %v16998_v9 = vld [vmem:[#allocation2 + $0x174] sm:$0xff]   ;;  %v11183_v17 = vsel %vm2029_vm9, %v11178_v42, %v11182_v12  ;;  %v12967_v60 = vshll.u32 %v17000_v52, 16  ;;  %v19931_v42 = vld [vmem:[%s20679_s6] ss:$0 sm:$0xff] }
 0x578   :  { %v11843_v16 = vpop.permute.xlu1 %11842  ;;  %v11187_v30 = vshll.u32 %v16998_v9, 16  ;;  %v17015_v12 = vld [vmem:[#allocation2 + $0x188] ss:$0 sps:$4 sm:$0x11]  }
 0x579   :  { %v10053_v37 = vpop.permute.xlu0 %10052  ;;  %11921 = vst.msk [vmem:[#allocation3 + $0x88] sm:$0xff] %vm4883_vm1, %v11843_v16  ;;  %v11793_v16 = vrot.slane %v16994_v23, 1 }
 0x57a   :  { %10130 = vst.msk [vmem:[#allocation3 + $0x90] sm:$0xff] %vm3088_vm13, %v10053_v37  ;;  %12210 = vrot.lane.b32.xlu1 %v16973_v50, %s17059_s23  ;;  %v11794_v50 = vrot.slane %v16995_v59, 1  ;;  %v13584_v37 = vsel %vm2895_vm10, %v13582_v55, %v13583_v58  ;;  %v11189_v20 = vrot.slane %v11187_v30, 1  ;;  %v11199_v55 = vshll.u32 %v19911_v18, 16  ;;  %v19949_v30 = vld [vmem:[#allocation2 + $0x180] sm:$0xfe]  }
 0x57b   :  { %10420 = vrot.lane.b32.xlu0 %v16972_v49, %s17056_s16  ;;  %v10004_v49 = vrot.slane %v16992_v4, 1  ;;  %v13588_v41 = vrot.slane %v19949_v30, 1  ;;  %v17021_v30 = vld [vmem:[#allocation2 + $0x18c] sm:$0xff]  }
 0x57c   :  { %v12195_v38 = vpop.permute.xlu1 %12194  ;;  %v11795_v11 = vsel %vm2895_vm10, %v11793_v16, %v11794_v50  ;;  %v14310_v50 = vld [vmem:[%s20673_s0] sm:$0xff] }
 0x57d   :  { %v10405_v24 = vpop.permute.xlu0 %10404  ;;  %v13744_v29 = vld [vmem:[#allocation3 + $0x80] sm:$0xff]  ;;  %12273 = vst.msk [vmem:[#allocation3 + $0x88] sm:$0xff] %vm5237_vm2, %v12195_v38  ;;  %v12969_v38 = vrot.slane %v12967_v60, 1  ;;  %v10006_v21 = vsel %vm2895_vm10, %v10004_v49, %v10005_v1  ;;  %v12977_v1 = vshrl.u32 %v19908_v0, 16 }
 0x57e   :  { %10482 = vst.msk [vmem:[#allocation3 + $0x90] sm:$0xff] %vm20727_vm3, %v10405_v24  ;;  %16038 = vmatprep.mubr.msk.bf16.mxu1 %vm6764_vm14, %v13744_v29  ;;  %13074 = vrot.lane.b32.xlu1 %v12951_v10, %s17060_s24  ;;  %v11185_v24 = vshrl.u32 %v16998_v9, 16  ;;  %v12965_v29 = vshrl.u32 %v17000_v52, 16  ;;  %v12972_v10 = vshll.u32 %v17001_v34, 16  ;;  %v12981_v9 = vrot.slane %v12979_v3, 1  ;;  %vm20734_vm3 = vmmov %vm20728_vm5 }
 0x57f   :  { %11284 = vrot.lane.b32.xlu0 %v11171_v43, %s17057_s21  ;;  %v11192_v43 = vshll.u32 %v16999_v5, 16  ;;  %v11201_v34 = vrot.slane %v11199_v55, 1 }
 0x580   :  { %v13059_v8 = vpop.permute.xlu1 %13058 }
 0x581   :  { %v11269_v45 = vpop.permute.xlu0 %11268  ;;  %13137 = vst.msk [vmem:[#allocation3 + $0x88] sm:$0xff] %vm6102_vm4, %v13059_v8  ;;  %v11194_v2 = vrot.slane %v11192_v43, 1  ;;  %v11204_v43 = vshll.u32 %v17015_v12, 16 }
 0x582   :  { %11346 = vst.msk [vmem:[#allocation3 + $0x90] sm:$0xff] %vm20728_vm5, %v11269_v45  ;;  %13650 = vrot.lane.b32.xlu1 %v13581_v33, %s17061_s25  ;;  %v12970_v45 = vor.u32 %v12969_v38, %v12965_v29  ;;  %v11190_v33 = vor.u32 %v11189_v20, %v11185_v24  ;;  %v17006_v38 = vld [vmem:[#allocation2 + $0x180] sm:$0xff]   ;;  %v11197_v20 = vshrl.u32 %v19911_v18, 16  ;;  %v14311_v29 = vld [vmem:[%s20673_s0 + $0x8] sm:$0xff]  ;;  %vm20735_vm5 = vmmov %vm20733_vm0 }
 0x583   :  { %11860 = vrot.lane.b32.xlu0 %v11792_v36, %s17058_s22  ;;  %v12974_v36 = vrot.slane %v12972_v10, 1  ;;  %v12982_v10 = vor.u32 %v12981_v9, %v12977_v1  ;;  %v17019_v18 = vld [vmem:[#allocation2 + $0x188] ss:$0 sps:$4 sm:$0x11]  }
 0x584   :  { %v13635_v6 = vpop.permute.xlu1 %13634  ;;  %v11195_v48 = vsel %vm2029_vm9, %v11190_v33, %v11194_v2  ;;  %v11202_v0 = vor.u32 %v11201_v34, %v11197_v20  ;;  %v17025_v9 = vld [vmem:[#allocation2 + $0x194] ss:$0 sps:$4 sm:$0x11]   ;;  %v17028_v34 = vld [vmem:[#allocation2 + $0x18c] sm:$0xfe]  }
 0x585   :  { %v11845_v25 = vpop.permute.xlu0 %11844  ;;  %13713 = vst.msk [vmem:[#allocation3 + $0x88] sm:$0xff] %vm6679_vm15, %v13635_v6  ;;  %v13586_v6 = vrot.slane %v17005_v26, 1  ;;  %v17027_v20 = vld [vmem:[#allocation2 + $0x194] ss:$0 sps:$4 sm:$0x11]  }
 0x586   :  { %11922 = vst.msk [vmem:[#allocation3 + $0x90] sm:$0xff] %vm4883_vm1, %v11845_v25  ;;  %10070 = vrot.lane.b32.xlu1 %v10003_v40, %s17055_s11  ;;  %v12975_v25 = vsel %vm2029_vm9, %v12970_v45, %v12974_v36  ;;  %v17008_v40 = vld [vmem:[#allocation2 + $0x17c] ss:$0 sps:$4 sm:$0x11]   ;;  %v17016_v36 = vld [vmem:[#allocation2 + $0x180] sm:$0xfe]  }
 0x587   :  { %12212 = vrot.lane.b32.xlu0 %v16982_v39, %s17059_s23  ;;  %v17007_v39 = vld [vmem:[#allocation2 + $0x174] sm:$0xfe]   ;;  %v13587_v23 = vsel %vm2895_vm10, %v13585_v32, %v13586_v6  ;;  %v10008_v52 = vrot.slane %v17008_v40, 1 }
 0x588   :  { %v10055_v56 = vpop.permute.xlu1 %10054  ;;  %v10007_v59 = vrot.slane %v17007_v39, 1 }
 0x589   :  { %v12197_v7 = vpop.permute.xlu0 %12196  ;;  %10131 = vst.msk [vmem:[#allocation3 + $0x98] sm:$0xff] %vm3088_vm13, %v10055_v56  ;;  %v19924_v56 = vld [vmem:[%s20678_s5] ss:$0 sm:$0xff] }
 0x58a   :  { %12274 = vst.msk [vmem:[#allocation3 + $0x90] sm:$0xff] %vm5237_vm2, %v12197_v7  ;;  %10422 = vrot.lane.b32.xlu1 %v16987_v61, %s17056_s16 }
 0x58b   :  { %13076 = vrot.lane.b32.xlu0 %v12963_v46, %s17060_s24  ;;  %v11798_v46 = vsel %vm2895_vm10, %v11796_v51, %v11797_v53  ;;  %v17017_v51 = vld [vmem:[#allocation2 + $0x188] ss:$0 sps:$4 sm:$0x11]  }
 0x58c   :  { %v10407_v27 = vpop.permute.xlu1 %10406  ;;  %v13745_v57 = vld [vmem:[#allocation3 + $0x88] sm:$0xff] }
 0x58d   :  { %v13061_v62 = vpop.permute.xlu0 %13060  ;;  %10483 = vst.msk [vmem:[#allocation3 + $0x98] sm:$0xff] %vm20729_vm7, %v10407_v27  ;;  %16039 = vmatmul.mubr.msk.bf16.gmra.mrb[32].mxu1 %vm6764_vm14, %v13745_v57  ;;  %v14312_v27 = vld [vmem:[%s20673_s0 + $0x10] sm:$0xff]  ;;  %vm20736_vm7 = vmmov %vm20734_vm3 }
 0x58e   :  { %13138 = vst.msk [vmem:[#allocation3 + $0x90] sm:$0xff] %vm6102_vm4, %v13061_v62  ;;  %11286 = vrot.lane.b32.xlu1 %v11183_v17, %s17057_s21  ;;  %v12984_v17 = vshll.u32 %v17010_v13, 16 }
 0x58f   :  { %13652 = vrot.lane.b32.xlu0 %v13584_v37, %s17061_s25 }
 0x590   :  { %v11271_v54 = vpop.permute.xlu1 %11270 }
 0x591   :  { %v13637_v15 = vpop.permute.xlu0 %13636  ;;  %11347 = vst.msk [vmem:[#allocation3 + $0x98] sm:$0xff] %vm20730_vm8, %v11271_v54  ;;  %vm20737_vm8 = vmmov %vm20733_vm0 }
 0x592   :  { %13714 = vst.msk [vmem:[#allocation3 + $0x90] sm:$0xff] %vm6679_vm15, %v13637_v15  ;;  %11862 = vrot.lane.b32.xlu1 %v11795_v11, %s17058_s22  ;;  %v14313_v15 = vld [vmem:[%s20673_s0 + $0x18] sm:$0xff] }
 0x593   :  { %10072 = vrot.lane.b32.xlu0 %v10006_v21, %s17055_s11  ;;  %v10009_v21 = vsel %vm2895_vm10, %v10007_v59, %v10008_v52 }
 0x594   :  { %v11847_v14 = vpop.permute.xlu1 %11846 }
 0x595   :  { %v10057_v8 = vpop.permute.xlu0 %10056  ;;  %11923 = vst.msk [vmem:[#allocation3 + $0x98] sm:$0xff] %vm4883_vm1, %v11847_v14  ;;  %v17013_v14 = vld [vmem:[#allocation2 + $0x188] ss:$0 sps:$4 sm:$0x11]  }
 0x596   :  { %10132 = vst.msk [vmem:[#allocation3 + $0xa0] sm:$0xff] %vm3088_vm13, %v10057_v8  ;;  %12214 = vrot.lane.b32.xlu1 %v16997_v22, %s17059_s23  ;;  %v12986_v8 = vrot.slane %v12984_v17, 1  ;;  %v13589_v40 = vrot.slane %v17013_v14, 1  ;;  %v13591_v14 = vrot.slane %v17028_v34, 1 }
 0x597   :  { %10424 = vrot.lane.b32.xlu0 %v16996_v31, %s17056_s16  ;;  %v17011_v31 = vld [vmem:[#allocation2 + $0x180] sm:$0xff]  }
 0x598   :  { %v12199_v44 = vpop.permute.xlu1 %12198  ;;  %v12987_v39 = vsel %vm2029_vm9, %v12982_v10, %v12986_v8  ;;  %v13590_v52 = vsel %vm2895_vm10, %v13588_v41, %v13589_v40  ;;  %v20011_v41 = vld [vmem:[#allocation2 + $0x198] sm:$0xff]  }
 0x599   :  { %v10409_v47 = vpop.permute.xlu0 %10408  ;;  %v13746_v28 = vld [vmem:[#allocation3 + $0x90] sm:$0xff]  ;;  %12275 = vst.msk [vmem:[#allocation3 + $0x98] sm:$0xff] %vm5237_vm2, %v12199_v44 }
 0x59a   :  { %10484 = vst.msk [vmem:[#allocation3 + $0xa0] sm:$0xff] %vm20731_vm12, %v10409_v47  ;;  %16042 = vmatprep.mubr.msk.bf16.mxu1 %vm6764_vm14, %v13746_v28  ;;  %13078 = vrot.lane.b32.xlu1 %v12975_v25, %s17060_s24  ;;  %v17018_v44 = vld [vmem:[#allocation2 + $0x180] sm:$0xfe]   ;;  %v17022_v47 = vld [vmem:[#allocation2 + $0x18c] sm:$0xff]   ;;  %vm20738_vm12 = vmmov %vm20734_vm3 }
 0x59b   :  { %11288 = vrot.lane.b32.xlu0 %v11195_v48, %s17057_s21  ;;  %v17024_v28 = vld [vmem:[#allocation2 + $0x18c] sm:$0xff]   ;;  %v11206_v48 = vrot.slane %v11204_v43, 1 }
 0x59c   :  { %v13063_v61 = vpop.permute.xlu1 %13062  ;;  %v12991_v59 = vshll.u32 %v17024_v28, 16 }
 0x59d   :  { %v11273_v58 = vpop.permute.xlu0 %11272  ;;  %13139 = vst.msk [vmem:[#allocation3 + $0x98] sm:$0xff] %vm6102_vm4, %v13063_v61  ;;  %v16008_v7 = vpop.f32.mrb[0].mxu1  ;;  %v11207_v61 = vsel %vm2029_vm9, %v11202_v0, %v11206_v48 }
 0x59e   :  { %11348 = vst.msk [vmem:[#allocation3 + $0xa0] sm:$0xff] %vm20732_vm6, %v11273_v58  ;;  %v14177_v4 = vmul.f32 %v16008_v7, %v19924_v56  ;;  %v13913_v35 = vpop.f32.mrb[1].mxu1  ;;  %13654 = vrot.lane.b32.xlu1 %v13587_v23, %s17061_s25  ;;  %v11799_v58 = vrot.slane %v17018_v44, 1  ;;  %v11800_v7 = vrot.slane %v17019_v18, 1  ;;  %v11211_v23 = vshll.u32 %v17022_v47, 16  ;;  %vm20740_vm6 = vmmov %vm20734_vm3 }
 0x59f   :  { %11864 = vrot.lane.b32.xlu0 %v11798_v46, %s17058_s22  ;;  %v14175_v57 = vmul.f32 %v19924_v56, %v13913_v35  ;;  %v16009_v62 = vpop.f32.mrb[2].mxu1  ;;  %v10010_v46 = vrot.slane %v17016_v36, 1  ;;  %v17023_v35 = vld [vmem:[#allocation2 + $0x194] ss:$0 sps:$4 sm:$0x11]   ;;  %v12993_v17 = vrot.slane %v12991_v59, 1 }
 0x5a0   :  { %v14248_v16 = vadd.f32 %v19931_v42, %v14177_v4  ;;  %v14178_v60 = vmul.f32 %v16009_v62, %v19924_v56  ;;  %v13916_v37 = vpop.f32.mrb[3].mxu1  ;;  %v13639_v49 = vpop.permute.xlu1 %13638  ;;  %v10011_v4 = vrot.slane %v17017_v51, 1  ;;  %v11213_v62 = vrot.slane %v11211_v23, 1 }
 0x5a1   :  { %v14246_v54 = vadd.f32 %v19931_v42, %v14175_v57  ;;  %v11849_v5 = vpop.permute.xlu0 %11848  ;;  %v14176_v11 = vmul.f32 %v19924_v56, %v13916_v37  ;;  %13715 = vst.msk [vmem:[#allocation3 + $0x98] sm:$0xff] %vm6679_vm15, %v13639_v49  ;;  %v11801_v57 = vsel %vm2895_vm10, %v11799_v58, %v11800_v7  ;;  %v12989_v37 = vshrl.u32 %v17024_v28, 16 }
 0x5a2   :  { %v14376_v22 = vadd.f32 %v14312_v27, %v14248_v16  ;;  %11924 = vst.msk [vmem:[#allocation3 + $0xa0] sm:$0xff] %vm4883_vm1, %v11849_v5  ;;  %v14249_v24 = vadd.f32 %v19931_v42, %v14178_v60  ;;  %10074 = vrot.lane.b32.xlu1 %v10009_v21, %s17055_s11  ;;  %v10012_v16 = vsel %vm2895_vm10, %v10010_v46, %v10011_v4  ;;  %v11216_v60 = vshll.u32 %v17023_v35, 16  ;;  %v17026_v21 = vld [vmem:[#allocation2 + $0x18c] sm:$0xfe]  }
 0x5a3   :  { %v14374_v63 = vadd.f32 %v14310_v50, %v14246_v54  ;;  %v14247_v26 = vadd.f32 %v19931_v42, %v14176_v11  ;;  %12216 = vrot.lane.b32.xlu0 %v17006_v38, %s17059_s23  ;;  %v11209_v50 = vshrl.u32 %v17022_v47, 16  ;;  %v12996_v49 = vshll.u32 %v17025_v9, 16  ;;  %v17029_v54 = vld [vmem:[#allocation2 + $0x194] ss:$0 sps:$4 sm:$0x11]   ;;  %v14315_v46 = vld [vmem:[%s20673_s0 + $0x28] sm:$0xff] }
 0x5a4   :  { %v14440_v45 = vmax.f32 %v14376_v22, 0.0  ;;  %v14377_v33 = vadd.f32 %v14313_v15, %v14249_v24  ;;  %v10059_v19 = vpop.permute.xlu1 %10058  ;;  %v17020_v15 = vld [vmem:[#allocation2 + $0x18c] sm:$0xff]   ;;  %v12994_v38 = vor.u32 %v12993_v17, %v12989_v37  ;;  %v20005_v22 = vld [vmem:[#allocation2 + $0x198] sm:$0xff]   ;;  %v11218_v24 = vrot.slane %v11216_v60, 1 }
 0x5a5   :  { %v14438_v2 = vmax.f32 %v14374_v63, 0.0  ;;  %v14375_v32 = vadd.f32 %v14311_v29, %v14247_v26  ;;  %v12201_v6 = vpop.permute.xlu0 %12200  ;;  %10133 = vst.msk [vmem:[#allocation3 + $0xa8] sm:$0xff] %vm3088_vm13, %v10059_v19  ;;  %v11214_v11 = vor.u32 %v11213_v62, %v11209_v50  ;;  %v12998_v29 = vrot.slane %v12996_v49, 1  ;;  %v17031_v63 = vld [vmem:[#allocation2 + $0x18c] sm:$0xfe]  }
 0x5a6   :  { %14504 = vst.msk [vmem:[%s20680_s7 + $0x10] sm:$0xff] %vm1644_vm11, %v14440_v45  ;;  %v14441_v25 = vmax.f32 %v14377_v33, 0.0  ;;  %10426 = vrot.lane.b32.xlu1 %v17011_v31, %s17056_s16  ;;  %v13592_v43 = vrot.slane %v17029_v54, 1  ;;  %v17032_v19 = vld [vmem:[#allocation2 + $0x194] ss:$0 sps:$4 sm:$0x11]  }
 0x5a7   :  { %12276 = vst.msk [vmem:[#allocation3 + $0xa0] sm:$0xff] %vm5237_vm2, %v12201_v6  ;;  %v14439_v53 = vmax.f32 %v14375_v32, 0.0  ;;  %13080 = vrot.lane.b32.xlu0 %v12987_v39, %s17060_s24  ;;  %v11219_v31 = vsel %vm2029_vm9, %v11214_v11, %v11218_v24  ;;  %v12999_v33 = vsel %vm2029_vm9, %v12994_v38, %v12998_v29  ;;  %v11802_v44 = vrot.slane %v17026_v21, 1  ;;  %v14316_v6 = vld [vmem:[%s20673_s0 + $0x30] sm:$0xff] }
 0x5a8   :  { %14502 = vst.msk [vmem:[%s20680_s7] sm:$0xff] %vm1644_vm11, %v14438_v2  ;;  %14505 = vst.msk [vmem:[%s20680_s7 + $0x18] sm:$0xff] %vm1644_vm11, %v14441_v25  ;;  %v10411_v3 = vpop.permute.xlu1 %10410  ;;  %v13747_v13 = vld [vmem:[#allocation3 + $0x98] sm:$0xff]  ;;  %v11803_v2 = vrot.slane %v17027_v20, 1  ;;  %v13003_v32 = vshll.u32 %v20005_v22, 16  ;;  %v14314_v25 = vld [vmem:[%s20673_s0 + $0x20] sm:$0xff]  ;;  %v13593_v51 = vsel %vm2895_vm10, %v13591_v14, %v13592_v43 }
 0x5a9   :  { %14503 = vst.msk [vmem:[%s20680_s7 + $0x8] sm:$0xff] %vm1644_vm11, %v14439_v53  ;;  %v13065_v55 = vpop.permute.xlu0 %13064  ;;  %16043 = vmatmul.mubr.msk.bf16.gmra.mrb[36].mxu1 %vm6764_vm14, %v13747_v13  ;;  %v10013_v53 = vrot.slane %v17031_v63, 1  ;;  %v10014_v7 = vrot.slane %v17032_v19, 1  ;;  %v11223_v23 = vshll.u32 %v20011_v41, 16  ;;  %v11221_v21 = vshrl.u32 %v20011_v41, 16 }
 0x5aa   :  { %10485 = vst.msk [vmem:[#allocation3 + $0xa8] sm:$0xff] %vm20733_vm0, %v10411_v3  ;;  %11290 = vrot.lane.b32.xlu1 %v11207_v61, %s17057_s21  ;;  %v17034_v3 = vld [vmem:[#allocation2 + $0x1a0] ss:$0 sps:$4 sm:$0x11]   ;;  %v11804_v4 = vsel %vm2895_vm10, %v11802_v44, %v11803_v2  ;;  %v13005_v35 = vrot.slane %v13003_v32, 1 }
 0x5ab   :  { %13140 = vst.msk [vmem:[#allocation3 + $0xa0] sm:$0xff] %vm6102_vm4, %v13065_v55  ;;  %13656 = vrot.lane.b32.xlu0 %v13590_v52, %s17061_s25  ;;  %v14317_v55 = vld [vmem:[%s20673_s0 + $0x38] sm:$0xff]  ;;  %v13008_v50 = vshll.u32 %v17034_v3, 16  ;;  %v11225_v34 = vrot.slane %v11223_v23, 1 }
 0x5ac   :  { %v11275_v12 = vpop.permute.xlu1 %11274  ;;  %v17037_v11 = vld [vmem:[#allocation2 + $0x1a0] ss:$0 sps:$4 sm:$0x11]   ;;  %v17040_v63 = vld [vmem:[#allocation2 + $0x198] sm:$0xfe]  }
 0x5ad   :  { %v13641_v27 = vpop.permute.xlu0 %13640  ;;  %11349 = vst.msk [vmem:[#allocation3 + $0xa8] sm:$0xff] %vm20734_vm3, %v11275_v12  ;;  %v13010_v29 = vrot.slane %v13008_v50, 1  ;;  %v11226_v43 = vor.u32 %v11225_v34, %v11221_v21  ;;  %v17044_v19 = vld [vmem:[#allocation2 + $0x1ac] ss:$0 sps:$4 sm:$0x11]   ;;  %v11805_v32 = vrot.slane %v17040_v63, 1 }
 0x5ae   :  { %13716 = vst.msk [vmem:[#allocation3 + $0xa0] sm:$0xff] %vm6679_vm15, %v13641_v27  ;;  %11866 = vrot.lane.b32.xlu1 %v11801_v57, %s17058_s22  ;;  %v17039_v27 = vld [vmem:[#allocation2 + $0x1a0] ss:$0 sps:$4 sm:$0x11]  }
 0x5af   :  { %10076 = vrot.lane.b32.xlu0 %v10012_v16, %s17055_s11  ;;  %v13001_v16 = vshrl.u32 %v20005_v22, 16  ;;  %v11228_v20 = vshll.u32 %v17039_v27, 16  ;;  %v17043_v22 = vld [vmem:[#allocation2 + $0x1a4] sm:$0xff]  }
 0x5b0   :  { %v11851_v1 = vpop.permute.xlu1 %11850  ;;  %v13015_v41 = vshll.u32 %v17043_v22, 16 }
 0x5b1   :  { %v10061_v5 = vpop.permute.xlu0 %10060  ;;  %11925 = vst.msk [vmem:[#allocation3 + $0xa8] sm:$0xff] %vm4883_vm1, %v11851_v1  ;;  %v17030_v1 = vld [vmem:[#allocation2 + $0x198] sm:$0xff]  }
 0x5b2   :  { %10134 = vst.msk [vmem:[#allocation3 + $0xb0] sm:$0xff] %vm3088_vm13, %v10061_v5  ;;  %12218 = vrot.lane.b32.xlu1 %v17021_v30, %s17059_s23  ;;  %v10015_v30 = vsel %vm2895_vm10, %v10013_v53, %v10014_v7  ;;  %v13006_v5 = vor.u32 %v13005_v35, %v13001_v16 }
 0x5b3   :  { %10428 = vrot.lane.b32.xlu0 %v17020_v15, %s17056_s16  ;;  %v17036_v15 = vld [vmem:[#allocation2 + $0x198] sm:$0xfe]  }
 0x5b4   :  { %v12203_v10 = vpop.permute.xlu1 %12202 }
 0x5b5   :  { %v10413_v26 = vpop.permute.xlu0 %10412  ;;  %v13748_v8 = vld [vmem:[#allocation3 + $0xa0] sm:$0xff]  ;;  %12277 = vst.msk [vmem:[#allocation3 + $0xa8] sm:$0xff] %vm5237_vm2, %v12203_v10  ;;  %v16012_v45 = vpop.f32.mrb[4].mxu1  ;;  %v17035_v10 = vld [vmem:[#allocation2 + $0x198] sm:$0xff]  }
 0x5b6   :  { %10486 = vst.msk [vmem:[#allocation3 + $0xb0] sm:$0xff] %vm20735_vm5, %v10413_v26  ;;  %16046 = vmatprep.mubr.msk.bf16.mxu1 %vm6764_vm14, %v13748_v8  ;;  %v14181_v0 = vmul.f32 %v16012_v45, %v19924_v56  ;;  %v13929_v36 = vpop.f32.mrb[5].mxu1  ;;  %13082 = vrot.lane.b32.xlu1 %v12999_v33, %s17060_s24  ;;  %v17041_v26 = vld [vmem:[#allocation2 + $0x1a0] ss:$0 sps:$4 sm:$0x11]   ;;  %v13011_v8 = vsel %vm2029_vm9, %v13006_v5, %v13010_v29  ;;  %v13595_v45 = vrot.slane %v17037_v11, 1 }
 0x5b7   :  { %11292 = vrot.lane.b32.xlu0 %v11219_v31, %s17057_s21  ;;  %v14179_v18 = vmul.f32 %v19924_v56, %v13929_v36  ;;  %v16013_v47 = vpop.f32.mrb[6].mxu1  ;;  %v13594_v31 = vrot.slane %v17036_v15, 1  ;;  %v11230_v33 = vrot.slane %v11228_v20, 1 }
 0x5b8   :  { %v14252_v28 = vadd.f32 %v19931_v42, %v14181_v0  ;;  %v14182_v39 = vmul.f32 %v16013_v47, %v19924_v56  ;;  %v13932_v40 = vpop.f32.mrb[7].mxu1  ;;  %v13067_v48 = vpop.permute.xlu1 %13066  ;;  %v13013_v47 = vshrl.u32 %v17043_v22, 16 }
 0x5b9   :  { %v14250_v13 = vadd.f32 %v19931_v42, %v14179_v18  ;;  %v11277_v61 = vpop.permute.xlu0 %11276  ;;  %v14180_v58 = vmul.f32 %v19924_v56, %v13932_v40  ;;  %13141 = vst.msk [vmem:[#allocation3 + $0xa8] sm:$0xff] %vm6102_vm4, %v13067_v48  ;;  %v11231_v2 = vsel %vm2029_vm9, %v11226_v43, %v11230_v33  ;;  %v13596_v18 = vsel %vm2895_vm10, %v13594_v31, %v13595_v45 }
 0x5ba   :  { %v14380_v59 = vadd.f32 %v14316_v6, %v14252_v28  ;;  %11350 = vst.msk [vmem:[#allocation3 + $0xb0] sm:$0xff] %vm20736_vm7, %v11277_v61  ;;  %v14253_v52 = vadd.f32 %v19931_v42, %v14182_v39  ;;  %13658 = vrot.lane.b32.xlu1 %v13593_v51, %s17061_s25  ;;  %v11806_v6 = vrot.slane %v17041_v26, 1  ;;  %v13017_v28 = vrot.slane %v13015_v41, 1  ;;  %v17042_v51 = vld [vmem:[#allocation2 + $0x1a4] sm:$0xff]  }
 0x5bb   :  { %v14378_v9 = vadd.f32 %v14314_v25, %v14250_v13  ;;  %v14251_v12 = vadd.f32 %v19931_v42, %v14180_v58  ;;  %11868 = vrot.lane.b32.xlu0 %v11804_v4, %s17058_s22  ;;  %v13020_v25 = vshll.u32 %v17044_v19, 16  ;;  %v17045_v13 = vld [vmem:[#allocation2 + $0x1a4] sm:$0xfe]   ;;  %v17046_v61 = vld [vmem:[#allocation2 + $0x1ac] ss:$0 sps:$4 sm:$0x11]  }
 0x5bc   :  { %v14444_v57 = vmax.f32 %v14380_v59, 0.0  ;;  %v14381_v62 = vadd.f32 %v14317_v55, %v14253_v52  ;;  %v13643_v17 = vpop.permute.xlu1 %13642  ;;  %v11807_v48 = vsel %vm2895_vm10, %v11805_v32, %v11806_v6  ;;  %v13018_v53 = vor.u32 %v13017_v28, %v13013_v47  ;;  %v14320_v52 = vld [vmem:[%s20673_s0 + $0x50] sm:$0xff]  ;;  %v14322_v47 = vld [vmem:[%s20673_s0 + $0x60] sm:$0xff] }
 0x5bd   :  { %v14442_v60 = vmax.f32 %v14378_v9, 0.0  ;;  %v14379_v37 = vadd.f32 %v14315_v46, %v14251_v12  ;;  %v11853_v49 = vpop.permute.xlu0 %11852  ;;  %13717 = vst.msk [vmem:[#allocation3 + $0xa8] sm:$0xff] %vm6679_vm15, %v13643_v17  ;;  %v13022_v3 = vrot.slane %v13020_v25, 1  ;;  %v13597_v9 = vrot.slane %v17045_v13, 1 }
 0x5be   :  { %14508 = vst.msk [vmem:[%s20680_s7 + $0x30] sm:$0xff] %vm1644_vm11, %v14444_v57  ;;  %v14445_v54 = vmax.f32 %v14381_v62, 0.0  ;;  %10078 = vrot.lane.b32.xlu1 %v10015_v30, %s17055_s11  ;;  %v13598_v12 = vrot.slane %v17046_v61, 1  ;;  %v14318_v57 = vld [vmem:[%s20673_s0 + $0x40] sm:$0xff]  ;;  %v14323_v61 = vld [vmem:[%s20673_s0 + $0x68] sm:$0xff] }
 0x5bf   :  { %11926 = vst.msk [vmem:[#allocation3 + $0xb0] sm:$0xff] %vm4883_vm1, %v11853_v49  ;;  %v14443_v38 = vmax.f32 %v14379_v37, 0.0  ;;  %12220 = vrot.lane.b32.xlu0 %v17030_v1, %s17059_s23  ;;  %v13023_v35 = vsel %vm2029_vm9, %v13018_v53, %v13022_v3  ;;  %v14321_v37 = vld [vmem:[%s20673_s0 + $0x58] sm:$0xff]  ;;  %vm20739_vm9 = vmmov %vm20733_vm0 }
 0x5c0   :  { %14506 = vst.msk [vmem:[%s20680_s7 + $0x20] sm:$0xff] %vm1644_vm11, %v14442_v60  ;;  %14509 = vst.msk [vmem:[%s20680_s7 + $0x38] sm:$0xff] %vm1644_vm11, %v14445_v54  ;;  %v10063_v24 = vpop.permute.xlu1 %10062  ;;  %v14319_v54 = vld [vmem:[%s20673_s0 + $0x48] sm:$0xff]  ;;  %v13599_v11 = vsel %vm2895_vm10, %v13597_v9, %v13598_v12 }
 0x5c1   :  { %14507 = vst.msk [vmem:[%s20680_s7 + $0x28] sm:$0xff] %vm1644_vm11, %v14443_v38  ;;  %v12205_v14 = vpop.permute.xlu0 %12204  ;;  %vm20741_vm10 = vmmov %vm20733_vm0 }
 0x5c2   :  { %10135 = vst.msk [vmem:[#allocation3 + $0xb8] sm:$0xff] %vm3088_vm13, %v10063_v24  ;;  %10430 = vrot.lane.b32.xlu1 %v17035_v10, %s17056_s16  ;;  %vm20742_vm0 = vmmov %vm20734_vm3 }
 0x5c3   :  { %12278 = vst.msk [vmem:[#allocation3 + $0xb0] sm:$0xff] %vm5237_vm2, %v12205_v14  ;;  %13084 = vrot.lane.b32.xlu0 %v13011_v8, %s17060_s24  ;;  %vm20743_vm3 = vmmov %vm20735_vm5 }
 0x5c4   :  { %v10415_v0 = vpop.permute.xlu1 %10414  ;;  %v13749_v36 = vld [vmem:[#allocation3 + $0xa8] sm:$0xff]  ;;  %vm20744_vm5 = vmmov %vm20742_vm0 }
 0x5c5   :  { %v13069_v44 = vpop.permute.xlu0 %13068  ;;  %10487 = vst.msk [vmem:[#allocation3 + $0xb8] sm:$0xff] %vm20737_vm8, %v10415_v0  ;;  %16047 = vmatmul.mubr.msk.bf16.gmra.mrb[40].mxu1 %vm6764_vm14, %v13749_v36  ;;  %vm20745_vm7 = vmmov %vm20743_vm3 }
 0x5c6   :  { %13142 = vst.msk [vmem:[#allocation3 + $0xb0] sm:$0xff] %vm6102_vm4, %v13069_v44  ;;  %11294 = vrot.lane.b32.xlu1 %v11231_v2, %s17057_s21  ;;  %v14324_v2 = vld [vmem:[%s20673_s0 + $0x70] sm:$0xff]  ;;  %vm20746_vm8 = vmmov %vm20742_vm0 }
 0x5c7   :  { %13660 = vrot.lane.b32.xlu0 %v13596_v18, %s17061_s25 }
 0x5c8   :  { %v11279_v39 = vpop.permute.xlu1 %11278 }
 0x5c9   :  { %v13645_v40 = vpop.permute.xlu0 %13644  ;;  %11351 = vst.msk [vmem:[#allocation3 + $0xb8] sm:$0xff] %vm20738_vm12, %v11279_v39  ;;  %vm20747_vm12 = vmmov %vm20743_vm3 }
 0x5ca   :  { %13718 = vst.msk [vmem:[#allocation3 + $0xb0] sm:$0xff] %vm6679_vm15, %v13645_v40  ;;  %11870 = vrot.lane.b32.xlu1 %v11807_v48, %s17058_s22 }
 0x5cc   :  { %v11855_v55 = vpop.permute.xlu1 %11854 }
 0x5cd   :  { %v10065_v58 = vpop.permute.xlu0 %10064  ;;  %11927 = vst.msk [vmem:[#allocation3 + $0xb8] sm:$0xff] %vm4883_vm1, %v11855_v55  ;;  %v16016_v7 = vpop.f32.mrb[8].mxu1 }
 0x5ce   :  { %10136 = vst.msk [vmem:[#allocation3 + $0xc0] sm:$0xff] %vm3088_vm13, %v10065_v58  ;;  %v14185_v23 = vmul.f32 %v16016_v7, %v19924_v56  ;;  %v13945_v59 = vpop.f32.mrb[9].mxu1  ;;  %12222 = vrot.lane.b32.xlu1 %v17042_v51, %s17059_s23  ;;  %v14325_v51 = vld [vmem:[%s20673_s0 + $0x78] sm:$0xff] }
 0x5cf   :  { %v14183_v46 = vmul.f32 %v19924_v56, %v13945_v59  ;;  %v16017_v4 = vpop.f32.mrb[10].mxu1 }
 0x5d0   :  { %v14256_v27 = vadd.f32 %v19931_v42, %v14185_v23  ;;  %v14186_v62 = vmul.f32 %v16017_v4, %v19924_v56  ;;  %v13948_v17 = vpop.f32.mrb[11].mxu1  ;;  %v12207_v16 = vpop.permute.xlu1 %12206 }
 0x5d1   :  { %v14254_v50 = vadd.f32 %v19931_v42, %v14183_v46  ;;  %v10417_v60 = vpop.permute.xlu0 %10416  ;;  %v14184_v49 = vmul.f32 %v19924_v56, %v13948_v17  ;;  %v13750_v1 = vld [vmem:[#allocation3 + $0xb0] sm:$0xff]  ;;  %12279 = vst.msk [vmem:[#allocation3 + $0xb8] sm:$0xff] %vm5237_vm2, %v12207_v16 }
 0x5d2   :  { %v14384_v30 = vadd.f32 %v14320_v52, %v14256_v27  ;;  %10488 = vst.msk [vmem:[#allocation3 + $0xc0] sm:$0xff] %vm20739_vm9, %v10417_v60  ;;  %v14257_v34 = vadd.f32 %v19931_v42, %v14186_v62  ;;  %16050 = vmatprep.mubr.msk.bf16.mxu1 %vm6764_vm14, %v13750_v1  ;;  %13086 = vrot.lane.b32.xlu1 %v13023_v35, %s17060_s24  ;;  %vm20748_vm9 = vmmov %vm20742_vm0 }
 0x5d3   :  { %v14382_v5 = vadd.f32 %v14318_v57, %v14254_v50  ;;  %v14255_v15 = vadd.f32 %v19931_v42, %v14184_v49 }
 0x5d4   :  { %v14448_v38 = vmax.f32 %v14384_v30, 0.0  ;;  %v14385_v21 = vadd.f32 %v14321_v37, %v14257_v34  ;;  %v13071_v20 = vpop.permute.xlu1 %13070 }
 0x5d5   :  { %v14446_v22 = vmax.f32 %v14382_v5, 0.0  ;;  %v14383_v24 = vadd.f32 %v14319_v54, %v14255_v15  ;;  %v11281_v29 = vpop.permute.xlu0 %11280  ;;  %13143 = vst.msk [vmem:[#allocation3 + $0xb8] sm:$0xff] %vm6102_vm4, %v13071_v20  ;;  %v14328_v54 = vld [vmem:[%s20673_s0 + $0x90] sm:$0xff] }
 0x5d6   :  { %14512 = vst.msk [vmem:[%s20680_s7 + $0x50] sm:$0xff] %vm1644_vm11, %v14448_v38  ;;  %v14449_v10 = vmax.f32 %v14385_v21, 0.0  ;;  %13662 = vrot.lane.b32.xlu1 %v13599_v11, %s17061_s25  ;;  %v14326_v38 = vld [vmem:[%s20673_s0 + $0x80] sm:$0xff] }
 0x5d7   :  { %11352 = vst.msk [vmem:[#allocation3 + $0xc0] sm:$0xff] %vm20740_vm6, %v11281_v29  ;;  %v14447_v14 = vmax.f32 %v14383_v24, 0.0  ;;  %vm20749_vm6 = vmmov %vm20743_vm3 }
 0x5d8   :  { %14510 = vst.msk [vmem:[%s20680_s7 + $0x40] sm:$0xff] %vm1644_vm11, %v14446_v22  ;;  %14513 = vst.msk [vmem:[%s20680_s7 + $0x58] sm:$0xff] %vm1644_vm11, %v14449_v10  ;;  %v13647_v43 = vpop.permute.xlu1 %13646  ;;  %v14329_v10 = vld [vmem:[%s20673_s0 + $0x98] sm:$0xff] }
 0x5d9   :  { %14511 = vst.msk [vmem:[%s20680_s7 + $0x48] sm:$0xff] %vm1644_vm11, %v14447_v14  ;;  %v11857_v63 = vpop.permute.xlu0 %11856 }
 0x5da   :  { %13719 = vst.msk [vmem:[#allocation3 + $0xb8] sm:$0xff] %vm6679_vm15, %v13647_v43 }
 0x5db   :  { %11928 = vst.msk [vmem:[#allocation3 + $0xc0] sm:$0xff] %vm4883_vm1, %v11857_v63 }
 0x5dc   :  { %v10067_v26 = vpop.permute.xlu1 %10066 }
 0x5dd   :  { %v12209_v8 = vpop.permute.xlu0 %12208  ;;  %10137 = vst.msk [vmem:[#allocation3 + $0xc8] sm:$0xff] %vm3088_vm13, %v10067_v26  ;;  %v14327_v26 = vld [vmem:[%s20673_s0 + $0x88] sm:$0xff] }
 0x5de   :  { %12280 = vst.msk [vmem:[#allocation3 + $0xc0] sm:$0xff] %vm5237_vm2, %v12209_v8 }
 0x5e0   :  { %v10419_v31 = vpop.permute.xlu1 %10418 }
 0x5e1   :  { %v13751_v45 = vld [vmem:[#allocation3 + $0xb8] sm:$0xff]  ;;  %v13073_v33 = vpop.permute.xlu0 %13072  ;;  %10489 = vst.msk [vmem:[#allocation3 + $0xc8] sm:$0xff] %vm20741_vm10, %v10419_v31  ;;  %vm20750_vm10 = vmmov %vm20742_vm0 }
 0x5e2   :  { %16051 = vmatmul.mubr.msk.bf16.gmra.mrb[44].mxu1 %vm6764_vm14, %v13751_v45  ;;  %13144 = vst.msk [vmem:[#allocation3 + $0xc0] sm:$0xff] %vm6102_vm4, %v13073_v33 }
 0x5e4   :  { %v11283_v19 = vpop.permute.xlu1 %11282 }
 0x5e5   :  { %v13649_v41 = vpop.permute.xlu0 %13648  ;;  %11353 = vst.msk [vmem:[#allocation3 + $0xc8] sm:$0xff] %vm20742_vm0, %v11283_v19  ;;  %v16020_v0 = vpop.f32.mrb[12].mxu1  ;;  %vm20751_vm0 = vmmov %vm20743_vm3 }
 0x5e6   :  { %13720 = vst.msk [vmem:[#allocation3 + $0xc0] sm:$0xff] %vm6679_vm15, %v13649_v41  ;;  %v14189_v36 = vmul.f32 %v16020_v0, %v19924_v56  ;;  %v13961_v44 = vpop.f32.mrb[13].mxu1 }
 0x5e7   :  { %v14187_v32 = vmul.f32 %v19924_v56, %v13961_v44  ;;  %v16021_v6 = vpop.f32.mrb[14].mxu1 }
 0x5e8   :  { %v14260_v18 = vadd.f32 %v19931_v42, %v14189_v36  ;;  %v14190_v28 = vmul.f32 %v16021_v6, %v19924_v56  ;;  %v13964_v25 = vpop.f32.mrb[15].mxu1  ;;  %v11859_v39 = vpop.permute.xlu1 %11858 }
 0x5e9   :  { %v14258_v40 = vadd.f32 %v19931_v42, %v14187_v32  ;;  %v10069_v48 = vpop.permute.xlu0 %10068  ;;  %v14188_v53 = vmul.f32 %v19924_v56, %v13964_v25  ;;  %11929 = vst.msk [vmem:[#allocation3 + $0xc8] sm:$0xff] %vm4883_vm1, %v11859_v39 }
 0x5ea   :  { %v14388_v3 = vadd.f32 %v14324_v2, %v14260_v18  ;;  %10138 = vst.msk [vmem:[#allocation3 + $0xd0] sm:$0xff] %vm3088_vm13, %v10069_v48  ;;  %v14261_v13 = vadd.f32 %v19931_v42, %v14190_v28 }
 0x5eb   :  { %v14386_v55 = vadd.f32 %v14322_v47, %v14258_v40  ;;  %v14259_v58 = vadd.f32 %v19931_v42, %v14188_v53 }
 0x5ec   :  { %v14452_v7 = vmax.f32 %v14388_v3, 0.0  ;;  %v14389_v23 = vadd.f32 %v14325_v51, %v14261_v13  ;;  %v12211_v59 = vpop.permute.xlu1 %12210  ;;  %v14332_v13 = vld [vmem:[%s20673_s0 + $0xb0] sm:$0xff] }
 0x5ed   :  { %v14450_v52 = vmax.f32 %v14386_v55, 0.0  ;;  %v14387_v46 = vadd.f32 %v14323_v61, %v14259_v58  ;;  %v10421_v4 = vpop.permute.xlu0 %10420  ;;  %v13752_v35 = vld [vmem:[#allocation3 + $0xc0] sm:$0xff]  ;;  %12281 = vst.msk [vmem:[#allocation3 + $0xc8] sm:$0xff] %vm5237_vm2, %v12211_v59 }
 0x5ee   :  { %14516 = vst.msk [vmem:[%s20680_s7 + $0x70] sm:$0xff] %vm1644_vm11, %v14452_v7  ;;  %v14453_v9 = vmax.f32 %v14389_v23, 0.0  ;;  %16054 = vmatprep.mubr.msk.bf16.mxu1 %vm6764_vm14, %v13752_v35  ;;  %v14330_v7 = vld [vmem:[%s20673_s0 + $0xa0] sm:$0xff] }
 0x5ef   :  { %10490 = vst.msk [vmem:[#allocation3 + $0xd0] sm:$0xff] %vm20743_vm3, %v10421_v4  ;;  %v14451_v12 = vmax.f32 %v14387_v46, 0.0  ;;  %vm20752_vm3 = vmmov %vm20744_vm5 }
 0x5f0   :  { %14514 = vst.msk [vmem:[%s20680_s7 + $0x60] sm:$0xff] %vm1644_vm11, %v14450_v52  ;;  %14517 = vst.msk [vmem:[%s20680_s7 + $0x78] sm:$0xff] %vm1644_vm11, %v14453_v9  ;;  %v13075_v27 = vpop.permute.xlu1 %13074  ;;  %v14333_v9 = vld [vmem:[%s20673_s0 + $0xb8] sm:$0xff] }
 0x5f1   :  { %14515 = vst.msk [vmem:[%s20680_s7 + $0x68] sm:$0xff] %vm1644_vm11, %v14451_v12  ;;  %v11285_v57 = vpop.permute.xlu0 %11284 }
 0x5f2   :  { %13145 = vst.msk [vmem:[#allocation3 + $0xc8] sm:$0xff] %vm6102_vm4, %v13075_v27 }
 0x5f3   :  { %11354 = vst.msk [vmem:[#allocation3 + $0xd0] sm:$0xff] %vm20744_vm5, %v11285_v57  ;;  %vm20754_vm5 = vmmov %vm20752_vm3 }
 0x5f4   :  { %v13651_v62 = vpop.permute.xlu1 %13650 }
 0x5f5   :  { %v11861_v17 = vpop.permute.xlu0 %11860  ;;  %13721 = vst.msk [vmem:[#allocation3 + $0xc8] sm:$0xff] %vm6679_vm15, %v13651_v62  ;;  %v14331_v62 = vld [vmem:[%s20673_s0 + $0xa8] sm:$0xff] }
 0x5f6   :  { %11930 = vst.msk [vmem:[#allocation3 + $0xd0] sm:$0xff] %vm4883_vm1, %v11861_v17 }
 0x5f8   :  { %v10071_v16 = vpop.permute.xlu1 %10070 }
 0x5f9   :  { %v12213_v50 = vpop.permute.xlu0 %12212  ;;  %10139 = vst.msk [vmem:[#allocation3 + $0xd8] sm:$0xff] %vm3088_vm13, %v10071_v16 }
 0x5fa   :  { %12282 = vst.msk [vmem:[#allocation3 + $0xd0] sm:$0xff] %vm5237_vm2, %v12213_v50 }
 0x5fc   :  { %v10423_v60 = vpop.permute.xlu1 %10422  ;;  %v13753_v37 = vld [vmem:[#allocation3 + $0xc8] sm:$0xff] }
 0x5fd   :  { %v13077_v49 = vpop.permute.xlu0 %13076  ;;  %10491 = vst.msk [vmem:[#allocation3 + $0xd8] sm:$0xff] %vm20745_vm7, %v10423_v60  ;;  %v16024_v1 = vpop.f32.mrb[16].mxu1  ;;  %16055 = vmatmul.mubr.msk.bf16.gmra.mrb[48].mxu1 %vm6764_vm14, %v13753_v37 }
 0x5fe   :  { %13146 = vst.msk [vmem:[#allocation3 + $0xd0] sm:$0xff] %vm6102_vm4, %v13077_v49  ;;  %v14193_v30 = vmul.f32 %v16024_v1, %v19924_v56  ;;  %v13977_v34 = vpop.f32.mrb[17].mxu1 }
 0x5ff   :  { %v14191_v5 = vmul.f32 %v19924_v56, %v13977_v34  ;;  %v16025_v15 = vpop.f32.mrb[18].mxu1 }
 0x600   :  { %v14264_v11 = vadd.f32 %v19931_v42, %v14193_v30  ;;  %v14194_v21 = vmul.f32 %v16025_v15, %v19924_v56  ;;  %v13980_v20 = vpop.f32.mrb[19].mxu1  ;;  %v11287_v22 = vpop.permute.xlu1 %11286 }
 0x601   :  { %v14262_v24 = vadd.f32 %v19931_v42, %v14191_v5  ;;  %v13653_v29 = vpop.permute.xlu0 %13652  ;;  %v14192_v14 = vmul.f32 %v19924_v56, %v13980_v20  ;;  %11355 = vst.msk [vmem:[#allocation3 + $0xd8] sm:$0xff] %vm20746_vm8, %v11287_v22 }
 0x602   :  { %v14392_v43 = vadd.f32 %v14328_v54, %v14264_v11  ;;  %13722 = vst.msk [vmem:[#allocation3 + $0xd0] sm:$0xff] %vm6679_vm15, %v13653_v29  ;;  %v14265_v63 = vadd.f32 %v19931_v42, %v14194_v21 }
 0x603   :  { %v14390_v8 = vadd.f32 %v14326_v38, %v14262_v24  ;;  %v14263_v31 = vadd.f32 %v19931_v42, %v14192_v14 }
 0x604   :  { %v14456_v45 = vmax.f32 %v14392_v43, 0.0  ;;  %v14393_v33 = vadd.f32 %v14329_v10, %v14265_v63  ;;  %v11863_v19 = vpop.permute.xlu1 %11862  ;;  %v14336_v63 = vld [vmem:[%s20673_s0 + $0xd0] sm:$0xff] }
 0x605   :  { %v14454_v41 = vmax.f32 %v14390_v8, 0.0  ;;  %v14391_v0 = vadd.f32 %v14327_v26, %v14263_v31  ;;  %v10073_v36 = vpop.permute.xlu0 %10072  ;;  %11931 = vst.msk [vmem:[#allocation3 + $0xd8] sm:$0xff] %vm4883_vm1, %v11863_v19 }
 0x606   :  { %14520 = vst.msk [vmem:[%s20680_s7 + $0x90] sm:$0xff] %vm1644_vm11, %v14456_v45  ;;  %v14457_v44 = vmax.f32 %v14393_v33, 0.0  ;;  %v14334_v45 = vld [vmem:[%s20673_s0 + $0xc0] sm:$0xff] }
 0x607   :  { %10140 = vst.msk [vmem:[#allocation3 + $0xe0] sm:$0xff] %vm3088_vm13, %v10073_v36  ;;  %v14455_v2 = vmax.f32 %v14391_v0, 0.0 }
 0x608   :  { %14518 = vst.msk [vmem:[%s20680_s7 + $0x80] sm:$0xff] %vm1644_vm11, %v14454_v41  ;;  %14521 = vst.msk [vmem:[%s20680_s7 + $0x98] sm:$0xff] %vm1644_vm11, %v14457_v44  ;;  %v12215_v32 = vpop.permute.xlu1 %12214  ;;  %v14337_v44 = vld [vmem:[%s20673_s0 + $0xd8] sm:$0xff] }
 0x609   :  { %14519 = vst.msk [vmem:[%s20680_s7 + $0x88] sm:$0xff] %vm1644_vm11, %v14455_v2  ;;  %v10425_v6 = vpop.permute.xlu0 %10424  ;;  %v13754_v18 = vld [vmem:[#allocation3 + $0xd0] sm:$0xff] }
 0x60a   :  { %12283 = vst.msk [vmem:[#allocation3 + $0xd8] sm:$0xff] %vm5237_vm2, %v12215_v32  ;;  %16058 = vmatprep.mubr.msk.bf16.mxu1 %vm6764_vm14, %v13754_v18  ;;  %v14335_v18 = vld [vmem:[%s20673_s0 + $0xc8] sm:$0xff] }
 0x60b   :  { %10492 = vst.msk [vmem:[#allocation3 + $0xe0] sm:$0xff] %vm20747_vm12, %v10425_v6 }
 0x60c   :  { %v13079_v47 = vpop.permute.xlu1 %13078 }
 0x60d   :  { %v11289_v28 = vpop.permute.xlu0 %11288  ;;  %13147 = vst.msk [vmem:[#allocation3 + $0xd8] sm:$0xff] %vm6102_vm4, %v13079_v47 }
 0x60e   :  { %11356 = vst.msk [vmem:[#allocation3 + $0xe0] sm:$0xff] %vm20748_vm9, %v11289_v28 }
 0x610   :  { %v13655_v25 = vpop.permute.xlu1 %13654 }
 0x611   :  { %v11865_v39 = vpop.permute.xlu0 %11864  ;;  %13723 = vst.msk [vmem:[#allocation3 + $0xd8] sm:$0xff] %vm6679_vm15, %v13655_v25 }
 0x612   :  { %11932 = vst.msk [vmem:[#allocation3 + $0xe0] sm:$0xff] %vm4883_vm1, %v11865_v39 }
 0x614   :  { %v10075_v40 = vpop.permute.xlu1 %10074 }
 0x615   :  { %v12217_v48 = vpop.permute.xlu0 %12216  ;;  %10141 = vst.msk [vmem:[#allocation3 + $0xe8] sm:$0xff] %vm3088_vm13, %v10075_v40  ;;  %v16028_v51 = vpop.f32.mrb[20].mxu1 }
 0x616   :  { %12284 = vst.msk [vmem:[#allocation3 + $0xe0] sm:$0xff] %vm5237_vm2, %v12217_v48  ;;  %v14197_v53 = vmul.f32 %v16028_v51, %v19924_v56  ;;  %v13993_v3 = vpop.f32.mrb[21].mxu1 }
 0x617   :  { %v14195_v61 = vmul.f32 %v19924_v56, %v13993_v3  ;;  %v16029_v55 = vpop.f32.mrb[22].mxu1 }
 0x618   :  { %v14268_v58 = vadd.f32 %v19931_v42, %v14197_v53  ;;  %v14198_v23 = vmul.f32 %v16029_v55, %v19924_v56  ;;  %v13996_v59 = vpop.f32.mrb[23].mxu1  ;;  %v10427_v52 = vpop.permute.xlu1 %10426  ;;  %v13755_v46 = vld [vmem:[#allocation3 + $0xd8] sm:$0xff] }
 0x619   :  { %v14266_v4 = vadd.f32 %v19931_v42, %v14195_v61  ;;  %v13081_v35 = vpop.permute.xlu0 %13080  ;;  %v14196_v12 = vmul.f32 %v19924_v56, %v13996_v59  ;;  %10493 = vst.msk [vmem:[#allocation3 + $0xe8] sm:$0xff] %vm20749_vm6, %v10427_v52  ;;  %16059 = vmatmul.mubr.msk.bf16.gmra.mrb[52].mxu1 %vm6764_vm14, %v13755_v46  ;;  %v20340_v52 = vld [vmem:[%s20678_s5] ss:$0 sm:$0xff] }
 0x61a   :  { %v14396_v27 = vadd.f32 %v14332_v13, %v14268_v58  ;;  %13148 = vst.msk [vmem:[#allocation3 + $0xe0] sm:$0xff] %vm6102_vm4, %v13081_v35  ;;  %v14269_v57 = vadd.f32 %v19931_v42, %v14198_v23  ;;  %v14340_v35 = vld [vmem:[%s20673_s0 + $0xf0] sm:$0xff] }
 0x61b   :  { %v14394_v17 = vadd.f32 %v14330_v7, %v14266_v4  ;;  %v14267_v16 = vadd.f32 %v19931_v42, %v14196_v12 }
 0x61c   :  { %v14460_v50 = vmax.f32 %v14396_v27, 0.0  ;;  %v14397_v60 = vadd.f32 %v14333_v9, %v14269_v57  ;;  %v11291_v37 = vpop.permute.xlu1 %11290  ;;  %v20350_v27 = vld [vmem:[%s20679_s6] ss:$0 sm:$0xff] }
 0x61d   :  { %v14458_v49 = vmax.f32 %v14394_v17, 0.0  ;;  %v14395_v1 = vadd.f32 %v14331_v62, %v14267_v16  ;;  %v13657_v30 = vpop.permute.xlu0 %13656  ;;  %11357 = vst.msk [vmem:[#allocation3 + $0xe8] sm:$0xff] %vm20750_vm10, %v11291_v37  ;;  %v14338_v62 = vld [vmem:[%s20673_s0 + $0xe0] sm:$0xff]  ;;  %v14341_v37 = vld [vmem:[%s20673_s0 + $0xf8] sm:$0xff] }
 0x61e   :  { %14524 = vst.msk [vmem:[%s20680_s7 + $0xb0] sm:$0xff] %vm1644_vm11, %v14460_v50  ;;  %v14461_v34 = vmax.f32 %v14397_v60, 0.0 }
 0x61f   :  { %13724 = vst.msk [vmem:[#allocation3 + $0xe0] sm:$0xff] %vm6679_vm15, %v13657_v30  ;;  %v14459_v54 = vmax.f32 %v14395_v1, 0.0 }
 0x620   :  { %14522 = vst.msk [vmem:[%s20680_s7 + $0xa0] sm:$0xff] %vm1644_vm11, %v14458_v49  ;;  %14525 = vst.msk [vmem:[%s20680_s7 + $0xb8] sm:$0xff] %vm1644_vm11, %v14461_v34  ;;  %v11867_v5 = vpop.permute.xlu1 %11866  ;;  %v14339_v34 = vld [vmem:[%s20673_s0 + $0xe8] sm:$0xff] }
 0x621   :  { %14523 = vst.msk [vmem:[%s20680_s7 + $0xa8] sm:$0xff] %vm1644_vm11, %v14459_v54  ;;  %v10077_v15 = vpop.permute.xlu0 %10076 }
 0x622   :  { %11933 = vst.msk [vmem:[#allocation3 + $0xe8] sm:$0xff] %vm4883_vm1, %v11867_v5 }
 0x623   :  { %10142 = vst.msk [vmem:[#allocation3 + $0xf0] sm:$0xff] %vm3088_vm13, %v10077_v15 }
 0x624   :  { %v12219_v11 = vpop.permute.xlu1 %12218 }
 0x625   :  { %v10429_v38 = vpop.permute.xlu0 %10428  ;;  %12285 = vst.msk [vmem:[#allocation3 + $0xe8] sm:$0xff] %vm5237_vm2, %v12219_v11 }
 0x626   :  { %v13756_v21 = vld [vmem:[#allocation3 + $0xe0] sm:$0xff]  ;;  %10494 = vst.msk [vmem:[#allocation3 + $0xf0] sm:$0xff] %vm20751_vm0, %v10429_v38 }
 0x627   :  { %16062 = vmatprep.mubr.msk.bf16.mxu1 %vm6764_vm14, %v13756_v21 }
 0x628   :  { %v13083_v20 = vpop.permute.xlu1 %13082 }
 0x629   :  { %v11293_v22 = vpop.permute.xlu0 %11292  ;;  %13149 = vst.msk [vmem:[#allocation3 + $0xe8] sm:$0xff] %vm6102_vm4, %v13083_v20 }
 0x62a   :  { %11358 = vst.msk [vmem:[#allocation3 + $0xf0] sm:$0xff] %vm20752_vm3, %v11293_v22 }
 0x62c   :  { %v13659_v24 = vpop.permute.xlu1 %13658 }
 0x62d   :  { %v11869_v29 = vpop.permute.xlu0 %11868  ;;  %13725 = vst.msk [vmem:[#allocation3 + $0xe8] sm:$0xff] %vm6679_vm15, %v13659_v24  ;;  %v16032_v10 = vpop.f32.mrb[24].mxu1 }
 0x62e   :  { %11934 = vst.msk [vmem:[#allocation3 + $0xf0] sm:$0xff] %vm4883_vm1, %v11869_v29  ;;  %v14201_v14 = vmul.f32 %v16032_v10, %v19924_v56  ;;  %v14009_v43 = vpop.f32.mrb[25].mxu1 }
 0x62f   :  { %v14199_v26 = vmul.f32 %v19924_v56, %v14009_v43  ;;  %v16033_v8 = vpop.f32.mrb[26].mxu1  ;;  %v14344_v43 = vld [vmem:[%s20673_s0 + $0x110] sm:$0xff] }
 0x630   :  { %v14272_v31 = vadd.f32 %v19931_v42, %v14201_v14  ;;  %v14202_v33 = vmul.f32 %v16033_v8, %v19924_v56  ;;  %v14012_v19 = vpop.f32.mrb[27].mxu1  ;;  %v10079_v41 = vpop.permute.xlu1 %10078 }
 0x631   :  { %v14270_v0 = vadd.f32 %v19931_v42, %v14199_v26  ;;  %v12221_v36 = vpop.permute.xlu0 %12220  ;;  %v14200_v2 = vmul.f32 %v19924_v56, %v14012_v19  ;;  %10143 = vst.msk [vmem:[#allocation3 + $0xf8] sm:$0xff] %vm3088_vm13, %v10079_v41  ;;  %vm20753_vm13 = vmmov %vm20751_vm0  ;;  %v14345_v41 = vld [vmem:[%s20673_s0 + $0x118] sm:$0xff] }
 0x632   :  { %v14400_v32 = vadd.f32 %v14336_v63, %v14272_v31  ;;  %12286 = vst.msk [vmem:[#allocation3 + $0xf0] sm:$0xff] %vm5237_vm2, %v12221_v36  ;;  %v14273_v6 = vadd.f32 %v19931_v42, %v14202_v33  ;;  %v14342_v31 = vld [vmem:[%s20673_s0 + $0x100] sm:$0xff] }
 0x633   :  { %v14398_v47 = vadd.f32 %v14334_v45, %v14270_v0  ;;  %v14271_v28 = vadd.f32 %v19931_v42, %v14200_v2  ;;  %v14343_v2 = vld [vmem:[%s20673_s0 + $0x108] sm:$0xff] }
 0x634   :  { %v14464_v25 = vmax.f32 %v14400_v32, 0.0  ;;  %v14401_v39 = vadd.f32 %v14337_v44, %v14273_v6  ;;  %v10431_v40 = vpop.permute.xlu1 %10430  ;;  %v13757_v48 = vld [vmem:[#allocation3 + $0xe8] sm:$0xff] }
 0x635   :  { %v14462_v51 = vmax.f32 %v14398_v47, 0.0  ;;  %v14399_v56 = vadd.f32 %v14335_v18, %v14271_v28  ;;  %v13085_v53 = vpop.permute.xlu0 %13084  ;;  %10495 = vst.msk [vmem:[#allocation3 + $0xf8] sm:$0xff] %vm20753_vm13, %v10431_v40  ;;  %16063 = vmatmul.mubr.msk.bf16.gmra.mrb[56].mxu1 %vm6764_vm14, %v13757_v48 }
 0x636   :  { %14528 = vst.msk [vmem:[%s20680_s7 + $0xd0] sm:$0xff] %vm1644_vm11, %v14464_v25  ;;  %v14465_v3 = vmax.f32 %v14401_v39, 0.0 }
 0x637   :  { %13150 = vst.msk [vmem:[#allocation3 + $0xf0] sm:$0xff] %vm6102_vm4, %v13085_v53  ;;  %v14463_v42 = vmax.f32 %v14399_v56, 0.0  ;;  %v14348_v53 = vld [vmem:[%s20673_s0 + $0x130] sm:$0xff] }
 0x638   :  { %14526 = vst.msk [vmem:[%s20680_s7 + $0xc0] sm:$0xff] %vm1644_vm11, %v14462_v51  ;;  %14529 = vst.msk [vmem:[%s20680_s7 + $0xd8] sm:$0xff] %vm1644_vm11, %v14465_v3  ;;  %v11295_v13 = vpop.permute.xlu1 %11294 }
 0x639   :  { %14527 = vst.msk [vmem:[%s20680_s7 + $0xc8] sm:$0xff] %vm1644_vm11, %v14463_v42  ;;  %v13661_v61 = vpop.permute.xlu0 %13660 }
 0x63a   :  { %11359 = vst.msk [vmem:[#allocation3 + $0xf8] sm:$0xff] %vm20754_vm5, %v11295_v13 }
 0x63b   :  { %13726 = vst.msk [vmem:[#allocation3 + $0xf0] sm:$0xff] %vm6679_vm15, %v13661_v61  ;;  %v14346_v61 = vld [vmem:[%s20673_s0 + $0x120] sm:$0xff] }
 0x63c   :  { %v11871_v55 = vpop.permute.xlu1 %11870 }
 0x63d   :  { %11935 = vst.msk [vmem:[#allocation3 + $0xf8] sm:$0xff] %vm4883_vm1, %v11871_v55 }
 0x640   :  { %v12223_v58 = vpop.permute.xlu1 %12222 }
 0x641   :  { %12287 = vst.msk [vmem:[#allocation3 + $0xf8] sm:$0xff] %vm5237_vm2, %v12223_v58 }
 0x642   :  { %v13758_v7 = vld [vmem:[#allocation3 + $0xf0] sm:$0xff] }
 0x643   :  { %16066 = vmatprep.mubr.msk.bf16.mxu1 %vm6764_vm14, %v13758_v7 }
 0x644   :  { %v13087_v23 = vpop.permute.xlu1 %13086 }
 0x645   :  { %13151 = vst.msk [vmem:[#allocation3 + $0xf8] sm:$0xff] %vm6102_vm4, %v13087_v23  ;;  %v16036_v59 = vpop.f32.mrb[28].mxu1  ;;  %v14349_v23 = vld [vmem:[%s20673_s0 + $0x138] sm:$0xff] }
 0x646   :  { %v14205_v46 = vmul.f32 %v20340_v52, %v16036_v59  ;;  %v14025_v4 = vpop.f32.mrb[29].mxu1 }
 0x647   :  { %v14203_v9 = vmul.f32 %v20340_v52, %v14025_v4  ;;  %v16037_v12 = vpop.f32.mrb[30].mxu1 }
 0x648   :  { %v14276_v57 = vadd.f32 %v20350_v27, %v14205_v46  ;;  %v14206_v17 = vmul.f32 %v20340_v52, %v16037_v12  ;;  %v14028_v16 = vpop.f32.mrb[31].mxu1  ;;  %v13663_v50 = vpop.permute.xlu1 %13662 }
 0x649   :  { %v14274_v60 = vadd.f32 %v20350_v27, %v14203_v9  ;;  %v14204_v49 = vmul.f32 %v20340_v52, %v14028_v16  ;;  %13727 = vst.msk [vmem:[#allocation3 + $0xf8] sm:$0xff] %vm6679_vm15, %v13663_v50 }
 0x64a   :  { %v14404_v1 = vadd.f32 %v14340_v35, %v14276_v57  ;;  %v14277_v30 = vadd.f32 %v20350_v27, %v14206_v17  ;;  %v14347_v35 = vld [vmem:[%s20673_s0 + $0x128] sm:$0xff] }
 0x64b   :  { %v14402_v54 = vadd.f32 %v14338_v62, %v14274_v60  ;;  %v14275_v5 = vadd.f32 %v20350_v27, %v14204_v49 }
 0x64c   :  { %v14468_v15 = vmax.f32 %v14404_v1, 0.0  ;;  %v14405_v11 = vadd.f32 %v14341_v37, %v14277_v30  ;;  %v14352_v30 = vld [vmem:[%s20673_s0 + $0x150] sm:$0xff] }
 0x64d   :  { %v14466_v38 = vmax.f32 %v14402_v54, 0.0  ;;  %v14403_v21 = vadd.f32 %v14339_v34, %v14275_v5 }
 0x64e   :  { %14532 = vst.msk [vmem:[%s20680_s7 + $0xf0] sm:$0xff] %vm1644_vm11, %v14468_v15  ;;  %v14469_v20 = vmax.f32 %v14405_v11, 0.0  ;;  %v14350_v15 = vld [vmem:[%s20673_s0 + $0x140] sm:$0xff] }
 0x64f   :  { %14530 = vst.msk [vmem:[%s20680_s7 + $0xe0] sm:$0xff] %vm1644_vm11, %v14466_v38  ;;  %v14467_v22 = vmax.f32 %v14403_v21, 0.0 }
 0x650   :  { %14533 = vst.msk [vmem:[%s20680_s7 + $0xf8] sm:$0xff] %vm1644_vm11, %v14469_v20  ;;  %v13759_v24 = vld [vmem:[#allocation3 + $0xf8] sm:$0xff]  ;;  %v14353_v20 = vld [vmem:[%s20673_s0 + $0x158] sm:$0xff] }
 0x651   :  { %14531 = vst.msk [vmem:[%s20680_s7 + $0xe8] sm:$0xff] %vm1644_vm11, %v14467_v22  ;;  %16067 = vmatmul.mubr.msk.bf16.gmra.mrb[60].mxu1 %vm6764_vm14, %v13759_v24 }
 0x660   :  { %v16040_v29 = vpop.f32.mrb[32].mxu1 }
 0x661   :  { %v14209_v10 = vmul.f32 %v20340_v52, %v16040_v29  ;;  %v14041_v14 = vpop.f32.mrb[33].mxu1 }
 0x662   :  { %v14207_v63 = vmul.f32 %v20340_v52, %v14041_v14  ;;  %v16041_v26 = vpop.f32.mrb[34].mxu1 }
 0x663   :  { %v14280_v8 = vadd.f32 %v20350_v27, %v14209_v10  ;;  %v14210_v45 = vmul.f32 %v20340_v52, %v16041_v26  ;;  %v14044_v33 = vpop.f32.mrb[35].mxu1  ;;  %v14351_v10 = vld [vmem:[%s20673_s0 + $0x148] sm:$0xff] }
 0x664   :  { %v14278_v19 = vadd.f32 %v20350_v27, %v14207_v63  ;;  %v14208_v0 = vmul.f32 %v20340_v52, %v14044_v33 }
 0x665   :  { %v14408_v36 = vadd.f32 %v14344_v43, %v14280_v8  ;;  %v14281_v44 = vadd.f32 %v20350_v27, %v14210_v45 }
 0x666   :  { %v14406_v32 = vadd.f32 %v14342_v31, %v14278_v19  ;;  %v14279_v6 = vadd.f32 %v20350_v27, %v14208_v0 }
 0x667   :  { %v14472_v18 = vmax.f32 %v14408_v36, 0.0  ;;  %v14409_v47 = vadd.f32 %v14345_v41, %v14281_v44  ;;  %v14356_v36 = vld [vmem:[%s20673_s0 + $0x170] sm:$0xff] }
 0x668   :  { %v14470_v28 = vmax.f32 %v14406_v32, 0.0  ;;  %v14407_v25 = vadd.f32 %v14343_v2, %v14279_v6  ;;  %v14354_v6 = vld [vmem:[%s20673_s0 + $0x160] sm:$0xff] }
 0x669   :  { %14536 = vst.msk [vmem:[%s20680_s7 + $0x110] sm:$0xff] %vm1644_vm11, %v14472_v18  ;;  %v14473_v39 = vmax.f32 %v14409_v47, 0.0 }
 0x66a   :  { %14534 = vst.msk [vmem:[%s20680_s7 + $0x100] sm:$0xff] %vm1644_vm11, %v14470_v28  ;;  %v14471_v40 = vmax.f32 %v14407_v25, 0.0  ;;  %v14357_v25 = vld [vmem:[%s20673_s0 + $0x178] sm:$0xff] }
 0x66b   :  { %14537 = vst.msk [vmem:[%s20680_s7 + $0x118] sm:$0xff] %vm1644_vm11, %v14473_v39 }
 0x66c   :  { %14535 = vst.msk [vmem:[%s20680_s7 + $0x108] sm:$0xff] %vm1644_vm11, %v14471_v40 }
 0x67c   :  { %v16044_v48 = vpop.f32.mrb[36].mxu1 }
 0x67d   :  { %v14213_v51 = vmul.f32 %v20340_v52, %v16044_v48  ;;  %v14057_v56 = vpop.f32.mrb[37].mxu1 }
 0x67e   :  { %v14211_v3 = vmul.f32 %v20340_v52, %v14057_v56  ;;  %v16045_v42 = vpop.f32.mrb[38].mxu1 }
 0x67f   :  { %v14284_v13 = vadd.f32 %v20350_v27, %v14213_v51  ;;  %v14214_v55 = vmul.f32 %v20340_v52, %v16045_v42  ;;  %v14060_v58 = vpop.f32.mrb[39].mxu1  ;;  %v14355_v51 = vld [vmem:[%s20673_s0 + $0x168] sm:$0xff] }
 0x680   :  { %v14282_v7 = vadd.f32 %v20350_v27, %v14211_v3  ;;  %v14212_v59 = vmul.f32 %v20340_v52, %v14060_v58 }
 0x681   :  { %v14412_v46 = vadd.f32 %v14348_v53, %v14284_v13  ;;  %v14285_v4 = vadd.f32 %v20350_v27, %v14214_v55 }
 0x682   :  { %v14410_v9 = vadd.f32 %v14346_v61, %v14282_v7  ;;  %v14283_v12 = vadd.f32 %v20350_v27, %v14212_v59 }
 0x683   :  { %v14476_v57 = vmax.f32 %v14412_v46, 0.0  ;;  %v14413_v62 = vadd.f32 %v14349_v23, %v14285_v4  ;;  %v14360_v46 = vld [vmem:[%s20673_s0 + $0x190] sm:$0xff] }
 0x684   :  { %v14474_v17 = vmax.f32 %v14410_v9, 0.0  ;;  %v14411_v16 = vadd.f32 %v14347_v35, %v14283_v12  ;;  %v14358_v12 = vld [vmem:[%s20673_s0 + $0x180] sm:$0xff] }
 0x685   :  { %14540 = vst.msk [vmem:[%s20680_s7 + $0x130] sm:$0xff] %vm1644_vm11, %v14476_v57  ;;  %v14477_v50 = vmax.f32 %v14413_v62, 0.0 }
 0x686   :  { %14538 = vst.msk [vmem:[%s20680_s7 + $0x120] sm:$0xff] %vm1644_vm11, %v14474_v17  ;;  %v14475_v60 = vmax.f32 %v14411_v16, 0.0  ;;  %v14361_v16 = vld [vmem:[%s20673_s0 + $0x198] sm:$0xff] }
 0x687   :  { %14541 = vst.msk [vmem:[%s20680_s7 + $0x138] sm:$0xff] %vm1644_vm11, %v14477_v50 }
 0x688   :  { %14539 = vst.msk [vmem:[%s20680_s7 + $0x128] sm:$0xff] %vm1644_vm11, %v14475_v60 }
 0x698   :  { %v16048_v37 = vpop.f32.mrb[40].mxu1 }
 0x699   :  { %v14217_v49 = vmul.f32 %v20340_v52, %v16048_v37  ;;  %v14073_v1 = vpop.f32.mrb[41].mxu1 }
 0x69a   :  { %v14215_v34 = vmul.f32 %v20340_v52, %v14073_v1  ;;  %v16049_v54 = vpop.f32.mrb[42].mxu1 }
 0x69b   :  { %v14288_v5 = vadd.f32 %v20350_v27, %v14217_v49  ;;  %v14218_v11 = vmul.f32 %v20340_v52, %v16049_v54  ;;  %v14076_v38 = vpop.f32.mrb[43].mxu1  ;;  %v14359_v49 = vld [vmem:[%s20673_s0 + $0x188] sm:$0xff] }
 0x69c   :  { %v14286_v21 = vadd.f32 %v20350_v27, %v14215_v34  ;;  %v14216_v22 = vmul.f32 %v20340_v52, %v14076_v38 }
 0x69d   :  { %v14416_v24 = vadd.f32 %v14352_v30, %v14288_v5  ;;  %v14289_v29 = vadd.f32 %v20350_v27, %v14218_v11 }
 0x69e   :  { %v14414_v14 = vadd.f32 %v14350_v15, %v14286_v21  ;;  %v14287_v43 = vadd.f32 %v20350_v27, %v14216_v22 }
 0x69f   :  { %v14480_v63 = vmax.f32 %v14416_v24, 0.0  ;;  %v14417_v26 = vadd.f32 %v14353_v20, %v14289_v29  ;;  %v14364_v24 = vld [vmem:[%s20673_s0 + $0x1b0] sm:$0xff] }
 0x6a0   :  { %v14478_v8 = vmax.f32 %v14414_v14, 0.0  ;;  %v14415_v31 = vadd.f32 %v14351_v10, %v14287_v43  ;;  %v14362_v43 = vld [vmem:[%s20673_s0 + $0x1a0] sm:$0xff] }
 0x6a1   :  { %14544 = vst.msk [vmem:[%s20680_s7 + $0x150] sm:$0xff] %vm1644_vm11, %v14480_v63  ;;  %v14481_v45 = vmax.f32 %v14417_v26, 0.0 }
 0x6a2   :  { %14542 = vst.msk [vmem:[%s20680_s7 + $0x140] sm:$0xff] %vm1644_vm11, %v14478_v8  ;;  %v14479_v33 = vmax.f32 %v14415_v31, 0.0  ;;  %v14365_v31 = vld [vmem:[%s20673_s0 + $0x1b8] sm:$0xff] }
 0x6a3   :  { %14545 = vst.msk [vmem:[%s20680_s7 + $0x158] sm:$0xff] %vm1644_vm11, %v14481_v45 }
 0x6a4   :  { %14543 = vst.msk [vmem:[%s20680_s7 + $0x148] sm:$0xff] %vm1644_vm11, %v14479_v33 }
 0x6b5   :  { %v16052_v19 = vpop.f32.mrb[44].mxu1 }
 0x6b6   :  { %v14221_v41 = vmul.f32 %v20340_v52, %v16052_v19  ;;  %v14089_v0 = vpop.f32.mrb[45].mxu1 }
 0x6b7   :  { %v14219_v44 = vmul.f32 %v20340_v52, %v14089_v0  ;;  %v16053_v2 = vpop.f32.mrb[46].mxu1 }
 0x6b8   :  { %v14292_v32 = vadd.f32 %v20350_v27, %v14221_v41  ;;  %v14222_v18 = vmul.f32 %v20340_v52, %v16053_v2  ;;  %v14092_v47 = vpop.f32.mrb[47].mxu1  ;;  %v14363_v41 = vld [vmem:[%s20673_s0 + $0x1a8] sm:$0xff] }
 0x6b9   :  { %v14290_v28 = vadd.f32 %v20350_v27, %v14219_v44  ;;  %v14220_v39 = vmul.f32 %v20340_v52, %v14092_v47 }
 0x6ba   :  { %v14420_v40 = vadd.f32 %v14356_v36, %v14292_v32  ;;  %v14293_v48 = vadd.f32 %v20350_v27, %v14222_v18 }
 0x6bb   :  { %v14418_v56 = vadd.f32 %v14354_v6, %v14290_v28  ;;  %v14291_v53 = vadd.f32 %v20350_v27, %v14220_v39 }
 0x6bc   :  { %v14484_v3 = vmax.f32 %v14420_v40, 0.0  ;;  %v14421_v42 = vadd.f32 %v14357_v25, %v14293_v48  ;;  %v14368_v40 = vld [vmem:[%s20673_s0 + $0x1d0] sm:$0xff] }
 0x6bd   :  { %v14482_v13 = vmax.f32 %v14418_v56, 0.0  ;;  %v14419_v61 = vadd.f32 %v14355_v51, %v14291_v53  ;;  %v14366_v53 = vld [vmem:[%s20673_s0 + $0x1c0] sm:$0xff] }
 0x6be   :  { %14548 = vst.msk [vmem:[%s20680_s7 + $0x170] sm:$0xff] %vm1644_vm11, %v14484_v3  ;;  %v14485_v55 = vmax.f32 %v14421_v42, 0.0 }
 0x6bf   :  { %14546 = vst.msk [vmem:[%s20680_s7 + $0x160] sm:$0xff] %vm1644_vm11, %v14482_v13  ;;  %v14483_v58 = vmax.f32 %v14419_v61, 0.0  ;;  %v14369_v61 = vld [vmem:[%s20673_s0 + $0x1d8] sm:$0xff] }
 0x6c0   :  { %14549 = vst.msk [vmem:[%s20680_s7 + $0x178] sm:$0xff] %vm1644_vm11, %v14485_v55 }
 0x6c1   :  { %14547 = vst.msk [vmem:[%s20680_s7 + $0x168] sm:$0xff] %vm1644_vm11, %v14483_v58 }
 0x6d0   :  { %v16056_v7 = vpop.f32.mrb[48].mxu1 }
 0x6d1   :  { %v14225_v23 = vmul.f32 %v20340_v52, %v16056_v7  ;;  %v14105_v59 = vpop.f32.mrb[49].mxu1 }
 0x6d2   :  { %v14223_v4 = vmul.f32 %v20340_v52, %v14105_v59  ;;  %v16057_v35 = vpop.f32.mrb[50].mxu1 }
 0x6d3   :  { %v14296_v9 = vadd.f32 %v20350_v27, %v14225_v23  ;;  %v14226_v57 = vmul.f32 %v20340_v52, %v16057_v35  ;;  %v14108_v62 = vpop.f32.mrb[51].mxu1  ;;  %v14367_v23 = vld [vmem:[%s20673_s0 + $0x1c8] sm:$0xff] }
 0x6d4   :  { %v14294_v17 = vadd.f32 %v20350_v27, %v14223_v4  ;;  %v14224_v50 = vmul.f32 %v20340_v52, %v14108_v62 }
 0x6d5   :  { %v14424_v60 = vadd.f32 %v14360_v46, %v14296_v9  ;;  %v14297_v37 = vadd.f32 %v20350_v27, %v14226_v57 }
 0x6d6   :  { %v14422_v1 = vadd.f32 %v14358_v12, %v14294_v17  ;;  %v14295_v30 = vadd.f32 %v20350_v27, %v14224_v50 }
 0x6d7   :  { %v14488_v34 = vmax.f32 %v14424_v60, 0.0  ;;  %v14425_v54 = vadd.f32 %v14361_v16, %v14297_v37  ;;  %v14372_v60 = vld [vmem:[%s20673_s0 + $0x1f0] sm:$0xff] }
 0x6d8   :  { %v14486_v5 = vmax.f32 %v14422_v1, 0.0  ;;  %v14423_v15 = vadd.f32 %v14359_v49, %v14295_v30  ;;  %v14370_v30 = vld [vmem:[%s20673_s0 + $0x1e0] sm:$0xff] }
 0x6d9   :  { %14552 = vst.msk [vmem:[%s20680_s7 + $0x190] sm:$0xff] %vm1644_vm11, %v14488_v34  ;;  %v14489_v11 = vmax.f32 %v14425_v54, 0.0 }
 0x6da   :  { %14550 = vst.msk [vmem:[%s20680_s7 + $0x180] sm:$0xff] %vm1644_vm11, %v14486_v5  ;;  %v14487_v38 = vmax.f32 %v14423_v15, 0.0  ;;  %v14373_v15 = vld [vmem:[%s20673_s0 + $0x1f8] sm:$0xff] }
 0x6db   :  { %14553 = vst.msk [vmem:[%s20680_s7 + $0x198] sm:$0xff] %vm1644_vm11, %v14489_v11 }
 0x6dc   :  { %14551 = vst.msk [vmem:[%s20680_s7 + $0x188] sm:$0xff] %vm1644_vm11, %v14487_v38 }
 0x6ec   :  { %v16060_v21 = vpop.f32.mrb[52].mxu1 }
 0x6ed   :  { %v14229_v20 = vmul.f32 %v20340_v52, %v16060_v21  ;;  %v14121_v22 = vpop.f32.mrb[53].mxu1 }
 0x6ee   :  { %v14227_v29 = vmul.f32 %v20340_v52, %v14121_v22  ;;  %v16061_v10 = vpop.f32.mrb[54].mxu1 }
 0x6ef   :  { %v14300_v14 = vadd.f32 %v20350_v27, %v14229_v20  ;;  %v14230_v63 = vmul.f32 %v20340_v52, %v16061_v10  ;;  %v14124_v26 = vpop.f32.mrb[55].mxu1  ;;  %v14371_v20 = vld [vmem:[%s20673_s0 + $0x1e8] sm:$0xff] }
 0x6f0   :  { %v14298_v8 = vadd.f32 %v20350_v27, %v14227_v29  ;;  %v14228_v45 = vmul.f32 %v20340_v52, %v14124_v26 }
 0x6f1   :  { %v14428_v33 = vadd.f32 %v14364_v24, %v14300_v14  ;;  %v14301_v19 = vadd.f32 %v20350_v27, %v14230_v63 }
 0x6f2   :  { %v14426_v0 = vadd.f32 %v14362_v43, %v14298_v8  ;;  %v14299_v36 = vadd.f32 %v20350_v27, %v14228_v45 }
 0x6f3   :  { %v14492_v44 = vmax.f32 %v14428_v33, 0.0  ;;  %v14429_v2 = vadd.f32 %v14365_v31, %v14301_v19 }
 0x6f4   :  { %v14490_v32 = vmax.f32 %v14426_v0, 0.0  ;;  %v14427_v6 = vadd.f32 %v14363_v41, %v14299_v36 }
 0x6f5   :  { %14556 = vst.msk [vmem:[%s20680_s7 + $0x1b0] sm:$0xff] %vm1644_vm11, %v14492_v44  ;;  %v14493_v18 = vmax.f32 %v14429_v2, 0.0 }
 0x6f6   :  { %14554 = vst.msk [vmem:[%s20680_s7 + $0x1a0] sm:$0xff] %vm1644_vm11, %v14490_v32  ;;  %v14491_v47 = vmax.f32 %v14427_v6, 0.0 }
 0x6f7   :  { %14557 = vst.msk [vmem:[%s20680_s7 + $0x1b8] sm:$0xff] %vm1644_vm11, %v14493_v18 }
 0x6f8   :  { %14555 = vst.msk [vmem:[%s20680_s7 + $0x1a8] sm:$0xff] %vm1644_vm11, %v14491_v47 }
 0x708   :  { %v16064_v28 = vpop.f32.mrb[56].mxu1 }
 0x709   :  { %v14233_v25 = vmul.f32 %v20340_v52, %v16064_v28  ;;  %v14137_v39 = vpop.f32.mrb[57].mxu1 }
 0x70a   :  { %v14231_v48 = vmul.f32 %v20340_v52, %v14137_v39  ;;  %v16065_v51 = vpop.f32.mrb[58].mxu1 }
 0x70b   :  { %v14304_v56 = vadd.f32 %v20350_v27, %v14233_v25  ;;  %v14234_v3 = vmul.f32 %v20340_v52, %v16065_v51  ;;  %v14140_v42 = vpop.f32.mrb[59].mxu1 }
 0x70c   :  { %v14302_v13 = vadd.f32 %v20350_v27, %v14231_v48  ;;  %v14232_v55 = vmul.f32 %v20340_v52, %v14140_v42 }
 0x70d   :  { %v14432_v58 = vadd.f32 %v14368_v40, %v14304_v56  ;;  %v14305_v7 = vadd.f32 %v20350_v27, %v14234_v3 }
 0x70e   :  { %v14430_v59 = vadd.f32 %v14366_v53, %v14302_v13  ;;  %v14303_v46 = vadd.f32 %v20350_v27, %v14232_v55 }
 0x70f   :  { %v14496_v4 = vmax.f32 %v14432_v58, 0.0  ;;  %v14433_v35 = vadd.f32 %v14369_v61, %v14305_v7 }
 0x710   :  { %v14494_v9 = vmax.f32 %v14430_v59, 0.0  ;;  %v14431_v12 = vadd.f32 %v14367_v23, %v14303_v46 }
 0x711   :  { %14560 = vst.msk [vmem:[%s20680_s7 + $0x1d0] sm:$0xff] %vm1644_vm11, %v14496_v4  ;;  %v14497_v57 = vmax.f32 %v14433_v35, 0.0 }
 0x712   :  { %14558 = vst.msk [vmem:[%s20680_s7 + $0x1c0] sm:$0xff] %vm1644_vm11, %v14494_v9  ;;  %v14495_v62 = vmax.f32 %v14431_v12, 0.0 }
 0x713   :  { %14561 = vst.msk [vmem:[%s20680_s7 + $0x1d8] sm:$0xff] %vm1644_vm11, %v14497_v57 }
 0x714   :  { %14559 = vst.msk [vmem:[%s20680_s7 + $0x1c8] sm:$0xff] %vm1644_vm11, %v14495_v62 }
 0x724   :  { %v16068_v17 = vpop.f32.mrb[60].mxu1 }
 0x725   :  { %v14237_v16 = vmul.f32 %v20340_v52, %v16068_v17  ;;  %v14153_v50 = vpop.f32.mrb[61].mxu1 }
 0x726   :  { %v14235_v37 = vmul.f32 %v20340_v52, %v14153_v50  ;;  %v16069_v49 = vpop.f32.mrb[62].mxu1 }
 0x727   :  { %v14308_v1 = vadd.f32 %v20350_v27, %v14237_v16  ;;  %v14238_v34 = vmul.f32 %v20340_v52, %v16069_v49  ;;  %v14156_v54 = vpop.f32.mrb[63].mxu1 }
 0x728   :  { %v14306_v5 = vadd.f32 %v20350_v27, %v14235_v37  ;;  %v14236_v11 = vmul.f32 %v20340_v52, %v14156_v54 }
 0x729   :  { %v14436_v38 = vadd.f32 %v14372_v60, %v14308_v1  ;;  %v14309_v21 = vadd.f32 %v20350_v27, %v14238_v34 }
 0x72a   :  { %v14434_v22 = vadd.f32 %v14370_v30, %v14306_v5  ;;  %v14307_v24 = vadd.f32 %v20350_v27, %v14236_v11 }
 0x72b   :  { %v14500_v29 = vmax.f32 %v14436_v38, 0.0  ;;  %v14437_v10 = vadd.f32 %v14373_v15, %v14309_v21 }
 0x72c   :  { %v14498_v14 = vmax.f32 %v14434_v22, 0.0  ;;  %v14435_v43 = vadd.f32 %v14371_v20, %v14307_v24 }
 0x72d   :  { %14564 = vst.msk [vmem:[%s20680_s7 + $0x1f0] sm:$0xff] %vm1644_vm11, %v14500_v29  ;;  %v14501_v52 = vmax.f32 %v14437_v10, 0.0 }
 0x72e   :  { %14562 = vst.msk [vmem:[%s20680_s7 + $0x1e0] sm:$0xff] %vm1644_vm11, %v14498_v14  ;;  %v14499_v63 = vmax.f32 %v14435_v43, 0.0 }
 0x72f   :  { %14565 = vst.msk [vmem:[%s20680_s7 + $0x1f8] sm:$0xff] %vm1644_vm11, %v14501_v52 }
 0x730   :  { %14563 = vst.msk [vmem:[%s20680_s7 + $0x1e8] sm:$0xff] %vm1644_vm11, %v14499_v63 }

</bundles_post_ra>
